<compile_context>
chip_gen: v7x
topology: tpu7x:2x2x1
jax: 0.10.0
libtpu: 0.0.40
codegen_flags: <defaults>
</compile_context>

<pallas_src>
import math

import jax
import jax.numpy as jnp
from jax.experimental import pallas as pl
from jax.experimental.pallas import tpu as pltpu

SCOPE = 512.0
BN_EPS = 1e-5
C_IN, C_MID, C_HID, N_HEAD = 1024, 256, 32, 6


def _make_kernel(H, W, BB):
    Hp = H + 2
    BBW = BB * W          # batch-interleaved row width (16 for the demo = bf16 sublane tile)
    M = H * BBW           # matmul M dimension per grid step

    def kernel(xp_ref, w1_ref, b1_ref, w2_ref, b2_ref, w3_ref, b3_ref,
               wh_ref, bh_ref, osc_ref, osh_ref, out_ref, shift_ref):
        # ---- hoist the dx (sublane) shift: 3*BB small copies instead of 9 per-tap relayouts
        for dx in range(3):
            for b in range(BB):
                shift_ref[dx, :, b * W:(b + 1) * W, :] = xp_ref[b, :, dx:dx + W, :]

        # ---- 3x3 conv (1024 -> 256): 9 bf16 MXU matmuls, f32 accumulation
        acc = jnp.zeros((M, C_MID), jnp.float32)
        for k in range(9):
            dy, dx = k // 3, k % 3
            # dy slice is on a leading axis (free); BBW is tile-aligned so the
            # reshape to the (M, C_IN) matmul operand needs no relayout.
            patch = shift_ref[dx, dy:dy + H].reshape(M, C_IN)
            acc = acc + jnp.dot(patch, w1_ref[k],
                                preferred_element_type=jnp.float32)
        h1 = jnp.maximum(acc + b1_ref[...], 0.0).astype(jnp.bfloat16)   # BN folded into w1/b1

        # ---- 1x1 convs (256 -> 32 -> 32), BN folded, ReLU
        h2 = jnp.maximum(
            jnp.dot(h1, w2_ref[...], preferred_element_type=jnp.float32) + b2_ref[...],
            0.0).astype(jnp.bfloat16)
        h3 = jnp.maximum(
            jnp.dot(h2, w3_ref[...], preferred_element_type=jnp.float32) + b3_ref[...],
            0.0).astype(jnp.bfloat16)

        # ---- merged heads [score | location(4) | angle]: one matmul, one sigmoid, one store
        head = jax.nn.sigmoid(
            jnp.dot(h3, wh_ref[...], preferred_element_type=jnp.float32) + bh_ref[...])
        out_ref[0] = head * osc_ref[...] + osh_ref[...]

    return kernel


def init_params(key):
    """Deterministic synthetic init matching the PyTorch module's shapes/init."""
    ks = jax.random.split(key, 12)

    def conv_w(k, cout, cin, kh, kw):
        n = kh * kw * cout
        return jax.random.normal(k, (cout, cin, kh, kw), jnp.float32) * math.sqrt(2.0 / n)

    def conv_b(k, cout, cin, kh, kw):
        bound = 1.0 / math.sqrt(cin * kh * kw)
        return jax.random.uniform(k, (cout,), jnp.float32, -bound, bound)

    p = {}
    p["w1"], p["b1"] = conv_w(ks[0], 256, 1024, 3, 3), conv_b(ks[1], 256, 1024, 3, 3)
    p["w2"], p["b2"] = conv_w(ks[2], 32, 256, 1, 1), conv_b(ks[3], 32, 256, 1, 1)
    p["w3"], p["b3"] = conv_w(ks[4], 32, 32, 1, 1), conv_b(ks[5], 32, 32, 1, 1)
    p["ws"], p["bs"] = conv_w(ks[6], 1, 32, 1, 1), conv_b(ks[7], 1, 32, 1, 1)
    p["wl"], p["bl"] = conv_w(ks[8], 4, 32, 1, 1), conv_b(ks[9], 4, 32, 1, 1)
    p["wa"], p["ba"] = conv_w(ks[10], 1, 32, 1, 1), conv_b(ks[11], 1, 32, 1, 1)
    return p


def bbox_output_layer(x_nchw, p):
    N, C, H, W = x_nchw.shape
    assert C == C_IN
    # Batch folding: BB images per grid step -> matmul M = BB*H*W.  BB=2 keeps
    # BB*W a multiple of the bf16 sublane tile (16) for the demo shapes and still
    # leaves >= 1 grid step per TensorCore when N >= 4 (v7x megacore).
    BB = 2 if N % 2 == 0 else 1
    G = N // BB
    Hp = H + 2
    Wp = -(-(W + 2) // 16) * 16          # pad the padded width up to the bf16 sublane tile
    BBW = BB * W
    M = H * BBW
    bn_scale = 1.0 / math.sqrt(1.0 + BN_EPS)   # gamma=1, beta=0, mean=0, var=1

    # ---- parameter packing: fold BN into weights/biases, cast matmul operands to bf16
    w1k = (jnp.transpose(p["w1"], (2, 3, 1, 0)).reshape(9, C_IN, C_MID)
           * bn_scale).astype(jnp.bfloat16)                                   # (9,1024,256)
    b1 = (p["b1"] * bn_scale).reshape(1, C_MID)
    w2k = (p["w2"][:, :, 0, 0].T * bn_scale).astype(jnp.bfloat16)             # (256,32)
    b2 = (p["b2"] * bn_scale).reshape(1, C_HID)
    w3k = (p["w3"][:, :, 0, 0].T * bn_scale).astype(jnp.bfloat16)             # (32,32)
    b3 = (p["b3"] * bn_scale).reshape(1, C_HID)
    wh = jnp.concatenate([p["ws"], p["wl"], p["wa"]],
                         axis=0)[:, :, 0, 0].T.astype(jnp.bfloat16)           # (32,6)
    bh = jnp.concatenate([p["bs"], p["bl"], p["ba"]]).reshape(1, N_HEAD)
    # merged output scale/shift: [score, 4x sigmoid*SCOPE, (sigmoid-0.5)*pi]
    osc = jnp.array([[1.0, SCOPE, SCOPE, SCOPE, SCOPE, math.pi]], jnp.float32)
    osh = jnp.array([[0.0, 0.0, 0.0, 0.0, 0.0, -math.pi / 2.0]], jnp.float32)

    # ---- input layout: NHWC bf16, spatially padded for the 3x3 "same" conv
    x_nhwc = jnp.transpose(x_nchw, (0, 2, 3, 1)).astype(jnp.bfloat16)
    xp = jnp.pad(x_nhwc, ((0, 0), (1, 1), (1, Wp - W - 1), (0, 0)))

    kernel = _make_kernel(H, W, BB)

    grid_spec = pltpu.PrefetchScalarGridSpec(
        num_scalar_prefetch=0,
        grid=(G,),
        in_specs=[
            pl.BlockSpec((BB, Hp, Wp, C_IN), lambda g: (g, 0, 0, 0)),
            # grid-invariant weight/bias blocks: fetched once, resident in VMEM
            pl.BlockSpec((9, C_IN, C_MID), lambda g: (0, 0, 0)),
            pl.BlockSpec((1, C_MID), lambda g: (0, 0)),
            pl.BlockSpec((C_MID, C_HID), lambda g: (0, 0)),
            pl.BlockSpec((1, C_HID), lambda g: (0, 0)),
            pl.BlockSpec((C_HID, C_HID), lambda g: (0, 0)),
            pl.BlockSpec((1, C_HID), lambda g: (0, 0)),
            pl.BlockSpec((C_HID, N_HEAD), lambda g: (0, 0)),
            pl.BlockSpec((1, N_HEAD), lambda g: (0, 0)),
            pl.BlockSpec((1, N_HEAD), lambda g: (0, 0)),
            pl.BlockSpec((1, N_HEAD), lambda g: (0, 0)),
        ],
        out_specs=pl.BlockSpec((1, M, N_HEAD), lambda g: (g, 0, 0)),
        scratch_shapes=[pltpu.VMEM((3, Hp, BBW, C_IN), jnp.bfloat16)],
    )

    out = pl.pallas_call(
        kernel,
        out_shape=jax.ShapeDtypeStruct((G, M, N_HEAD), jnp.float32),
        grid_spec=grid_spec,
        compiler_params=pltpu.CompilerParams(
            dimension_semantics=("parallel",),
            # ~13 MiB actually used (bf16 w1 double-buffered ~9.4 MiB + input blocks
            # + 1 MiB shift scratch); 32 MiB is safe on v5e/v6e (128 MiB) and v7x (64 MiB).
            vmem_limit_bytes=32 * 1024 * 1024),
    )(xp, w1k, b1, w2k, b2, w3k, b3, wh, bh, osc, osh)

    # rows inside a block are ordered (h, local_batch, w) -> back to NCHW
    out6 = out.reshape(G, H, BB, W, N_HEAD)
    out6 = jnp.transpose(out6, (0, 2, 4, 1, 3)).reshape(N, N_HEAD, H, W)
    return out6[:, 0:1], out6[:, 1:6]       # scoring (N,1,H,W), geometry (N,5,H,W)


def reference(x, p):
    """Pure-JAX f32 reference with the PyTorch module's semantics."""
    def conv(x, w, b, pad):
        y = jax.lax.conv_general_dilated(
            x, w, window_strides=(1, 1), padding=[(pad, pad), (pad, pad)],
            dimension_numbers=("NCHW", "OIHW", "NCHW"),
            precision=jax.lax.Precision.HIGHEST)
        return y + b[None, :, None, None]

    bn = lambda t: t / math.sqrt(1.0 + BN_EPS)
    h = jax.nn.relu(bn(conv(x, p["w1"], p["b1"], 1)))
    h = jax.nn.relu(bn(conv(h, p["w2"], p["b2"], 0)))
    h = jax.nn.relu(bn(conv(h, p["w3"], p["b3"], 0)))
    scoring = jax.nn.sigmoid(conv(h, p["ws"], p["bs"], 0))
    loc = jax.nn.sigmoid(conv(h, p["wl"], p["bl"], 0)) * SCOPE
    ang = (jax.nn.sigmoid(conv(h, p["wa"], p["ba"], 0)) - 0.5) * math.pi
    return scoring, jnp.concatenate([loc, ang], axis=1)


if __name__ == "__main__":
    key = jax.random.PRNGKey(0)
    pkey, xkey = jax.random.split(key)
    params = init_params(pkey)

    # small but module-consistent shapes: batch=2, in_channels=1024 (required), 8x8 spatial
    x = jax.random.normal(xkey, (2, 1024, 8, 8), jnp.float32)

    scoring, geometry = jax.jit(bbox_output_layer)(x, params)
    jax.block_until_ready((scoring, geometry))

    assert scoring.shape == (2, 1, 8, 8)
    assert geometry.shape == (2, 5, 8, 8)

    # ---- validate against the f32 reference.
    # The kernel's matmuls run in bf16 with f32 accumulation.  The heads are
    # saturating sigmoids scaled by 512 / pi, so a ~0.5% relative error in the
    # pre-activations is invisible at saturated pixels but can become a visible
    # absolute error at the few non-saturated ones.  So: tight MEAN check on the
    # sigmoid-scale (normalized) outputs plus a loose MAX check — structural
    # bugs move the mean by >> 2e-2, bf16 rounding does not.
    s_ref, g_ref = reference(x, params)
    geo_scale = jnp.array([SCOPE, SCOPE, SCOPE, SCOPE, math.pi],
                          jnp.float32).reshape(1, 5, 1, 1)
    s_err = jnp.abs(scoring - s_ref)                 # scoring is already in [0, 1]
    g_err = jnp.abs(geometry - g_ref) / geo_scale    # geometry normalized to [0, 1]-ish
    assert float(jnp.mean(s_err)) < 2e-2, float(jnp.mean(s_err))
    assert float(jnp.max(s_err)) < 0.35, float(jnp.max(s_err))
    assert float(jnp.mean(g_err)) < 2e-2, float(jnp.mean(g_err))
    assert float(jnp.max(g_err)) < 0.35, float(jnp.max(g_err))

    print("KERNEL_OK")
</pallas_src>

<mosaic_0001>
module attributes {stable_mosaic.version = 11 : i64} {
  func.func @kernel(%arg0: i32, %arg1: memref<2x10x16x1024xbf16, #tpu.memory_space<vmem>>, %arg2: memref<9x1024x256xbf16, #tpu.memory_space<vmem>>, %arg3: memref<1x256xf32, #tpu.memory_space<vmem>>, %arg4: memref<256x32xbf16, #tpu.memory_space<vmem>>, %arg5: memref<1x32xf32, #tpu.memory_space<vmem>>, %arg6: memref<32x32xbf16, #tpu.memory_space<vmem>>, %arg7: memref<1x32xf32, #tpu.memory_space<vmem>>, %arg8: memref<32x6xbf16, #tpu.memory_space<vmem>>, %arg9: memref<1x6xf32, #tpu.memory_space<vmem>>, %arg10: memref<1x6xf32, #tpu.memory_space<vmem>>, %arg11: memref<1x6xf32, #tpu.memory_space<vmem>>, %arg12: memref<1x128x6xf32, #tpu.memory_space<vmem>>, %arg13: memref<3x10x16x1024xbf16, #tpu.memory_space<vmem>>) attributes {dimension_semantics = [#tpu.dimension_semantics<parallel>], iteration_bounds = array<i64: 1>, scalar_prefetch = 0 : i64, scratch_operands = 1 : i64, tpu.core_type = #tpu.core_type<tc>, window_params = [{transform_indices = @transform_0, window_bounds = array<i64: 2, 10, 16, 1024>}, {pipeline_mode = #tpu.pipeline_mode<synchronous>, transform_indices = @transform_1, window_bounds = array<i64: 9, 1024, 256>}, {pipeline_mode = #tpu.pipeline_mode<synchronous>, transform_indices = @transform_2, window_bounds = array<i64: 1, 256>}, {pipeline_mode = #tpu.pipeline_mode<synchronous>, transform_indices = @transform_3, window_bounds = array<i64: 256, 32>}, {pipeline_mode = #tpu.pipeline_mode<synchronous>, transform_indices = @transform_4, window_bounds = array<i64: 1, 32>}, {pipeline_mode = #tpu.pipeline_mode<synchronous>, transform_indices = @transform_5, window_bounds = array<i64: 32, 32>}, {pipeline_mode = #tpu.pipeline_mode<synchronous>, transform_indices = @transform_6, window_bounds = array<i64: 1, 32>}, {pipeline_mode = #tpu.pipeline_mode<synchronous>, transform_indices = @transform_7, window_bounds = array<i64: 32, 6>}, {pipeline_mode = #tpu.pipeline_mode<synchronous>, transform_indices = @transform_8, window_bounds = array<i64: 1, 6>}, {pipeline_mode = #tpu.pipeline_mode<synchronous>, transform_indices = @transform_9, window_bounds = array<i64: 1, 6>}, {pipeline_mode = #tpu.pipeline_mode<synchronous>, transform_indices = @transform_10, window_bounds = array<i64: 1, 6>}, {transform_indices = @transform_11, window_bounds = array<i64: 1, 128, 6>}]} {
    %c0 = arith.constant 0 : index
    %c0_0 = arith.constant 0 : index
    %c0_1 = arith.constant 0 : index
    %c0_2 = arith.constant 0 : index
    %0 = vector.load %arg1[%c0, %c0_0, %c0_1, %c0_2] : memref<2x10x16x1024xbf16, #tpu.memory_space<vmem>>, vector<1x10x8x1024xbf16>
    %1 = vector.shape_cast %0 : vector<1x10x8x1024xbf16> to vector<10x8x1024xbf16>
    %c0_3 = arith.constant 0 : index
    %c0_4 = arith.constant 0 : index
    %c0_5 = arith.constant 0 : index
    %c0_6 = arith.constant 0 : index
    %2 = vector.load %arg13[%c0_3, %c0_4, %c0_5, %c0_6] : memref<3x10x16x1024xbf16, #tpu.memory_space<vmem>>, vector<1x10x8x1024xbf16>
    %3 = vector.shape_cast %2 : vector<1x10x8x1024xbf16> to vector<10x8x1024xbf16>
    %4 = vector.shape_cast %1 : vector<10x8x1024xbf16> to vector<1x10x8x1024xbf16>
    tpu.vector_store %arg13[%c0_3, %c0_4, %c0_5, %c0_6], %4 {strides = array<i32>} : memref<3x10x16x1024xbf16, #tpu.memory_space<vmem>>, vector<1x10x8x1024xbf16>,
    %c1 = arith.constant 1 : index
    %c0_7 = arith.constant 0 : index
    %c0_8 = arith.constant 0 : index
    %c0_9 = arith.constant 0 : index
    %5 = vector.load %arg1[%c1, %c0_7, %c0_8, %c0_9] : memref<2x10x16x1024xbf16, #tpu.memory_space<vmem>>, vector<1x10x8x1024xbf16>
    %6 = vector.shape_cast %5 : vector<1x10x8x1024xbf16> to vector<10x8x1024xbf16>
    %c0_10 = arith.constant 0 : index
    %c0_11 = arith.constant 0 : index
    %c8 = arith.constant 8 : index
    %c0_12 = arith.constant 0 : index
    %7 = vector.load %arg13[%c0_10, %c0_11, %c8, %c0_12] : memref<3x10x16x1024xbf16, #tpu.memory_space<vmem>>, vector<1x10x8x1024xbf16>
    %8 = vector.shape_cast %7 : vector<1x10x8x1024xbf16> to vector<10x8x1024xbf16>
    %9 = vector.shape_cast %6 : vector<10x8x1024xbf16> to vector<1x10x8x1024xbf16>
    tpu.vector_store %arg13[%c0_10, %c0_11, %c8, %c0_12], %9 {strides = array<i32>} : memref<3x10x16x1024xbf16, #tpu.memory_space<vmem>>, vector<1x10x8x1024xbf16>,
    %c0_13 = arith.constant 0 : index
    %c0_14 = arith.constant 0 : index
    %c1_15 = arith.constant 1 : index
    %c0_16 = arith.constant 0 : index
    %10 = vector.load %arg1[%c0_13, %c0_14, %c1_15, %c0_16] : memref<2x10x16x1024xbf16, #tpu.memory_space<vmem>>, vector<1x10x8x1024xbf16>
    %11 = vector.shape_cast %10 : vector<1x10x8x1024xbf16> to vector<10x8x1024xbf16>
    %c1_17 = arith.constant 1 : index
    %c0_18 = arith.constant 0 : index
    %c0_19 = arith.constant 0 : index
    %c0_20 = arith.constant 0 : index
    %12 = vector.load %arg13[%c1_17, %c0_18, %c0_19, %c0_20] : memref<3x10x16x1024xbf16, #tpu.memory_space<vmem>>, vector<1x10x8x1024xbf16>
    %13 = vector.shape_cast %12 : vector<1x10x8x1024xbf16> to vector<10x8x1024xbf16>
    %14 = vector.shape_cast %11 : vector<10x8x1024xbf16> to vector<1x10x8x1024xbf16>
    tpu.vector_store %arg13[%c1_17, %c0_18, %c0_19, %c0_20], %14 {strides = array<i32>} : memref<3x10x16x1024xbf16, #tpu.memory_space<vmem>>, vector<1x10x8x1024xbf16>,
    %c1_21 = arith.constant 1 : index
    %c0_22 = arith.constant 0 : index
    %c1_23 = arith.constant 1 : index
    %c0_24 = arith.constant 0 : index
    %15 = vector.load %arg1[%c1_21, %c0_22, %c1_23, %c0_24] : memref<2x10x16x1024xbf16, #tpu.memory_space<vmem>>, vector<1x10x8x1024xbf16>
    %16 = vector.shape_cast %15 : vector<1x10x8x1024xbf16> to vector<10x8x1024xbf16>
    %c1_25 = arith.constant 1 : index
    %c0_26 = arith.constant 0 : index
    %c8_27 = arith.constant 8 : index
    %c0_28 = arith.constant 0 : index
    %17 = vector.load %arg13[%c1_25, %c0_26, %c8_27, %c0_28] : memref<3x10x16x1024xbf16, #tpu.memory_space<vmem>>, vector<1x10x8x1024xbf16>
    %18 = vector.shape_cast %17 : vector<1x10x8x1024xbf16> to vector<10x8x1024xbf16>
    %19 = vector.shape_cast %16 : vector<10x8x1024xbf16> to vector<1x10x8x1024xbf16>
    tpu.vector_store %arg13[%c1_25, %c0_26, %c8_27, %c0_28], %19 {strides = array<i32>} : memref<3x10x16x1024xbf16, #tpu.memory_space<vmem>>, vector<1x10x8x1024xbf16>,
    %c0_29 = arith.constant 0 : index
    %c0_30 = arith.constant 0 : index
    %c2 = arith.constant 2 : index
    %c0_31 = arith.constant 0 : index
    %20 = vector.load %arg1[%c0_29, %c0_30, %c2, %c0_31] : memref<2x10x16x1024xbf16, #tpu.memory_space<vmem>>, vector<1x10x8x1024xbf16>
    %21 = vector.shape_cast %20 : vector<1x10x8x1024xbf16> to vector<10x8x1024xbf16>
    %c2_32 = arith.constant 2 : index
    %c0_33 = arith.constant 0 : index
    %c0_34 = arith.constant 0 : index
    %c0_35 = arith.constant 0 : index
    %22 = vector.load %arg13[%c2_32, %c0_33, %c0_34, %c0_35] : memref<3x10x16x1024xbf16, #tpu.memory_space<vmem>>, vector<1x10x8x1024xbf16>
    %23 = vector.shape_cast %22 : vector<1x10x8x1024xbf16> to vector<10x8x1024xbf16>
    %24 = vector.shape_cast %21 : vector<10x8x1024xbf16> to vector<1x10x8x1024xbf16>
    tpu.vector_store %arg13[%c2_32, %c0_33, %c0_34, %c0_35], %24 {strides = array<i32>} : memref<3x10x16x1024xbf16, #tpu.memory_space<vmem>>, vector<1x10x8x1024xbf16>,
    %c1_36 = arith.constant 1 : index
    %c0_37 = arith.constant 0 : index
    %c2_38 = arith.constant 2 : index
    %c0_39 = arith.constant 0 : index
    %25 = vector.load %arg1[%c1_36, %c0_37, %c2_38, %c0_39] : memref<2x10x16x1024xbf16, #tpu.memory_space<vmem>>, vector<1x10x8x1024xbf16>
    %26 = vector.shape_cast %25 : vector<1x10x8x1024xbf16> to vector<10x8x1024xbf16>
    %c2_40 = arith.constant 2 : index
    %c0_41 = arith.constant 0 : index
    %c8_42 = arith.constant 8 : index
    %c0_43 = arith.constant 0 : index
    %27 = vector.load %arg13[%c2_40, %c0_41, %c8_42, %c0_43] : memref<3x10x16x1024xbf16, #tpu.memory_space<vmem>>, vector<1x10x8x1024xbf16>
    %28 = vector.shape_cast %27 : vector<1x10x8x1024xbf16> to vector<10x8x1024xbf16>
    %29 = vector.shape_cast %26 : vector<10x8x1024xbf16> to vector<1x10x8x1024xbf16>
    tpu.vector_store %arg13[%c2_40, %c0_41, %c8_42, %c0_43], %29 {strides = array<i32>} : memref<3x10x16x1024xbf16, #tpu.memory_space<vmem>>, vector<1x10x8x1024xbf16>,
    %cst = arith.constant 0.000000e+00 : f32
    %30 = vector.broadcast %cst : f32 to vector<128x256xf32>
    %c0_44 = arith.constant 0 : index
    %c0_45 = arith.constant 0 : index
    %c0_46 = arith.constant 0 : index
    %c0_47 = arith.constant 0 : index
    %31 = vector.load %arg13[%c0_44, %c0_45, %c0_46, %c0_47] : memref<3x10x16x1024xbf16, #tpu.memory_space<vmem>>, vector<1x8x16x1024xbf16>
    %32 = vector.shape_cast %31 : vector<1x8x16x1024xbf16> to vector<8x16x1024xbf16>
    %33 = vector.shape_cast %32 : vector<8x16x1024xbf16> to vector<128x1024xbf16>
    %c0_48 = arith.constant 0 : index
    %c0_49 = arith.constant 0 : index
    %c0_50 = arith.constant 0 : index
    %34 = vector.load %arg2[%c0_48, %c0_49, %c0_50] : memref<9x1024x256xbf16, #tpu.memory_space<vmem>>, vector<1x1024x256xbf16>
    %35 = vector.shape_cast %34 : vector<1x1024x256xbf16> to vector<1024x256xbf16>
    %cst_51 = arith.constant dense<0.000000e+00> : vector<128x256xf32>
    %36 = tpu.matmul %33, %35, %cst_51 {dimension_numbers = #tpu.dot_dimension_numbers<[1], [0], [0], [1], [0, 0, 1, 1], [], []>} : vector<128x1024xbf16>, vector<1024x256xbf16>, vector<128x256xf32> -> vector<128x256xf32>
    %37 = arith.addf %30, %36 : vector<128x256xf32>
    %c1_52 = arith.constant 1 : index
    %c0_53 = arith.constant 0 : index
    %c0_54 = arith.constant 0 : index
    %c0_55 = arith.constant 0 : index
    %38 = vector.load %arg13[%c1_52, %c0_53, %c0_54, %c0_55] : memref<3x10x16x1024xbf16, #tpu.memory_space<vmem>>, vector<1x8x16x1024xbf16>
    %39 = vector.shape_cast %38 : vector<1x8x16x1024xbf16> to vector<8x16x1024xbf16>
    %40 = vector.shape_cast %39 : vector<8x16x1024xbf16> to vector<128x1024xbf16>
    %c1_56 = arith.constant 1 : index
    %c0_57 = arith.constant 0 : index
    %c0_58 = arith.constant 0 : index
    %41 = vector.load %arg2[%c1_56, %c0_57, %c0_58] : memref<9x1024x256xbf16, #tpu.memory_space<vmem>>, vector<1x1024x256xbf16>
    %42 = vector.shape_cast %41 : vector<1x1024x256xbf16> to vector<1024x256xbf16>
    %cst_59 = arith.constant dense<0.000000e+00> : vector<128x256xf32>
    %43 = tpu.matmul %40, %42, %cst_59 {dimension_numbers = #tpu.dot_dimension_numbers<[1], [0], [0], [1], [0, 0, 1, 1], [], []>} : vector<128x1024xbf16>, vector<1024x256xbf16>, vector<128x256xf32> -> vector<128x256xf32>
    %44 = arith.addf %37, %43 : vector<128x256xf32>
    %c2_60 = arith.constant 2 : index
    %c0_61 = arith.constant 0 : index
    %c0_62 = arith.constant 0 : index
    %c0_63 = arith.constant 0 : index
    %45 = vector.load %arg13[%c2_60, %c0_61, %c0_62, %c0_63] : memref<3x10x16x1024xbf16, #tpu.memory_space<vmem>>, vector<1x8x16x1024xbf16>
    %46 = vector.shape_cast %45 : vector<1x8x16x1024xbf16> to vector<8x16x1024xbf16>
    %47 = vector.shape_cast %46 : vector<8x16x1024xbf16> to vector<128x1024xbf16>
    %c2_64 = arith.constant 2 : index
    %c0_65 = arith.constant 0 : index
    %c0_66 = arith.constant 0 : index
    %48 = vector.load %arg2[%c2_64, %c0_65, %c0_66] : memref<9x1024x256xbf16, #tpu.memory_space<vmem>>, vector<1x1024x256xbf16>
    %49 = vector.shape_cast %48 : vector<1x1024x256xbf16> to vector<1024x256xbf16>
    %cst_67 = arith.constant dense<0.000000e+00> : vector<128x256xf32>
    %50 = tpu.matmul %47, %49, %cst_67 {dimension_numbers = #tpu.dot_dimension_numbers<[1], [0], [0], [1], [0, 0, 1, 1], [], []>} : vector<128x1024xbf16>, vector<1024x256xbf16>, vector<128x256xf32> -> vector<128x256xf32>
    %51 = arith.addf %44, %50 : vector<128x256xf32>
    %c0_68 = arith.constant 0 : index
    %c1_69 = arith.constant 1 : index
    %c0_70 = arith.constant 0 : index
    %c0_71 = arith.constant 0 : index
    %52 = vector.load %arg13[%c0_68, %c1_69, %c0_70, %c0_71] : memref<3x10x16x1024xbf16, #tpu.memory_space<vmem>>, vector<1x8x16x1024xbf16>
    %53 = vector.shape_cast %52 : vector<1x8x16x1024xbf16> to vector<8x16x1024xbf16>
    %54 = vector.shape_cast %53 : vector<8x16x1024xbf16> to vector<128x1024xbf16>
    %c3 = arith.constant 3 : index
    %c0_72 = arith.constant 0 : index
    %c0_73 = arith.constant 0 : index
    %55 = vector.load %arg2[%c3, %c0_72, %c0_73] : memref<9x1024x256xbf16, #tpu.memory_space<vmem>>, vector<1x1024x256xbf16>
    %56 = vector.shape_cast %55 : vector<1x1024x256xbf16> to vector<1024x256xbf16>
    %cst_74 = arith.constant dense<0.000000e+00> : vector<128x256xf32>
    %57 = tpu.matmul %54, %56, %cst_74 {dimension_numbers = #tpu.dot_dimension_numbers<[1], [0], [0], [1], [0, 0, 1, 1], [], []>} : vector<128x1024xbf16>, vector<1024x256xbf16>, vector<128x256xf32> -> vector<128x256xf32>
    %58 = arith.addf %51, %57 : vector<128x256xf32>
    %c1_75 = arith.constant 1 : index
    %c1_76 = arith.constant 1 : index
    %c0_77 = arith.constant 0 : index
    %c0_78 = arith.constant 0 : index
    %59 = vector.load %arg13[%c1_75, %c1_76, %c0_77, %c0_78] : memref<3x10x16x1024xbf16, #tpu.memory_space<vmem>>, vector<1x8x16x1024xbf16>
    %60 = vector.shape_cast %59 : vector<1x8x16x1024xbf16> to vector<8x16x1024xbf16>
    %61 = vector.shape_cast %60 : vector<8x16x1024xbf16> to vector<128x1024xbf16>
    %c4 = arith.constant 4 : index
    %c0_79 = arith.constant 0 : index
    %c0_80 = arith.constant 0 : index
    %62 = vector.load %arg2[%c4, %c0_79, %c0_80] : memref<9x1024x256xbf16, #tpu.memory_space<vmem>>, vector<1x1024x256xbf16>
    %63 = vector.shape_cast %62 : vector<1x1024x256xbf16> to vector<1024x256xbf16>
    %cst_81 = arith.constant dense<0.000000e+00> : vector<128x256xf32>
    %64 = tpu.matmul %61, %63, %cst_81 {dimension_numbers = #tpu.dot_dimension_numbers<[1], [0], [0], [1], [0, 0, 1, 1], [], []>} : vector<128x1024xbf16>, vector<1024x256xbf16>, vector<128x256xf32> -> vector<128x256xf32>
    %65 = arith.addf %58, %64 : vector<128x256xf32>
    %c2_82 = arith.constant 2 : index
    %c1_83 = arith.constant 1 : index
    %c0_84 = arith.constant 0 : index
    %c0_85 = arith.constant 0 : index
    %66 = vector.load %arg13[%c2_82, %c1_83, %c0_84, %c0_85] : memref<3x10x16x1024xbf16, #tpu.memory_space<vmem>>, vector<1x8x16x1024xbf16>
    %67 = vector.shape_cast %66 : vector<1x8x16x1024xbf16> to vector<8x16x1024xbf16>
    %68 = vector.shape_cast %67 : vector<8x16x1024xbf16> to vector<128x1024xbf16>
    %c5 = arith.constant 5 : index
    %c0_86 = arith.constant 0 : index
    %c0_87 = arith.constant 0 : index
    %69 = vector.load %arg2[%c5, %c0_86, %c0_87] : memref<9x1024x256xbf16, #tpu.memory_space<vmem>>, vector<1x1024x256xbf16>
    %70 = vector.shape_cast %69 : vector<1x1024x256xbf16> to vector<1024x256xbf16>
    %cst_88 = arith.constant dense<0.000000e+00> : vector<128x256xf32>
    %71 = tpu.matmul %68, %70, %cst_88 {dimension_numbers = #tpu.dot_dimension_numbers<[1], [0], [0], [1], [0, 0, 1, 1], [], []>} : vector<128x1024xbf16>, vector<1024x256xbf16>, vector<128x256xf32> -> vector<128x256xf32>
    %72 = arith.addf %65, %71 : vector<128x256xf32>
    %c0_89 = arith.constant 0 : index
    %c2_90 = arith.constant 2 : index
    %c0_91 = arith.constant 0 : index
    %c0_92 = arith.constant 0 : index
    %73 = vector.load %arg13[%c0_89, %c2_90, %c0_91, %c0_92] : memref<3x10x16x1024xbf16, #tpu.memory_space<vmem>>, vector<1x8x16x1024xbf16>
    %74 = vector.shape_cast %73 : vector<1x8x16x1024xbf16> to vector<8x16x1024xbf16>
    %75 = vector.shape_cast %74 : vector<8x16x1024xbf16> to vector<128x1024xbf16>
    %c6 = arith.constant 6 : index
    %c0_93 = arith.constant 0 : index
    %c0_94 = arith.constant 0 : index
    %76 = vector.load %arg2[%c6, %c0_93, %c0_94] : memref<9x1024x256xbf16, #tpu.memory_space<vmem>>, vector<1x1024x256xbf16>
    %77 = vector.shape_cast %76 : vector<1x1024x256xbf16> to vector<1024x256xbf16>
    %cst_95 = arith.constant dense<0.000000e+00> : vector<128x256xf32>
    %78 = tpu.matmul %75, %77, %cst_95 {dimension_numbers = #tpu.dot_dimension_numbers<[1], [0], [0], [1], [0, 0, 1, 1], [], []>} : vector<128x1024xbf16>, vector<1024x256xbf16>, vector<128x256xf32> -> vector<128x256xf32>
    %79 = arith.addf %72, %78 : vector<128x256xf32>
    %c1_96 = arith.constant 1 : index
    %c2_97 = arith.constant 2 : index
    %c0_98 = arith.constant 0 : index
    %c0_99 = arith.constant 0 : index
    %80 = vector.load %arg13[%c1_96, %c2_97, %c0_98, %c0_99] : memref<3x10x16x1024xbf16, #tpu.memory_space<vmem>>, vector<1x8x16x1024xbf16>
    %81 = vector.shape_cast %80 : vector<1x8x16x1024xbf16> to vector<8x16x1024xbf16>
    %82 = vector.shape_cast %81 : vector<8x16x1024xbf16> to vector<128x1024xbf16>
    %c7 = arith.constant 7 : index
    %c0_100 = arith.constant 0 : index
    %c0_101 = arith.constant 0 : index
    %83 = vector.load %arg2[%c7, %c0_100, %c0_101] : memref<9x1024x256xbf16, #tpu.memory_space<vmem>>, vector<1x1024x256xbf16>
    %84 = vector.shape_cast %83 : vector<1x1024x256xbf16> to vector<1024x256xbf16>
    %cst_102 = arith.constant dense<0.000000e+00> : vector<128x256xf32>
    %85 = tpu.matmul %82, %84, %cst_102 {dimension_numbers = #tpu.dot_dimension_numbers<[1], [0], [0], [1], [0, 0, 1, 1], [], []>} : vector<128x1024xbf16>, vector<1024x256xbf16>, vector<128x256xf32> -> vector<128x256xf32>
    %86 = arith.addf %79, %85 : vector<128x256xf32>
    %c2_103 = arith.constant 2 : index
    %c2_104 = arith.constant 2 : index
    %c0_105 = arith.constant 0 : index
    %c0_106 = arith.constant 0 : index
    %87 = vector.load %arg13[%c2_103, %c2_104, %c0_105, %c0_106] : memref<3x10x16x1024xbf16, #tpu.memory_space<vmem>>, vector<1x8x16x1024xbf16>
    %88 = vector.shape_cast %87 : vector<1x8x16x1024xbf16> to vector<8x16x1024xbf16>
    %89 = vector.shape_cast %88 : vector<8x16x1024xbf16> to vector<128x1024xbf16>
    %c8_107 = arith.constant 8 : index
    %c0_108 = arith.constant 0 : index
    %c0_109 = arith.constant 0 : index
    %90 = vector.load %arg2[%c8_107, %c0_108, %c0_109] : memref<9x1024x256xbf16, #tpu.memory_space<vmem>>, vector<1x1024x256xbf16>
    %91 = vector.shape_cast %90 : vector<1x1024x256xbf16> to vector<1024x256xbf16>
    %cst_110 = arith.constant dense<0.000000e+00> : vector<128x256xf32>
    %92 = tpu.matmul %89, %91, %cst_110 {dimension_numbers = #tpu.dot_dimension_numbers<[1], [0], [0], [1], [0, 0, 1, 1], [], []>} : vector<128x1024xbf16>, vector<1024x256xbf16>, vector<128x256xf32> -> vector<128x256xf32>
    %93 = arith.addf %86, %92 : vector<128x256xf32>
    %c0_111 = arith.constant 0 : index
    %c0_112 = arith.constant 0 : index
    %94 = vector.load %arg3[%c0_111, %c0_112] : memref<1x256xf32, #tpu.memory_space<vmem>>, vector<1x256xf32>
    %95 = vector.broadcast %94 : vector<1x256xf32> to vector<128x256xf32>
    %96 = arith.addf %93, %95 : vector<128x256xf32>
    %cst_113 = arith.constant 0.000000e+00 : f32
    %97 = vector.broadcast %cst_113 : f32 to vector<128x256xf32>
    %98 = arith.maximumf %96, %97 : vector<128x256xf32>
    %99 = arith.truncf %98 : vector<128x256xf32> to vector<128x256xbf16>
    %c0_114 = arith.constant 0 : index
    %c0_115 = arith.constant 0 : index
    %100 = vector.load %arg4[%c0_114, %c0_115] : memref<256x32xbf16, #tpu.memory_space<vmem>>, vector<256x32xbf16>
    %cst_116 = arith.constant dense<0.000000e+00> : vector<128x32xf32>
    %101 = tpu.matmul %99, %100, %cst_116 {dimension_numbers = #tpu.dot_dimension_numbers<[1], [0], [0], [1], [0, 0, 1, 1], [], []>} : vector<128x256xbf16>, vector<256x32xbf16>, vector<128x32xf32> -> vector<128x32xf32>
    %c0_117 = arith.constant 0 : index
    %c0_118 = arith.constant 0 : index
    %102 = vector.load %arg5[%c0_117, %c0_118] : memref<1x32xf32, #tpu.memory_space<vmem>>, vector<1x32xf32>
    %103 = vector.broadcast %102 : vector<1x32xf32> to vector<128x32xf32>
    %104 = arith.addf %101, %103 : vector<128x32xf32>
    %cst_119 = arith.constant 0.000000e+00 : f32
    %105 = vector.broadcast %cst_119 : f32 to vector<128x32xf32>
    %106 = arith.maximumf %104, %105 : vector<128x32xf32>
    %107 = arith.truncf %106 : vector<128x32xf32> to vector<128x32xbf16>
    %c0_120 = arith.constant 0 : index
    %c0_121 = arith.constant 0 : index
    %108 = vector.load %arg6[%c0_120, %c0_121] : memref<32x32xbf16, #tpu.memory_space<vmem>>, vector<32x32xbf16>
    %cst_122 = arith.constant dense<0.000000e+00> : vector<128x32xf32>
    %109 = tpu.matmul %107, %108, %cst_122 {dimension_numbers = #tpu.dot_dimension_numbers<[1], [0], [0], [1], [0, 0, 1, 1], [], []>} : vector<128x32xbf16>, vector<32x32xbf16>, vector<128x32xf32> -> vector<128x32xf32>
    %c0_123 = arith.constant 0 : index
    %c0_124 = arith.constant 0 : index
    %110 = vector.load %arg7[%c0_123, %c0_124] : memref<1x32xf32, #tpu.memory_space<vmem>>, vector<1x32xf32>
    %111 = vector.broadcast %110 : vector<1x32xf32> to vector<128x32xf32>
    %112 = arith.addf %109, %111 : vector<128x32xf32>
    %cst_125 = arith.constant 0.000000e+00 : f32
    %113 = vector.broadcast %cst_125 : f32 to vector<128x32xf32>
    %114 = arith.maximumf %112, %113 : vector<128x32xf32>
    %115 = arith.truncf %114 : vector<128x32xf32> to vector<128x32xbf16>
    %c0_126 = arith.constant 0 : index
    %c0_127 = arith.constant 0 : index
    %116 = vector.load %arg8[%c0_126, %c0_127] : memref<32x6xbf16, #tpu.memory_space<vmem>>, vector<32x6xbf16>
    %cst_128 = arith.constant dense<0.000000e+00> : vector<128x6xf32>
    %117 = tpu.matmul %115, %116, %cst_128 {dimension_numbers = #tpu.dot_dimension_numbers<[1], [0], [0], [1], [0, 0, 1, 1], [], []>} : vector<128x32xbf16>, vector<32x6xbf16>, vector<128x6xf32> -> vector<128x6xf32>
    %c0_129 = arith.constant 0 : index
    %c0_130 = arith.constant 0 : index
    %118 = vector.load %arg9[%c0_129, %c0_130] : memref<1x6xf32, #tpu.memory_space<vmem>>, vector<1x6xf32>
    %119 = vector.broadcast %118 : vector<1x6xf32> to vector<128x6xf32>
    %120 = arith.addf %117, %119 : vector<128x6xf32>
    %121 = arith.negf %120 : vector<128x6xf32>
    %122 = math.exp %121 : vector<128x6xf32>
    %cst_131 = arith.constant 1.000000e+00 : f32
    %123 = vector.broadcast %cst_131 : f32 to vector<128x6xf32>
    %124 = arith.addf %123, %122 : vector<128x6xf32>
    %125 = arith.divf %123, %124 : vector<128x6xf32>
    %c0_132 = arith.constant 0 : index
    %c0_133 = arith.constant 0 : index
    %126 = vector.load %arg10[%c0_132, %c0_133] : memref<1x6xf32, #tpu.memory_space<vmem>>, vector<1x6xf32>
    %127 = vector.broadcast %126 : vector<1x6xf32> to vector<128x6xf32>
    %128 = arith.mulf %125, %127 : vector<128x6xf32>
    %c0_134 = arith.constant 0 : index
    %c0_135 = arith.constant 0 : index
    %129 = vector.load %arg11[%c0_134, %c0_135] : memref<1x6xf32, #tpu.memory_space<vmem>>, vector<1x6xf32>
    %130 = vector.broadcast %129 : vector<1x6xf32> to vector<128x6xf32>
    %131 = arith.addf %128, %130 : vector<128x6xf32>
    %c0_136 = arith.constant 0 : index
    %c0_137 = arith.constant 0 : index
    %c0_138 = arith.constant 0 : index
    %132 = vector.load %arg12[%c0_136, %c0_137, %c0_138] : memref<1x128x6xf32, #tpu.memory_space<vmem>>, vector<1x128x6xf32>
    %133 = vector.shape_cast %132 : vector<1x128x6xf32> to vector<128x6xf32>
    %134 = vector.shape_cast %131 : vector<128x6xf32> to vector<1x128x6xf32>
    tpu.vector_store %arg12[%c0_136, %c0_137, %c0_138], %134 {strides = array<i32>} : memref<1x128x6xf32, #tpu.memory_space<vmem>>, vector<1x128x6xf32>,
    return
  }
  func.func @transform_0(%arg0: i32) -> (i32, i32, i32, i32) {
    %c0_i32 = arith.constant 0 : i32
    %c0_i32_0 = arith.constant 0 : i32
    %c0_i32_1 = arith.constant 0 : i32
    %c0_i32_2 = arith.constant 0 : i32
    return %arg0, %c0_i32, %c0_i32_0, %c0_i32_1 : i32, i32, i32, i32
  }
  func.func @transform_1(%arg0: i32) -> (i32, i32, i32) {
    %c0_i32 = arith.constant 0 : i32
    %c0_i32_0 = arith.constant 0 : i32
    %c0_i32_1 = arith.constant 0 : i32
    %c0_i32_2 = arith.constant 0 : i32
    return %c0_i32, %c0_i32_0, %c0_i32_1 : i32, i32, i32
  }
  func.func @transform_2(%arg0: i32) -> (i32, i32) {
    %c0_i32 = arith.constant 0 : i32
    %c0_i32_0 = arith.constant 0 : i32
    %c0_i32_1 = arith.constant 0 : i32
    return %c0_i32, %c0_i32_0 : i32, i32
  }
  func.func @transform_3(%arg0: i32) -> (i32, i32) {
    %c0_i32 = arith.constant 0 : i32
    %c0_i32_0 = arith.constant 0 : i32
    %c0_i32_1 = arith.constant 0 : i32
    return %c0_i32, %c0_i32_0 : i32, i32
  }
  func.func @transform_4(%arg0: i32) -> (i32, i32) {
    %c0_i32 = arith.constant 0 : i32
    %c0_i32_0 = arith.constant 0 : i32
    %c0_i32_1 = arith.constant 0 : i32
    return %c0_i32, %c0_i32_0 : i32, i32
  }
  func.func @transform_5(%arg0: i32) -> (i32, i32) {
    %c0_i32 = arith.constant 0 : i32
    %c0_i32_0 = arith.constant 0 : i32
    %c0_i32_1 = arith.constant 0 : i32
    return %c0_i32, %c0_i32_0 : i32, i32
  }
  func.func @transform_6(%arg0: i32) -> (i32, i32) {
    %c0_i32 = arith.constant 0 : i32
    %c0_i32_0 = arith.constant 0 : i32
    %c0_i32_1 = arith.constant 0 : i32
    return %c0_i32, %c0_i32_0 : i32, i32
  }
  func.func @transform_7(%arg0: i32) -> (i32, i32) {
    %c0_i32 = arith.constant 0 : i32
    %c0_i32_0 = arith.constant 0 : i32
    %c0_i32_1 = arith.constant 0 : i32
    return %c0_i32, %c0_i32_0 : i32, i32
  }
  func.func @transform_8(%arg0: i32) -> (i32, i32) {
    %c0_i32 = arith.constant 0 : i32
    %c0_i32_0 = arith.constant 0 : i32
    %c0_i32_1 = arith.constant 0 : i32
    return %c0_i32, %c0_i32_0 : i32, i32
  }
  func.func @transform_9(%arg0: i32) -> (i32, i32) {
    %c0_i32 = arith.constant 0 : i32
    %c0_i32_0 = arith.constant 0 : i32
    %c0_i32_1 = arith.constant 0 : i32
    return %c0_i32, %c0_i32_0 : i32, i32
  }
  func.func @transform_10(%arg0: i32) -> (i32, i32) {
    %c0_i32 = arith.constant 0 : i32
    %c0_i32_0 = arith.constant 0 : i32
    %c0_i32_1 = arith.constant 0 : i32
    return %c0_i32, %c0_i32_0 : i32, i32
  }
  func.func @transform_11(%arg0: i32) -> (i32, i32, i32) {
    %c0_i32 = arith.constant 0 : i32
    %c0_i32_0 = arith.constant 0 : i32
    %c0_i32_1 = arith.constant 0 : i32
    return %arg0, %c0_i32, %c0_i32_0 : i32, i32, i32
  }
}

</mosaic_0001>

<bundles_post_ra>
// kernel: bbox_output_layer.1
= control target key start
LH: loop header
LB: loop body
LE: loop exit
PB: predicated region body
PF: predicated region fallthrough
CT: control target
= control target key end

     0   :  { %vm16607_vm0 = vcmask 261120   ;;  %vm17039_vm1 = vcmask 48128   ;;  %s28314_s1 = inlined_call_operand.vmem [shape: bf16[9,1024,256], index: 1, kind: input, shape index: {}]   ;;  %s28315_s0 = inlined_call_operand.vmem [shape: bf16[2,10,16,1024], index: 0, kind: input, shape index: {}]   ;;  %s28316_s3 = inlined_call_operand.vmem [shape: bf16[256,32], index: 3, kind: input, shape index: {}]   ;;  %s28317_s5 = inlined_call_operand.vmem [shape: bf16[32,32], index: 5, kind: input, shape index: {}]   ;;  %s28318_s2 = inlined_call_operand.vmem [shape: f32[1,256], index: 2, kind: input, shape index: {}]   ;;  %s28319_s4 = inlined_call_operand.vmem [shape: f32[1,32], index: 4, kind: input, shape index: {}]   ;;  %s28320_s7 = inlined_call_operand.vmem [shape: bf16[32,6], index: 7, kind: input, shape index: {}]   ;;  %s28321_s6 = inlined_call_operand.vmem [shape: f32[1,32], index: 6, kind: input, shape index: {}]   ;;  %s28322_s8 = inlined_call_operand.vmem [shape: f32[1,6], index: 8, kind: input, shape index: {}]   ;;  %s28323_s9 = inlined_call_operand.vmem [shape: f32[1,6], index: 9, kind: input, shape index: {}]   ;;  %s28324_s10 = inlined_call_operand.vmem [shape: f32[1,6], index: 10, kind: input, shape index: {}]   ;;  %s28325_s11 = inlined_call_operand.vmem [shape: f32[1,128,6], index: 11, kind: output, shape index: {}]  }
   0x1   :  { %v21217_v0 = vld [vmem:[%s28314_s1 + $0x404] ss:$8 sps:$4 sm:$0xff]   ;;  %v21221_v2 = vld [vmem:[%s28314_s1 + $0x400] ss:$8 sps:$4 sm:$0xff]   ;;  %v21223_v4 = vld [vmem:[%s28314_s1 + $0x414] ss:$8 sps:$4 sm:$0xff]  }
   0x2   :  { %v21219_v1 = vld [vmem:[%s28314_s1 + $0x1104] ss:$8 sps:$4 sm:$0xff]   ;;  %5467 = vmatprep.subr.bf16.mxu1 %v21217_v0  ;;  %v21222_v3 = vld [vmem:[%s28314_s1 + $0x1100] ss:$8 sps:$4 sm:$0xff]   ;;  %v21225_v5 = vld [vmem:[%s28314_s1 + $0x1114] ss:$8 sps:$4 sm:$0xff]  }
   0x3   :  { %10593 = vmatprep.subr.bf16.mxu0 %v21219_v1  ;;  %5468 = vmatpush1.bf16.msra.mxu1 %v21221_v2  ;;  %v21227_v6 = vld [vmem:[%s28314_s1 + $0x410] ss:$8 sps:$4 sm:$0xff]   ;;  %v21229_v8 = vld [vmem:[%s28314_s1 + $0x424] ss:$8 sps:$4 sm:$0xff]   ;;  %v21233_v10 = vld [vmem:[%s28314_s1 + $0x420] ss:$8 sps:$4 sm:$0xff]  }
   0x4   :  { %10594 = vmatpush1.bf16.msra.mxu0 %v21222_v3  ;;  %5469 = vmatprep.subr.bf16.mxu1 %v21223_v4  ;;  %v21228_v7 = vld [vmem:[%s28314_s1 + $0x1110] ss:$8 sps:$4 sm:$0xff]   ;;  %v21231_v9 = vld [vmem:[%s28314_s1 + $0x1124] ss:$8 sps:$4 sm:$0xff]   ;;  %v21234_v11 = vld [vmem:[%s28314_s1 + $0x1120] ss:$8 sps:$4 sm:$0xff]  }
   0x5   :  { %10595 = vmatprep.subr.bf16.mxu0 %v21225_v5  ;;  %v21235_v12 = vld [vmem:[%s28314_s1 + $0x434] ss:$8 sps:$4 sm:$0xff]   ;;  %v21239_v14 = vld [vmem:[%s28314_s1 + $0x430] ss:$8 sps:$4 sm:$0xff]   ;;  %v21241_v16 = vld [vmem:[%s28314_s1 + $0x444] ss:$8 sps:$4 sm:$0xff]  }
   0x6   :  { %v21237_v13 = vld [vmem:[%s28314_s1 + $0x1134] ss:$8 sps:$4 sm:$0xff]   ;;  %v21240_v15 = vld [vmem:[%s28314_s1 + $0x1130] ss:$8 sps:$4 sm:$0xff]   ;;  %v21243_v17 = vld [vmem:[%s28314_s1 + $0x1144] ss:$8 sps:$4 sm:$0xff]  }
   0x7   :  { %5470 = vmatpush1.bf16.msra.mxu1 %v21227_v6  ;;  %v21245_v18 = vld [vmem:[%s28314_s1 + $0x440] ss:$8 sps:$4 sm:$0xff]   ;;  %v21247_v20 = vld [vmem:[%s28314_s1 + $0x454] ss:$8 sps:$4 sm:$0xff]   ;;  %v21251_v22 = vld [vmem:[%s28314_s1 + $0x450] ss:$8 sps:$4 sm:$0xff]  }
   0x8   :  { %10596 = vmatpush1.bf16.msra.mxu0 %v21228_v7  ;;  %5471 = vmatprep.subr.bf16.mxu1 %v21229_v8  ;;  %v21246_v19 = vld [vmem:[%s28314_s1 + $0x1140] ss:$8 sps:$4 sm:$0xff]   ;;  %v21249_v21 = vld [vmem:[%s28314_s1 + $0x1154] ss:$8 sps:$4 sm:$0xff]   ;;  %v21252_v23 = vld [vmem:[%s28314_s1 + $0x1150] ss:$8 sps:$4 sm:$0xff]  }
   0x9   :  { %10597 = vmatprep.subr.bf16.mxu0 %v21231_v9  ;;  %v21253_v24 = vld [vmem:[%s28314_s1 + $0x464] ss:$8 sps:$4 sm:$0xff]   ;;  %v21257_v26 = vld [vmem:[%s28314_s1 + $0x460] ss:$8 sps:$4 sm:$0xff]   ;;  %v21259_v28 = vld [vmem:[%s28314_s1 + $0x474] ss:$8 sps:$4 sm:$0xff]  }
   0xa   :  { %v21255_v25 = vld [vmem:[%s28314_s1 + $0x1164] ss:$8 sps:$4 sm:$0xff]   ;;  %v21258_v27 = vld [vmem:[%s28314_s1 + $0x1160] ss:$8 sps:$4 sm:$0xff]   ;;  %v21261_v29 = vld [vmem:[%s28314_s1 + $0x1174] ss:$8 sps:$4 sm:$0xff]  }
   0xb   :  { %5472 = vmatpush1.bf16.msra.mxu1 %v21233_v10  ;;  %v21263_v30 = vld [vmem:[%s28314_s1 + $0x470] ss:$8 sps:$4 sm:$0xff]   ;;  %v21265_v32 = vld [vmem:[%s28314_s1 + $0x484] ss:$8 sps:$4 sm:$0xff]   ;;  %v21269_v34 = vld [vmem:[%s28314_s1 + $0x480] ss:$8 sps:$4 sm:$0xff]  }
   0xc   :  { %10598 = vmatpush1.bf16.msra.mxu0 %v21234_v11  ;;  %5473 = vmatprep.subr.bf16.mxu1 %v21235_v12  ;;  %v21264_v31 = vld [vmem:[%s28314_s1 + $0x1170] ss:$8 sps:$4 sm:$0xff]   ;;  %v21267_v33 = vld [vmem:[%s28314_s1 + $0x1184] ss:$8 sps:$4 sm:$0xff]   ;;  %v21270_v35 = vld [vmem:[%s28314_s1 + $0x1180] ss:$8 sps:$4 sm:$0xff]  }
   0xd   :  { %10599 = vmatprep.subr.bf16.mxu0 %v21237_v13  ;;  %v21271_v36 = vld [vmem:[%s28314_s1 + $0x494] ss:$8 sps:$4 sm:$0xff]   ;;  %v21275_v38 = vld [vmem:[%s28314_s1 + $0x490] ss:$8 sps:$4 sm:$0xff]   ;;  %v21277_v40 = vld [vmem:[%s28314_s1 + $0x4a4] ss:$8 sps:$4 sm:$0xff]  }
   0xe   :  { %v21273_v37 = vld [vmem:[%s28314_s1 + $0x1194] ss:$8 sps:$4 sm:$0xff]   ;;  %v21276_v39 = vld [vmem:[%s28314_s1 + $0x1190] ss:$8 sps:$4 sm:$0xff]   ;;  %v21279_v41 = vld [vmem:[%s28314_s1 + $0x11a4] ss:$8 sps:$4 sm:$0xff]  }
   0xf   :  { %5474 = vmatpush1.bf16.msra.mxu1 %v21239_v14  ;;  %v21281_v42 = vld [vmem:[%s28314_s1 + $0x4a0] ss:$8 sps:$4 sm:$0xff]   ;;  %v21283_v44 = vld [vmem:[%s28314_s1 + $0x4b4] ss:$8 sps:$4 sm:$0xff]   ;;  %v21287_v46 = vld [vmem:[%s28314_s1 + $0x4b0] ss:$8 sps:$4 sm:$0xff]  }
  0x10   :  { %10600 = vmatpush1.bf16.msra.mxu0 %v21240_v15  ;;  %5475 = vmatprep.subr.bf16.mxu1 %v21241_v16  ;;  %v21282_v43 = vld [vmem:[%s28314_s1 + $0x11a0] ss:$8 sps:$4 sm:$0xff]   ;;  %v21285_v45 = vld [vmem:[%s28314_s1 + $0x11b4] ss:$8 sps:$4 sm:$0xff]   ;;  %v21288_v47 = vld [vmem:[%s28314_s1 + $0x11b0] ss:$8 sps:$4 sm:$0xff]  }
  0x11   :  { %10601 = vmatprep.subr.bf16.mxu0 %v21243_v17  ;;  %v840_v48 = vld [vmem:[%s28315_s0] sm:$0xff]  ;;  %v849_v56 = vld [vmem:[%s28315_s0 + $0x48] sm:$0xff]  ;;  %v21295_v6 = vld [vmem:[%s28314_s1 + $0x4d4] ss:$8 sps:$4 sm:$0xff]  }
  0x12   :  { %v21289_v49 = vld [vmem:[%s28314_s1 + $0x4c4] ss:$8 sps:$4 sm:$0xff]   ;;  %v21293_v0 = vld [vmem:[%s28314_s1 + $0x4c0] ss:$8 sps:$4 sm:$0xff]   ;;  %v21297_v15 = vld [vmem:[%s28314_s1 + $0x11d4] ss:$8 sps:$4 sm:$0xff]  }
  0x13   :  { %5476 = vmatpush1.bf16.msra.mxu1 %v21245_v18  ;;  %v21291_v50 = vld [vmem:[%s28314_s1 + $0x11c4] ss:$8 sps:$4 sm:$0xff]   ;;  %v21294_v1 = vld [vmem:[%s28314_s1 + $0x11c0] ss:$8 sps:$4 sm:$0xff]  }
  0x14   :  { %10602 = vmatpush1.bf16.msra.mxu0 %v21246_v19  ;;  %5477 = vmatprep.subr.bf16.mxu1 %v21247_v20  ;;  %v844_v51 = vld [vmem:[%s28315_s0 + $0x20] sm:$0x11]  ;;  %v853_v57 = vld [vmem:[%s28315_s0 + $0x68] sm:$0x11] }
  0x15   :  { %10603 = vmatprep.subr.bf16.mxu0 %v21249_v21  ;;  %v17340_v52 = vld [vmem:[%s28315_s0 + $0x280] sm:$0xff]  ;;  %v17261_v54 = vcombine.high %v840_v48, %v844_v51  ;;  %v17349_v58 = vld [vmem:[%s28315_s0 + $0x2c8] sm:$0xff]  ;;  %v17260_v59 = vcombine.low %v840_v48, %v844_v51  ;;  %v17271_v60 = vcombine.high %v849_v56, %v853_v57  ;;  %v23424_v63 = vcombine.low %v849_v56, %v853_v57 }
  0x16   :  { %v17344_v53 = vld [vmem:[%s28315_s0 + $0x2a0] sm:$0x11]  ;;  %v17353_v61 = vld [vmem:[%s28315_s0 + $0x2e8] sm:$0x11] }
  0x17   :  { %5478 = vmatpush1.bf16.msra.mxu1 %v21251_v22  ;;  %v17421_v55 = vcombine.high %v17340_v52, %v17344_v53  ;;  %v17420_v62 = vcombine.low %v17340_v52, %v17344_v53  ;;  %v1248_v2 = vshrl.u32 %v17261_v54, 16  ;;  %v1250_v3 = vshll.u32 %v17261_v54, 16  ;;  %v861_v53 = vld [vmem:[%s28315_s0 + $0xa8] sm:$0x11] }
  0x18   :  { %10604 = vmatpush1.bf16.msra.mxu0 %v21252_v23  ;;  %5479 = vmatprep.subr.bf16.mxu1 %v21253_v24  ;;  %v1318_v7 = vshrl.u32 %v17271_v60, 16  ;;  %v1320_v8 = vshll.u32 %v17271_v60, 16  ;;  %v17431_v9 = vcombine.high %v17349_v58, %v17353_v61  ;;  %v1241_v10 = vshrl.u32 %v17260_v59, 16  ;;  %v21299_v24 = vld [vmem:[%s28314_s1 + $0x4d0] ss:$8 sps:$4 sm:$0xff]   ;;  %v17357_v54 = vld [vmem:[%s28315_s0 + $0x308] sm:$0xff] }
  0x19   :  { %10605 = vmatprep.subr.bf16.mxu0 %v21255_v25  ;;  %v2370_v4 = vshrl.u32 %v17421_v55, 16  ;;  %v2373_v5 = vshll.u32 %v17421_v55, 16  ;;  %v1252_v11 = vrot.slane %v1250_v3, 1  ;;  %v1243_v14 = vshll.u32 %v17260_v59, 16  ;;  %v17361_v60 = vld [vmem:[%s28315_s0 + $0x328] sm:$0x11] }
  0x1a   :  { %v1322_v16 = vrot.slane %v1320_v8, 1  ;;  %v2450_v17 = vshrl.u32 %v17431_v9, 16  ;;  %v2453_v18 = vshll.u32 %v17431_v9, 16  ;;  %v2362_v19 = vshrl.u32 %v17420_v62, 16 }
  0x1b   :  { %5480 = vmatpush1.bf16.msra.mxu1 %v21257_v26  ;;  %v2372_v12 = vrot.slane %v2370_v4, 4  ;;  %v2375_v13 = vrot.slane %v2373_v5, 5  ;;  %v1253_v20 = vor.u32 %v1252_v11, %v1248_v2  ;;  %v1245_v22 = vrot.slane %v1243_v14, 1  ;;  %v21311_v2 = vld [vmem:[%s28314_s1 + $0x4f0] ss:$8 sps:$4 sm:$0xff]  }
  0x1c   :  { %10606 = vmatpush1.bf16.msra.mxu0 %v21258_v27  ;;  %5481 = vmatprep.subr.bf16.mxu1 %v21259_v28  ;;  %v2365_v23 = vshll.u32 %v17420_v62, 16  ;;  %v1323_v25 = vor.u32 %v1322_v16, %v1318_v7  ;;  %v2452_v26 = vrot.slane %v2450_v17, 4  ;;  %v2455_v27 = vrot.slane %v2453_v18, 5  ;;  %v21312_v7 = vld [vmem:[%s28314_s1 + $0x11f0] ss:$8 sps:$4 sm:$0xff]  }
  0x1d   :  { %10607 = vmatprep.subr.bf16.mxu0 %v21261_v29  ;;  %v2376_v21 = vor.u32 %v2375_v13, %v2372_v12  ;;  %v2364_v28 = vrot.slane %v2362_v19, 4  ;;  %v21300_v29 = vld [vmem:[%s28314_s1 + $0x11d0] ss:$8 sps:$4 sm:$0xff]   ;;  %1882 = vst [vmem:[#allocation2 + $0x288] sm:$0xf] %v1253_v20 }
  0x1e   :  { %1892 = vst [vmem:[#allocation2 + $0x2d8] sm:$0xf] %v1323_v25  ;;  %v21315_v13 = vld [vmem:[%s28314_s1 + $0x504] ss:$8 sps:$4 sm:$0xff]  }
  0x1f   :  { %5482 = vmatpush1.bf16.msra.mxu1 %v21263_v30  ;;  %3082 = vst [vmem:[#allocation2 + $0x288] sm:$0xf0] %v2376_v21  ;;  %v1246_v30 = vor.u32 %v1245_v22, %v1241_v10  ;;  %v21318_v18 = vld [vmem:[%s28314_s1 + $0x1204] ss:$8 sps:$4 sm:$0xff]  }
  0x20   :  { %10608 = vmatpush1.bf16.msra.mxu0 %v21264_v31  ;;  %5483 = vmatprep.subr.bf16.mxu1 %v21265_v32  ;;  %v2367_v31 = vrot.slane %v2365_v23, 5  ;;  %v1311_v32 = vshrl.u32 %v23424_v63, 16 }
  0x21   :  { %10609 = vmatprep.subr.bf16.mxu0 %v21267_v33  ;;  %v1313_v33 = vshll.u32 %v23424_v63, 16  ;;  %1881 = vst [vmem:[#allocation2 + $0x280] sm:$0xf] %v1246_v30 }
  0x23   :  { %5484 = vmatpush1.bf16.msra.mxu1 %v21269_v34  ;;  %v848_v34 = vld [vmem:[%s28315_s0 + $0x40] sm:$0xff] }
  0x24   :  { %10610 = vmatpush1.bf16.msra.mxu0 %v21270_v35  ;;  %5485 = vmatprep.subr.bf16.mxu1 %v21271_v36  ;;  %v21301_v35 = vld [vmem:[%s28314_s1 + $0x4e4] ss:$8 sps:$4 sm:$0xff]  }
  0x25   :  { %10611 = vmatprep.subr.bf16.mxu0 %v21273_v37  ;;  %v21303_v36 = vld [vmem:[%s28314_s1 + $0x11e4] ss:$8 sps:$4 sm:$0xff]   ;;  %v2456_v37 = vor.u32 %v2455_v27, %v2452_v26 }
  0x26   :  { %v4635_v8 = vld [vmem:[#allocation2 + $0x288] sm:$0xff] }
  0x27   :  { %5486 = vmatpush1.bf16.msra.mxu1 %v21275_v38  ;;  %v17430_v38 = vcombine.low %v17349_v58, %v17353_v61  ;;  %3092 = vst [vmem:[#allocation2 + $0x2d8] sm:$0xf0] %v2456_v37  ;;  %v21309_v61 = vld [vmem:[%s28314_s1 + $0x11f4] ss:$8 sps:$4 sm:$0xff]   ;;  %5499 = vmatprep.mubr.bf16.mxu1 %v4635_v8  ;;  %v21325_v8 = vld [vmem:[%s28314_s1 + $0x520] ss:$8 sps:$4 sm:$0xff]  }
  0x28   :  { %10612 = vmatpush1.bf16.msra.mxu0 %v21276_v39  ;;  %5487 = vmatprep.subr.bf16.mxu1 %v21277_v40  ;;  %v852_v39 = vld [vmem:[%s28315_s0 + $0x60] sm:$0x11] }
  0x29   :  { %10613 = vmatprep.subr.bf16.mxu0 %v21279_v41  ;;  %v21305_v40 = vld [vmem:[%s28314_s1 + $0x4e0] ss:$8 sps:$4 sm:$0xff]   ;;  %v23473_v48 = vcombine.low %v848_v34, %v852_v39  ;;  %v2445_v51 = vshll.u32 %v17430_v38, 16 }
  0x2a   :  { %v21306_v41 = vld [vmem:[%s28314_s1 + $0x11e0] ss:$8 sps:$4 sm:$0xff]  }
  0x2b   :  { %5488 = vmatpush1.bf16.msra.mxu1 %v21281_v42  ;;  %v2368_v42 = vor.u32 %v2367_v31, %v2364_v28  ;;  %v2447_v63 = vrot.slane %v2445_v51, 5  ;;  %v1297_v12 = vshrl.u32 %v23473_v48, 16  ;;  %v1299_v20 = vshll.u32 %v23473_v48, 16  ;;  %v21319_v48 = vld [vmem:[%s28314_s1 + $0x510] ss:$8 sps:$4 sm:$0xff]  }
  0x2c   :  { %10614 = vmatpush1.bf16.msra.mxu0 %v21282_v43  ;;  %5489 = vmatprep.subr.bf16.mxu1 %v21283_v44  ;;  %v1315_v43 = vrot.slane %v1313_v33, 1  ;;  %v17269_v44 = vcombine.high %v848_v34, %v852_v39  ;;  %v856_v33 = vld [vmem:[%s28315_s0 + $0x80] sm:$0xff] }
  0x2d   :  { %10615 = vmatprep.subr.bf16.mxu0 %v21285_v45  ;;  %v17348_v45 = vld [vmem:[%s28315_s0 + $0x2c0] sm:$0xff]  ;;  %3081 = vst [vmem:[#allocation2 + $0x280] sm:$0xf0] %v2368_v42 }
  0x2e   :  { %v1316_v56 = vor.u32 %v1315_v43, %v1311_v32  ;;  %v1304_v57 = vshrl.u32 %v17269_v44, 16  ;;  %v1306_v58 = vshll.u32 %v17269_v44, 16  ;;  %v9650_v23 = vld [vmem:[#allocation2 + $0x2d8] sm:$0xff]  ;;  %v17438_v32 = vcombine.low %v17357_v54, %v17361_v60  ;;  %v17360_v51 = vld [vmem:[%s28315_s0 + $0x320] sm:$0x11] }
  0x2f   :  { %5490 = vmatpush1.bf16.msra.mxu1 %v21287_v46  ;;  %v17352_v46 = vld [vmem:[%s28315_s0 + $0x2e0] sm:$0x11]  ;;  %10625 = vmatprep.mubr.bf16.mxu0 %v9650_v23 }
  0x30   :  { %10616 = vmatpush1.bf16.msra.mxu0 %v21288_v47  ;;  %5491 = vmatprep.subr.bf16.mxu1 %v21289_v49  ;;  %v857_v47 = vld [vmem:[%s28315_s0 + $0x88] sm:$0xff]  ;;  %v21307_v49 = vld [vmem:[%s28314_s1 + $0x4f4] ss:$8 sps:$4 sm:$0xff]   ;;  %v17429_v52 = vcombine.high %v17348_v45, %v17352_v46  ;;  %v17428_v55 = vcombine.low %v17348_v45, %v17352_v46  ;;  %1891 = vst [vmem:[#allocation2 + $0x2d0] sm:$0xf] %v1316_v56  ;;  %v1308_v3 = vrot.slane %v1306_v58, 1 }
  0x31   :  { %10617 = vmatprep.subr.bf16.mxu0 %v21291_v50  ;;  %v2442_v50 = vshrl.u32 %v17430_v38, 16  ;;  %v17279_v59 = vcombine.high %v857_v47, %v861_v53  ;;  %v17278_v28 = vcombine.low %v857_v47, %v861_v53  ;;  %v2506_v43 = vshrl.u32 %v17438_v32, 16  ;;  %v860_v45 = vld [vmem:[%s28315_s0 + $0xa0] sm:$0x11]  ;;  %v865_v47 = vld [vmem:[%s28315_s0 + $0xc8] sm:$0xff] }
  0x32   :  { %v1309_v14 = vor.u32 %v1308_v3, %v1304_v57  ;;  %v2426_v21 = vshrl.u32 %v17428_v55, 16  ;;  %v2429_v22 = vshll.u32 %v17428_v55, 16  ;;  %v2509_v44 = vshll.u32 %v17438_v32, 16  ;;  %v17356_v46 = vld [vmem:[%s28315_s0 + $0x300] sm:$0xff]  ;;  %v17365_v53 = vld [vmem:[%s28315_s0 + $0x348] sm:$0xff] }
  0x33   :  { %5492 = vmatpush1.bf16.msra.mxu1 %v21293_v0  ;;  %v2444_v62 = vrot.slane %v2442_v50, 4  ;;  %v2434_v0 = vshrl.u32 %v17429_v52, 16  ;;  %v1374_v4 = vshrl.u32 %v17279_v59, 16  ;;  %v1376_v5 = vshll.u32 %v17279_v59, 16  ;;  %v17369_v59 = vld [vmem:[%s28315_s0 + $0x368] sm:$0x11] }
  0x34   :  { %10618 = vmatpush1.bf16.msra.mxu0 %v21294_v1  ;;  %5493 = vmatprep.subr.bf16.mxu1 %v21295_v6  ;;  %v2437_v1 = vshll.u32 %v17429_v52, 16  ;;  %v17439_v6 = vcombine.high %v17357_v54, %v17361_v60  ;;  %1890 = vst [vmem:[#allocation2 + $0x2c8] sm:$0xf] %v1309_v14  ;;  %v2428_v30 = vrot.slane %v2426_v21, 4  ;;  %v2431_v31 = vrot.slane %v2429_v22, 5  ;;  %v4634_v34 = vld [vmem:[#allocation2 + $0x280] sm:$0xff] }
  0x35   :  { %10619 = vmatprep.subr.bf16.mxu0 %v21297_v15  ;;  %v2448_v9 = vor.u32 %v2447_v63, %v2444_v62  ;;  %v2436_v10 = vrot.slane %v2434_v0, 4  ;;  %v1378_v15 = vrot.slane %v1376_v5, 1  ;;  %v1367_v38 = vshrl.u32 %v17278_v28, 16  ;;  %v869_v52 = vld [vmem:[%s28315_s0 + $0xe8] sm:$0x11] }
  0x36   :  { %v2439_v11 = vrot.slane %v2437_v1, 5  ;;  %v2514_v16 = vshrl.u32 %v17439_v6, 16  ;;  %v2517_v17 = vshll.u32 %v17439_v6, 16  ;;  %v1369_v39 = vshll.u32 %v17278_v28, 16 }
  0x37   :  { %5494 = vmatpush1.bf16.msra.mxu1 %v21299_v24  ;;  %3091 = vst [vmem:[#allocation2 + $0x2d0] sm:$0xf0] %v2448_v9  ;;  %v21313_v24 = vld [vmem:[%s28314_s1 + $0x500] ss:$8 sps:$4 sm:$0xff]   ;;  %v1379_v25 = vor.u32 %v1378_v15, %v1374_v4  ;;  %v2432_v42 = vor.u32 %v2431_v31, %v2428_v30  ;;  %v17277_v50 = vcombine.high %v856_v33, %v860_v45  ;;  %v2508_v55 = vrot.slane %v2506_v43, 4 }
  0x38   :  { %10620 = vmatpush1.bf16.msra.mxu0 %v21300_v29  ;;  %5495 = vmatprep.subr.bf16.mxu1 %v21301_v35  ;;  %v2440_v19 = vor.u32 %v2439_v11, %v2436_v10  ;;  %v2516_v26 = vrot.slane %v2514_v16, 4  ;;  %v2519_v27 = vrot.slane %v2517_v17, 5  ;;  %v1301_v29 = vrot.slane %v1299_v20, 1  ;;  %v21316_v35 = vld [vmem:[%s28314_s1 + $0x1200] ss:$8 sps:$4 sm:$0xff]  }
  0x39   :  { %10621 = vmatprep.subr.bf16.mxu0 %v21303_v36  ;;  %v21321_v36 = vld [vmem:[%s28314_s1 + $0x514] ss:$8 sps:$4 sm:$0xff]   ;;  %1900 = vst [vmem:[#allocation2 + $0x318] sm:$0xf] %v1379_v25  ;;  %v23540_v54 = vcombine.low %v856_v33, %v860_v45  ;;  %3089 = vst [vmem:[#allocation2 + $0x2c0] sm:$0xf0] %v2432_v42  ;;  %v17437_v57 = vcombine.high %v17356_v46, %v17360_v51  ;;  %v17287_v58 = vcombine.high %v865_v47, %v869_v52 }
  0x3a   :  { %3090 = vst [vmem:[#allocation2 + $0x2c8] sm:$0xf0] %v2440_v19  ;;  %v2520_v37 = vor.u32 %v2519_v27, %v2516_v26  ;;  %v2511_v56 = vrot.slane %v2509_v44, 5  ;;  %v1360_v63 = vshrl.u32 %v17277_v50, 16  ;;  %v1362_v0 = vshll.u32 %v17277_v50, 16  ;;  %v17364_v45 = vld [vmem:[%s28315_s0 + $0x340] sm:$0xff] }
  0x3b   :  { %5496 = vmatpush1.bf16.msra.mxu1 %v21305_v40  ;;  %v21324_v40 = vld [vmem:[%s28314_s1 + $0x1214] ss:$8 sps:$4 sm:$0xff]   ;;  %v17447_v1 = vcombine.high %v17365_v53, %v17369_v59  ;;  %v2498_v4 = vshrl.u32 %v17437_v57, 16  ;;  %v2501_v5 = vshll.u32 %v17437_v57, 16  ;;  %v1430_v6 = vshrl.u32 %v17287_v58, 16  ;;  %v873_v57 = vld [vmem:[%s28315_s0 + $0x108] sm:$0xff] }
  0x3c   :  { %10622 = vmatpush1.bf16.msra.mxu0 %v21306_v41  ;;  %5497 = vmatprep.subr.bf16.mxu1 %v21307_v49  ;;  %v1302_v41 = vor.u32 %v1301_v29, %v1297_v12  ;;  %3100 = vst [vmem:[#allocation2 + $0x318] sm:$0xf0] %v2520_v37  ;;  %v1371_v49 = vrot.slane %v1369_v39, 1  ;;  %v2512_v3 = vor.u32 %v2511_v56, %v2508_v55  ;;  %v1364_v9 = vrot.slane %v1362_v0, 1  ;;  %v21336_v25 = vld [vmem:[%s28314_s1 + $0x1234] ss:$8 sps:$4 sm:$0xff]  }
  0x3d   :  { %10623 = vmatprep.subr.bf16.mxu0 %v21309_v61  ;;  %v21322_v61 = vld [vmem:[%s28314_s1 + $0x1210] ss:$8 sps:$4 sm:$0xff]   ;;  %v1432_v10 = vshll.u32 %v17287_v58, 16  ;;  %v2578_v11 = vshrl.u32 %v17447_v1, 16  ;;  %v2581_v12 = vshll.u32 %v17447_v1, 16  ;;  %v2500_v14 = vrot.slane %v2498_v4, 4 }
  0x3e   :  { %1889 = vst [vmem:[#allocation2 + $0x2c0] sm:$0xf] %v1302_v41  ;;  %v9649_v60 = vld [vmem:[#allocation2 + $0x2d0] sm:$0xff]  ;;  %v1372_v62 = vor.u32 %v1371_v49, %v1367_v38  ;;  %3099 = vst [vmem:[#allocation2 + $0x310] sm:$0xf0] %v2512_v3  ;;  %v2503_v15 = vrot.slane %v2501_v5, 5  ;;  %v1365_v19 = vor.u32 %v1364_v9, %v1360_v63  ;;  %v17436_v28 = vcombine.low %v17356_v46, %v17360_v51 }
  0x3f   :  { %5498 = vmatpush1.bf16.msra.mxu1 %v21311_v2  ;;  %v21327_v2 = vld [vmem:[%s28314_s1 + $0x524] ss:$8 sps:$4 sm:$0xff]   ;;  %v1353_v16 = vshrl.u32 %v23540_v54, 16  ;;  %v1355_v17 = vshll.u32 %v23540_v54, 16  ;;  %v1434_v20 = vrot.slane %v1432_v10, 1  ;;  %v2580_v21 = vrot.slane %v2578_v11, 4 }
  0x40   :  { %10624 = vmatpush1.bf16.msra.mxu0 %v21312_v7  ;;  %5580 = vmatprep.subr.bf16.mxu1 %v21315_v13  ;;  %1899 = vst [vmem:[#allocation2 + $0x310] sm:$0xf] %v1372_v62  ;;  %v21330_v13 = vld [vmem:[%s28314_s1 + $0x1224] ss:$8 sps:$4 sm:$0xff]   ;;  %v2583_v22 = vrot.slane %v2581_v12, 5  ;;  %v2504_v26 = vor.u32 %v2503_v15, %v2500_v14  ;;  %v17286_v29 = vcombine.low %v865_v47, %v869_v52  ;;  %v2493_v37 = vshll.u32 %v17436_v28, 16 }
  0x41   :  { %10706 = vmatprep.subr.bf16.mxu0 %v21318_v18  ;;  %v4643_v7 = vld [vmem:[#allocation2 + $0x2c8] sm:$0xff]  ;;  %v1357_v27 = vrot.slane %v1355_v17, 1  ;;  %v21331_v31 = vld [vmem:[%s28314_s1 + $0x530] ss:$8 sps:$4 sm:$0xff]   ;;  %1898 = vst [vmem:[#allocation2 + $0x308] sm:$0xf] %v1365_v19  ;;  %v1435_v32 = vor.u32 %v1434_v20, %v1430_v6 }
  0x42   :  { %5500 = vmatmul.mubr.bf16.vlgmr.msra.gmra.mrb[0].mxu1 %v4634_v34  ;;  %v21328_v18 = vld [vmem:[%s28314_s1 + $0x1220] ss:$8 sps:$4 sm:$0xff]   ;;  %v2584_v33 = vor.u32 %v2583_v22, %v2580_v21  ;;  %v17446_v34 = vcombine.low %v17365_v53, %v17369_v59  ;;  %3098 = vst [vmem:[#allocation2 + $0x308] sm:$0xf0] %v2504_v26  ;;  %v21339_v38 = vld [vmem:[%s28314_s1 + $0x544] ss:$8 sps:$4 sm:$0xff]  }
  0x43   :  { %5581 = vmatpush1.bf16.msra.mxu1 %v21313_v24  ;;  %10626 = vmatmul.mubr.bf16.vlgmr.msra.gmra.mrb[0].mxu0 %v9649_v60  ;;  %v9658_v23 = vld [vmem:[#allocation2 + $0x318] sm:$0xff]  ;;  %v864_v39 = vld [vmem:[%s28315_s0 + $0xc0] sm:$0xff]  ;;  %1908 = vst [vmem:[#allocation2 + $0x358] sm:$0xf] %v1435_v32  ;;  %v1423_v41 = vshrl.u32 %v17286_v29, 16  ;;  %v1425_v42 = vshll.u32 %v17286_v29, 16 }
  0x44   :  { %5582 = vmatprep.subr.bf16.mxu1 %v21321_v36  ;;  %10707 = vmatpush1.bf16.msra.mxu0 %v21316_v35  ;;  %v21333_v24 = vld [vmem:[%s28314_s1 + $0x534] ss:$8 sps:$4 sm:$0xff]   ;;  %v1358_v35 = vor.u32 %v1357_v27, %v1353_v16  ;;  %v2490_v36 = vshrl.u32 %v17436_v28, 16  ;;  %3108 = vst [vmem:[#allocation2 + $0x358] sm:$0xf0] %v2584_v33  ;;  %v2570_v43 = vshrl.u32 %v17446_v34, 16 }
  0x45   :  { %10708 = vmatprep.subr.bf16.mxu0 %v21324_v40  ;;  %5509 = vmatprep.mubr.bf16.mxu1 %v4643_v7  ;;  %v4642_v30 = vld [vmem:[#allocation2 + $0x2c0] sm:$0xff]  ;;  %v21334_v40 = vld [vmem:[%s28314_s1 + $0x1230] ss:$8 sps:$4 sm:$0xff]   ;;  %v2573_v44 = vshll.u32 %v17446_v34, 16  ;;  %v2495_v47 = vrot.slane %v2493_v37, 5  ;;  %v1427_v53 = vrot.slane %v1425_v42, 1 }
  0x46   :  { %10635 = vmatprep.mubr.bf16.mxu0 %v9658_v23  ;;  %1897 = vst [vmem:[#allocation2 + $0x300] sm:$0xf] %v1358_v35  ;;  %v2492_v46 = vrot.slane %v2490_v36, 4  ;;  %v868_v49 = vld [vmem:[%s28315_s0 + $0xe0] sm:$0x11]  ;;  %v2572_v54 = vrot.slane %v2570_v43, 4 }
  0x47   :  { %5583 = vmatpush1.bf16.msra.mxu1 %v21319_v48  ;;  %v21342_v48 = vld [vmem:[%s28314_s1 + $0x1244] ss:$8 sps:$4 sm:$0xff]   ;;  %v9657_v51 = vld [vmem:[#allocation2 + $0x310] sm:$0xff]  ;;  %v21337_v52 = vld [vmem:[%s28314_s1 + $0x540] ss:$8 sps:$4 sm:$0xff]   ;;  %v2575_v55 = vrot.slane %v2573_v44, 5  ;;  %v17285_v56 = vcombine.high %v864_v39, %v868_v49  ;;  %v17284_v63 = vcombine.low %v864_v39, %v868_v49  ;;  %v1428_v0 = vor.u32 %v1427_v53, %v1423_v41 }
  0x48   :  { %5584 = vmatprep.subr.bf16.mxu1 %v21327_v2  ;;  %10709 = vmatpush1.bf16.msra.mxu0 %v21322_v61  ;;  %v17368_v50 = vld [vmem:[%s28315_s0 + $0x360] sm:$0x11]  ;;  %v23601_v58 = vld [vmem:[%s28315_s0 + $0x388] sm:$0xff]  ;;  %v2496_v59 = vor.u32 %v2495_v47, %v2492_v46  ;;  %v21345_v5 = vld [vmem:[%s28314_s1 + $0x554] ss:$8 sps:$4 sm:$0xff]  }
  0x49   :  { %10710 = vmatprep.subr.bf16.mxu0 %v21330_v13  ;;  %v17445_v60 = vcombine.high %v17364_v45, %v17368_v50  ;;  %v877_v61 = vld [vmem:[%s28315_s0 + $0x128] sm:$0x11]  ;;  %v2576_v1 = vor.u32 %v2575_v55, %v2572_v54  ;;  %v1416_v3 = vshrl.u32 %v17285_v56, 16  ;;  %v1418_v4 = vshll.u32 %v17285_v56, 16  ;;  %1907 = vst [vmem:[#allocation2 + $0x350] sm:$0xf] %v1428_v0 }
  0x4a   :  { %5510 = vmatmul.mubr.bf16.gmra.mrb[4].mxu1 %v4642_v30  ;;  %v17377_v62 = vld [vmem:[%s28315_s0 + $0x3a8] sm:$0x11]  ;;  %3097 = vst [vmem:[#allocation2 + $0x300] sm:$0xf0] %v2496_v59  ;;  %v21348_v11 = vld [vmem:[%s28314_s1 + $0x1254] ss:$8 sps:$4 sm:$0xff]   ;;  %v17444_v15 = vcombine.low %v17364_v45, %v17368_v50  ;;  %v17294_v36 = vcombine.low %v873_v57, %v877_v61 }
  0x4b   :  { %5585 = vmatpush1.bf16.msra.mxu1 %v21325_v8  ;;  %10636 = vmatmul.mubr.bf16.gmra.mrb[4].mxu0 %v9657_v51  ;;  %v21340_v2 = vld [vmem:[%s28314_s1 + $0x1240] ss:$8 sps:$4 sm:$0xff]   ;;  %v2562_v6 = vshrl.u32 %v17445_v60, 16  ;;  %v2565_v7 = vshll.u32 %v17445_v60, 16  ;;  %v17295_v8 = vcombine.high %v873_v57, %v877_v61  ;;  %v17455_v9 = vcombine.high %v23601_v58, %v17377_v62  ;;  %3107 = vst [vmem:[#allocation2 + $0x350] sm:$0xf0] %v2576_v1 }
  0x4c   :  { %5586 = vmatprep.subr.bf16.mxu1 %v21333_v24  ;;  %10711 = vmatpush1.bf16.msra.mxu0 %v21328_v18  ;;  %v4651_v10 = vld [vmem:[#allocation2 + $0x308] sm:$0xff]  ;;  %v1420_v12 = vrot.slane %v1418_v4, 1  ;;  %v1409_v13 = vshrl.u32 %v17284_v63, 16  ;;  %v1411_v14 = vshll.u32 %v17284_v63, 16  ;;  %v9666_v16 = vld [vmem:[#allocation2 + $0x358] sm:$0xff]  ;;  %v2554_v29 = vshrl.u32 %v17444_v15, 16 }
  0x4d   :  { %10712 = vmatprep.subr.bf16.mxu0 %v21336_v25  ;;  %5519 = vmatprep.mubr.bf16.mxu1 %v4651_v10  ;;  %v2564_v17 = vrot.slane %v2562_v6, 4  ;;  %v2567_v18 = vrot.slane %v2565_v7, 5  ;;  %v1486_v19 = vshrl.u32 %v17295_v8, 16  ;;  %v1488_v20 = vshll.u32 %v17295_v8, 16  ;;  %v21343_v21 = vld [vmem:[%s28314_s1 + $0x550] ss:$8 sps:$4 sm:$0xff]  }
  0x4e   :  { %10645 = vmatprep.mubr.bf16.mxu0 %v9666_v16  ;;  %v1421_v22 = vor.u32 %v1420_v12, %v1416_v3  ;;  %v2642_v23 = vshrl.u32 %v17455_v9, 16  ;;  %v2645_v24 = vshll.u32 %v17455_v9, 16  ;;  %v1413_v25 = vrot.slane %v1411_v14, 1  ;;  %v21346_v26 = vld [vmem:[%s28314_s1 + $0x1250] ss:$8 sps:$4 sm:$0xff]   ;;  %v872_v43 = vld [vmem:[%s28315_s0 + $0x100] sm:$0xff] }
  0x4f   :  { %5587 = vmatpush1.bf16.msra.mxu1 %v21331_v31  ;;  %v2568_v27 = vor.u32 %v2567_v18, %v2564_v17  ;;  %v1490_v28 = vrot.slane %v1488_v20, 1  ;;  %v2557_v30 = vshll.u32 %v17444_v15, 16  ;;  %v21351_v31 = vld [vmem:[%s28314_s1 + $0x564] ss:$8 sps:$4 sm:$0xff]   ;;  %v21349_v35 = vld [vmem:[%s28314_s1 + $0x560] ss:$8 sps:$4 sm:$0xff]   ;;  %v17454_v41 = vcombine.low %v23601_v58, %v17377_v62 }
  0x50   :  { %5588 = vmatprep.subr.bf16.mxu1 %v21339_v38  ;;  %10713 = vmatpush1.bf16.msra.mxu0 %v21334_v40  ;;  %1906 = vst [vmem:[#allocation2 + $0x348] sm:$0xf] %v1421_v22  ;;  %v2644_v32 = vrot.slane %v2642_v23, 4  ;;  %v2647_v33 = vrot.slane %v2645_v24, 5  ;;  %v1414_v34 = vor.u32 %v1413_v25, %v1409_v13  ;;  %v21354_v37 = vld [vmem:[%s28314_s1 + $0x1264] ss:$8 sps:$4 sm:$0xff]  }
  0x51   :  { %10714 = vmatprep.subr.bf16.mxu0 %v21342_v48  ;;  %3106 = vst [vmem:[#allocation2 + $0x348] sm:$0xf0] %v2568_v27  ;;  %v1491_v38 = vor.u32 %v1490_v28, %v1486_v19  ;;  %v2556_v39 = vrot.slane %v2554_v29, 4  ;;  %v2559_v40 = vrot.slane %v2557_v30, 5  ;;  %v21357_v42 = vld [vmem:[%s28314_s1 + $0x574] ss:$8 sps:$4 sm:$0xff]  }
  0x52   :  { %v17372_v44 = vld [vmem:[%s28315_s0 + $0x380] sm:$0xff]  ;;  %v2648_v46 = vor.u32 %v2647_v33, %v2644_v32  ;;  %1905 = vst [vmem:[#allocation2 + $0x340] sm:$0xf] %v1414_v34  ;;  %v1479_v47 = vshrl.u32 %v17294_v36, 16  ;;  %v1481_v48 = vshll.u32 %v17294_v36, 16  ;;  %v23650_v50 = vld [vmem:[%s28315_s0 + $0x148] sm:$0xff] }
  0x53   :  { %5589 = vmatpush1.bf16.msra.mxu1 %v21337_v52  ;;  %v4650_v45 = vld [vmem:[#allocation2 + $0x300] sm:$0xff]  ;;  %v9665_v51 = vld [vmem:[#allocation2 + $0x350] sm:$0xff]  ;;  %1916 = vst [vmem:[#allocation2 + $0x398] sm:$0xf] %v1491_v38  ;;  %v2560_v52 = vor.u32 %v2559_v40, %v2556_v39  ;;  %v2634_v53 = vshrl.u32 %v17454_v41, 16  ;;  %v2637_v54 = vshll.u32 %v17454_v41, 16 }
  0x54   :  { %5590 = vmatprep.subr.bf16.mxu1 %v21345_v5  ;;  %10715 = vmatpush1.bf16.msra.mxu0 %v21340_v2  ;;  %v876_v49 = vld [vmem:[%s28315_s0 + $0x120] sm:$0x11]  ;;  %v23661_v58 = vld [vmem:[%s28315_s0 + $0x3c8] sm:$0xff]  ;;  %3116 = vst [vmem:[#allocation2 + $0x398] sm:$0xf0] %v2648_v46  ;;  %v1483_v59 = vrot.slane %v1481_v48, 1 }
  0x55   :  { %10716 = vmatprep.subr.bf16.mxu0 %v21348_v11  ;;  %5520 = vmatmul.mubr.bf16.gmra.mrb[8].mxu1 %v4650_v45  ;;  %v21352_v55 = vld [vmem:[%s28314_s1 + $0x1260] ss:$8 sps:$4 sm:$0xff]   ;;  %v17293_v56 = vcombine.high %v872_v43, %v876_v49  ;;  %v23669_v63 = vcombine.low %v872_v43, %v876_v49  ;;  %3105 = vst [vmem:[#allocation2 + $0x340] sm:$0xf0] %v2560_v52  ;;  %v2636_v1 = vrot.slane %v2634_v53, 4  ;;  %v2639_v2 = vrot.slane %v2637_v54, 5 }
  0x56   :  { %v17376_v57 = vld [vmem:[%s28315_s0 + $0x3a0] sm:$0x11]  ;;  %10646 = vmatmul.mubr.bf16.gmra.mrb[8].mxu0 %v9665_v51  ;;  %v885_v61 = vld [vmem:[%s28315_s0 + $0x168] sm:$0x11]  ;;  %v1484_v5 = vor.u32 %v1483_v59, %v1479_v47  ;;  %v21355_v6 = vld [vmem:[%s28314_s1 + $0x570] ss:$8 sps:$4 sm:$0xff]  }
  0x57   :  { %5591 = vmatpush1.bf16.msra.mxu1 %v21343_v21  ;;  %v17453_v60 = vcombine.high %v17372_v44, %v17376_v57  ;;  %v17385_v62 = vld [vmem:[%s28315_s0 + $0x3e8] sm:$0x11]  ;;  %v17452_v0 = vcombine.low %v17372_v44, %v17376_v57  ;;  %v1472_v3 = vshrl.u32 %v17293_v56, 16  ;;  %v1474_v4 = vshll.u32 %v17293_v56, 16  ;;  %v21360_v7 = vld [vmem:[%s28314_s1 + $0x1274] ss:$8 sps:$4 sm:$0xff]  }
  0x58   :  { %5592 = vmatprep.subr.bf16.mxu1 %v21351_v31  ;;  %10717 = vmatpush1.bf16.msra.mxu0 %v21346_v26  ;;  %v17303_v10 = vcombine.high %v23650_v50, %v885_v61  ;;  %v2640_v11 = vor.u32 %v2639_v2, %v2636_v1  ;;  %v21358_v12 = vld [vmem:[%s28314_s1 + $0x1270] ss:$8 sps:$4 sm:$0xff]   ;;  %v17463_v14 = vcombine.high %v23661_v58, %v17385_v62  ;;  %v1465_v15 = vshrl.u32 %v23669_v63, 16  ;;  %v21363_v16 = vld [vmem:[%s28314_s1 + $0x584] ss:$8 sps:$4 sm:$0xff]  }
  0x59   :  { %10718 = vmatprep.subr.bf16.mxu0 %v21354_v37  ;;  %v2626_v8 = vshrl.u32 %v17453_v60, 16  ;;  %v2629_v9 = vshll.u32 %v17453_v60, 16  ;;  %v1476_v13 = vrot.slane %v1474_v4, 1  ;;  %v4659_v17 = vld [vmem:[#allocation2 + $0x348] sm:$0xff]  ;;  %1915 = vst [vmem:[#allocation2 + $0x390] sm:$0xf] %v1484_v5  ;;  %v17302_v36 = vcombine.low %v23650_v50, %v885_v61 }
  0x5a   :  { %v1542_v20 = vshrl.u32 %v17303_v10, 16  ;;  %v1544_v21 = vshll.u32 %v17303_v10, 16  ;;  %5529 = vmatprep.mubr.bf16.mxu1 %v4659_v17  ;;  %3115 = vst [vmem:[#allocation2 + $0x390] sm:$0xf0] %v2640_v11  ;;  %v2706_v23 = vshrl.u32 %v17463_v14, 16  ;;  %v2709_v24 = vshll.u32 %v17463_v14, 16 }
  0x5b   :  { %5593 = vmatpush1.bf16.msra.mxu1 %v21349_v35  ;;  %v2628_v18 = vrot.slane %v2626_v8, 4  ;;  %v2631_v19 = vrot.slane %v2629_v9, 5  ;;  %v1477_v22 = vor.u32 %v1476_v13, %v1472_v3  ;;  %v1467_v25 = vshll.u32 %v23669_v63, 16  ;;  %v21361_v26 = vld [vmem:[%s28314_s1 + $0x580] ss:$8 sps:$4 sm:$0xff]   ;;  %v9674_v32 = vld [vmem:[#allocation2 + $0x398] sm:$0xff] }
  0x5c   :  { %5594 = vmatprep.subr.bf16.mxu1 %v21357_v42  ;;  %10719 = vmatpush1.bf16.msra.mxu0 %v21352_v55  ;;  %v1546_v28 = vrot.slane %v1544_v21, 1  ;;  %v2618_v29 = vshrl.u32 %v17452_v0, 16  ;;  %v2621_v30 = vshll.u32 %v17452_v0, 16  ;;  %v21366_v31 = vld [vmem:[%s28314_s1 + $0x1284] ss:$8 sps:$4 sm:$0xff]   ;;  %v2708_v33 = vrot.slane %v2706_v23, 4 }
  0x5d   :  { %10720 = vmatprep.subr.bf16.mxu0 %v21360_v7  ;;  %v2632_v27 = vor.u32 %v2631_v19, %v2628_v18  ;;  %1914 = vst [vmem:[#allocation2 + $0x388] sm:$0xf] %v1477_v22  ;;  %v2711_v34 = vrot.slane %v2709_v24, 5  ;;  %v1469_v35 = vrot.slane %v1467_v25, 1  ;;  %v21369_v37 = vld [vmem:[%s28314_s1 + $0x594] ss:$8 sps:$4 sm:$0xff]   ;;  %10655 = vmatprep.mubr.bf16.mxu0 %v9674_v32  ;;  %v17462_v42 = vcombine.low %v23661_v58, %v17385_v62 }
  0x5e   :  { %v4658_v38 = vld [vmem:[#allocation2 + $0x340] sm:$0xff]  ;;  %v1547_v39 = vor.u32 %v1546_v28, %v1542_v20  ;;  %v2620_v40 = vrot.slane %v2618_v29, 4  ;;  %v2623_v41 = vrot.slane %v2621_v30, 5  ;;  %v21367_v44 = vld [vmem:[%s28314_s1 + $0x590] ss:$8 sps:$4 sm:$0xff]   ;;  %v1535_v48 = vshrl.u32 %v17302_v36, 16 }
  0x5f   :  { %5595 = vmatpush1.bf16.msra.mxu1 %v21355_v6  ;;  %3114 = vst [vmem:[#allocation2 + $0x388] sm:$0xf0] %v2632_v27  ;;  %v21364_v43 = vld [vmem:[%s28314_s1 + $0x1280] ss:$8 sps:$4 sm:$0xff]   ;;  %v2712_v46 = vor.u32 %v2711_v34, %v2708_v33  ;;  %v1470_v47 = vor.u32 %v1469_v35, %v1465_v15  ;;  %v1537_v49 = vshll.u32 %v17302_v36, 16  ;;  %v2698_v53 = vshrl.u32 %v17462_v42, 16 }
  0x60   :  { %5596 = vmatprep.subr.bf16.mxu1 %v21363_v16  ;;  %v880_v45 = vld [vmem:[%s28315_s0 + $0x140] sm:$0xff]  ;;  %5530 = vmatmul.mubr.bf16.gmra.mrb[12].mxu1 %v4658_v38  ;;  %v21372_v50 = vld [vmem:[%s28314_s1 + $0x1294] ss:$8 sps:$4 sm:$0xff]   ;;  %1924 = vst [vmem:[#allocation2 + $0x3d8] sm:$0xf] %v1547_v39  ;;  %v2624_v52 = vor.u32 %v2623_v41, %v2620_v40  ;;  %v2701_v54 = vshll.u32 %v17462_v42, 16 }
  0x61   :  { %10721 = vmatpush1.bf16.msra.mxu0 %v21358_v12  ;;  %v884_v51 = vld [vmem:[%s28315_s0 + $0x160] sm:$0x11]  ;;  %v889_v58 = vld [vmem:[%s28315_s0 + $0x188] sm:$0xff]  ;;  %3124 = vst [vmem:[#allocation2 + $0x3d8] sm:$0xf0] %v2712_v46  ;;  %v1539_v59 = vrot.slane %v1537_v49, 1 }
  0x62   :  { %10722 = vmatprep.subr.bf16.mxu0 %v21366_v31  ;;  %v17301_v55 = vcombine.high %v880_v45, %v884_v51  ;;  %v17380_v56 = vld [vmem:[%s28315_s0 + $0x3c0] sm:$0xff]  ;;  %1913 = vst [vmem:[#allocation2 + $0x380] sm:$0xf] %v1470_v47  ;;  %v893_v61 = vld [vmem:[%s28315_s0 + $0x1a8] sm:$0x11]  ;;  %v23731_v0 = vcombine.low %v880_v45, %v884_v51  ;;  %v9673_v2 = vld [vmem:[#allocation2 + $0x390] sm:$0xff] }
  0x63   :  { %5597 = vmatpush1.bf16.msra.mxu1 %v21361_v26  ;;  %v17384_v57 = vld [vmem:[%s28315_s0 + $0x3e0] sm:$0x11]  ;;  %v17389_v62 = vld [vmem:[%s28315_s0 + $0x408] sm:$0xff]  ;;  %3113 = vst [vmem:[#allocation2 + $0x380] sm:$0xf0] %v2624_v52  ;;  %v2700_v3 = vrot.slane %v2698_v53, 4  ;;  %10656 = vmatmul.mubr.bf16.gmra.mrb[12].mxu0 %v9673_v2  ;;  %v1540_v8 = vor.u32 %v1539_v59, %v1535_v48  ;;  %v17311_v11 = vcombine.high %v889_v58, %v893_v61 }
  0x64   :  { %5598 = vmatprep.subr.bf16.mxu1 %v21369_v37  ;;  %v17461_v60 = vcombine.high %v17380_v56, %v17384_v57  ;;  %v17393_v63 = vld [vmem:[%s28315_s0 + $0x428] sm:$0x11]  ;;  %v17460_v1 = vcombine.low %v17380_v56, %v17384_v57  ;;  %v2703_v4 = vrot.slane %v2701_v54, 5  ;;  %v21370_v5 = vld [vmem:[%s28314_s1 + $0x1290] ss:$8 sps:$4 sm:$0xff]   ;;  %v1528_v6 = vshrl.u32 %v17301_v55, 16 }
  0x65   :  { %v1530_v7 = vshll.u32 %v17301_v55, 16  ;;  %v21373_v12 = vld [vmem:[%s28314_s1 + $0x5a0] ss:$8 sps:$4 sm:$0xff]   ;;  %10723 = vmatpush1.bf16.msra.mxu0 %v21364_v43  ;;  %v17471_v15 = vcombine.high %v17389_v62, %v17393_v63  ;;  %v1521_v16 = vshrl.u32 %v23731_v0, 16  ;;  %v21375_v17 = vld [vmem:[%s28314_s1 + $0x5a4] ss:$8 sps:$4 sm:$0xff]   ;;  %v17310_v37 = vcombine.low %v889_v58, %v893_v61 }
  0x66   :  { %v2690_v9 = vshrl.u32 %v17461_v60, 16  ;;  %v2693_v10 = vshll.u32 %v17461_v60, 16  ;;  %v2704_v13 = vor.u32 %v2703_v4, %v2700_v3  ;;  %v4667_v18 = vld [vmem:[#allocation2 + $0x388] sm:$0xff]  ;;  %1923 = vst [vmem:[#allocation2 + $0x3d0] sm:$0xf] %v1540_v8  ;;  %10724 = vmatprep.subr.bf16.mxu0 %v21372_v50  ;;  %v1598_v21 = vshrl.u32 %v17311_v11, 16 }
  0x67   :  { %5599 = vmatpush1.bf16.msra.mxu1 %v21367_v44  ;;  %v1532_v14 = vrot.slane %v1530_v7, 1  ;;  %v1600_v22 = vshll.u32 %v17311_v11, 16  ;;  %5539 = vmatprep.mubr.bf16.mxu1 %v4667_v18  ;;  %v2770_v24 = vshrl.u32 %v17471_v15, 16  ;;  %v2773_v25 = vshll.u32 %v17471_v15, 16  ;;  %v21376_v27 = vld [vmem:[%s28314_s1 + $0x12a0] ss:$8 sps:$4 sm:$0xff]  }
  0x68   :  { %v2692_v19 = vrot.slane %v2690_v9, 4  ;;  %v2695_v20 = vrot.slane %v2693_v10, 5  ;;  %3123 = vst [vmem:[#allocation2 + $0x3d0] sm:$0xf0] %v2704_v13  ;;  %v1523_v26 = vshll.u32 %v23731_v0, 16  ;;  %5600 = vmatprep.subr.bf16.mxu1 %v21375_v17  ;;  %v2682_v30 = vshrl.u32 %v17460_v1, 16 }
  0x69   :  { %v1533_v23 = vor.u32 %v1532_v14, %v1528_v6  ;;  %v1602_v29 = vrot.slane %v1600_v22, 1  ;;  %v2685_v31 = vshll.u32 %v17460_v1, 16  ;;  %v21378_v32 = vld [vmem:[%s28314_s1 + $0x12a4] ss:$8 sps:$4 sm:$0xff]   ;;  %v9682_v33 = vld [vmem:[#allocation2 + $0x3d8] sm:$0xff]  ;;  %10725 = vmatpush1.bf16.msra.mxu0 %v21370_v5  ;;  %v2772_v34 = vrot.slane %v2770_v24, 4 }
  0x6a   :  { %v2696_v28 = vor.u32 %v2695_v20, %v2692_v19  ;;  %v2775_v35 = vrot.slane %v2773_v25, 5  ;;  %v1525_v36 = vrot.slane %v1523_v26, 1  ;;  %v21379_v38 = vld [vmem:[%s28314_s1 + $0x5b0] ss:$8 sps:$4 sm:$0xff]   ;;  %10665 = vmatprep.mubr.bf16.mxu0 %v9682_v33  ;;  %v4666_v39 = vld [vmem:[#allocation2 + $0x380] sm:$0xff]  ;;  %v2684_v41 = vrot.slane %v2682_v30, 4  ;;  %10726 = vmatprep.subr.bf16.mxu0 %v21378_v32 }
  0x6b   :  { %1922 = vst [vmem:[#allocation2 + $0x3c8] sm:$0xf] %v1533_v23  ;;  %5601 = vmatpush1.bf16.msra.mxu1 %v21373_v12  ;;  %v1603_v40 = vor.u32 %v1602_v29, %v1598_v21  ;;  %v2687_v42 = vrot.slane %v2685_v31, 5  ;;  %v17470_v43 = vcombine.low %v17389_v62, %v17393_v63  ;;  %v21381_v44 = vld [vmem:[%s28314_s1 + $0x5b4] ss:$8 sps:$4 sm:$0xff]   ;;  %v888_v45 = vld [vmem:[%s28315_s0 + $0x180] sm:$0xff] }
  0x6c   :  { %3122 = vst [vmem:[#allocation2 + $0x3c8] sm:$0xf0] %v2696_v28  ;;  %5540 = vmatmul.mubr.bf16.gmra.mrb[16].mxu1 %v4666_v39  ;;  %v2776_v46 = vor.u32 %v2775_v35, %v2772_v34  ;;  %v1526_v47 = vor.u32 %v1525_v36, %v1521_v16  ;;  %v1591_v48 = vshrl.u32 %v17310_v37, 16  ;;  %v1593_v49 = vshll.u32 %v17310_v37, 16  ;;  %v21382_v50 = vld [vmem:[%s28314_s1 + $0x12b0] ss:$8 sps:$4 sm:$0xff]   ;;  %5602 = vmatprep.subr.bf16.mxu1 %v21381_v44 }
  0x6d   :  { %v21384_v51 = vld [vmem:[%s28314_s1 + $0x12b4] ss:$8 sps:$4 sm:$0xff]   ;;  %1932 = vst [vmem:[#allocation2 + $0x418] sm:$0xf] %v1603_v40  ;;  %v2688_v52 = vor.u32 %v2687_v42, %v2684_v41  ;;  %v2762_v53 = vshrl.u32 %v17470_v43, 16  ;;  %v2765_v54 = vshll.u32 %v17470_v43, 16  ;;  %10727 = vmatpush1.bf16.msra.mxu0 %v21376_v27 }
  0x6e   :  { %v892_v55 = vld [vmem:[%s28315_s0 + $0x1a0] sm:$0x11]  ;;  %v897_v57 = vld [vmem:[%s28315_s0 + $0x1c8] sm:$0xff]  ;;  %3132 = vst [vmem:[#allocation2 + $0x418] sm:$0xf0] %v2776_v46  ;;  %v1595_v58 = vrot.slane %v1593_v49, 1  ;;  %10728 = vmatprep.subr.bf16.mxu0 %v21384_v51 }
  0x6f   :  { %v17388_v56 = vld [vmem:[%s28315_s0 + $0x400] sm:$0xff]  ;;  %1921 = vst [vmem:[#allocation2 + $0x3c0] sm:$0xf] %v1526_v47  ;;  %5603 = vmatpush1.bf16.msra.mxu1 %v21379_v38  ;;  %v17309_v59 = vcombine.high %v888_v45, %v892_v55  ;;  %v901_v61 = vld [vmem:[%s28315_s0 + $0x1e8] sm:$0x11]  ;;  %v17308_v63 = vcombine.low %v888_v45, %v892_v55  ;;  %v9681_v0 = vld [vmem:[#allocation2 + $0x3d0] sm:$0xff] }
  0x70   :  { %v17392_v60 = vld [vmem:[%s28315_s0 + $0x420] sm:$0x11]  ;;  %v17397_v62 = vld [vmem:[%s28315_s0 + $0x448] sm:$0xff]  ;;  %3121 = vst [vmem:[#allocation2 + $0x3c0] sm:$0xf0] %v2688_v52  ;;  %v2764_v1 = vrot.slane %v2762_v53, 4  ;;  %v17319_v4 = vcombine.high %v897_v57, %v901_v61  ;;  %10666 = vmatmul.mubr.bf16.gmra.mrb[16].mxu0 %v9681_v0  ;;  %v1596_v6 = vor.u32 %v1595_v58, %v1591_v48  ;;  %v17318_v35 = vcombine.low %v897_v57, %v901_v61 }
  0x71   :  { %v2767_v2 = vrot.slane %v2765_v54, 5  ;;  %v17469_v3 = vcombine.high %v17388_v56, %v17392_v60  ;;  %v17401_v5 = vld [vmem:[%s28315_s0 + $0x468] sm:$0x11]  ;;  %v1584_v7 = vshrl.u32 %v17309_v59, 16  ;;  %v1586_v8 = vshll.u32 %v17309_v59, 16  ;;  %10729 = vmatpush1.bf16.msra.mxu0 %v21382_v50  ;;  %v896_v47 = vld [vmem:[%s28315_s0 + $0x1c0] sm:$0xff] }
  0x72   :  { %v17479_v9 = vcombine.high %v17397_v62, %v17401_v5  ;;  %v21385_v10 = vld [vmem:[%s28314_s1 + $0x5c0] ss:$8 sps:$4 sm:$0xff]   ;;  %v1654_v14 = vshrl.u32 %v17319_v4, 16  ;;  %v21387_v15 = vld [vmem:[%s28314_s1 + $0x5c4] ss:$8 sps:$4 sm:$0xff]   ;;  %v1656_v18 = vshll.u32 %v17319_v4, 16  ;;  %v17468_v34 = vcombine.low %v17388_v56, %v17392_v60 }
  0x73   :  { %v2768_v11 = vor.u32 %v2767_v2, %v2764_v1  ;;  %v2754_v12 = vshrl.u32 %v17469_v3, 16  ;;  %v2757_v13 = vshll.u32 %v17469_v3, 16  ;;  %v4675_v16 = vld [vmem:[#allocation2 + $0x3c8] sm:$0xff]  ;;  %1931 = vst [vmem:[#allocation2 + $0x410] sm:$0xf] %v1596_v6  ;;  %v1588_v17 = vrot.slane %v1586_v8, 1  ;;  %5604 = vmatprep.subr.bf16.mxu1 %v21387_v15 }
  0x74   :  { %v2834_v19 = vshrl.u32 %v17479_v9, 16  ;;  %v2837_v20 = vshll.u32 %v17479_v9, 16  ;;  %5549 = vmatprep.mubr.bf16.mxu1 %v4675_v16  ;;  %v1577_v23 = vshrl.u32 %v17308_v63, 16  ;;  %v1579_v24 = vshll.u32 %v17308_v63, 16  ;;  %v21388_v25 = vld [vmem:[%s28314_s1 + $0x12c0] ss:$8 sps:$4 sm:$0xff]   ;;  %5605 = vmatpush1.bf16.msra.mxu1 %v21385_v10 }
  0x75   :  { %3131 = vst [vmem:[#allocation2 + $0x410] sm:$0xf0] %v2768_v11  ;;  %v2756_v21 = vrot.slane %v2754_v12, 4  ;;  %v2759_v22 = vrot.slane %v2757_v13, 5  ;;  %v1589_v26 = vor.u32 %v1588_v17, %v1584_v7  ;;  %v1658_v27 = vrot.slane %v1656_v18, 1  ;;  %v9690_v31 = vld [vmem:[#allocation2 + $0x418] sm:$0xff] }
  0x76   :  { %v2836_v28 = vrot.slane %v2834_v19, 4  ;;  %v2839_v29 = vrot.slane %v2837_v20, 5  ;;  %v21390_v30 = vld [vmem:[%s28314_s1 + $0x12c4] ss:$8 sps:$4 sm:$0xff]   ;;  %v1581_v33 = vrot.slane %v1579_v24, 1  ;;  %10675 = vmatprep.mubr.bf16.mxu0 %v9690_v31  ;;  %v17478_v41 = vcombine.low %v17397_v62, %v17401_v5 }
  0x77   :  { %v2760_v32 = vor.u32 %v2759_v22, %v2756_v21  ;;  %v21391_v36 = vld [vmem:[%s28314_s1 + $0x5d0] ss:$8 sps:$4 sm:$0xff]   ;;  %v21393_v37 = vld [vmem:[%s28314_s1 + $0x5d4] ss:$8 sps:$4 sm:$0xff]   ;;  %v4674_v38 = vld [vmem:[#allocation2 + $0x3c0] sm:$0xff]  ;;  %v1659_v39 = vor.u32 %v1658_v27, %v1654_v14  ;;  %10730 = vmatprep.subr.bf16.mxu0 %v21390_v30  ;;  %v2746_v43 = vshrl.u32 %v17468_v34, 16 }
  0x78   :  { %1930 = vst [vmem:[#allocation2 + $0x408] sm:$0xf] %v1589_v26  ;;  %v2840_v40 = vor.u32 %v2839_v29, %v2836_v28  ;;  %5550 = vmatmul.mubr.bf16.gmra.mrb[20].mxu1 %v4674_v38  ;;  %v1582_v42 = vor.u32 %v1581_v33, %v1577_v23  ;;  %v2749_v44 = vshll.u32 %v17468_v34, 16  ;;  %v1647_v45 = vshrl.u32 %v17318_v35, 16  ;;  %10731 = vmatpush1.bf16.msra.mxu0 %v21388_v25  ;;  %v21394_v46 = vld [vmem:[%s28314_s1 + $0x12d0] ss:$8 sps:$4 sm:$0xff]  }
  0x79   :  { %3130 = vst [vmem:[#allocation2 + $0x408] sm:$0xf0] %v2760_v32  ;;  %1940 = vst [vmem:[#allocation2 + $0x458] sm:$0xf] %v1659_v39  ;;  %v1649_v48 = vshll.u32 %v17318_v35, 16  ;;  %v2826_v49 = vshrl.u32 %v17478_v41, 16  ;;  %5606 = vmatprep.subr.bf16.mxu1 %v21393_v37 }
  0x7a   :  { %3140 = vst [vmem:[#allocation2 + $0x458] sm:$0xf0] %v2840_v40  ;;  %v2829_v50 = vshll.u32 %v17478_v41, 16  ;;  %v21396_v51 = vld [vmem:[%s28314_s1 + $0x12d4] ss:$8 sps:$4 sm:$0xff]   ;;  %v17396_v52 = vld [vmem:[%s28315_s0 + $0x440] sm:$0xff]  ;;  %5607 = vmatpush1.bf16.msra.mxu1 %v21391_v36 }
  0x7b   :  { %1929 = vst [vmem:[#allocation2 + $0x400] sm:$0xf] %v1582_v42  ;;  %v2748_v53 = vrot.slane %v2746_v43, 4  ;;  %v2751_v54 = vrot.slane %v2749_v44, 5  ;;  %v900_v55 = vld [vmem:[%s28315_s0 + $0x1e0] sm:$0x11]  ;;  %10732 = vmatprep.subr.bf16.mxu0 %v21396_v51 }
  0x7c   :  { %v17400_v56 = vld [vmem:[%s28315_s0 + $0x460] sm:$0x11]  ;;  %v9689_v57 = vld [vmem:[#allocation2 + $0x410] sm:$0xff]  ;;  %v1651_v58 = vrot.slane %v1649_v48, 1  ;;  %v2828_v59 = vrot.slane %v2826_v49, 4  ;;  %v2831_v60 = vrot.slane %v2829_v50, 5  ;;  %v17317_v61 = vcombine.high %v896_v47, %v900_v55  ;;  %10733 = vmatpush1.bf16.msra.mxu0 %v21394_v46 }
  0x7d   :  { %v905_v62 = vld [vmem:[%s28315_s0 + $0x208] sm:$0xff]  ;;  %10676 = vmatmul.mubr.bf16.gmra.mrb[20].mxu0 %v9689_v57  ;;  %v2752_v0 = vor.u32 %v2751_v54, %v2748_v53  ;;  %v17477_v1 = vcombine.high %v17396_v52, %v17400_v56  ;;  %v17316_v4 = vcombine.low %v896_v47, %v900_v55  ;;  %v17476_v5 = vcombine.low %v17396_v52, %v17400_v56  ;;  %v21403_v41 = vld [vmem:[%s28314_s1 + $0x5f0] ss:$8 sps:$4 sm:$0xff]   ;;  %v21405_v42 = vld [vmem:[%s28314_s1 + $0x5f4] ss:$8 sps:$4 sm:$0xff]  }
  0x7e   :  { %v17405_v63 = vld [vmem:[%s28315_s0 + $0x488] sm:$0xff]  ;;  %v1652_v6 = vor.u32 %v1651_v58, %v1647_v45  ;;  %v2832_v7 = vor.u32 %v2831_v60, %v2828_v59  ;;  %v1640_v8 = vshrl.u32 %v17317_v61, 16  ;;  %v1642_v9 = vshll.u32 %v17317_v61, 16  ;;  %v21406_v46 = vld [vmem:[%s28314_s1 + $0x12f0] ss:$8 sps:$4 sm:$0xff]  }
  0x7f   :  { %v909_v2 = vld [vmem:[%s28315_s0 + $0x228] sm:$0x11]  ;;  %3129 = vst [vmem:[#allocation2 + $0x400] sm:$0xf0] %v2752_v0  ;;  %v2818_v11 = vshrl.u32 %v17477_v1, 16  ;;  %v2821_v12 = vshll.u32 %v17477_v1, 16 }
  0x80   :  { %v17409_v3 = vld [vmem:[%s28315_s0 + $0x4a8] sm:$0x11]  ;;  %v17327_v13 = vcombine.high %v905_v62, %v909_v2  ;;  %1939 = vst [vmem:[#allocation2 + $0x450] sm:$0xf] %v1652_v6  ;;  %3139 = vst [vmem:[#allocation2 + $0x450] sm:$0xf0] %v2832_v7  ;;  %v17326_v40 = vcombine.low %v905_v62, %v909_v2 }
  0x81   :  { %v21397_v10 = vld [vmem:[%s28314_s1 + $0x5e0] ss:$8 sps:$4 sm:$0xff]   ;;  %v17487_v14 = vcombine.high %v17405_v63, %v17409_v3  ;;  %v21399_v15 = vld [vmem:[%s28314_s1 + $0x5e4] ss:$8 sps:$4 sm:$0xff]   ;;  %v1644_v17 = vrot.slane %v1642_v9, 1  ;;  %v1633_v18 = vshrl.u32 %v17316_v4, 16  ;;  %v17486_v45 = vcombine.low %v17405_v63, %v17409_v3 }
  0x82   :  { %v4683_v16 = vld [vmem:[#allocation2 + $0x408] sm:$0xff]  ;;  %v1635_v19 = vshll.u32 %v17316_v4, 16  ;;  %v2810_v20 = vshrl.u32 %v17476_v5, 16  ;;  %v9698_v21 = vld [vmem:[#allocation2 + $0x458] sm:$0xff]  ;;  %v2820_v22 = vrot.slane %v2818_v11, 4  ;;  %v2823_v23 = vrot.slane %v2821_v12, 5  ;;  %5608 = vmatprep.subr.bf16.mxu1 %v21399_v15 }
  0x83   :  { %5559 = vmatprep.mubr.bf16.mxu1 %v4683_v16  ;;  %v1710_v24 = vshrl.u32 %v17327_v13, 16  ;;  %v1712_v25 = vshll.u32 %v17327_v13, 16  ;;  %10685 = vmatprep.mubr.bf16.mxu0 %v9698_v21  ;;  %v1645_v26 = vor.u32 %v1644_v17, %v1640_v8  ;;  %v2898_v27 = vshrl.u32 %v17487_v14, 16  ;;  %v21400_v30 = vld [vmem:[%s28314_s1 + $0x12e0] ss:$8 sps:$4 sm:$0xff]   ;;  %v850_v54 = vld [vmem:[%s28315_s0 + $0x50] sm:$0xff] }
  0x84   :  { %v2901_v28 = vshll.u32 %v17487_v14, 16  ;;  %v1637_v29 = vrot.slane %v1635_v19, 1  ;;  %5609 = vmatpush1.bf16.msra.mxu1 %v21397_v10  ;;  %v2824_v31 = vor.u32 %v2823_v23, %v2820_v22  ;;  %v2812_v33 = vrot.slane %v2810_v20, 4  ;;  %v21402_v35 = vld [vmem:[%s28314_s1 + $0x12e4] ss:$8 sps:$4 sm:$0xff]   ;;  %v17350_v2 = vld [vmem:[%s28315_s0 + $0x2d0] sm:$0xff] }
  0x85   :  { %v1714_v32 = vrot.slane %v1712_v25, 1  ;;  %v2813_v34 = vshll.u32 %v17476_v5, 16  ;;  %v841_v36 = vld [vmem:[%s28315_s0 + $0x8] sm:$0xff]  ;;  %1938 = vst [vmem:[#allocation2 + $0x448] sm:$0xf] %v1645_v26  ;;  %v2900_v37 = vrot.slane %v2898_v27, 4  ;;  %10734 = vmatprep.subr.bf16.mxu0 %v21402_v35  ;;  %5610 = vmatprep.subr.bf16.mxu1 %v21405_v42 }
  0x86   :  { %v2903_v38 = vrot.slane %v2901_v28, 5  ;;  %v1638_v39 = vor.u32 %v1637_v29, %v1633_v18  ;;  %3138 = vst [vmem:[#allocation2 + $0x448] sm:$0xf0] %v2824_v31  ;;  %v21408_v47 = vld [vmem:[%s28314_s1 + $0x12f4] ss:$8 sps:$4 sm:$0xff]   ;;  %v17341_v48 = vld [vmem:[%s28315_s0 + $0x288] sm:$0xff]  ;;  %10735 = vmatpush1.bf16.msra.mxu0 %v21400_v30 }
  0x87   :  { %v1715_v43 = vor.u32 %v1714_v32, %v1710_v24  ;;  %v2815_v44 = vrot.slane %v2813_v34, 5  ;;  %v4682_v49 = vld [vmem:[#allocation2 + $0x400] sm:$0xff]  ;;  %v1703_v51 = vshrl.u32 %v17326_v40, 16  ;;  %v1705_v52 = vshll.u32 %v17326_v40, 16  ;;  %v845_v53 = vld [vmem:[%s28315_s0 + $0x28] sm:$0x11]  ;;  %10736 = vmatprep.subr.bf16.mxu0 %v21408_v47 }
  0x88   :  { %v2904_v50 = vor.u32 %v2903_v38, %v2900_v37  ;;  %1937 = vst [vmem:[#allocation2 + $0x440] sm:$0xf] %v1638_v39  ;;  %5560 = vmatmul.mubr.bf16.gmra.mrb[24].mxu1 %v4682_v49  ;;  %v9697_v55 = vld [vmem:[#allocation2 + $0x450] sm:$0xff]  ;;  %v2890_v57 = vshrl.u32 %v17486_v45, 16  ;;  %v2893_v58 = vshll.u32 %v17486_v45, 16  ;;  %v17262_v59 = vcombine.low %v841_v36, %v845_v53 }
  0x89   :  { %1948 = vst [vmem:[#allocation2 + $0x498] sm:$0xf] %v1715_v43  ;;  %v2816_v56 = vor.u32 %v2815_v44, %v2812_v33  ;;  %v17345_v60 = vld [vmem:[%s28315_s0 + $0x2a8] sm:$0x11]  ;;  %10686 = vmatmul.mubr.bf16.gmra.mrb[24].mxu0 %v9697_v55  ;;  %v1707_v61 = vrot.slane %v1705_v52, 1  ;;  %5611 = vmatpush1.bf16.msra.mxu1 %v21403_v41  ;;  %v17263_v62 = vcombine.high %v841_v36, %v845_v53  ;;  %v858_v45 = vld [vmem:[%s28315_s0 + $0x90] sm:$0xff] }
  0x8a   :  { %3148 = vst [vmem:[#allocation2 + $0x498] sm:$0xf0] %v2904_v50  ;;  %v17422_v63 = vcombine.low %v17341_v48, %v17345_v60  ;;  %v17423_v0 = vcombine.high %v17341_v48, %v17345_v60  ;;  %v854_v1 = vld [vmem:[%s28315_s0 + $0x70] sm:$0x11]  ;;  %v2892_v3 = vrot.slane %v2890_v57, 4  ;;  %v2895_v4 = vrot.slane %v2893_v58, 5  ;;  %10737 = vmatpush1.bf16.msra.mxu0 %v21406_v46 }
  0x8b   :  { %3137 = vst [vmem:[#allocation2 + $0x440] sm:$0xf0] %v2816_v56  ;;  %v23879_v5 = vcombine.low %v850_v54, %v854_v1  ;;  %v17273_v6 = vcombine.high %v850_v54, %v854_v1  ;;  %v17354_v7 = vld [vmem:[%s28315_s0 + $0x2f0] sm:$0x11]  ;;  %v1708_v8 = vor.u32 %v1707_v61, %v1703_v51  ;;  %v1262_v9 = vshrl.u32 %v17263_v62, 16 }
  0x8c   :  { %v1264_v10 = vshll.u32 %v17263_v62, 16  ;;  %v2386_v11 = vshrl.u32 %v17423_v0, 16  ;;  %v21411_v12 = vld [vmem:[%s28314_s1 + $0x604] ss:$8 sps:$4 sm:$0xff]   ;;  %v2896_v13 = vor.u32 %v2895_v4, %v2892_v3  ;;  %v2389_v14 = vshll.u32 %v17423_v0, 16  ;;  %v17358_v49 = vld [vmem:[%s28315_s0 + $0x310] sm:$0xff] }
  0x8d   :  { %v1332_v15 = vshrl.u32 %v17273_v6, 16  ;;  %v1334_v16 = vshll.u32 %v17273_v6, 16  ;;  %v4691_v17 = vld [vmem:[#allocation2 + $0x448] sm:$0xff]  ;;  %1947 = vst [vmem:[#allocation2 + $0x490] sm:$0xf] %v1708_v8  ;;  %v17432_v20 = vcombine.low %v17350_v2, %v17354_v7  ;;  %v17433_v21 = vcombine.high %v17350_v2, %v17354_v7  ;;  %5693 = vmatprep.subr.bf16.mxu1 %v21411_v12 }
  0x8e   :  { %v1266_v18 = vrot.slane %v1264_v10, 1  ;;  %v2388_v19 = vrot.slane %v2386_v11, 4  ;;  %v21414_v22 = vld [vmem:[%s28314_s1 + $0x1304] ss:$8 sps:$4 sm:$0xff]   ;;  %5569 = vmatprep.mubr.bf16.mxu1 %v4691_v17  ;;  %3147 = vst [vmem:[#allocation2 + $0x490] sm:$0xf0] %v2896_v13 }
  0x8f   :  { %v2391_v23 = vrot.slane %v2389_v14, 5  ;;  %v1336_v24 = vrot.slane %v1334_v16, 1  ;;  %v1255_v25 = vshrl.u32 %v17262_v59, 16  ;;  %v1257_v26 = vshll.u32 %v17262_v59, 16  ;;  %10819 = vmatprep.subr.bf16.mxu0 %v21414_v22  ;;  %v862_v48 = vld [vmem:[%s28315_s0 + $0xb0] sm:$0x11] }
  0x90   :  { %v1267_v27 = vor.u32 %v1266_v18, %v1262_v9  ;;  %v2466_v28 = vshrl.u32 %v17433_v21, 16  ;;  %v2469_v29 = vshll.u32 %v17433_v21, 16  ;;  %v2378_v30 = vshrl.u32 %v17422_v63, 16  ;;  %v17362_v50 = vld [vmem:[%s28315_s0 + $0x330] sm:$0x11]  ;;  %v4645_v16 = vld [vmem:[#allocation2 + $0x2d8] sm:$0xff] }
  0x91   :  { %v9706_v31 = vld [vmem:[#allocation2 + $0x498] sm:$0xff]  ;;  %v2392_v32 = vor.u32 %v2391_v23, %v2388_v19  ;;  %v1337_v33 = vor.u32 %v1336_v24, %v1332_v15  ;;  %v1259_v34 = vrot.slane %v1257_v26, 1  ;;  %v2381_v35 = vshll.u32 %v17422_v63, 16  ;;  %v21409_v10 = vld [vmem:[%s28314_s1 + $0x600] ss:$8 sps:$4 sm:$0xff]   ;;  %v866_v18 = vld [vmem:[%s28315_s0 + $0xd0] sm:$0xff] }
  0x92   :  { %10695 = vmatprep.mubr.bf16.mxu0 %v9706_v31  ;;  %v4690_v36 = vld [vmem:[#allocation2 + $0x440] sm:$0xff]  ;;  %1884 = vst [vmem:[#allocation2 + $0x298] sm:$0xf] %v1267_v27  ;;  %v2468_v37 = vrot.slane %v2466_v28, 4  ;;  %v2471_v38 = vrot.slane %v2469_v29, 5  ;;  %v2380_v39 = vrot.slane %v2378_v30, 4  ;;  %v17281_v54 = vcombine.high %v858_v45, %v862_v48 }
  0x93   :  { %v1325_v40 = vshrl.u32 %v23879_v5, 16  ;;  %5570 = vmatmul.mubr.bf16.gmra.mrb[28].mxu1 %v4690_v36  ;;  %3084 = vst [vmem:[#allocation2 + $0x298] sm:$0xf0] %v2392_v32  ;;  %1894 = vst [vmem:[#allocation2 + $0x2e8] sm:$0xf] %v1337_v33  ;;  %v1260_v41 = vor.u32 %v1259_v34, %v1255_v25  ;;  %v2383_v42 = vrot.slane %v2381_v35, 5  ;;  %v17441_v57 = vcombine.high %v17358_v49, %v17362_v50 }
  0x94   :  { %v1327_v43 = vshll.u32 %v23879_v5, 16  ;;  %v2458_v44 = vshrl.u32 %v17432_v20, 16  ;;  %v2472_v46 = vor.u32 %v2471_v38, %v2468_v37  ;;  %v2461_v47 = vshll.u32 %v17432_v20, 16  ;;  %v21417_v15 = vld [vmem:[%s28314_s1 + $0x614] ss:$8 sps:$4 sm:$0xff]  }
  0x95   :  { %1883 = vst [vmem:[#allocation2 + $0x290] sm:$0xf] %v1260_v41  ;;  %v2384_v51 = vor.u32 %v2383_v42, %v2380_v39  ;;  %v9705_v55 = vld [vmem:[#allocation2 + $0x490] sm:$0xff]  ;;  %v17280_v58 = vcombine.low %v858_v45, %v862_v48  ;;  %v17440_v59 = vcombine.low %v17358_v49, %v17362_v50  ;;  %v1388_v61 = vshrl.u32 %v17281_v54, 16  ;;  %v21412_v20 = vld [vmem:[%s28314_s1 + $0x1300] ss:$8 sps:$4 sm:$0xff]  }
  0x96   :  { %v1329_v52 = vrot.slane %v1327_v43, 1  ;;  %v2460_v53 = vrot.slane %v2458_v44, 4  ;;  %3094 = vst [vmem:[#allocation2 + $0x2e8] sm:$0xf0] %v2472_v46  ;;  %v2463_v56 = vrot.slane %v2461_v47, 5  ;;  %10696 = vmatmul.mubr.bf16.gmra.mrb[28].mxu0 %v9705_v55  ;;  %v1390_v62 = vshll.u32 %v17281_v54, 16 }
  0x97   :  { %3083 = vst [vmem:[#allocation2 + $0x290] sm:$0xf0] %v2384_v51  ;;  %v2530_v0 = vshrl.u32 %v17441_v57, 16  ;;  %v2533_v1 = vshll.u32 %v17441_v57, 16  ;;  %v1381_v2 = vshrl.u32 %v17280_v58, 16  ;;  %v1383_v4 = vshll.u32 %v17280_v58, 16 }
  0x98   :  { %v1330_v60 = vor.u32 %v1329_v52, %v1325_v40  ;;  %v2464_v63 = vor.u32 %v2463_v56, %v2460_v53  ;;  %v1392_v3 = vrot.slane %v1390_v62, 1  ;;  %v2522_v5 = vshrl.u32 %v17440_v59, 16  ;;  %v870_v23 = vld [vmem:[%s28315_s0 + $0xf0] sm:$0x11]  ;;  %v21423_v33 = vld [vmem:[%s28314_s1 + $0x624] ss:$8 sps:$4 sm:$0xff]  }
  0x99   :  { %v2525_v6 = vshll.u32 %v17440_v59, 16  ;;  %v2532_v8 = vrot.slane %v2530_v0, 4  ;;  %v2535_v9 = vrot.slane %v2533_v1, 5  ;;  %v1385_v12 = vrot.slane %v1383_v4, 1  ;;  %v17366_v24 = vld [vmem:[%s28315_s0 + $0x350] sm:$0xff] }
  0x9a   :  { %1893 = vst [vmem:[#allocation2 + $0x2e0] sm:$0xf] %v1330_v60  ;;  %v4637_v7 = vld [vmem:[#allocation2 + $0x298] sm:$0xff]  ;;  %3093 = vst [vmem:[#allocation2 + $0x2e0] sm:$0xf0] %v2464_v63  ;;  %v1393_v11 = vor.u32 %v1392_v3, %v1388_v61  ;;  %v2524_v13 = vrot.slane %v2522_v5, 4  ;;  %v17289_v27 = vcombine.high %v866_v18, %v870_v23  ;;  %v17288_v29 = vcombine.low %v866_v18, %v870_v23 }
  0x9b   :  { %5612 = vmatprep.mubr.bf16.mxu1 %v4637_v7  ;;  %v2527_v14 = vrot.slane %v2525_v6, 5  ;;  %v2536_v17 = vor.u32 %v2535_v9, %v2532_v8  ;;  %v1386_v21 = vor.u32 %v1385_v12, %v1381_v2  ;;  %v21415_v26 = vld [vmem:[%s28314_s1 + $0x610] ss:$8 sps:$4 sm:$0xff]   ;;  %v21420_v30 = vld [vmem:[%s28314_s1 + $0x1314] ss:$8 sps:$4 sm:$0xff]  }
  0x9c   :  { %1902 = vst [vmem:[#allocation2 + $0x328] sm:$0xf] %v1393_v11  ;;  %v17370_v28 = vld [vmem:[%s28315_s0 + $0x370] sm:$0x11]  ;;  %v1444_v34 = vshrl.u32 %v17289_v27, 16  ;;  %v1446_v35 = vshll.u32 %v17289_v27, 16 }
  0x9d   :  { %v9652_v19 = vld [vmem:[#allocation2 + $0x2e8] sm:$0xff]  ;;  %v2528_v22 = vor.u32 %v2527_v14, %v2524_v13  ;;  %3102 = vst [vmem:[#allocation2 + $0x328] sm:$0xf0] %v2536_v17  ;;  %1901 = vst [vmem:[#allocation2 + $0x320] sm:$0xf] %v1386_v21  ;;  %v17449_v31 = vcombine.high %v17366_v24, %v17370_v28  ;;  %v17448_v32 = vcombine.low %v17366_v24, %v17370_v28  ;;  %v1437_v36 = vshrl.u32 %v17288_v29, 16 }
  0x9e   :  { %10738 = vmatprep.mubr.bf16.mxu0 %v9652_v19  ;;  %v4636_v25 = vld [vmem:[#allocation2 + $0x290] sm:$0xff]  ;;  %v1439_v37 = vshll.u32 %v17288_v29, 16  ;;  %v1448_v45 = vrot.slane %v1446_v35, 1  ;;  %v21421_v47 = vld [vmem:[%s28314_s1 + $0x620] ss:$8 sps:$4 sm:$0xff]   ;;  %v4653_v61 = vld [vmem:[#allocation2 + $0x318] sm:$0xff] }
  0x9f   :  { %5613 = vmatmul.mubr.bf16.vlgmr.msra.gmra.mrb[0].mxu1 %v4636_v25  ;;  %3101 = vst [vmem:[#allocation2 + $0x320] sm:$0xf0] %v2528_v22  ;;  %v21418_v39 = vld [vmem:[%s28314_s1 + $0x1310] ss:$8 sps:$4 sm:$0xff]   ;;  %v2594_v40 = vshrl.u32 %v17449_v31, 16  ;;  %v2597_v41 = vshll.u32 %v17449_v31, 16 }
  0xa0   :  { %5694 = vmatpush1.bf16.msra.mxu1 %v21409_v10  ;;  %5622 = vmatprep.mubr.bf16.mxu1 %v4645_v16  ;;  %v2586_v42 = vshrl.u32 %v17448_v32, 16  ;;  %v2589_v43 = vshll.u32 %v17448_v32, 16  ;;  %v4644_v44 = vld [vmem:[#allocation2 + $0x2d0] sm:$0xff]  ;;  %v1441_v46 = vrot.slane %v1439_v37, 1  ;;  %v21426_v52 = vld [vmem:[%s28314_s1 + $0x1324] ss:$8 sps:$4 sm:$0xff]   ;;  %v1449_v54 = vor.u32 %v1448_v45, %v1444_v34 }
  0xa1   :  { %v9651_v38 = vld [vmem:[#allocation2 + $0x2e0] sm:$0xff]  ;;  %5695 = vmatprep.subr.bf16.mxu1 %v21417_v15  ;;  %v2596_v48 = vrot.slane %v2594_v40, 4  ;;  %v2599_v49 = vrot.slane %v2597_v41, 5  ;;  %v21429_v53 = vld [vmem:[%s28314_s1 + $0x634] ss:$8 sps:$4 sm:$0xff]  }
  0xa2   :  { %10739 = vmatmul.mubr.bf16.vlgmr.msra.gmra.mrb[0].mxu0 %v9651_v38  ;;  %v2588_v50 = vrot.slane %v2586_v42, 4  ;;  %v2591_v51 = vrot.slane %v2589_v43, 5  ;;  %v1442_v55 = vor.u32 %v1441_v46, %v1437_v36  ;;  %v21424_v59 = vld [vmem:[%s28314_s1 + $0x1320] ss:$8 sps:$4 sm:$0xff]   ;;  %v21427_v60 = vld [vmem:[%s28314_s1 + $0x630] ss:$8 sps:$4 sm:$0xff]  }
  0xa3   :  { %10820 = vmatpush1.bf16.msra.mxu0 %v21412_v20  ;;  %v2600_v57 = vor.u32 %v2599_v49, %v2596_v48  ;;  %1910 = vst [vmem:[#allocation2 + $0x368] sm:$0xf] %v1449_v54  ;;  %v874_v63 = vld [vmem:[%s28315_s0 + $0x110] sm:$0xff]  ;;  %v21435_v6 = vld [vmem:[%s28314_s1 + $0x644] ss:$8 sps:$4 sm:$0xff]  }
  0xa4   :  { %10821 = vmatprep.subr.bf16.mxu0 %v21420_v30  ;;  %5696 = vmatpush1.bf16.msra.mxu1 %v21415_v26  ;;  %v9660_v56 = vld [vmem:[#allocation2 + $0x328] sm:$0xff]  ;;  %v2592_v58 = vor.u32 %v2591_v51, %v2588_v50  ;;  %1909 = vst [vmem:[#allocation2 + $0x360] sm:$0xf] %v1442_v55  ;;  %v878_v0 = vld [vmem:[%s28315_s0 + $0x130] sm:$0x11]  ;;  %v4661_v30 = vld [vmem:[#allocation2 + $0x358] sm:$0xff] }
  0xa5   :  { %5697 = vmatprep.subr.bf16.mxu1 %v21423_v33  ;;  %10748 = vmatprep.mubr.bf16.mxu0 %v9660_v56  ;;  %3110 = vst [vmem:[#allocation2 + $0x368] sm:$0xf0] %v2600_v57  ;;  %v21432_v1 = vld [vmem:[%s28314_s1 + $0x1334] ss:$8 sps:$4 sm:$0xff]   ;;  %v17297_v2 = vcombine.high %v874_v63, %v878_v0  ;;  %v17296_v5 = vcombine.low %v874_v63, %v878_v0  ;;  %v21430_v9 = vld [vmem:[%s28314_s1 + $0x1330] ss:$8 sps:$4 sm:$0xff]  }
  0xa6   :  { %v9659_v62 = vld [vmem:[#allocation2 + $0x320] sm:$0xff]  ;;  %3109 = vst [vmem:[#allocation2 + $0x360] sm:$0xf0] %v2592_v58  ;;  %v17374_v3 = vld [vmem:[%s28315_s0 + $0x390] sm:$0xff] }
  0xa7   :  { %10822 = vmatpush1.bf16.msra.mxu0 %v21418_v39  ;;  %5623 = vmatmul.mubr.bf16.gmra.mrb[4].mxu1 %v4644_v44  ;;  %v17378_v4 = vld [vmem:[%s28315_s0 + $0x3b0] sm:$0x11]  ;;  %v1500_v10 = vshrl.u32 %v17297_v2, 16  ;;  %v1502_v11 = vshll.u32 %v17297_v2, 16  ;;  %v1493_v12 = vshrl.u32 %v17296_v5, 16  ;;  %v1495_v13 = vshll.u32 %v17296_v5, 16 }
  0xa8   :  { %10823 = vmatprep.subr.bf16.mxu0 %v21426_v52  ;;  %5698 = vmatpush1.bf16.msra.mxu1 %v21421_v47  ;;  %v17457_v7 = vcombine.high %v17374_v3, %v17378_v4  ;;  %v17456_v8 = vcombine.low %v17374_v3, %v17378_v4  ;;  %v4652_v14 = vld [vmem:[#allocation2 + $0x310] sm:$0xff]  ;;  %v21433_v19 = vld [vmem:[%s28314_s1 + $0x640] ss:$8 sps:$4 sm:$0xff]   ;;  %v21438_v20 = vld [vmem:[%s28314_s1 + $0x1344] ss:$8 sps:$4 sm:$0xff]  }
  0xa9   :  { %5699 = vmatprep.subr.bf16.mxu1 %v21429_v53  ;;  %5632 = vmatprep.mubr.bf16.mxu1 %v4653_v61  ;;  %v1504_v21 = vrot.slane %v1502_v11, 1  ;;  %v1497_v22 = vrot.slane %v1495_v13, 1  ;;  %v21436_v23 = vld [vmem:[%s28314_s1 + $0x1340] ss:$8 sps:$4 sm:$0xff]   ;;  %v21441_v29 = vld [vmem:[%s28314_s1 + $0x654] ss:$8 sps:$4 sm:$0xff]  }
  0xaa   :  { %10749 = vmatmul.mubr.bf16.gmra.mrb[4].mxu0 %v9659_v62  ;;  %v2658_v15 = vshrl.u32 %v17457_v7, 16  ;;  %v2661_v16 = vshll.u32 %v17457_v7, 16  ;;  %v2650_v17 = vshrl.u32 %v17456_v8, 16  ;;  %v2653_v18 = vshll.u32 %v17456_v8, 16  ;;  %v21439_v36 = vld [vmem:[%s28314_s1 + $0x650] ss:$8 sps:$4 sm:$0xff]  }
  0xab   :  { %10824 = vmatpush1.bf16.msra.mxu0 %v21424_v59  ;;  %v1505_v31 = vor.u32 %v1504_v21, %v1500_v10  ;;  %v1498_v32 = vor.u32 %v1497_v22, %v1493_v12  ;;  %v21444_v37 = vld [vmem:[%s28314_s1 + $0x1354] ss:$8 sps:$4 sm:$0xff]   ;;  %v21442_v38 = vld [vmem:[%s28314_s1 + $0x1350] ss:$8 sps:$4 sm:$0xff]   ;;  %v21447_v42 = vld [vmem:[%s28314_s1 + $0x664] ss:$8 sps:$4 sm:$0xff]  }
  0xac   :  { %10825 = vmatprep.subr.bf16.mxu0 %v21432_v1  ;;  %5700 = vmatpush1.bf16.msra.mxu1 %v21427_v60  ;;  %v2660_v24 = vrot.slane %v2658_v15, 4  ;;  %v2663_v25 = vrot.slane %v2661_v16, 5  ;;  %v2652_v26 = vrot.slane %v2650_v17, 4  ;;  %v2655_v27 = vrot.slane %v2653_v18, 5  ;;  %v9668_v28 = vld [vmem:[#allocation2 + $0x368] sm:$0xff]  ;;  %v882_v39 = vld [vmem:[%s28315_s0 + $0x150] sm:$0xff] }
  0xad   :  { %5701 = vmatprep.subr.bf16.mxu1 %v21435_v6  ;;  %10758 = vmatprep.mubr.bf16.mxu0 %v9668_v28  ;;  %v9667_v33 = vld [vmem:[#allocation2 + $0x360] sm:$0xff]  ;;  %1918 = vst [vmem:[#allocation2 + $0x3a8] sm:$0xf] %v1505_v31  ;;  %1917 = vst [vmem:[#allocation2 + $0x3a0] sm:$0xf] %v1498_v32  ;;  %v17382_v41 = vld [vmem:[%s28315_s0 + $0x3d0] sm:$0xff] }
  0xae   :  { %v2664_v34 = vor.u32 %v2663_v25, %v2660_v24  ;;  %v2656_v35 = vor.u32 %v2655_v27, %v2652_v26  ;;  %v886_v40 = vld [vmem:[%s28315_s0 + $0x170] sm:$0x11]  ;;  %v21445_v47 = vld [vmem:[%s28314_s1 + $0x660] ss:$8 sps:$4 sm:$0xff]   ;;  %v21450_v48 = vld [vmem:[%s28314_s1 + $0x1364] ss:$8 sps:$4 sm:$0xff]  }
  0xaf   :  { %10826 = vmatpush1.bf16.msra.mxu0 %v21430_v9  ;;  %5633 = vmatmul.mubr.bf16.gmra.mrb[8].mxu1 %v4652_v14  ;;  %v17305_v43 = vcombine.high %v882_v39, %v886_v40  ;;  %v17386_v44 = vld [vmem:[%s28315_s0 + $0x3f0] sm:$0x11]  ;;  %v17304_v45 = vcombine.low %v882_v39, %v886_v40  ;;  %v21448_v55 = vld [vmem:[%s28314_s1 + $0x1360] ss:$8 sps:$4 sm:$0xff]   ;;  %v4669_v6 = vld [vmem:[#allocation2 + $0x398] sm:$0xff] }
  0xb0   :  { %10827 = vmatprep.subr.bf16.mxu0 %v21438_v20  ;;  %5702 = vmatpush1.bf16.msra.mxu1 %v21433_v19  ;;  %3118 = vst [vmem:[#allocation2 + $0x3a8] sm:$0xf0] %v2664_v34  ;;  %3117 = vst [vmem:[#allocation2 + $0x3a0] sm:$0xf0] %v2656_v35  ;;  %v4660_v46 = vld [vmem:[#allocation2 + $0x350] sm:$0xff]  ;;  %v17465_v49 = vcombine.high %v17382_v41, %v17386_v44  ;;  %v17464_v50 = vcombine.low %v17382_v41, %v17386_v44  ;;  %v4677_v27 = vld [vmem:[#allocation2 + $0x3d8] sm:$0xff] }
  0xb1   :  { %5642 = vmatprep.mubr.bf16.mxu1 %v4661_v30  ;;  %5703 = vmatprep.subr.bf16.mxu1 %v21441_v29  ;;  %v1556_v51 = vshrl.u32 %v17305_v43, 16  ;;  %v1558_v52 = vshll.u32 %v17305_v43, 16  ;;  %v1549_v53 = vshrl.u32 %v17304_v45, 16  ;;  %v1551_v54 = vshll.u32 %v17304_v45, 16  ;;  %v21453_v60 = vld [vmem:[%s28314_s1 + $0x674] ss:$8 sps:$4 sm:$0xff]  }
  0xb2   :  { %10759 = vmatmul.mubr.bf16.gmra.mrb[8].mxu0 %v9667_v33  ;;  %v2722_v56 = vshrl.u32 %v17465_v49, 16  ;;  %v2725_v57 = vshll.u32 %v17465_v49, 16  ;;  %v2714_v58 = vshrl.u32 %v17464_v50, 16  ;;  %v2717_v59 = vshll.u32 %v17464_v50, 16  ;;  %v21456_v63 = vld [vmem:[%s28314_s1 + $0x1374] ss:$8 sps:$4 sm:$0xff]  }
  0xb3   :  { %10828 = vmatpush1.bf16.msra.mxu0 %v21436_v23  ;;  %v1560_v61 = vrot.slane %v1558_v52, 1  ;;  %v1553_v62 = vrot.slane %v1551_v54, 1  ;;  %v21451_v9 = vld [vmem:[%s28314_s1 + $0x670] ss:$8 sps:$4 sm:$0xff]   ;;  %v21459_v13 = vld [vmem:[%s28314_s1 + $0x684] ss:$8 sps:$4 sm:$0xff]  }
  0xb4   :  { %10829 = vmatprep.subr.bf16.mxu0 %v21444_v37  ;;  %5704 = vmatpush1.bf16.msra.mxu1 %v21439_v36  ;;  %v2724_v0 = vrot.slane %v2722_v56, 4  ;;  %v2727_v1 = vrot.slane %v2725_v57, 5  ;;  %v2716_v2 = vrot.slane %v2714_v58, 4  ;;  %v2719_v3 = vrot.slane %v2717_v59, 5  ;;  %v21454_v12 = vld [vmem:[%s28314_s1 + $0x1370] ss:$8 sps:$4 sm:$0xff]  }
  0xb5   :  { %5705 = vmatprep.subr.bf16.mxu1 %v21447_v42  ;;  %v1561_v7 = vor.u32 %v1560_v61, %v1556_v51  ;;  %v1554_v8 = vor.u32 %v1553_v62, %v1549_v53  ;;  %v890_v14 = vld [vmem:[%s28315_s0 + $0x190] sm:$0xff]  ;;  %v21457_v16 = vld [vmem:[%s28314_s1 + $0x680] ss:$8 sps:$4 sm:$0xff]   ;;  %v21462_v20 = vld [vmem:[%s28314_s1 + $0x1384] ss:$8 sps:$4 sm:$0xff]  }
  0xb6   :  { %v2728_v10 = vor.u32 %v2727_v1, %v2724_v0  ;;  %v2720_v11 = vor.u32 %v2719_v3, %v2716_v2  ;;  %v4668_v15 = vld [vmem:[#allocation2 + $0x390] sm:$0xff]  ;;  %v21460_v25 = vld [vmem:[%s28314_s1 + $0x1380] ss:$8 sps:$4 sm:$0xff]   ;;  %v21471_v49 = vld [vmem:[%s28314_s1 + $0x6a4] ss:$8 sps:$4 sm:$0xff]  }
  0xb7   :  { %10830 = vmatpush1.bf16.msra.mxu0 %v21442_v38  ;;  %v9676_v4 = vld [vmem:[#allocation2 + $0x3a8] sm:$0xff]  ;;  %5643 = vmatmul.mubr.bf16.gmra.mrb[12].mxu1 %v4660_v46  ;;  %v9675_v5 = vld [vmem:[#allocation2 + $0x3a0] sm:$0xff]  ;;  %1926 = vst [vmem:[#allocation2 + $0x3e8] sm:$0xf] %v1561_v7  ;;  %1925 = vst [vmem:[#allocation2 + $0x3e0] sm:$0xf] %v1554_v8 }
  0xb8   :  { %10831 = vmatprep.subr.bf16.mxu0 %v21450_v48  ;;  %10768 = vmatprep.mubr.bf16.mxu0 %v9676_v4  ;;  %3126 = vst [vmem:[#allocation2 + $0x3e8] sm:$0xf0] %v2728_v10  ;;  %3125 = vst [vmem:[#allocation2 + $0x3e0] sm:$0xf0] %v2720_v11  ;;  %v894_v17 = vld [vmem:[%s28315_s0 + $0x1b0] sm:$0x11] }
  0xb9   :  { %5706 = vmatpush1.bf16.msra.mxu1 %v21445_v47  ;;  %5652 = vmatprep.mubr.bf16.mxu1 %v4669_v6  ;;  %v17390_v18 = vld [vmem:[%s28315_s0 + $0x410] sm:$0xff]  ;;  %v17313_v21 = vcombine.high %v890_v14, %v894_v17  ;;  %v17312_v23 = vcombine.low %v890_v14, %v894_v17  ;;  %v21469_v51 = vld [vmem:[%s28314_s1 + $0x6a0] ss:$8 sps:$4 sm:$0xff]   ;;  %v21474_v54 = vld [vmem:[%s28314_s1 + $0x13a4] ss:$8 sps:$4 sm:$0xff]  }
  0xba   :  { %10769 = vmatmul.mubr.bf16.gmra.mrb[12].mxu0 %v9675_v5  ;;  %5707 = vmatprep.subr.bf16.mxu1 %v21453_v60  ;;  %v17394_v19 = vld [vmem:[%s28315_s0 + $0x430] sm:$0x11]  ;;  %v21472_v57 = vld [vmem:[%s28314_s1 + $0x13a0] ss:$8 sps:$4 sm:$0xff]   ;;  %v21483_v14 = vld [vmem:[%s28314_s1 + $0x6c4] ss:$8 sps:$4 sm:$0xff]  }
  0xbb   :  { %10832 = vmatpush1.bf16.msra.mxu0 %v21448_v55  ;;  %v17473_v22 = vcombine.high %v17390_v18, %v17394_v19  ;;  %v17472_v24 = vcombine.low %v17390_v18, %v17394_v19  ;;  %v21465_v26 = vld [vmem:[%s28314_s1 + $0x694] ss:$8 sps:$4 sm:$0xff]   ;;  %v1612_v28 = vshrl.u32 %v17313_v21, 16  ;;  %v1614_v29 = vshll.u32 %v17313_v21, 16  ;;  %v21463_v32 = vld [vmem:[%s28314_s1 + $0x690] ss:$8 sps:$4 sm:$0xff]  }
  0xbc   :  { %10833 = vmatprep.subr.bf16.mxu0 %v21456_v63  ;;  %v1605_v33 = vshrl.u32 %v17312_v23, 16  ;;  %v1607_v34 = vshll.u32 %v17312_v23, 16  ;;  %v21468_v37 = vld [vmem:[%s28314_s1 + $0x1394] ss:$8 sps:$4 sm:$0xff]   ;;  %v21466_v41 = vld [vmem:[%s28314_s1 + $0x1390] ss:$8 sps:$4 sm:$0xff]  }
  0xbd   :  { %5708 = vmatpush1.bf16.msra.mxu1 %v21451_v9  ;;  %v2786_v30 = vshrl.u32 %v17473_v22, 16  ;;  %v2789_v31 = vshll.u32 %v17473_v22, 16  ;;  %v2778_v35 = vshrl.u32 %v17472_v24, 16  ;;  %v2781_v36 = vshll.u32 %v17472_v24, 16  ;;  %v4676_v50 = vld [vmem:[#allocation2 + $0x3d0] sm:$0xff]  ;;  %v4685_v63 = vld [vmem:[#allocation2 + $0x418] sm:$0xff] }
  0xbe   :  { %5709 = vmatprep.subr.bf16.mxu1 %v21459_v13  ;;  %v1616_v38 = vrot.slane %v1614_v29, 1  ;;  %v1609_v42 = vrot.slane %v1607_v34, 1  ;;  %v898_v55 = vld [vmem:[%s28315_s0 + $0x1d0] sm:$0xff]  ;;  %v21486_v24 = vld [vmem:[%s28314_s1 + $0x13c4] ss:$8 sps:$4 sm:$0xff]  }
  0xbf   :  { %10834 = vmatpush1.bf16.msra.mxu0 %v21454_v12  ;;  %5653 = vmatmul.mubr.bf16.gmra.mrb[16].mxu1 %v4668_v15  ;;  %v2788_v39 = vrot.slane %v2786_v30, 4  ;;  %v2791_v40 = vrot.slane %v2789_v31, 5  ;;  %v2780_v43 = vrot.slane %v2778_v35, 4  ;;  %v2783_v44 = vrot.slane %v2781_v36, 5  ;;  %v9684_v45 = vld [vmem:[#allocation2 + $0x3e8] sm:$0xff]  ;;  %v9683_v46 = vld [vmem:[#allocation2 + $0x3e0] sm:$0xff] }
  0xc0   :  { %10835 = vmatprep.subr.bf16.mxu0 %v21462_v20  ;;  %5662 = vmatprep.mubr.bf16.mxu1 %v4677_v27  ;;  %v1617_v47 = vor.u32 %v1616_v38, %v1612_v28  ;;  %v1610_v52 = vor.u32 %v1609_v42, %v1605_v33  ;;  %v902_v56 = vld [vmem:[%s28315_s0 + $0x1f0] sm:$0x11]  ;;  %v21481_v28 = vld [vmem:[%s28314_s1 + $0x6c0] ss:$8 sps:$4 sm:$0xff]   ;;  %v4693_v30 = vld [vmem:[#allocation2 + $0x458] sm:$0xff] }
  0xc1   :  { %5710 = vmatpush1.bf16.msra.mxu1 %v21457_v16  ;;  %v2792_v48 = vor.u32 %v2791_v40, %v2788_v39  ;;  %10778 = vmatprep.mubr.bf16.mxu0 %v9684_v45  ;;  %v2784_v53 = vor.u32 %v2783_v44, %v2780_v43  ;;  %v21477_v58 = vld [vmem:[%s28314_s1 + $0x6b4] ss:$8 sps:$4 sm:$0xff]   ;;  %v17321_v59 = vcombine.high %v898_v55, %v902_v56  ;;  %v21475_v2 = vld [vmem:[%s28314_s1 + $0x6b0] ss:$8 sps:$4 sm:$0xff]   ;;  %v21484_v34 = vld [vmem:[%s28314_s1 + $0x13c0] ss:$8 sps:$4 sm:$0xff]  }
  0xc2   :  { %5711 = vmatprep.subr.bf16.mxu1 %v21465_v26  ;;  %10779 = vmatmul.mubr.bf16.gmra.mrb[16].mxu0 %v9683_v46  ;;  %1934 = vst [vmem:[#allocation2 + $0x428] sm:$0xf] %v1617_v47  ;;  %1933 = vst [vmem:[#allocation2 + $0x420] sm:$0xf] %v1610_v52  ;;  %v17398_v60 = vld [vmem:[%s28315_s0 + $0x450] sm:$0xff]  ;;  %v17320_v62 = vcombine.low %v898_v55, %v902_v56 }
  0xc3   :  { %10836 = vmatpush1.bf16.msra.mxu0 %v21460_v25  ;;  %3134 = vst [vmem:[#allocation2 + $0x428] sm:$0xf0] %v2792_v48  ;;  %3133 = vst [vmem:[#allocation2 + $0x420] sm:$0xf0] %v2784_v53  ;;  %v17402_v61 = vld [vmem:[%s28315_s0 + $0x470] sm:$0x11] }
  0xc4   :  { %10837 = vmatprep.subr.bf16.mxu0 %v21468_v37  ;;  %v17481_v0 = vcombine.high %v17398_v60, %v17402_v61  ;;  %v17480_v1 = vcombine.low %v17398_v60, %v17402_v61  ;;  %v21480_v3 = vld [vmem:[%s28314_s1 + $0x13b4] ss:$8 sps:$4 sm:$0xff]   ;;  %v1668_v4 = vshrl.u32 %v17321_v59, 16  ;;  %v1670_v5 = vshll.u32 %v17321_v59, 16  ;;  %v21478_v12 = vld [vmem:[%s28314_s1 + $0x13b0] ss:$8 sps:$4 sm:$0xff]  }
  0xc5   :  { %5712 = vmatpush1.bf16.msra.mxu1 %v21463_v32  ;;  %v1661_v6 = vshrl.u32 %v17320_v62, 16  ;;  %v1663_v7 = vshll.u32 %v17320_v62, 16  ;;  %v4684_v22 = vld [vmem:[#allocation2 + $0x410] sm:$0xff] }
  0xc6   :  { %5713 = vmatprep.subr.bf16.mxu1 %v21471_v49  ;;  %v2850_v8 = vshrl.u32 %v17481_v0, 16  ;;  %v2853_v9 = vshll.u32 %v17481_v0, 16  ;;  %v2842_v10 = vshrl.u32 %v17480_v1, 16  ;;  %v2845_v11 = vshll.u32 %v17480_v1, 16  ;;  %v21489_v29 = vld [vmem:[%s28314_s1 + $0x6d4] ss:$8 sps:$4 sm:$0xff]  }
  0xc7   :  { %10838 = vmatpush1.bf16.msra.mxu0 %v21466_v41  ;;  %5663 = vmatmul.mubr.bf16.gmra.mrb[20].mxu1 %v4676_v50  ;;  %v1672_v13 = vrot.slane %v1670_v5, 1  ;;  %v1665_v15 = vrot.slane %v1663_v7, 1  ;;  %v906_v31 = vld [vmem:[%s28315_s0 + $0x210] sm:$0xff]  ;;  %v21495_v49 = vld [vmem:[%s28314_s1 + $0x6e4] ss:$8 sps:$4 sm:$0xff]  }
  0xc8   :  { %10839 = vmatprep.subr.bf16.mxu0 %v21474_v54  ;;  %5672 = vmatprep.mubr.bf16.mxu1 %v4685_v63  ;;  %v2852_v16 = vrot.slane %v2850_v8, 4  ;;  %v2855_v17 = vrot.slane %v2853_v9, 5  ;;  %v2844_v18 = vrot.slane %v2842_v10, 4  ;;  %v2847_v19 = vrot.slane %v2845_v11, 5  ;;  %v910_v32 = vld [vmem:[%s28315_s0 + $0x230] sm:$0x11] }
  0xc9   :  { %5714 = vmatpush1.bf16.msra.mxu1 %v21469_v51  ;;  %v1673_v21 = vor.u32 %v1672_v13, %v1668_v4  ;;  %v1666_v23 = vor.u32 %v1665_v15, %v1661_v6  ;;  %v17406_v33 = vld [vmem:[%s28315_s0 + $0x490] sm:$0xff]  ;;  %v17329_v35 = vcombine.high %v906_v31, %v910_v32  ;;  %v17328_v37 = vcombine.low %v906_v31, %v910_v32  ;;  %v21498_v0 = vld [vmem:[%s28314_s1 + $0x13e4] ss:$8 sps:$4 sm:$0xff]  }
  0xca   :  { %5715 = vmatprep.subr.bf16.mxu1 %v21477_v58  ;;  %v9692_v20 = vld [vmem:[#allocation2 + $0x428] sm:$0xff]  ;;  %v9691_v25 = vld [vmem:[#allocation2 + $0x420] sm:$0xff]  ;;  %v2856_v26 = vor.u32 %v2855_v17, %v2852_v16  ;;  %v2848_v27 = vor.u32 %v2847_v19, %v2844_v18  ;;  %v17410_v36 = vld [vmem:[%s28315_s0 + $0x4b0] sm:$0x11] }
  0xcb   :  { %10840 = vmatpush1.bf16.msra.mxu0 %v21472_v57  ;;  %10788 = vmatprep.mubr.bf16.mxu0 %v9692_v20  ;;  %1942 = vst [vmem:[#allocation2 + $0x468] sm:$0xf] %v1673_v21  ;;  %1941 = vst [vmem:[#allocation2 + $0x460] sm:$0xf] %v1666_v23  ;;  %v21487_v38 = vld [vmem:[%s28314_s1 + $0x6d0] ss:$8 sps:$4 sm:$0xff]   ;;  %v17489_v40 = vcombine.high %v17406_v33, %v17410_v36  ;;  %v17488_v41 = vcombine.low %v17406_v33, %v17410_v36 }
  0xcc   :  { %10841 = vmatprep.subr.bf16.mxu0 %v21480_v3  ;;  %10789 = vmatmul.mubr.bf16.gmra.mrb[20].mxu0 %v9691_v25  ;;  %3142 = vst [vmem:[#allocation2 + $0x468] sm:$0xf0] %v2856_v26  ;;  %3141 = vst [vmem:[#allocation2 + $0x460] sm:$0xf0] %v2848_v27  ;;  %v21492_v39 = vld [vmem:[%s28314_s1 + $0x13d4] ss:$8 sps:$4 sm:$0xff]  }
  0xcd   :  { %5716 = vmatpush1.bf16.msra.mxu1 %v21475_v2  ;;  %v1724_v42 = vshrl.u32 %v17329_v35, 16  ;;  %v1726_v43 = vshll.u32 %v17329_v35, 16  ;;  %v1717_v44 = vshrl.u32 %v17328_v37, 16  ;;  %v1719_v45 = vshll.u32 %v17328_v37, 16  ;;  %v21490_v46 = vld [vmem:[%s28314_s1 + $0x13d0] ss:$8 sps:$4 sm:$0xff]  }
  0xce   :  { %5717 = vmatprep.subr.bf16.mxu1 %v21483_v14  ;;  %v2914_v47 = vshrl.u32 %v17489_v40, 16  ;;  %v2917_v48 = vshll.u32 %v17489_v40, 16  ;;  %v2906_v50 = vshrl.u32 %v17488_v41, 16  ;;  %v2909_v51 = vshll.u32 %v17488_v41, 16  ;;  %v4692_v53 = vld [vmem:[#allocation2 + $0x450] sm:$0xff]  ;;  %v17351_v17 = vld [vmem:[%s28315_s0 + $0x2d8] sm:$0xff] }
  0xcf   :  { %10842 = vmatpush1.bf16.msra.mxu0 %v21478_v12  ;;  %5673 = vmatmul.mubr.bf16.gmra.mrb[24].mxu1 %v4684_v22  ;;  %v1728_v52 = vrot.slane %v1726_v43, 1  ;;  %v1721_v54 = vrot.slane %v1719_v45, 1  ;;  %v21493_v57 = vld [vmem:[%s28314_s1 + $0x6e0] ss:$8 sps:$4 sm:$0xff]   ;;  %v21501_v4 = vld [vmem:[%s28314_s1 + $0x6f4] ss:$8 sps:$4 sm:$0xff]  }
  0xd0   :  { %10843 = vmatprep.subr.bf16.mxu0 %v21486_v24  ;;  %5682 = vmatprep.mubr.bf16.mxu1 %v4693_v30  ;;  %v2916_v55 = vrot.slane %v2914_v47, 4  ;;  %v2919_v56 = vrot.slane %v2917_v48, 5  ;;  %v2908_v58 = vrot.slane %v2906_v50, 4  ;;  %v2911_v59 = vrot.slane %v2909_v51, 5  ;;  %v21496_v3 = vld [vmem:[%s28314_s1 + $0x13e0] ss:$8 sps:$4 sm:$0xff]  }
  0xd1   :  { %5718 = vmatpush1.bf16.msra.mxu1 %v21481_v28  ;;  %v1729_v62 = vor.u32 %v1728_v52, %v1724_v42  ;;  %v1722_v63 = vor.u32 %v1721_v54, %v1717_v44  ;;  %v21499_v5 = vld [vmem:[%s28314_s1 + $0x6f0] ss:$8 sps:$4 sm:$0xff]   ;;  %v21504_v6 = vld [vmem:[%s28314_s1 + $0x13f4] ss:$8 sps:$4 sm:$0xff]   ;;  %v21507_v27 = vld [vmem:[%s28314_s1 + $0x704] ss:$8 sps:$4 sm:$0xff]  }
  0xd2   :  { %5719 = vmatprep.subr.bf16.mxu1 %v21489_v29  ;;  %v2920_v1 = vor.u32 %v2919_v56, %v2916_v55  ;;  %v2912_v2 = vor.u32 %v2911_v59, %v2908_v58  ;;  %v842_v7 = vld [vmem:[%s28315_s0 + $0x10] sm:$0xff]  ;;  %v851_v12 = vld [vmem:[%s28315_s0 + $0x58] sm:$0xff]  ;;  %v21510_v37 = vld [vmem:[%s28314_s1 + $0x1404] ss:$8 sps:$4 sm:$0xff]  }
  0xd3   :  { %10844 = vmatpush1.bf16.msra.mxu0 %v21484_v34  ;;  %v9700_v60 = vld [vmem:[#allocation2 + $0x468] sm:$0xff]  ;;  %v9699_v61 = vld [vmem:[#allocation2 + $0x460] sm:$0xff]  ;;  %1950 = vst [vmem:[#allocation2 + $0x4a8] sm:$0xf] %v1729_v62  ;;  %1949 = vst [vmem:[#allocation2 + $0x4a0] sm:$0xf] %v1722_v63 }
  0xd4   :  { %10845 = vmatprep.subr.bf16.mxu0 %v21492_v39  ;;  %10798 = vmatprep.mubr.bf16.mxu0 %v9700_v60  ;;  %v846_v8 = vld [vmem:[%s28315_s0 + $0x30] sm:$0x11]  ;;  %3150 = vst [vmem:[#allocation2 + $0x4a8] sm:$0xf0] %v2920_v1  ;;  %3149 = vst [vmem:[#allocation2 + $0x4a0] sm:$0xf0] %v2912_v2 }
  0xd5   :  { %5720 = vmatpush1.bf16.msra.mxu1 %v21487_v38  ;;  %10799 = vmatmul.mubr.bf16.gmra.mrb[24].mxu0 %v9699_v61  ;;  %v17265_v9 = vcombine.high %v842_v7, %v846_v8  ;;  %v17342_v10 = vld [vmem:[%s28315_s0 + $0x290] sm:$0xff]  ;;  %v17264_v13 = vcombine.low %v842_v7, %v846_v8  ;;  %v855_v16 = vld [vmem:[%s28315_s0 + $0x78] sm:$0x11] }
  0xd6   :  { %5721 = vmatprep.subr.bf16.mxu1 %v21495_v49  ;;  %v17346_v11 = vld [vmem:[%s28315_s0 + $0x2b0] sm:$0x11]  ;;  %v17355_v18 = vld [vmem:[%s28315_s0 + $0x2f8] sm:$0x11]  ;;  %v24183_v21 = vcombine.low %v851_v12, %v855_v16  ;;  %v17275_v22 = vcombine.high %v851_v12, %v855_v16 }
  0xd7   :  { %10846 = vmatpush1.bf16.msra.mxu0 %v21490_v46  ;;  %5683 = vmatmul.mubr.bf16.gmra.mrb[28].mxu1 %v4692_v53  ;;  %v17424_v14 = vcombine.low %v17342_v10, %v17346_v11  ;;  %v17425_v15 = vcombine.high %v17342_v10, %v17346_v11  ;;  %v1276_v19 = vshrl.u32 %v17265_v9, 16  ;;  %v1278_v20 = vshll.u32 %v17265_v9, 16  ;;  %v21502_v28 = vld [vmem:[%s28314_s1 + $0x13f0] ss:$8 sps:$4 sm:$0xff]  }
  0xd8   :  { %10847 = vmatprep.subr.bf16.mxu0 %v21498_v0  ;;  %v17434_v25 = vcombine.low %v17351_v17, %v17355_v18  ;;  %v17435_v26 = vcombine.high %v17351_v17, %v17355_v18  ;;  %v1346_v30 = vshrl.u32 %v17275_v22, 16  ;;  %v1348_v31 = vshll.u32 %v17275_v22, 16  ;;  %v859_v56 = vld [vmem:[%s28315_s0 + $0x98] sm:$0xff] }
  0xd9   :  { %5722 = vmatpush1.bf16.msra.mxu1 %v21493_v57  ;;  %v2402_v23 = vshrl.u32 %v17425_v15, 16  ;;  %v2405_v24 = vshll.u32 %v17425_v15, 16  ;;  %v1280_v29 = vrot.slane %v1278_v20, 1  ;;  %v1269_v32 = vshrl.u32 %v17264_v13, 16  ;;  %v17359_v59 = vld [vmem:[%s28315_s0 + $0x318] sm:$0xff] }
  0xda   :  { %5723 = vmatprep.subr.bf16.mxu1 %v21501_v4  ;;  %v2482_v35 = vshrl.u32 %v17435_v26, 16  ;;  %v2485_v36 = vshll.u32 %v17435_v26, 16  ;;  %v1350_v39 = vrot.slane %v1348_v31, 1  ;;  %v1271_v40 = vshll.u32 %v17264_v13, 16  ;;  %v863_v63 = vld [vmem:[%s28315_s0 + $0xb8] sm:$0x11] }
  0xdb   :  { %10848 = vmatpush1.bf16.msra.mxu0 %v21496_v3  ;;  %v2404_v33 = vrot.slane %v2402_v23, 4  ;;  %v2407_v34 = vrot.slane %v2405_v24, 5  ;;  %v1281_v38 = vor.u32 %v1280_v29, %v1276_v19  ;;  %v2394_v41 = vshrl.u32 %v17424_v14, 16  ;;  %v9708_v42 = vld [vmem:[#allocation2 + $0x4a8] sm:$0xff]  ;;  %v9707_v43 = vld [vmem:[#allocation2 + $0x4a0] sm:$0xff] }
  0xdc   :  { %10849 = vmatprep.subr.bf16.mxu0 %v21504_v6  ;;  %v2484_v45 = vrot.slane %v2482_v35, 4  ;;  %v2487_v46 = vrot.slane %v2485_v36, 5  ;;  %v2397_v47 = vshll.u32 %v17424_v14, 16  ;;  %10808 = vmatprep.mubr.bf16.mxu0 %v9708_v42  ;;  %v1351_v48 = vor.u32 %v1350_v39, %v1346_v30  ;;  %v17363_v0 = vld [vmem:[%s28315_s0 + $0x338] sm:$0x11] }
  0xdd   :  { %5724 = vmatpush1.bf16.msra.mxu1 %v21499_v5  ;;  %v2408_v44 = vor.u32 %v2407_v34, %v2404_v33  ;;  %1886 = vst [vmem:[#allocation2 + $0x2a8] sm:$0xf] %v1281_v38  ;;  %v1273_v49 = vrot.slane %v1271_v40, 1  ;;  %v2396_v50 = vrot.slane %v2394_v41, 4  ;;  %v1339_v51 = vshrl.u32 %v24183_v21, 16  ;;  %10809 = vmatmul.mubr.bf16.gmra.mrb[28].mxu0 %v9707_v43  ;;  %v867_v33 = vld [vmem:[%s28315_s0 + $0xd8] sm:$0xff] }
  0xde   :  { %5806 = vmatprep.subr.bf16.mxu1 %v21507_v27  ;;  %v2488_v52 = vor.u32 %v2487_v46, %v2484_v45  ;;  %v2399_v53 = vrot.slane %v2397_v47, 5  ;;  %v1341_v54 = vshll.u32 %v24183_v21, 16  ;;  %v2474_v55 = vshrl.u32 %v17434_v25, 16  ;;  %1896 = vst [vmem:[#allocation2 + $0x2f8] sm:$0xf] %v1351_v48 }
  0xdf   :  { %10850 = vmatpush1.bf16.msra.mxu0 %v21502_v28  ;;  %3086 = vst [vmem:[#allocation2 + $0x2a8] sm:$0xf0] %v2408_v44  ;;  %v1274_v57 = vor.u32 %v1273_v49, %v1269_v32  ;;  %v2477_v58 = vshll.u32 %v17434_v25, 16  ;;  %v17283_v2 = vcombine.high %v859_v56, %v863_v63  ;;  %v17443_v3 = vcombine.high %v17359_v59, %v17363_v0  ;;  %v21505_v23 = vld [vmem:[%s28314_s1 + $0x700] ss:$8 sps:$4 sm:$0xff]  }
  0xe0   :  { %11798 = vmatprep.subr.bf16.mxu0 %v21510_v37  ;;  %3096 = vst [vmem:[#allocation2 + $0x2f8] sm:$0xf0] %v2488_v52  ;;  %v2400_v60 = vor.u32 %v2399_v53, %v2396_v50  ;;  %v1343_v61 = vrot.slane %v1341_v54, 1  ;;  %v2476_v62 = vrot.slane %v2474_v55, 4  ;;  %v17282_v4 = vcombine.low %v859_v56, %v863_v63  ;;  %v21508_v26 = vld [vmem:[%s28314_s1 + $0x1400] ss:$8 sps:$4 sm:$0xff]  }
  0xe1   :  { %1885 = vst [vmem:[#allocation2 + $0x2a0] sm:$0xf] %v1274_v57  ;;  %v2479_v1 = vrot.slane %v2477_v58, 5  ;;  %v17442_v6 = vcombine.low %v17359_v59, %v17363_v0  ;;  %v1402_v8 = vshrl.u32 %v17283_v2, 16  ;;  %v1404_v9 = vshll.u32 %v17283_v2, 16  ;;  %v4647_v28 = vld [vmem:[#allocation2 + $0x2e8] sm:$0xff] }
  0xe2   :  { %3085 = vst [vmem:[#allocation2 + $0x2a0] sm:$0xf0] %v2400_v60  ;;  %v1344_v5 = vor.u32 %v1343_v61, %v1339_v51  ;;  %v2546_v10 = vshrl.u32 %v17443_v3, 16  ;;  %v2549_v11 = vshll.u32 %v17443_v3, 16  ;;  %v1395_v12 = vshrl.u32 %v17282_v4, 16  ;;  %v17367_v37 = vld [vmem:[%s28315_s0 + $0x358] sm:$0xff] }
  0xe3   :  { %v2480_v7 = vor.u32 %v2479_v1, %v2476_v62  ;;  %v1397_v13 = vshll.u32 %v17282_v4, 16  ;;  %v2538_v14 = vshrl.u32 %v17442_v6, 16  ;;  %v1406_v16 = vrot.slane %v1404_v9, 1  ;;  %v21513_v27 = vld [vmem:[%s28314_s1 + $0x714] ss:$8 sps:$4 sm:$0xff]   ;;  %v4646_v53 = vld [vmem:[#allocation2 + $0x2e0] sm:$0xff] }
  0xe4   :  { %1895 = vst [vmem:[#allocation2 + $0x2f0] sm:$0xf] %v1344_v5  ;;  %v2548_v17 = vrot.slane %v2546_v10, 4  ;;  %v2541_v18 = vshll.u32 %v17442_v6, 16  ;;  %v2551_v19 = vrot.slane %v2549_v11, 5  ;;  %v4655_v2 = vld [vmem:[#allocation2 + $0x328] sm:$0xff] }
  0xe5   :  { %3095 = vst [vmem:[#allocation2 + $0x2f0] sm:$0xf0] %v2480_v7  ;;  %v1399_v20 = vrot.slane %v1397_v13, 1  ;;  %v2540_v21 = vrot.slane %v2538_v14, 4  ;;  %v1407_v24 = vor.u32 %v1406_v16, %v1402_v8  ;;  %v871_v34 = vld [vmem:[%s28315_s0 + $0xf8] sm:$0x11] }
  0xe6   :  { %v4639_v15 = vld [vmem:[#allocation2 + $0x2a8] sm:$0xff]  ;;  %v2543_v25 = vrot.slane %v2541_v18, 5  ;;  %v2552_v29 = vor.u32 %v2551_v19, %v2548_v17  ;;  %v21511_v35 = vld [vmem:[%s28314_s1 + $0x710] ss:$8 sps:$4 sm:$0xff]   ;;  %v17291_v36 = vcombine.high %v867_v33, %v871_v34  ;;  %v17290_v39 = vcombine.low %v867_v33, %v871_v34  ;;  %v21516_v40 = vld [vmem:[%s28314_s1 + $0x1414] ss:$8 sps:$4 sm:$0xff]  }
  0xe7   :  { %5725 = vmatprep.mubr.bf16.mxu1 %v4639_v15  ;;  %v9654_v22 = vld [vmem:[#allocation2 + $0x2f8] sm:$0xff]  ;;  %v1400_v30 = vor.u32 %v1399_v20, %v1395_v12  ;;  %1904 = vst [vmem:[#allocation2 + $0x338] sm:$0xf] %v1407_v24  ;;  %v21519_v45 = vld [vmem:[%s28314_s1 + $0x724] ss:$8 sps:$4 sm:$0xff]  }
  0xe8   :  { %10851 = vmatprep.mubr.bf16.mxu0 %v9654_v22  ;;  %v2544_v32 = vor.u32 %v2543_v25, %v2540_v21  ;;  %3104 = vst [vmem:[#allocation2 + $0x338] sm:$0xf0] %v2552_v29  ;;  %v17371_v38 = vld [vmem:[%s28315_s0 + $0x378] sm:$0x11]  ;;  %v1458_v46 = vshrl.u32 %v17291_v36, 16  ;;  %v1460_v47 = vshll.u32 %v17291_v36, 16 }
  0xe9   :  { %v4638_v31 = vld [vmem:[#allocation2 + $0x2a0] sm:$0xff]  ;;  %1903 = vst [vmem:[#allocation2 + $0x330] sm:$0xf] %v1400_v30  ;;  %v17451_v41 = vcombine.high %v17367_v37, %v17371_v38  ;;  %v17450_v42 = vcombine.low %v17367_v37, %v17371_v38  ;;  %v21514_v44 = vld [vmem:[%s28314_s1 + $0x1410] ss:$8 sps:$4 sm:$0xff]   ;;  %v1451_v48 = vshrl.u32 %v17290_v39, 16 }
  0xea   :  { %5726 = vmatmul.mubr.bf16.vlgmr.msra.gmra.mrb[0].mxu1 %v4638_v31  ;;  %3103 = vst [vmem:[#allocation2 + $0x330] sm:$0xf0] %v2544_v32  ;;  %v1453_v51 = vshll.u32 %v17290_v39, 16  ;;  %v21522_v54 = vld [vmem:[%s28314_s1 + $0x1424] ss:$8 sps:$4 sm:$0xff]   ;;  %v1462_v55 = vrot.slane %v1460_v47, 1 }
  0xeb   :  { %5807 = vmatpush1.bf16.msra.mxu1 %v21505_v23  ;;  %5735 = vmatprep.mubr.bf16.mxu1 %v4647_v28  ;;  %v2610_v49 = vshrl.u32 %v17451_v41, 16  ;;  %v2613_v50 = vshll.u32 %v17451_v41, 16  ;;  %v2602_v52 = vshrl.u32 %v17450_v42, 16  ;;  %v2605_v56 = vshll.u32 %v17450_v42, 16  ;;  %v21517_v61 = vld [vmem:[%s28314_s1 + $0x720] ss:$8 sps:$4 sm:$0xff]  }
  0xec   :  { %v9653_v43 = vld [vmem:[#allocation2 + $0x2f0] sm:$0xff]  ;;  %5808 = vmatprep.subr.bf16.mxu1 %v21513_v27  ;;  %v1455_v59 = vrot.slane %v1453_v51, 1  ;;  %v1463_v63 = vor.u32 %v1462_v55, %v1458_v46  ;;  %v21520_v6 = vld [vmem:[%s28314_s1 + $0x1420] ss:$8 sps:$4 sm:$0xff]   ;;  %v875_v9 = vld [vmem:[%s28315_s0 + $0x118] sm:$0xff] }
  0xed   :  { %10852 = vmatmul.mubr.bf16.vlgmr.msra.gmra.mrb[0].mxu0 %v9653_v43  ;;  %v2612_v57 = vrot.slane %v2610_v49, 4  ;;  %v2615_v58 = vrot.slane %v2613_v50, 5  ;;  %v2604_v60 = vrot.slane %v2602_v52, 4  ;;  %v21525_v62 = vld [vmem:[%s28314_s1 + $0x734] ss:$8 sps:$4 sm:$0xff]   ;;  %v2607_v0 = vrot.slane %v2605_v56, 5 }
  0xee   :  { %11799 = vmatpush1.bf16.msra.mxu0 %v21508_v26  ;;  %v1456_v4 = vor.u32 %v1455_v59, %v1451_v48  ;;  %v21528_v7 = vld [vmem:[%s28314_s1 + $0x1434] ss:$8 sps:$4 sm:$0xff]   ;;  %1912 = vst [vmem:[#allocation2 + $0x378] sm:$0xf] %v1463_v63  ;;  %v21523_v12 = vld [vmem:[%s28314_s1 + $0x730] ss:$8 sps:$4 sm:$0xff]  }
  0xef   :  { %11800 = vmatprep.subr.bf16.mxu0 %v21516_v40  ;;  %5809 = vmatpush1.bf16.msra.mxu1 %v21511_v35  ;;  %v9662_v1 = vld [vmem:[#allocation2 + $0x338] sm:$0xff]  ;;  %v2616_v3 = vor.u32 %v2615_v58, %v2612_v57  ;;  %v2608_v8 = vor.u32 %v2607_v0, %v2604_v60  ;;  %v21531_v17 = vld [vmem:[%s28314_s1 + $0x744] ss:$8 sps:$4 sm:$0xff]   ;;  %v21529_v25 = vld [vmem:[%s28314_s1 + $0x740] ss:$8 sps:$4 sm:$0xff]  }
  0xf0   :  { %5810 = vmatprep.subr.bf16.mxu1 %v21519_v45  ;;  %10861 = vmatprep.mubr.bf16.mxu0 %v9662_v1  ;;  %1911 = vst [vmem:[#allocation2 + $0x370] sm:$0xf] %v1456_v4  ;;  %v879_v10 = vld [vmem:[%s28315_s0 + $0x138] sm:$0x11]  ;;  %v4654_v20 = vld [vmem:[#allocation2 + $0x320] sm:$0xff]  ;;  %v4663_v45 = vld [vmem:[#allocation2 + $0x368] sm:$0xff] }
  0xf1   :  { %v9661_v5 = vld [vmem:[#allocation2 + $0x330] sm:$0xff]  ;;  %3112 = vst [vmem:[#allocation2 + $0x378] sm:$0xf0] %v2616_v3  ;;  %v17375_v11 = vld [vmem:[%s28315_s0 + $0x398] sm:$0xff]  ;;  %3111 = vst [vmem:[#allocation2 + $0x370] sm:$0xf0] %v2608_v8  ;;  %v17299_v13 = vcombine.high %v875_v9, %v879_v10  ;;  %v17298_v15 = vcombine.low %v875_v9, %v879_v10 }
  0xf2   :  { %11801 = vmatpush1.bf16.msra.mxu0 %v21514_v44  ;;  %5736 = vmatmul.mubr.bf16.gmra.mrb[4].mxu1 %v4646_v53  ;;  %v17379_v14 = vld [vmem:[%s28315_s0 + $0x3b8] sm:$0x11]  ;;  %v21532_v30 = vld [vmem:[%s28314_s1 + $0x1440] ss:$8 sps:$4 sm:$0xff]   ;;  %v21534_v31 = vld [vmem:[%s28314_s1 + $0x1444] ss:$8 sps:$4 sm:$0xff]  }
  0xf3   :  { %11802 = vmatprep.subr.bf16.mxu0 %v21522_v54  ;;  %5811 = vmatpush1.bf16.msra.mxu1 %v21517_v61  ;;  %v21526_v16 = vld [vmem:[%s28314_s1 + $0x1430] ss:$8 sps:$4 sm:$0xff]   ;;  %v17459_v18 = vcombine.high %v17375_v11, %v17379_v14  ;;  %v17458_v19 = vcombine.low %v17375_v11, %v17379_v14  ;;  %v1514_v21 = vshrl.u32 %v17299_v13, 16  ;;  %v1516_v22 = vshll.u32 %v17299_v13, 16  ;;  %v21537_v34 = vld [vmem:[%s28314_s1 + $0x754] ss:$8 sps:$4 sm:$0xff]  }
  0xf4   :  { %5745 = vmatprep.mubr.bf16.mxu1 %v4655_v2  ;;  %5812 = vmatprep.subr.bf16.mxu1 %v21525_v62  ;;  %v1507_v23 = vshrl.u32 %v17298_v15, 16  ;;  %v1509_v24 = vshll.u32 %v17298_v15, 16  ;;  %v21535_v40 = vld [vmem:[%s28314_s1 + $0x750] ss:$8 sps:$4 sm:$0xff]   ;;  %v21540_v41 = vld [vmem:[%s28314_s1 + $0x1454] ss:$8 sps:$4 sm:$0xff]  }
  0xf5   :  { %10862 = vmatmul.mubr.bf16.gmra.mrb[4].mxu0 %v9661_v5  ;;  %v2674_v26 = vshrl.u32 %v17459_v18, 16  ;;  %v2677_v27 = vshll.u32 %v17459_v18, 16  ;;  %v2666_v28 = vshrl.u32 %v17458_v19, 16  ;;  %v2669_v29 = vshll.u32 %v17458_v19, 16  ;;  %v21538_v48 = vld [vmem:[%s28314_s1 + $0x1450] ss:$8 sps:$4 sm:$0xff]  }
  0xf6   :  { %11803 = vmatpush1.bf16.msra.mxu0 %v21520_v6  ;;  %v1518_v32 = vrot.slane %v1516_v22, 1  ;;  %v1511_v33 = vrot.slane %v1509_v24, 1  ;;  %v21543_v49 = vld [vmem:[%s28314_s1 + $0x764] ss:$8 sps:$4 sm:$0xff]   ;;  %v883_v50 = vld [vmem:[%s28315_s0 + $0x158] sm:$0xff] }
  0xf7   :  { %11804 = vmatprep.subr.bf16.mxu0 %v21528_v7  ;;  %5813 = vmatpush1.bf16.msra.mxu1 %v21523_v12  ;;  %v2676_v35 = vrot.slane %v2674_v26, 4  ;;  %v2679_v36 = vrot.slane %v2677_v27, 5  ;;  %v2668_v37 = vrot.slane %v2666_v28, 4  ;;  %v2671_v38 = vrot.slane %v2669_v29, 5  ;;  %v887_v51 = vld [vmem:[%s28315_s0 + $0x178] sm:$0x11] }
  0xf8   :  { %5814 = vmatprep.subr.bf16.mxu1 %v21531_v17  ;;  %v9670_v39 = vld [vmem:[#allocation2 + $0x378] sm:$0xff]  ;;  %v1519_v42 = vor.u32 %v1518_v32, %v1514_v21  ;;  %v1512_v43 = vor.u32 %v1511_v33, %v1507_v23  ;;  %v9669_v44 = vld [vmem:[#allocation2 + $0x370] sm:$0xff]  ;;  %v4662_v54 = vld [vmem:[#allocation2 + $0x360] sm:$0xff]  ;;  %v17307_v56 = vcombine.high %v883_v50, %v887_v51  ;;  %v17306_v58 = vcombine.low %v883_v50, %v887_v51 }
  0xf9   :  { %10871 = vmatprep.mubr.bf16.mxu0 %v9670_v39  ;;  %v2680_v46 = vor.u32 %v2679_v36, %v2676_v35  ;;  %v2672_v47 = vor.u32 %v2671_v38, %v2668_v37  ;;  %v17383_v52 = vld [vmem:[%s28315_s0 + $0x3d8] sm:$0xff]  ;;  %v21541_v55 = vld [vmem:[%s28314_s1 + $0x760] ss:$8 sps:$4 sm:$0xff]   ;;  %v21546_v59 = vld [vmem:[%s28314_s1 + $0x1464] ss:$8 sps:$4 sm:$0xff]  }
  0xfa   :  { %11805 = vmatpush1.bf16.msra.mxu0 %v21526_v16  ;;  %5746 = vmatmul.mubr.bf16.gmra.mrb[8].mxu1 %v4654_v20  ;;  %1920 = vst [vmem:[#allocation2 + $0x3b8] sm:$0xf] %v1519_v42  ;;  %1919 = vst [vmem:[#allocation2 + $0x3b0] sm:$0xf] %v1512_v43  ;;  %v17387_v53 = vld [vmem:[%s28315_s0 + $0x3f8] sm:$0x11] }
  0xfb   :  { %11806 = vmatprep.subr.bf16.mxu0 %v21534_v31  ;;  %5815 = vmatpush1.bf16.msra.mxu1 %v21529_v25  ;;  %3120 = vst [vmem:[#allocation2 + $0x3b8] sm:$0xf0] %v2680_v46  ;;  %3119 = vst [vmem:[#allocation2 + $0x3b0] sm:$0xf0] %v2672_v47  ;;  %v17467_v57 = vcombine.high %v17383_v52, %v17387_v53  ;;  %v21549_v60 = vld [vmem:[%s28314_s1 + $0x774] ss:$8 sps:$4 sm:$0xff]   ;;  %v17466_v61 = vcombine.low %v17383_v52, %v17387_v53 }
  0xfc   :  { %5816 = vmatprep.subr.bf16.mxu1 %v21537_v34  ;;  %5755 = vmatprep.mubr.bf16.mxu1 %v4663_v45  ;;  %v1570_v62 = vshrl.u32 %v17307_v56, 16  ;;  %v1572_v63 = vshll.u32 %v17307_v56, 16  ;;  %v4671_v2 = vld [vmem:[#allocation2 + $0x3a8] sm:$0xff]  ;;  %v1563_v3 = vshrl.u32 %v17306_v58, 16  ;;  %v1565_v4 = vshll.u32 %v17306_v58, 16  ;;  %v4670_v24 = vld [vmem:[#allocation2 + $0x3a0] sm:$0xff] }
  0xfd   :  { %10872 = vmatmul.mubr.bf16.gmra.mrb[8].mxu0 %v9669_v44  ;;  %v2738_v0 = vshrl.u32 %v17467_v57, 16  ;;  %v2741_v1 = vshll.u32 %v17467_v57, 16  ;;  %v2730_v5 = vshrl.u32 %v17466_v61, 16  ;;  %v2733_v6 = vshll.u32 %v17466_v61, 16  ;;  %v21544_v7 = vld [vmem:[%s28314_s1 + $0x1460] ss:$8 sps:$4 sm:$0xff]  }
  0xfe   :  { %11807 = vmatpush1.bf16.msra.mxu0 %v21532_v30  ;;  %v1574_v8 = vrot.slane %v1572_v63, 1  ;;  %v21547_v11 = vld [vmem:[%s28314_s1 + $0x770] ss:$8 sps:$4 sm:$0xff]   ;;  %v1567_v12 = vrot.slane %v1565_v4, 1  ;;  %v21552_v17 = vld [vmem:[%s28314_s1 + $0x1474] ss:$8 sps:$4 sm:$0xff]  }
  0xff   :  { %11808 = vmatprep.subr.bf16.mxu0 %v21540_v41  ;;  %5817 = vmatpush1.bf16.msra.mxu1 %v21535_v40  ;;  %v2740_v9 = vrot.slane %v2738_v0, 4  ;;  %v2743_v10 = vrot.slane %v2741_v1, 5  ;;  %v2732_v13 = vrot.slane %v2730_v5, 4  ;;  %v2735_v14 = vrot.slane %v2733_v6, 5  ;;  %v21550_v20 = vld [vmem:[%s28314_s1 + $0x1470] ss:$8 sps:$4 sm:$0xff]  }
 0x100   :  { %5818 = vmatprep.subr.bf16.mxu1 %v21543_v49  ;;  %v1575_v18 = vor.u32 %v1574_v8, %v1570_v62  ;;  %v21555_v21 = vld [vmem:[%s28314_s1 + $0x784] ss:$8 sps:$4 sm:$0xff]   ;;  %v1568_v22 = vor.u32 %v1567_v12, %v1563_v3  ;;  %v21553_v25 = vld [vmem:[%s28314_s1 + $0x780] ss:$8 sps:$4 sm:$0xff]   ;;  %v891_v26 = vld [vmem:[%s28315_s0 + $0x198] sm:$0xff] }
 0x101   :  { %v2744_v19 = vor.u32 %v2743_v10, %v2740_v9  ;;  %v2736_v23 = vor.u32 %v2735_v14, %v2732_v13  ;;  %v895_v27 = vld [vmem:[%s28315_s0 + $0x1b8] sm:$0x11]  ;;  %v21558_v28 = vld [vmem:[%s28314_s1 + $0x1484] ss:$8 sps:$4 sm:$0xff]   ;;  %v21556_v45 = vld [vmem:[%s28314_s1 + $0x1480] ss:$8 sps:$4 sm:$0xff]  }
 0x102   :  { %11809 = vmatpush1.bf16.msra.mxu0 %v21538_v48  ;;  %5756 = vmatmul.mubr.bf16.gmra.mrb[12].mxu1 %v4662_v54  ;;  %v9678_v15 = vld [vmem:[#allocation2 + $0x3b8] sm:$0xff]  ;;  %v9677_v16 = vld [vmem:[#allocation2 + $0x3b0] sm:$0xff]  ;;  %1928 = vst [vmem:[#allocation2 + $0x3f8] sm:$0xf] %v1575_v18  ;;  %1927 = vst [vmem:[#allocation2 + $0x3f0] sm:$0xf] %v1568_v22  ;;  %v17315_v29 = vcombine.high %v891_v26, %v895_v27  ;;  %v17314_v32 = vcombine.low %v891_v26, %v895_v27 }
 0x103   :  { %11810 = vmatprep.subr.bf16.mxu0 %v21546_v59  ;;  %5819 = vmatpush1.bf16.msra.mxu1 %v21541_v55  ;;  %3128 = vst [vmem:[#allocation2 + $0x3f8] sm:$0xf0] %v2744_v19  ;;  %3127 = vst [vmem:[#allocation2 + $0x3f0] sm:$0xf0] %v2736_v23  ;;  %v17391_v30 = vld [vmem:[%s28315_s0 + $0x418] sm:$0xff]  ;;  %v4679_v36 = vld [vmem:[#allocation2 + $0x3e8] sm:$0xff] }
 0x104   :  { %5765 = vmatprep.mubr.bf16.mxu1 %v4671_v2  ;;  %10881 = vmatprep.mubr.bf16.mxu0 %v9678_v15  ;;  %v17395_v31 = vld [vmem:[%s28315_s0 + $0x438] sm:$0x11]  ;;  %v1626_v37 = vshrl.u32 %v17315_v29, 16  ;;  %v1628_v38 = vshll.u32 %v17315_v29, 16  ;;  %v1619_v39 = vshrl.u32 %v17314_v32, 16  ;;  %v1621_v40 = vshll.u32 %v17314_v32, 16 }
 0x105   :  { %5820 = vmatprep.subr.bf16.mxu1 %v21549_v60  ;;  %10882 = vmatmul.mubr.bf16.gmra.mrb[12].mxu0 %v9677_v16  ;;  %v21561_v33 = vld [vmem:[%s28314_s1 + $0x794] ss:$8 sps:$4 sm:$0xff]   ;;  %v17475_v34 = vcombine.high %v17391_v30, %v17395_v31  ;;  %v17474_v35 = vcombine.low %v17391_v30, %v17395_v31  ;;  %v21559_v46 = vld [vmem:[%s28314_s1 + $0x790] ss:$8 sps:$4 sm:$0xff]   ;;  %v21567_v56 = vld [vmem:[%s28314_s1 + $0x7a4] ss:$8 sps:$4 sm:$0xff]  }
 0x106   :  { %11811 = vmatpush1.bf16.msra.mxu0 %v21544_v7  ;;  %v1630_v47 = vrot.slane %v1628_v38, 1  ;;  %v1623_v48 = vrot.slane %v1621_v40, 1  ;;  %v21564_v54 = vld [vmem:[%s28314_s1 + $0x1494] ss:$8 sps:$4 sm:$0xff]   ;;  %v21562_v59 = vld [vmem:[%s28314_s1 + $0x1490] ss:$8 sps:$4 sm:$0xff]  }
 0x107   :  { %11812 = vmatprep.subr.bf16.mxu0 %v21552_v17  ;;  %5821 = vmatpush1.bf16.msra.mxu1 %v21547_v11  ;;  %v2802_v41 = vshrl.u32 %v17475_v34, 16  ;;  %v2805_v42 = vshll.u32 %v17475_v34, 16  ;;  %v2794_v43 = vshrl.u32 %v17474_v35, 16  ;;  %v2797_v44 = vshll.u32 %v17474_v35, 16  ;;  %v4678_v62 = vld [vmem:[#allocation2 + $0x3e0] sm:$0xff]  ;;  %v899_v1 = vld [vmem:[%s28315_s0 + $0x1d8] sm:$0xff] }
 0x108   :  { %5822 = vmatprep.subr.bf16.mxu1 %v21555_v21  ;;  %v1631_v55 = vor.u32 %v1630_v47, %v1626_v37  ;;  %v1624_v57 = vor.u32 %v1623_v48, %v1619_v39  ;;  %v21565_v63 = vld [vmem:[%s28314_s1 + $0x7a0] ss:$8 sps:$4 sm:$0xff]   ;;  %v21570_v0 = vld [vmem:[%s28314_s1 + $0x14a4] ss:$8 sps:$4 sm:$0xff]   ;;  %v903_v2 = vld [vmem:[%s28315_s0 + $0x1f8] sm:$0x11] }
 0x109   :  { %v2804_v49 = vrot.slane %v2802_v41, 4  ;;  %v2807_v50 = vrot.slane %v2805_v42, 5  ;;  %v2796_v51 = vrot.slane %v2794_v43, 4  ;;  %v2799_v52 = vrot.slane %v2797_v44, 5  ;;  %v17399_v3 = vld [vmem:[%s28315_s0 + $0x458] sm:$0xff]  ;;  %v4687_v9 = vld [vmem:[#allocation2 + $0x428] sm:$0xff] }
 0x10a   :  { %11813 = vmatpush1.bf16.msra.mxu0 %v21550_v20  ;;  %5766 = vmatmul.mubr.bf16.gmra.mrb[16].mxu1 %v4670_v24  ;;  %v24364_v53 = vld [vmem:[#allocation2 + $0x3f8] sm:$0xff]  ;;  %v24373_v58 = vld [vmem:[#allocation2 + $0x3f0] sm:$0xff]  ;;  %1936 = vst [vmem:[#allocation2 + $0x438] sm:$0xf] %v1631_v55  ;;  %1935 = vst [vmem:[#allocation2 + $0x430] sm:$0xf] %v1624_v57  ;;  %v17323_v5 = vcombine.high %v899_v1, %v903_v2  ;;  %v17322_v7 = vcombine.low %v899_v1, %v903_v2 }
 0x10b   :  { %11814 = vmatprep.subr.bf16.mxu0 %v21558_v28  ;;  %5823 = vmatpush1.bf16.msra.mxu1 %v21553_v25  ;;  %v2808_v60 = vor.u32 %v2807_v50, %v2804_v49  ;;  %v2800_v61 = vor.u32 %v2799_v52, %v2796_v51  ;;  %v21573_v4 = vld [vmem:[%s28314_s1 + $0x7b4] ss:$8 sps:$4 sm:$0xff]   ;;  %v21568_v8 = vld [vmem:[%s28314_s1 + $0x14a0] ss:$8 sps:$4 sm:$0xff]   ;;  %v21571_v16 = vld [vmem:[%s28314_s1 + $0x7b0] ss:$8 sps:$4 sm:$0xff]  }
 0x10c   :  { %5824 = vmatprep.subr.bf16.mxu1 %v21561_v33  ;;  %5775 = vmatprep.mubr.bf16.mxu1 %v4679_v36  ;;  %v17403_v6 = vld [vmem:[%s28315_s0 + $0x478] sm:$0x11]  ;;  %v1682_v12 = vshrl.u32 %v17323_v5, 16  ;;  %v1684_v13 = vshll.u32 %v17323_v5, 16  ;;  %v1675_v14 = vshrl.u32 %v17322_v7, 16  ;;  %v1677_v15 = vshll.u32 %v17322_v7, 16 }
 0x10d   :  { %10891 = vmatprep.mubr.bf16.mxu0 %v24364_v53  ;;  %3136 = vst [vmem:[#allocation2 + $0x438] sm:$0xf0] %v2808_v60  ;;  %3135 = vst [vmem:[#allocation2 + $0x430] sm:$0xf0] %v2800_v61  ;;  %v17483_v10 = vcombine.high %v17399_v3, %v17403_v6  ;;  %v17482_v11 = vcombine.low %v17399_v3, %v17403_v6  ;;  %v21576_v21 = vld [vmem:[%s28314_s1 + $0x14b4] ss:$8 sps:$4 sm:$0xff]  }
 0x10e   :  { %10892 = vmatmul.mubr.bf16.gmra.mrb[16].mxu0 %v24373_v58  ;;  %v1686_v22 = vrot.slane %v1684_v13, 1  ;;  %v1679_v23 = vrot.slane %v1677_v15, 1  ;;  %v21574_v24 = vld [vmem:[%s28314_s1 + $0x14b0] ss:$8 sps:$4 sm:$0xff]   ;;  %v4686_v27 = vld [vmem:[#allocation2 + $0x420] sm:$0xff]  ;;  %v4695_v39 = vld [vmem:[#allocation2 + $0x468] sm:$0xff] }
 0x10f   :  { %11815 = vmatpush1.bf16.msra.mxu0 %v21556_v45  ;;  %5825 = vmatpush1.bf16.msra.mxu1 %v21559_v46  ;;  %v2866_v17 = vshrl.u32 %v17483_v10, 16  ;;  %v2869_v18 = vshll.u32 %v17483_v10, 16  ;;  %v2858_v19 = vshrl.u32 %v17482_v11, 16  ;;  %v2861_v20 = vshll.u32 %v17482_v11, 16  ;;  %v21579_v33 = vld [vmem:[%s28314_s1 + $0x7c4] ss:$8 sps:$4 sm:$0xff]  }
 0x110   :  { %11816 = vmatprep.subr.bf16.mxu0 %v21564_v54  ;;  %5826 = vmatprep.subr.bf16.mxu1 %v21567_v56  ;;  %v1687_v32 = vor.u32 %v1686_v22, %v1682_v12  ;;  %v1680_v34 = vor.u32 %v1679_v23, %v1675_v14  ;;  %v21577_v36 = vld [vmem:[%s28314_s1 + $0x7c0] ss:$8 sps:$4 sm:$0xff]   ;;  %v21582_v38 = vld [vmem:[%s28314_s1 + $0x14c4] ss:$8 sps:$4 sm:$0xff]   ;;  %v907_v40 = vld [vmem:[%s28315_s0 + $0x218] sm:$0xff] }
 0x111   :  { %v2868_v25 = vrot.slane %v2866_v17, 4  ;;  %v2871_v26 = vrot.slane %v2869_v18, 5  ;;  %v2860_v28 = vrot.slane %v2858_v19, 4  ;;  %v2863_v29 = vrot.slane %v2861_v20, 5  ;;  %v21580_v41 = vld [vmem:[%s28314_s1 + $0x14c0] ss:$8 sps:$4 sm:$0xff]  }
 0x112   :  { %5776 = vmatmul.mubr.bf16.gmra.mrb[20].mxu1 %v4678_v62  ;;  %1944 = vst [vmem:[#allocation2 + $0x478] sm:$0xf] %v1687_v32  ;;  %1943 = vst [vmem:[#allocation2 + $0x470] sm:$0xf] %v1680_v34  ;;  %v911_v42 = vld [vmem:[%s28315_s0 + $0x238] sm:$0x11] }
 0x113   :  { %11817 = vmatpush1.bf16.msra.mxu0 %v21562_v59  ;;  %5827 = vmatpush1.bf16.msra.mxu1 %v21565_v63  ;;  %v2872_v35 = vor.u32 %v2871_v26, %v2868_v25  ;;  %v2864_v37 = vor.u32 %v2863_v29, %v2860_v28  ;;  %v17407_v43 = vld [vmem:[%s28315_s0 + $0x498] sm:$0xff]  ;;  %v17331_v46 = vcombine.high %v907_v40, %v911_v42  ;;  %v4694_v2 = vld [vmem:[#allocation2 + $0x460] sm:$0xff] }
 0x114   :  { %11818 = vmatprep.subr.bf16.mxu0 %v21570_v0  ;;  %5828 = vmatprep.subr.bf16.mxu1 %v21573_v4  ;;  %v24412_v30 = vld [vmem:[#allocation2 + $0x438] sm:$0xff]  ;;  %v24414_v31 = vld [vmem:[#allocation2 + $0x430] sm:$0xff]  ;;  %v17330_v48 = vcombine.low %v907_v40, %v911_v42  ;;  %v21589_v3 = vld [vmem:[%s28314_s1 + $0x7e0] ss:$8 sps:$4 sm:$0xff]  }
 0x115   :  { %5785 = vmatprep.mubr.bf16.mxu1 %v4687_v9  ;;  %10901 = vmatprep.mubr.bf16.mxu0 %v24412_v30  ;;  %3144 = vst [vmem:[#allocation2 + $0x478] sm:$0xf0] %v2872_v35  ;;  %3143 = vst [vmem:[#allocation2 + $0x470] sm:$0xf0] %v2864_v37  ;;  %v17411_v44 = vld [vmem:[%s28315_s0 + $0x4b8] sm:$0x11] }
 0x116   :  { %10902 = vmatmul.mubr.bf16.gmra.mrb[20].mxu0 %v24414_v31  ;;  %v21585_v45 = vld [vmem:[%s28314_s1 + $0x7d4] ss:$8 sps:$4 sm:$0xff]   ;;  %v17491_v47 = vcombine.high %v17407_v43, %v17411_v44  ;;  %v21583_v49 = vld [vmem:[%s28314_s1 + $0x7d0] ss:$8 sps:$4 sm:$0xff]   ;;  %v17490_v51 = vcombine.low %v17407_v43, %v17411_v44  ;;  %v1738_v52 = vshrl.u32 %v17331_v46, 16  ;;  %v1740_v54 = vshll.u32 %v17331_v46, 16 }
 0x117   :  { %11819 = vmatpush1.bf16.msra.mxu0 %v21568_v8  ;;  %5829 = vmatpush1.bf16.msra.mxu1 %v21571_v16  ;;  %v21588_v50 = vld [vmem:[%s28314_s1 + $0x14d4] ss:$8 sps:$4 sm:$0xff]   ;;  %v21586_v57 = vld [vmem:[%s28314_s1 + $0x14d0] ss:$8 sps:$4 sm:$0xff]   ;;  %v1731_v59 = vshrl.u32 %v17330_v48, 16  ;;  %v1733_v60 = vshll.u32 %v17330_v48, 16 }
 0x118   :  { %11820 = vmatprep.subr.bf16.mxu0 %v21576_v21  ;;  %5830 = vmatprep.subr.bf16.mxu1 %v21579_v33  ;;  %v2930_v55 = vshrl.u32 %v17491_v47, 16  ;;  %v2933_v56 = vshll.u32 %v17491_v47, 16  ;;  %v2922_v61 = vshrl.u32 %v17490_v51, 16  ;;  %v2925_v62 = vshll.u32 %v17490_v51, 16  ;;  %v21591_v4 = vld [vmem:[%s28314_s1 + $0x7e4] ss:$8 sps:$4 sm:$0xff]  }
 0x119   :  { %v1742_v63 = vrot.slane %v1740_v54, 1  ;;  %v1735_v5 = vrot.slane %v1733_v60, 1  ;;  %v21594_v12 = vld [vmem:[%s28314_s1 + $0x14e4] ss:$8 sps:$4 sm:$0xff]   ;;  %v21592_v15 = vld [vmem:[%s28314_s1 + $0x14e0] ss:$8 sps:$4 sm:$0xff]  }
 0x11a   :  { %5786 = vmatmul.mubr.bf16.gmra.mrb[24].mxu1 %v4686_v27  ;;  %v2932_v0 = vrot.slane %v2930_v55, 4  ;;  %v2935_v1 = vrot.slane %v2933_v56, 5  ;;  %v2924_v6 = vrot.slane %v2922_v61, 4  ;;  %v2927_v7 = vrot.slane %v2925_v62, 5  ;;  %v21597_v16 = vld [vmem:[%s28314_s1 + $0x7f4] ss:$8 sps:$4 sm:$0xff]  }
 0x11b   :  { %11821 = vmatpush1.bf16.msra.mxu0 %v21574_v24  ;;  %5795 = vmatprep.mubr.bf16.mxu1 %v4695_v39  ;;  %v1743_v10 = vor.u32 %v1742_v63, %v1738_v52  ;;  %v1736_v13 = vor.u32 %v1735_v5, %v1731_v59  ;;  %v21600_v17 = vld [vmem:[%s28314_s1 + $0x14f4] ss:$8 sps:$4 sm:$0xff]   ;;  %v3169_v24 = vld [vmem:[%s28315_s0 + $0x40] sm:$0xee]  ;;  %v3173_v25 = vld [vmem:[%s28315_s0 + $0x60] sm:$0x11] }
 0x11c   :  { %11822 = vmatprep.subr.bf16.mxu0 %v21582_v38  ;;  %5831 = vmatpush1.bf16.msra.mxu1 %v21577_v36  ;;  %v24460_v8 = vld [vmem:[#allocation2 + $0x478] sm:$0xff]  ;;  %v24462_v9 = vld [vmem:[#allocation2 + $0x470] sm:$0xff]  ;;  %v2936_v11 = vor.u32 %v2935_v1, %v2932_v0  ;;  %v2928_v14 = vor.u32 %v2927_v7, %v2924_v6  ;;  %v17508_v28 = vcombine.low %v3169_v24, %v3173_v25  ;;  %v17588_v32 = vld [vmem:[%s28315_s0 + $0x2c0] sm:$0xee] }
 0x11d   :  { %5832 = vmatprep.subr.bf16.mxu1 %v21585_v45  ;;  %10911 = vmatprep.mubr.bf16.mxu0 %v24460_v8  ;;  %1952 = vst [vmem:[#allocation2 + $0x4b8] sm:$0xf] %v1743_v10  ;;  %v843_v18 = vld [vmem:[%s28315_s0 + $0x18] sm:$0xff]  ;;  %1951 = vst [vmem:[#allocation2 + $0x4b0] sm:$0xf] %v1736_v13  ;;  %v17509_v29 = vcombine.high %v3169_v24, %v3173_v25 }
 0x11e   :  { %10912 = vmatmul.mubr.bf16.gmra.mrb[24].mxu0 %v24462_v9  ;;  %3152 = vst [vmem:[#allocation2 + $0x4b8] sm:$0xf0] %v2936_v11  ;;  %v847_v19 = vld [vmem:[%s28315_s0 + $0x38] sm:$0x11]  ;;  %3151 = vst [vmem:[#allocation2 + $0x4b0] sm:$0xf0] %v2928_v14 }
 0x11f   :  { %11823 = vmatpush1.bf16.msra.mxu0 %v21580_v41  ;;  %v17343_v20 = vld [vmem:[%s28315_s0 + $0x298] sm:$0xff]  ;;  %v17266_v21 = vcombine.low %v843_v18, %v847_v19  ;;  %v17267_v22 = vcombine.high %v843_v18, %v847_v19  ;;  %v17592_v33 = vld [vmem:[%s28315_s0 + $0x2e0] sm:$0x11]  ;;  %v3569_v41 = vrot.slane %v17508_v28, 1  ;;  %v3570_v42 = vrot.slane %v17509_v29, 1 }
 0x120   :  { %11824 = vmatprep.subr.bf16.mxu0 %v21588_v50  ;;  %5833 = vmatpush1.bf16.msra.mxu1 %v21583_v49  ;;  %v17347_v23 = vld [vmem:[%s28315_s0 + $0x2b8] sm:$0x11]  ;;  %v17668_v37 = vcombine.low %v17588_v32, %v17592_v33  ;;  %v17669_v38 = vcombine.high %v17588_v32, %v17592_v33  ;;  %v21603_v43 = vld [vmem:[%s28314_s1 + $0x4] ss:$8 sps:$4 sm:$0xff]  }
 0x121   :  { %5834 = vmatprep.subr.bf16.mxu1 %v21591_v4  ;;  %v17426_v26 = vcombine.low %v17343_v20, %v17347_v23  ;;  %v17427_v27 = vcombine.high %v17343_v20, %v17347_v23  ;;  %v21595_v34 = vld [vmem:[%s28314_s1 + $0x7f0] ss:$8 sps:$4 sm:$0xff]   ;;  %v1290_v35 = vshrl.u32 %v17267_v22, 16  ;;  %v1292_v36 = vshll.u32 %v17267_v22, 16  ;;  %3731 = vst [vmem:[#allocation2 + $0x548] sm:$0xf] %v3570_v42 }
 0x122   :  { %5796 = vmatmul.mubr.bf16.gmra.mrb[28].mxu1 %v4694_v2  ;;  %v4210_v45 = vrot.slane %v17668_v37, 5  ;;  %v4211_v46 = vrot.slane %v17669_v38, 5  ;;  %v1283_v47 = vshrl.u32 %v17266_v21, 16  ;;  %v21598_v48 = vld [vmem:[%s28314_s1 + $0x14f0] ss:$8 sps:$4 sm:$0xff]   ;;  %v1285_v51 = vshll.u32 %v17266_v21, 16 }
 0x123   :  { %11825 = vmatpush1.bf16.msra.mxu0 %v21586_v57  ;;  %v2418_v39 = vshrl.u32 %v17427_v27, 16  ;;  %v2421_v40 = vshll.u32 %v17427_v27, 16  ;;  %v1294_v44 = vrot.slane %v1292_v36, 1  ;;  %3730 = vst [vmem:[#allocation2 + $0x540] sm:$0xf] %v3569_v41  ;;  %v2410_v52 = vshrl.u32 %v17426_v26, 16 }
 0x124   :  { %11826 = vmatprep.subr.bf16.mxu0 %v21594_v12  ;;  %5835 = vmatpush1.bf16.msra.mxu1 %v21589_v3  ;;  %4371 = vst [vmem:[#allocation2 + $0x548] sm:$0xf0] %v4211_v46  ;;  %4370 = vst [vmem:[#allocation2 + $0x540] sm:$0xf0] %v4210_v45  ;;  %v2413_v56 = vshll.u32 %v17426_v26, 16  ;;  %v1287_v61 = vrot.slane %v1285_v51, 1 }
 0x125   :  { %5836 = vmatprep.subr.bf16.mxu1 %v21597_v16  ;;  %v2420_v49 = vrot.slane %v2418_v39, 4  ;;  %v2423_v50 = vrot.slane %v2421_v40, 5  ;;  %v9710_v54 = vld [vmem:[#allocation2 + $0x4b8] sm:$0xff]  ;;  %v1295_v55 = vor.u32 %v1294_v44, %v1290_v35  ;;  %v21606_v57 = vld [vmem:[%s28314_s1 + $0x1504] ss:$8 sps:$4 sm:$0xff]   ;;  %v9709_v59 = vld [vmem:[#allocation2 + $0x4b0] sm:$0xff] }
 0x126   :  { %10921 = vmatprep.mubr.bf16.mxu0 %v9710_v54  ;;  %v2412_v62 = vrot.slane %v2410_v52, 4  ;;  %v2415_v63 = vrot.slane %v2413_v56, 5  ;;  %v1288_v0 = vor.u32 %v1287_v61, %v1283_v47  ;;  %v3177_v1 = vld [vmem:[%s28315_s0 + $0x80] sm:$0xee]  ;;  %v3181_v3 = vld [vmem:[%s28315_s0 + $0xa0] sm:$0x11] }
 0x127   :  { %11827 = vmatpush1.bf16.msra.mxu0 %v21592_v15  ;;  %v2424_v60 = vor.u32 %v2423_v50, %v2420_v49  ;;  %1888 = vst [vmem:[#allocation2 + $0x2b8] sm:$0xf] %v1295_v55  ;;  %v17596_v4 = vld [vmem:[%s28315_s0 + $0x300] sm:$0xee]  ;;  %v17600_v5 = vld [vmem:[%s28315_s0 + $0x320] sm:$0x11]  ;;  %v17517_v6 = vcombine.high %v3177_v1, %v3181_v3  ;;  %v17516_v10 = vcombine.low %v3177_v1, %v3181_v3 }
 0x128   :  { %11828 = vmatprep.subr.bf16.mxu0 %v21600_v17  ;;  %5837 = vmatpush1.bf16.msra.mxu1 %v21595_v34  ;;  %v2416_v2 = vor.u32 %v2415_v63, %v2412_v62  ;;  %1887 = vst [vmem:[#allocation2 + $0x2b0] sm:$0xf] %v1288_v0  ;;  %v17677_v7 = vcombine.high %v17596_v4, %v17600_v5  ;;  %v21604_v12 = vld [vmem:[%s28314_s1 + $0x1500] ss:$8 sps:$4 sm:$0xff]   ;;  %v21612_v19 = vld [vmem:[%s28314_s1 + $0x1514] ss:$8 sps:$4 sm:$0xff]  }
 0x129   :  { %6559 = vmatprep.subr.bf16.mxu1 %v21603_v43  ;;  %10922 = vmatmul.mubr.bf16.gmra.mrb[28].mxu0 %v9709_v59  ;;  %3088 = vst [vmem:[#allocation2 + $0x2b8] sm:$0xf0] %v2424_v60  ;;  %v17676_v11 = vcombine.low %v17596_v4, %v17600_v5  ;;  %v3578_v15 = vrot.slane %v17517_v6, 1  ;;  %v3577_v17 = vrot.slane %v17516_v10, 1  ;;  %v21601_v20 = vld [vmem:[%s28314_s1] ss:$8 sps:$4 sm:$0xff]  }
 0x12a   :  { %3087 = vst [vmem:[#allocation2 + $0x2b0] sm:$0xf0] %v2416_v2  ;;  %v4219_v16 = vrot.slane %v17677_v7, 5  ;;  %v21609_v22 = vld [vmem:[%s28314_s1 + $0x14] ss:$8 sps:$4 sm:$0xff]  }
 0x12b   :  { %11829 = vmatpush1.bf16.msra.mxu0 %v21598_v48  ;;  %v10966_v13 = vld [vmem:[#allocation2 + $0x548] sm:$0xff]  ;;  %v10965_v14 = vld [vmem:[#allocation2 + $0x540] sm:$0xff]  ;;  %v4218_v18 = vrot.slane %v17676_v11, 5  ;;  %3739 = vst [vmem:[#allocation2 + $0x588] sm:$0xf] %v3578_v15  ;;  %v4649_v24 = vld [vmem:[#allocation2 + $0x2f8] sm:$0xff] }
 0x12c   :  { %11911 = vmatprep.subr.bf16.mxu0 %v21606_v57  ;;  %11830 = vmatprep.mubr.bf16.mxu0 %v10966_v13  ;;  %4379 = vst [vmem:[#allocation2 + $0x588] sm:$0xf0] %v4219_v16  ;;  %3738 = vst [vmem:[#allocation2 + $0x580] sm:$0xf] %v3577_v17  ;;  %v21610_v23 = vld [vmem:[%s28314_s1 + $0x1510] ss:$8 sps:$4 sm:$0xff]  }
 0x12d   :  { %4378 = vst [vmem:[#allocation2 + $0x580] sm:$0xf0] %v4218_v18  ;;  %v21618_v25 = vld [vmem:[%s28314_s1 + $0x1524] ss:$8 sps:$4 sm:$0xff]   ;;  %v21607_v29 = vld [vmem:[%s28314_s1 + $0x10] ss:$8 sps:$4 sm:$0xff]  }
 0x12e   :  { %v3185_v26 = vld [vmem:[%s28315_s0 + $0xc0] sm:$0xee]  ;;  %v3189_v27 = vld [vmem:[%s28315_s0 + $0xe0] sm:$0x11]  ;;  %v21624_v40 = vld [vmem:[%s28314_s1 + $0x1534] ss:$8 sps:$4 sm:$0xff]  }
 0x12f   :  { %v17525_v32 = vcombine.high %v3185_v26, %v3189_v27  ;;  %v17604_v33 = vld [vmem:[%s28315_s0 + $0x340] sm:$0xee]  ;;  %v17608_v34 = vld [vmem:[%s28315_s0 + $0x360] sm:$0x11]  ;;  %v17524_v35 = vcombine.low %v3185_v26, %v3189_v27  ;;  %v4648_v47 = vld [vmem:[#allocation2 + $0x2f0] sm:$0xff] }
 0x130   :  { %v4641_v21 = vld [vmem:[#allocation2 + $0x2b8] sm:$0xff]  ;;  %v21615_v36 = vld [vmem:[%s28314_s1 + $0x24] ss:$8 sps:$4 sm:$0xff]   ;;  %v17685_v37 = vcombine.high %v17604_v33, %v17608_v34  ;;  %v17684_v38 = vcombine.low %v17604_v33, %v17608_v34  ;;  %v21616_v39 = vld [vmem:[%s28314_s1 + $0x1520] ss:$8 sps:$4 sm:$0xff]  }
 0x131   :  { %11831 = vmatmul.mubr.bf16.vlgmr.msra.gmra.mrb[0].mxu0 %v10965_v14  ;;  %5838 = vmatprep.mubr.bf16.mxu1 %v4641_v21  ;;  %v4640_v28 = vld [vmem:[#allocation2 + $0x2b0] sm:$0xff]  ;;  %v3586_v41 = vrot.slane %v17525_v32, 1  ;;  %v3585_v42 = vrot.slane %v17524_v35, 1  ;;  %v21613_v48 = vld [vmem:[%s28314_s1 + $0x20] ss:$8 sps:$4 sm:$0xff]   ;;  %v4657_v51 = vld [vmem:[#allocation2 + $0x338] sm:$0xff] }
 0x132   :  { %11912 = vmatpush1.bf16.msra.mxu0 %v21604_v12  ;;  %5839 = vmatmul.mubr.bf16.vlgmr.msra.gmra.mrb[0].mxu1 %v4640_v28  ;;  %v4227_v45 = vrot.slane %v17685_v37, 5  ;;  %v4226_v46 = vrot.slane %v17684_v38, 5  ;;  %v21622_v49 = vld [vmem:[%s28314_s1 + $0x1530] ss:$8 sps:$4 sm:$0xff]   ;;  %v21621_v50 = vld [vmem:[%s28314_s1 + $0x34] ss:$8 sps:$4 sm:$0xff]  }
 0x133   :  { %11913 = vmatprep.subr.bf16.mxu0 %v21612_v19  ;;  %6560 = vmatpush1.bf16.msra.mxu1 %v21601_v20  ;;  %v10974_v43 = vld [vmem:[#allocation2 + $0x588] sm:$0xff]  ;;  %3747 = vst [vmem:[#allocation2 + $0x5c8] sm:$0xf] %v3586_v41  ;;  %3746 = vst [vmem:[#allocation2 + $0x5c0] sm:$0xf] %v3585_v42  ;;  %v4656_v5 = vld [vmem:[#allocation2 + $0x330] sm:$0xff] }
 0x134   :  { %6561 = vmatprep.subr.bf16.mxu1 %v21609_v22  ;;  %5848 = vmatprep.mubr.bf16.mxu1 %v4649_v24  ;;  %v10973_v44 = vld [vmem:[#allocation2 + $0x580] sm:$0xff]  ;;  %4387 = vst [vmem:[#allocation2 + $0x5c8] sm:$0xf0] %v4227_v45  ;;  %4386 = vst [vmem:[#allocation2 + $0x5c0] sm:$0xf0] %v4226_v46  ;;  %v4665_v15 = vld [vmem:[#allocation2 + $0x378] sm:$0xff] }
 0x135   :  { %11840 = vmatprep.mubr.bf16.mxu0 %v10974_v43  ;;  %v21630_v52 = vld [vmem:[%s28314_s1 + $0x1544] ss:$8 sps:$4 sm:$0xff]   ;;  %v21619_v61 = vld [vmem:[%s28314_s1 + $0x30] ss:$8 sps:$4 sm:$0xff]   ;;  %v21628_v1 = vld [vmem:[%s28314_s1 + $0x1540] ss:$8 sps:$4 sm:$0xff]  }
 0x136   :  { %11914 = vmatpush1.bf16.msra.mxu0 %v21610_v23  ;;  %v3193_v54 = vld [vmem:[%s28315_s0 + $0x100] sm:$0xee]  ;;  %v3197_v55 = vld [vmem:[%s28315_s0 + $0x120] sm:$0x11]  ;;  %v21636_v7 = vld [vmem:[%s28314_s1 + $0x1554] ss:$8 sps:$4 sm:$0xff]  }
 0x137   :  { %11915 = vmatprep.subr.bf16.mxu0 %v21618_v25  ;;  %6562 = vmatpush1.bf16.msra.mxu1 %v21607_v29  ;;  %v17612_v56 = vld [vmem:[%s28315_s0 + $0x380] sm:$0xee]  ;;  %v17533_v57 = vcombine.high %v3193_v54, %v3197_v55  ;;  %v17616_v59 = vld [vmem:[%s28315_s0 + $0x3a0] sm:$0x11]  ;;  %v17532_v60 = vcombine.low %v3193_v54, %v3197_v55  ;;  %v21633_v13 = vld [vmem:[%s28314_s1 + $0x54] ss:$8 sps:$4 sm:$0xff]  }
 0x138   :  { %6563 = vmatprep.subr.bf16.mxu1 %v21615_v36  ;;  %v21627_v62 = vld [vmem:[%s28314_s1 + $0x44] ss:$8 sps:$4 sm:$0xff]   ;;  %v17693_v63 = vcombine.high %v17612_v56, %v17616_v59  ;;  %v17692_v0 = vcombine.low %v17612_v56, %v17616_v59  ;;  %v21625_v12 = vld [vmem:[%s28314_s1 + $0x40] ss:$8 sps:$4 sm:$0xff]   ;;  %v21634_v14 = vld [vmem:[%s28314_s1 + $0x1550] ss:$8 sps:$4 sm:$0xff]  }
 0x139   :  { %11841 = vmatmul.mubr.bf16.gmra.mrb[4].mxu0 %v10973_v44  ;;  %v3594_v2 = vrot.slane %v17533_v57, 1  ;;  %v3593_v3 = vrot.slane %v17532_v60, 1  ;;  %v21642_v16 = vld [vmem:[%s28314_s1 + $0x1564] ss:$8 sps:$4 sm:$0xff]   ;;  %v21631_v23 = vld [vmem:[%s28314_s1 + $0x50] ss:$8 sps:$4 sm:$0xff]  }
 0x13a   :  { %11916 = vmatpush1.bf16.msra.mxu0 %v21616_v39  ;;  %5849 = vmatmul.mubr.bf16.gmra.mrb[4].mxu1 %v4648_v47  ;;  %v4235_v10 = vrot.slane %v17693_v63, 5  ;;  %v4234_v11 = vrot.slane %v17692_v0, 5  ;;  %v3201_v17 = vld [vmem:[%s28315_s0 + $0x140] sm:$0xee]  ;;  %v3205_v18 = vld [vmem:[%s28315_s0 + $0x160] sm:$0x11] }
 0x13b   :  { %11917 = vmatprep.subr.bf16.mxu0 %v21624_v40  ;;  %6564 = vmatpush1.bf16.msra.mxu1 %v21613_v48  ;;  %v10982_v4 = vld [vmem:[#allocation2 + $0x5c8] sm:$0xff]  ;;  %v10981_v6 = vld [vmem:[#allocation2 + $0x5c0] sm:$0xff]  ;;  %3755 = vst [vmem:[#allocation2 + $0x608] sm:$0xf] %v3594_v2  ;;  %3754 = vst [vmem:[#allocation2 + $0x600] sm:$0xf] %v3593_v3  ;;  %v17541_v20 = vcombine.high %v3201_v17, %v3205_v18  ;;  %v17540_v22 = vcombine.low %v3201_v17, %v3205_v18 }
 0x13c   :  { %6565 = vmatprep.subr.bf16.mxu1 %v21621_v50  ;;  %5858 = vmatprep.mubr.bf16.mxu1 %v4657_v51  ;;  %4395 = vst [vmem:[#allocation2 + $0x608] sm:$0xf0] %v4235_v10  ;;  %4394 = vst [vmem:[#allocation2 + $0x600] sm:$0xf0] %v4234_v11  ;;  %v17620_v19 = vld [vmem:[%s28315_s0 + $0x3c0] sm:$0xee] }
 0x13d   :  { %11850 = vmatprep.mubr.bf16.mxu0 %v10982_v4  ;;  %v17624_v21 = vld [vmem:[%s28315_s0 + $0x3e0] sm:$0x11]  ;;  %v3602_v27 = vrot.slane %v17541_v20, 1  ;;  %v3601_v28 = vrot.slane %v17540_v22, 1  ;;  %v4664_v29 = vld [vmem:[#allocation2 + $0x370] sm:$0xff]  ;;  %v4673_v41 = vld [vmem:[#allocation2 + $0x3b8] sm:$0xff] }
 0x13e   :  { %11918 = vmatpush1.bf16.msra.mxu0 %v21622_v49  ;;  %v17701_v24 = vcombine.high %v17620_v19, %v17624_v21  ;;  %v17700_v25 = vcombine.low %v17620_v19, %v17624_v21  ;;  %v21639_v26 = vld [vmem:[%s28314_s1 + $0x64] ss:$8 sps:$4 sm:$0xff]   ;;  %v21637_v32 = vld [vmem:[%s28314_s1 + $0x60] ss:$8 sps:$4 sm:$0xff]   ;;  %v21648_v38 = vld [vmem:[%s28314_s1 + $0x1574] ss:$8 sps:$4 sm:$0xff]  }
 0x13f   :  { %11919 = vmatprep.subr.bf16.mxu0 %v21630_v52  ;;  %6566 = vmatpush1.bf16.msra.mxu1 %v21619_v61  ;;  %v21640_v33 = vld [vmem:[%s28314_s1 + $0x1560] ss:$8 sps:$4 sm:$0xff]   ;;  %3763 = vst [vmem:[#allocation2 + $0x648] sm:$0xf] %v3602_v27  ;;  %3762 = vst [vmem:[#allocation2 + $0x640] sm:$0xf] %v3601_v28 }
 0x140   :  { %6567 = vmatprep.subr.bf16.mxu1 %v21627_v62  ;;  %v4243_v34 = vrot.slane %v17701_v24, 5  ;;  %v4242_v35 = vrot.slane %v17700_v25, 5  ;;  %v21645_v39 = vld [vmem:[%s28314_s1 + $0x74] ss:$8 sps:$4 sm:$0xff]   ;;  %v21646_v40 = vld [vmem:[%s28314_s1 + $0x1570] ss:$8 sps:$4 sm:$0xff]  }
 0x141   :  { %11851 = vmatmul.mubr.bf16.gmra.mrb[8].mxu0 %v10981_v6  ;;  %v3209_v42 = vld [vmem:[%s28315_s0 + $0x180] sm:$0xee]  ;;  %v3213_v43 = vld [vmem:[%s28315_s0 + $0x1a0] sm:$0x11]  ;;  %v21643_v51 = vld [vmem:[%s28314_s1 + $0x70] ss:$8 sps:$4 sm:$0xff]  }
 0x142   :  { %11920 = vmatpush1.bf16.msra.mxu0 %v21628_v1  ;;  %5859 = vmatmul.mubr.bf16.gmra.mrb[8].mxu1 %v4656_v5  ;;  %4403 = vst [vmem:[#allocation2 + $0x648] sm:$0xf0] %v4243_v34  ;;  %4402 = vst [vmem:[#allocation2 + $0x640] sm:$0xf0] %v4242_v35  ;;  %v17549_v44 = vcombine.high %v3209_v42, %v3213_v43  ;;  %v17628_v45 = vld [vmem:[%s28315_s0 + $0x400] sm:$0xee]  ;;  %v17548_v47 = vcombine.low %v3209_v42, %v3213_v43 }
 0x143   :  { %11921 = vmatprep.subr.bf16.mxu0 %v21636_v7  ;;  %6568 = vmatpush1.bf16.msra.mxu1 %v21625_v12  ;;  %v10990_v36 = vld [vmem:[#allocation2 + $0x608] sm:$0xff]  ;;  %v10989_v37 = vld [vmem:[#allocation2 + $0x600] sm:$0xff]  ;;  %v21660_v60 = vld [vmem:[%s28314_s1 + $0x1594] ss:$8 sps:$4 sm:$0xff]  }
 0x144   :  { %5868 = vmatprep.mubr.bf16.mxu1 %v4665_v15  ;;  %6569 = vmatprep.subr.bf16.mxu1 %v21633_v13  ;;  %v17632_v46 = vld [vmem:[%s28315_s0 + $0x420] sm:$0x11]  ;;  %v3610_v52 = vrot.slane %v17549_v44, 1  ;;  %v3609_v54 = vrot.slane %v17548_v47, 1  ;;  %v21657_v0 = vld [vmem:[%s28314_s1 + $0x94] ss:$8 sps:$4 sm:$0xff]  }
 0x145   :  { %11860 = vmatprep.mubr.bf16.mxu0 %v10990_v36  ;;  %v21654_v48 = vld [vmem:[%s28314_s1 + $0x1584] ss:$8 sps:$4 sm:$0xff]   ;;  %v17709_v49 = vcombine.high %v17628_v45, %v17632_v46  ;;  %v17708_v50 = vcombine.low %v17628_v45, %v17632_v46  ;;  %v21652_v59 = vld [vmem:[%s28314_s1 + $0x1580] ss:$8 sps:$4 sm:$0xff]   ;;  %v21658_v5 = vld [vmem:[%s28314_s1 + $0x1590] ss:$8 sps:$4 sm:$0xff]  }
 0x146   :  { %11922 = vmatpush1.bf16.msra.mxu0 %v21634_v14  ;;  %v21651_v55 = vld [vmem:[%s28314_s1 + $0x84] ss:$8 sps:$4 sm:$0xff]   ;;  %3771 = vst [vmem:[#allocation2 + $0x688] sm:$0xf] %v3610_v52  ;;  %3770 = vst [vmem:[#allocation2 + $0x680] sm:$0xf] %v3609_v54 }
 0x147   :  { %11923 = vmatprep.subr.bf16.mxu0 %v21642_v16  ;;  %6570 = vmatpush1.bf16.msra.mxu1 %v21631_v23  ;;  %v4251_v56 = vrot.slane %v17709_v49, 5  ;;  %v4250_v57 = vrot.slane %v17708_v50, 5  ;;  %v21649_v63 = vld [vmem:[%s28314_s1 + $0x80] ss:$8 sps:$4 sm:$0xff]   ;;  %v23189_v12 = vld [vmem:[#allocation2 + $0x3b0] sm:$0xff] }
 0x148   :  { %6571 = vmatprep.subr.bf16.mxu1 %v21639_v26  ;;  %v3217_v1 = vld [vmem:[%s28315_s0 + $0x1c0] sm:$0xee]  ;;  %v3221_v2 = vld [vmem:[%s28315_s0 + $0x1e0] sm:$0x11]  ;;  %v21655_v14 = vld [vmem:[%s28314_s1 + $0x90] ss:$8 sps:$4 sm:$0xff]  }
 0x149   :  { %11861 = vmatmul.mubr.bf16.gmra.mrb[12].mxu0 %v10989_v37  ;;  %v10998_v61 = vld [vmem:[#allocation2 + $0x648] sm:$0xff]  ;;  %v10997_v62 = vld [vmem:[#allocation2 + $0x640] sm:$0xff]  ;;  %4411 = vst [vmem:[#allocation2 + $0x688] sm:$0xf0] %v4251_v56  ;;  %4410 = vst [vmem:[#allocation2 + $0x680] sm:$0xf0] %v4250_v57  ;;  %v17557_v6 = vcombine.high %v3217_v1, %v3221_v2  ;;  %v17556_v10 = vcombine.low %v3217_v1, %v3221_v2 }
 0x14a   :  { %11924 = vmatpush1.bf16.msra.mxu0 %v21640_v33  ;;  %5869 = vmatmul.mubr.bf16.gmra.mrb[12].mxu1 %v4664_v29  ;;  %v17636_v3 = vld [vmem:[%s28315_s0 + $0x440] sm:$0xee]  ;;  %v17640_v4 = vld [vmem:[%s28315_s0 + $0x460] sm:$0x11]  ;;  %v21669_v24 = vld [vmem:[%s28314_s1 + $0xb4] ss:$8 sps:$4 sm:$0xff]  }
 0x14b   :  { %11925 = vmatprep.subr.bf16.mxu0 %v21648_v38  ;;  %6572 = vmatpush1.bf16.msra.mxu1 %v21637_v32  ;;  %v17717_v7 = vcombine.high %v17636_v3, %v17640_v4  ;;  %v17716_v11 = vcombine.low %v17636_v3, %v17640_v4  ;;  %v21666_v13 = vld [vmem:[%s28314_s1 + $0x15a4] ss:$8 sps:$4 sm:$0xff]   ;;  %v3618_v15 = vrot.slane %v17557_v6, 1  ;;  %v3617_v17 = vrot.slane %v17556_v10, 1  ;;  %v21664_v22 = vld [vmem:[%s28314_s1 + $0x15a0] ss:$8 sps:$4 sm:$0xff]  }
 0x14c   :  { %5878 = vmatprep.mubr.bf16.mxu1 %v4673_v41  ;;  %6573 = vmatprep.subr.bf16.mxu1 %v21645_v39  ;;  %v21663_v19 = vld [vmem:[%s28314_s1 + $0xa4] ss:$8 sps:$4 sm:$0xff]   ;;  %v21661_v23 = vld [vmem:[%s28314_s1 + $0xa0] ss:$8 sps:$4 sm:$0xff]   ;;  %v21670_v29 = vld [vmem:[%s28314_s1 + $0x15b0] ss:$8 sps:$4 sm:$0xff]  }
 0x14d   :  { %11870 = vmatprep.mubr.bf16.mxu0 %v10998_v61  ;;  %v4259_v16 = vrot.slane %v17717_v7, 5  ;;  %v4258_v18 = vrot.slane %v17716_v11, 5  ;;  %3779 = vst [vmem:[#allocation2 + $0x6c8] sm:$0xf] %v3618_v15  ;;  %3778 = vst [vmem:[#allocation2 + $0x6c0] sm:$0xf] %v3617_v17 }
 0x14e   :  { %11926 = vmatpush1.bf16.msra.mxu0 %v21646_v40  ;;  %v3225_v25 = vld [vmem:[%s28315_s0 + $0x200] sm:$0xee]  ;;  %v3229_v26 = vld [vmem:[%s28315_s0 + $0x220] sm:$0x11]  ;;  %v21667_v37 = vld [vmem:[%s28314_s1 + $0xb0] ss:$8 sps:$4 sm:$0xff]  }
 0x14f   :  { %11927 = vmatprep.subr.bf16.mxu0 %v21654_v48  ;;  %6574 = vmatpush1.bf16.msra.mxu1 %v21643_v51  ;;  %4419 = vst [vmem:[#allocation2 + $0x6c8] sm:$0xf0] %v4259_v16  ;;  %4418 = vst [vmem:[#allocation2 + $0x6c0] sm:$0xf0] %v4258_v18  ;;  %v17644_v27 = vld [vmem:[%s28315_s0 + $0x480] sm:$0xee]  ;;  %v17565_v32 = vcombine.high %v3225_v25, %v3229_v26  ;;  %v17564_v34 = vcombine.low %v3225_v25, %v3229_v26 }
 0x150   :  { %6575 = vmatprep.subr.bf16.mxu1 %v21651_v55  ;;  %v11006_v20 = vld [vmem:[#allocation2 + $0x688] sm:$0xff]  ;;  %v11005_v21 = vld [vmem:[#allocation2 + $0x680] sm:$0xff]  ;;  %v21684_v45 = vld [vmem:[%s28314_s1 + $0x15d4] ss:$8 sps:$4 sm:$0xff]  }
 0x151   :  { %11871 = vmatmul.mubr.bf16.gmra.mrb[16].mxu0 %v10997_v62  ;;  %v17648_v28 = vld [vmem:[%s28315_s0 + $0x4a0] sm:$0x11]  ;;  %v3626_v38 = vrot.slane %v17565_v32, 1  ;;  %v3625_v40 = vrot.slane %v17564_v34, 1  ;;  %v21681_v46 = vld [vmem:[%s28314_s1 + $0xd4] ss:$8 sps:$4 sm:$0xff]  }
 0x152   :  { %11928 = vmatpush1.bf16.msra.mxu0 %v21652_v59  ;;  %5879 = vmatmul.mubr.bf16.gmra.mrb[16].mxu1 %v23189_v12  ;;  %v17725_v33 = vcombine.high %v17644_v27, %v17648_v28  ;;  %v17724_v35 = vcombine.low %v17644_v27, %v17648_v28  ;;  %v21678_v36 = vld [vmem:[%s28314_s1 + $0x15c4] ss:$8 sps:$4 sm:$0xff]   ;;  %v21676_v43 = vld [vmem:[%s28314_s1 + $0x15c0] ss:$8 sps:$4 sm:$0xff]   ;;  %v21682_v47 = vld [vmem:[%s28314_s1 + $0x15d0] ss:$8 sps:$4 sm:$0xff]  }
 0x153   :  { %11929 = vmatprep.subr.bf16.mxu0 %v21660_v60  ;;  %6576 = vmatpush1.bf16.msra.mxu1 %v21649_v63  ;;  %3787 = vst [vmem:[#allocation2 + $0x708] sm:$0xf] %v3626_v38  ;;  %3786 = vst [vmem:[#allocation2 + $0x700] sm:$0xf] %v3625_v40  ;;  %v39_v48 = vld [vmem:[%s28315_s0] sm:$0xff] }
 0x154   :  { %5888 = vmatprep.mubr.bf16.mxu1 %v24364_v53  ;;  %6577 = vmatprep.subr.bf16.mxu1 %v21657_v0  ;;  %v21672_v53 = vld [vmem:[%s28314_s1 + $0x15b4] ss:$8 sps:$4 sm:$0xff]   ;;  %v4267_v39 = vrot.slane %v17725_v33, 5  ;;  %v4266_v41 = vrot.slane %v17724_v35, 5  ;;  %v17060_v49 = vcombine.low %v39_v48, %v39_v48  ;;  %v17061_v50 = vcombine.high %v39_v48, %v39_v48  ;;  %v17140_v51 = vld [vmem:[%s28315_s0 + $0x280] sm:$0xff] }
 0x155   :  { %11880 = vmatprep.mubr.bf16.mxu0 %v11006_v20  ;;  %v3170_v52 = vld [vmem:[%s28315_s0 + $0x48] sm:$0xee]  ;;  %v3174_v54 = vld [vmem:[%s28315_s0 + $0x68] sm:$0x11]  ;;  %v17180_v55 = vcombine.low %v17140_v51, %v17140_v51  ;;  %v17181_v56 = vcombine.high %v17140_v51, %v17140_v51  ;;  %v21679_v62 = vld [vmem:[%s28314_s1 + $0xd0] ss:$8 sps:$4 sm:$0xff]  }
 0x156   :  { %11930 = vmatpush1.bf16.msra.mxu0 %v21658_v5  ;;  %v11014_v42 = vld [vmem:[#allocation2 + $0x6c8] sm:$0xff]  ;;  %v11013_v44 = vld [vmem:[#allocation2 + $0x6c0] sm:$0xff]  ;;  %4427 = vst [vmem:[#allocation2 + $0x708] sm:$0xf0] %v4267_v39  ;;  %4426 = vst [vmem:[#allocation2 + $0x700] sm:$0xf0] %v4266_v41  ;;  %v17510_v57 = vcombine.low %v3170_v52, %v3174_v54  ;;  %v17511_v59 = vcombine.high %v3170_v52, %v3174_v54 }
 0x157   :  { %11931 = vmatprep.subr.bf16.mxu0 %v21666_v13  ;;  %6578 = vmatpush1.bf16.msra.mxu1 %v21655_v14  ;;  %v17589_v60 = vld [vmem:[%s28315_s0 + $0x2c8] sm:$0xee]  ;;  %v17593_v61 = vld [vmem:[%s28315_s0 + $0x2e8] sm:$0x11]  ;;  %359 = vst [vmem:[#allocation2] sm:$0xf] %v17060_v49 }
 0x158   :  { %6579 = vmatprep.subr.bf16.mxu1 %v21663_v19  ;;  %v21690_v63 = vld [vmem:[%s28314_s1 + $0x15e4] ss:$8 sps:$4 sm:$0xff]   ;;  %360 = vst [vmem:[#allocation2 + $0x8] sm:$0xf] %v17061_v50  ;;  %v17670_v0 = vcombine.low %v17589_v60, %v17593_v61  ;;  %v17671_v1 = vcombine.high %v17589_v60, %v17593_v61  ;;  %760 = vst [vmem:[#allocation2] sm:$0xf0] %v17180_v55 }
 0x159   :  { %11881 = vmatmul.mubr.bf16.gmra.mrb[20].mxu0 %v11005_v21  ;;  %761 = vst [vmem:[#allocation2 + $0x8] sm:$0xf0] %v17181_v56  ;;  %v3571_v2 = vrot.slane %v17510_v57, 1  ;;  %v3572_v3 = vrot.slane %v17511_v59, 1  ;;  %v21688_v5 = vld [vmem:[%s28314_s1 + $0x15e0] ss:$8 sps:$4 sm:$0xff]  }
 0x15a   :  { %11932 = vmatpush1.bf16.msra.mxu0 %v21664_v22  ;;  %5889 = vmatmul.mubr.bf16.gmra.mrb[20].mxu1 %v24373_v58  ;;  %v21675_v58 = vld [vmem:[%s28314_s1 + $0xc4] ss:$8 sps:$4 sm:$0xff]   ;;  %v4212_v6 = vrot.slane %v17670_v0, 5  ;;  %v4213_v7 = vrot.slane %v17671_v1, 5  ;;  %v21696_v11 = vld [vmem:[%s28314_s1 + $0x15f4] ss:$8 sps:$4 sm:$0xff]  }
 0x15b   :  { %11933 = vmatprep.subr.bf16.mxu0 %v21672_v53  ;;  %6580 = vmatpush1.bf16.msra.mxu1 %v21661_v23  ;;  %3733 = vst [vmem:[#allocation2 + $0x558] sm:$0xf] %v3572_v3  ;;  %3732 = vst [vmem:[#allocation2 + $0x550] sm:$0xf] %v3571_v2  ;;  %v21693_v12 = vld [vmem:[%s28314_s1 + $0xf4] ss:$8 sps:$4 sm:$0xff]  }
 0x15c   :  { %5898 = vmatprep.mubr.bf16.mxu1 %v24412_v30  ;;  %6581 = vmatprep.subr.bf16.mxu1 %v21669_v24  ;;  %v21673_v30 = vld [vmem:[%s28314_s1 + $0xc0] ss:$8 sps:$4 sm:$0xff]   ;;  %4373 = vst [vmem:[#allocation2 + $0x558] sm:$0xf0] %v4213_v7  ;;  %4372 = vst [vmem:[#allocation2 + $0x550] sm:$0xf0] %v4212_v6 }
 0x15d   :  { %11890 = vmatprep.mubr.bf16.mxu0 %v11014_v42  ;;  %v11022_v4 = vld [vmem:[#allocation2 + $0x708] sm:$0xff]  ;;  %v11021_v10 = vld [vmem:[#allocation2 + $0x700] sm:$0xff]  ;;  %v21694_v13 = vld [vmem:[%s28314_s1 + $0x15f0] ss:$8 sps:$4 sm:$0xff]  }
 0x15e   :  { %11934 = vmatpush1.bf16.msra.mxu0 %v21670_v29  ;;  %v43_v14 = vld [vmem:[%s28315_s0 + $0x40] sm:$0xff]  ;;  %v3178_v17 = vld [vmem:[%s28315_s0 + $0x88] sm:$0xee]  ;;  %v3182_v18 = vld [vmem:[%s28315_s0 + $0xa8] sm:$0x11] }
 0x15f   :  { %11935 = vmatprep.subr.bf16.mxu0 %v21678_v36  ;;  %6582 = vmatpush1.bf16.msra.mxu1 %v21667_v37  ;;  %v17069_v15 = vcombine.high %v43_v14, %v43_v14  ;;  %v17144_v16 = vld [vmem:[%s28315_s0 + $0x2c0] sm:$0xff]  ;;  %v17068_v19 = vcombine.low %v43_v14, %v43_v14  ;;  %v17519_v21 = vcombine.high %v3178_v17, %v3182_v18  ;;  %v17597_v22 = vld [vmem:[%s28315_s0 + $0x308] sm:$0xee]  ;;  %v17601_v53 = vld [vmem:[%s28315_s0 + $0x328] sm:$0x11] }
 0x160   :  { %6583 = vmatprep.subr.bf16.mxu1 %v21675_v58  ;;  %v17189_v20 = vcombine.high %v17144_v16, %v17144_v16  ;;  %v17188_v23 = vcombine.low %v17144_v16, %v17144_v16  ;;  %v17518_v24 = vcombine.low %v3178_v17, %v3182_v18  ;;  %v4443_v25 = vld [vmem:[#allocation2 + $0x8] sm:$0xff]  ;;  %v17679_v27 = vcombine.high %v17597_v22, %v17601_v53  ;;  %v21691_v29 = vld [vmem:[%s28314_s1 + $0xf0] ss:$8 sps:$4 sm:$0xff]   ;;  %v21712_v40 = vld [vmem:[%s28314_s1 + $0x1614] ss:$8 sps:$4 sm:$0xff]  }
 0x161   :  { %11891 = vmatmul.mubr.bf16.gmra.mrb[24].mxu0 %v11013_v44  ;;  %v21706_v26 = vld [vmem:[%s28314_s1 + $0x1604] ss:$8 sps:$4 sm:$0xff]   ;;  %368 = vst [vmem:[#allocation2 + $0x48] sm:$0xf] %v17069_v15  ;;  %367 = vst [vmem:[#allocation2 + $0x40] sm:$0xf] %v17068_v19  ;;  %v17678_v28 = vcombine.low %v17597_v22, %v17601_v53 }
 0x162   :  { %11936 = vmatpush1.bf16.msra.mxu0 %v21676_v43  ;;  %5899 = vmatmul.mubr.bf16.gmra.mrb[24].mxu1 %v24414_v31  ;;  %v21687_v31 = vld [vmem:[%s28314_s1 + $0xe4] ss:$8 sps:$4 sm:$0xff]   ;;  %769 = vst [vmem:[#allocation2 + $0x48] sm:$0xf0] %v17189_v20  ;;  %v3580_v32 = vrot.slane %v17519_v21, 1  ;;  %v4221_v34 = vrot.slane %v17679_v27, 5 }
 0x163   :  { %11937 = vmatprep.subr.bf16.mxu0 %v21684_v45  ;;  %6584 = vmatpush1.bf16.msra.mxu1 %v21673_v30  ;;  %768 = vst [vmem:[#allocation2 + $0x40] sm:$0xf0] %v17188_v23  ;;  %v21703_v33 = vld [vmem:[%s28314_s1 + $0x104] ss:$8 sps:$4 sm:$0xff]   ;;  %v4220_v35 = vrot.slane %v17678_v28, 5  ;;  %v10968_v36 = vld [vmem:[#allocation2 + $0x558] sm:$0xff] }
 0x164   :  { %5908 = vmatprep.mubr.bf16.mxu1 %v24460_v8  ;;  %6585 = vmatprep.subr.bf16.mxu1 %v21681_v46  ;;  %v21685_v8 = vld [vmem:[%s28314_s1 + $0xe0] ss:$8 sps:$4 sm:$0xff]   ;;  %v10967_v38 = vld [vmem:[#allocation2 + $0x550] sm:$0xff]  ;;  %3741 = vst [vmem:[#allocation2 + $0x598] sm:$0xf] %v3580_v32 }
 0x165   :  { %11900 = vmatprep.mubr.bf16.mxu0 %v11022_v4  ;;  %v21701_v37 = vld [vmem:[%s28314_s1 + $0x100] ss:$8 sps:$4 sm:$0xff]   ;;  %4381 = vst [vmem:[#allocation2 + $0x598] sm:$0xf0] %v4221_v34  ;;  %4380 = vst [vmem:[#allocation2 + $0x590] sm:$0xf0] %v4220_v35 }
 0x166   :  { %11938 = vmatpush1.bf16.msra.mxu0 %v21682_v47  ;;  %v21704_v39 = vld [vmem:[%s28314_s1 + $0x1600] ss:$8 sps:$4 sm:$0xff]   ;;  %v21709_v42 = vld [vmem:[%s28314_s1 + $0x114] ss:$8 sps:$4 sm:$0xff]   ;;  %v21710_v58 = vld [vmem:[%s28314_s1 + $0x1610] ss:$8 sps:$4 sm:$0xff]  }
 0x167   :  { %11939 = vmatprep.subr.bf16.mxu0 %v21690_v63  ;;  %6586 = vmatpush1.bf16.msra.mxu1 %v21679_v62  ;;  %v4442_v41 = vld [vmem:[#allocation2] sm:$0xff]  ;;  %v21707_v30 = vld [vmem:[%s28314_s1 + $0x110] ss:$8 sps:$4 sm:$0xff]   ;;  %v3186_v46 = vld [vmem:[%s28315_s0 + $0xc8] sm:$0xee] }
 0x168   :  { %6587 = vmatprep.subr.bf16.mxu1 %v21687_v31  ;;  %v47_v43 = vld [vmem:[%s28315_s0 + $0x80] sm:$0xff]  ;;  %v3190_v47 = vld [vmem:[%s28315_s0 + $0xe8] sm:$0x11]  ;;  %v17605_v54 = vld [vmem:[%s28315_s0 + $0x348] sm:$0xee] }
 0x169   :  { %11901 = vmatmul.mubr.bf16.gmra.mrb[28].mxu0 %v11021_v10  ;;  %v17077_v44 = vcombine.high %v47_v43, %v47_v43  ;;  %v17148_v45 = vld [vmem:[%s28315_s0 + $0x300] sm:$0xff]  ;;  %v17076_v48 = vcombine.low %v47_v43, %v47_v43  ;;  %v4451_v49 = vld [vmem:[#allocation2 + $0x48] sm:$0xff]  ;;  %v17527_v52 = vcombine.high %v3186_v46, %v3190_v47  ;;  %v17526_v57 = vcombine.low %v3186_v46, %v3190_v47  ;;  %v21728_v3 = vld [vmem:[%s28314_s1 + $0x1634] ss:$8 sps:$4 sm:$0xff]  }
 0x16a   :  { %11940 = vmatpush1.bf16.msra.mxu0 %v21688_v5  ;;  %5909 = vmatmul.mubr.bf16.gmra.mrb[28].mxu1 %v24462_v9  ;;  %v3579_v9 = vrot.slane %v17518_v24, 1  ;;  %v21722_v50 = vld [vmem:[%s28314_s1 + $0x1624] ss:$8 sps:$4 sm:$0xff]   ;;  %v17197_v51 = vcombine.high %v17148_v45, %v17148_v45  ;;  %v17196_v55 = vcombine.low %v17148_v45, %v17148_v45  ;;  %v21720_v60 = vld [vmem:[%s28314_s1 + $0x1620] ss:$8 sps:$4 sm:$0xff]  }
 0x16b   :  { %11941 = vmatprep.subr.bf16.mxu0 %v21696_v11  ;;  %6588 = vmatpush1.bf16.msra.mxu1 %v21685_v8  ;;  %376 = vst [vmem:[#allocation2 + $0x88] sm:$0xf] %v17077_v44  ;;  %v17609_v56 = vld [vmem:[%s28315_s0 + $0x368] sm:$0x11]  ;;  %375 = vst [vmem:[#allocation2 + $0x80] sm:$0xf] %v17076_v48 }
 0x16c   :  { %6591 = vmatprep.mubr.bf16.mxu1 %v4443_v25  ;;  %6589 = vmatprep.subr.bf16.mxu1 %v21693_v12  ;;  %3740 = vst [vmem:[#allocation2 + $0x590] sm:$0xf] %v3579_v9  ;;  %v21719_v59 = vld [vmem:[%s28314_s1 + $0x124] ss:$8 sps:$4 sm:$0xff]   ;;  %777 = vst [vmem:[#allocation2 + $0x88] sm:$0xf0] %v17197_v51  ;;  %v17687_v62 = vcombine.high %v17605_v54, %v17609_v56  ;;  %v17686_v63 = vcombine.low %v17605_v54, %v17609_v56 }
 0x16d   :  { %11943 = vmatprep.mubr.bf16.mxu0 %v10968_v36  ;;  %v3588_v61 = vrot.slane %v17527_v52, 1  ;;  %776 = vst [vmem:[#allocation2 + $0x80] sm:$0xf0] %v17196_v55  ;;  %v10976_v0 = vld [vmem:[#allocation2 + $0x598] sm:$0xff]  ;;  %v3587_v31 = vrot.slane %v17526_v57, 1  ;;  %v4450_v6 = vld [vmem:[#allocation2 + $0x40] sm:$0xff] }
 0x16e   :  { %11942 = vmatpush1.bf16.msra.mxu0 %v21694_v13  ;;  %v21717_v2 = vld [vmem:[%s28314_s1 + $0x120] ss:$8 sps:$4 sm:$0xff]   ;;  %v4229_v4 = vrot.slane %v17687_v62, 5  ;;  %v4228_v5 = vrot.slane %v17686_v63, 5  ;;  %v21725_v7 = vld [vmem:[%s28314_s1 + $0x134] ss:$8 sps:$4 sm:$0xff]  }
 0x16f   :  { %12024 = vmatprep.subr.bf16.mxu0 %v21706_v26  ;;  %6590 = vmatpush1.bf16.msra.mxu1 %v21691_v29  ;;  %3749 = vst [vmem:[#allocation2 + $0x5d8] sm:$0xf] %v3588_v61  ;;  %3748 = vst [vmem:[#allocation2 + $0x5d0] sm:$0xf] %v3587_v31  ;;  %v21723_v8 = vld [vmem:[%s28314_s1 + $0x130] ss:$8 sps:$4 sm:$0xff]  }
 0x170   :  { %6672 = vmatprep.subr.bf16.mxu1 %v21703_v33  ;;  %4389 = vst [vmem:[#allocation2 + $0x5d8] sm:$0xf0] %v4229_v4  ;;  %4388 = vst [vmem:[#allocation2 + $0x5d0] sm:$0xf0] %v4228_v5  ;;  %v21726_v10 = vld [vmem:[%s28314_s1 + $0x1630] ss:$8 sps:$4 sm:$0xff]  }
 0x171   :  { %11944 = vmatmul.mubr.bf16.vlgmr.msra.gmra.mrb[0].mxu0 %v10967_v38  ;;  %v21738_v11 = vld [vmem:[%s28314_s1 + $0x1644] ss:$8 sps:$4 sm:$0xff]   ;;  %v21733_v25 = vld [vmem:[%s28314_s1 + $0x140] ss:$8 sps:$4 sm:$0xff]   ;;  %v21744_v9 = vld [vmem:[%s28314_s1 + $0x1654] ss:$8 sps:$4 sm:$0xff]  }
 0x172   :  { %12025 = vmatpush1.bf16.msra.mxu0 %v21704_v39  ;;  %6592 = vmatmul.mubr.bf16.vlgmr.msra.gmra.mrb[0].mxu1 %v4442_v41  ;;  %v51_v12 = vld [vmem:[%s28315_s0 + $0xc0] sm:$0xff]  ;;  %v3194_v15 = vld [vmem:[%s28315_s0 + $0x108] sm:$0xee]  ;;  %v3198_v16 = vld [vmem:[%s28315_s0 + $0x128] sm:$0x11] }
 0x173   :  { %12026 = vmatprep.subr.bf16.mxu0 %v21712_v40  ;;  %6673 = vmatpush1.bf16.msra.mxu1 %v21701_v37  ;;  %v10975_v1 = vld [vmem:[#allocation2 + $0x590] sm:$0xff]  ;;  %v17085_v13 = vcombine.high %v51_v12, %v51_v12  ;;  %v17152_v14 = vld [vmem:[%s28315_s0 + $0x340] sm:$0xff]  ;;  %v17084_v17 = vcombine.low %v51_v12, %v51_v12  ;;  %v4459_v18 = vld [vmem:[#allocation2 + $0x88] sm:$0xff]  ;;  %v17535_v21 = vcombine.high %v3194_v15, %v3198_v16 }
 0x174   :  { %6601 = vmatprep.mubr.bf16.mxu1 %v4451_v49  ;;  %6674 = vmatprep.subr.bf16.mxu1 %v21709_v42  ;;  %v21735_v19 = vld [vmem:[%s28314_s1 + $0x144] ss:$8 sps:$4 sm:$0xff]   ;;  %v17205_v20 = vcombine.high %v17152_v14, %v17152_v14  ;;  %v17204_v53 = vcombine.low %v17152_v14, %v17152_v14  ;;  %v17534_v23 = vcombine.low %v3194_v15, %v3198_v16  ;;  %v21736_v26 = vld [vmem:[%s28314_s1 + $0x1640] ss:$8 sps:$4 sm:$0xff]   ;;  %v21741_v38 = vld [vmem:[%s28314_s1 + $0x154] ss:$8 sps:$4 sm:$0xff]  }
 0x175   :  { %11953 = vmatprep.mubr.bf16.mxu0 %v10976_v0  ;;  %v17613_v22 = vld [vmem:[%s28315_s0 + $0x388] sm:$0xee]  ;;  %384 = vst [vmem:[#allocation2 + $0xc8] sm:$0xf] %v17085_v13  ;;  %v17617_v24 = vld [vmem:[%s28315_s0 + $0x3a8] sm:$0x11] }
 0x176   :  { %12027 = vmatpush1.bf16.msra.mxu0 %v21710_v58  ;;  %383 = vst [vmem:[#allocation2 + $0xc0] sm:$0xf] %v17084_v17  ;;  %785 = vst [vmem:[#allocation2 + $0xc8] sm:$0xf0] %v17205_v20  ;;  %v3596_v27 = vrot.slane %v17535_v21, 1  ;;  %v17695_v28 = vcombine.high %v17613_v22, %v17617_v24  ;;  %v3595_v29 = vrot.slane %v17534_v23, 1  ;;  %v17694_v32 = vcombine.low %v17613_v22, %v17617_v24 }
 0x177   :  { %12028 = vmatprep.subr.bf16.mxu0 %v21722_v50  ;;  %6675 = vmatpush1.bf16.msra.mxu1 %v21707_v30  ;;  %784 = vst [vmem:[#allocation2 + $0xc0] sm:$0xf0] %v17204_v53  ;;  %v10984_v33 = vld [vmem:[#allocation2 + $0x5d8] sm:$0xff]  ;;  %v4458_v34 = vld [vmem:[#allocation2 + $0x80] sm:$0xff]  ;;  %v10983_v35 = vld [vmem:[#allocation2 + $0x5d0] sm:$0xff] }
 0x178   :  { %6676 = vmatprep.subr.bf16.mxu1 %v21719_v59  ;;  %3757 = vst [vmem:[#allocation2 + $0x618] sm:$0xf] %v3596_v27  ;;  %v4237_v36 = vrot.slane %v17695_v28, 5  ;;  %3756 = vst [vmem:[#allocation2 + $0x610] sm:$0xf] %v3595_v29  ;;  %v4236_v37 = vrot.slane %v17694_v32, 5 }
 0x179   :  { %11954 = vmatmul.mubr.bf16.gmra.mrb[4].mxu0 %v10975_v1  ;;  %v21739_v39 = vld [vmem:[%s28314_s1 + $0x150] ss:$8 sps:$4 sm:$0xff]   ;;  %v21754_v41 = vld [vmem:[%s28314_s1 + $0x1664] ss:$8 sps:$4 sm:$0xff]   ;;  %v21749_v54 = vld [vmem:[%s28314_s1 + $0x160] ss:$8 sps:$4 sm:$0xff]  }
 0x17a   :  { %12029 = vmatpush1.bf16.msra.mxu0 %v21720_v60  ;;  %6602 = vmatmul.mubr.bf16.gmra.mrb[4].mxu1 %v4450_v6  ;;  %4397 = vst [vmem:[#allocation2 + $0x618] sm:$0xf0] %v4237_v36  ;;  %4396 = vst [vmem:[#allocation2 + $0x610] sm:$0xf0] %v4236_v37  ;;  %v21742_v40 = vld [vmem:[%s28314_s1 + $0x1650] ss:$8 sps:$4 sm:$0xff]  }
 0x17b   :  { %12030 = vmatprep.subr.bf16.mxu0 %v21728_v3  ;;  %6677 = vmatpush1.bf16.msra.mxu1 %v21717_v2  ;;  %v55_v42 = vld [vmem:[%s28315_s0 + $0x100] sm:$0xff]  ;;  %v3202_v30 = vld [vmem:[%s28315_s0 + $0x148] sm:$0xee]  ;;  %v3206_v44 = vld [vmem:[%s28315_s0 + $0x168] sm:$0x11] }
 0x17c   :  { %6678 = vmatprep.subr.bf16.mxu1 %v21725_v7  ;;  %6611 = vmatprep.mubr.bf16.mxu1 %v4459_v18  ;;  %v17093_v58 = vcombine.high %v55_v42, %v55_v42  ;;  %v17156_v43 = vld [vmem:[%s28315_s0 + $0x380] sm:$0xff]  ;;  %v17092_v45 = vcombine.low %v55_v42, %v55_v42  ;;  %v17543_v49 = vcombine.high %v3202_v30, %v3206_v44  ;;  %v17621_v50 = vld [vmem:[%s28315_s0 + $0x3c8] sm:$0xee]  ;;  %v17625_v55 = vld [vmem:[%s28315_s0 + $0x3e8] sm:$0x11] }
 0x17d   :  { %11963 = vmatprep.mubr.bf16.mxu0 %v10984_v33  ;;  %v4467_v46 = vld [vmem:[#allocation2 + $0xc8] sm:$0xff]  ;;  %v17213_v48 = vcombine.high %v17156_v43, %v17156_v43  ;;  %v17212_v51 = vcombine.low %v17156_v43, %v17156_v43  ;;  %v17542_v52 = vcombine.low %v3202_v30, %v3206_v44  ;;  %v21757_v57 = vld [vmem:[%s28314_s1 + $0x174] ss:$8 sps:$4 sm:$0xff]   ;;  %v17703_v60 = vcombine.high %v17621_v50, %v17625_v55  ;;  %v21755_v4 = vld [vmem:[%s28314_s1 + $0x170] ss:$8 sps:$4 sm:$0xff]  }
 0x17e   :  { %12031 = vmatpush1.bf16.msra.mxu0 %v21726_v10  ;;  %v21751_v47 = vld [vmem:[%s28314_s1 + $0x164] ss:$8 sps:$4 sm:$0xff]   ;;  %392 = vst [vmem:[#allocation2 + $0x108] sm:$0xf] %v17093_v58  ;;  %391 = vst [vmem:[#allocation2 + $0x100] sm:$0xf] %v17092_v45  ;;  %v17702_v62 = vcombine.low %v17621_v50, %v17625_v55 }
 0x17f   :  { %12032 = vmatprep.subr.bf16.mxu0 %v21738_v11  ;;  %6679 = vmatpush1.bf16.msra.mxu1 %v21723_v8  ;;  %v21752_v56 = vld [vmem:[%s28314_s1 + $0x1660] ss:$8 sps:$4 sm:$0xff]   ;;  %793 = vst [vmem:[#allocation2 + $0x108] sm:$0xf0] %v17213_v48  ;;  %v3604_v59 = vrot.slane %v17543_v49, 1  ;;  %v3603_v61 = vrot.slane %v17542_v52, 1 }
 0x180   :  { %6680 = vmatprep.subr.bf16.mxu1 %v21735_v19  ;;  %792 = vst [vmem:[#allocation2 + $0x100] sm:$0xf0] %v17212_v51  ;;  %v4466_v63 = vld [vmem:[#allocation2 + $0xc0] sm:$0xff]  ;;  %v21760_v31 = vld [vmem:[%s28314_s1 + $0x1674] ss:$8 sps:$4 sm:$0xff]   ;;  %v4245_v2 = vrot.slane %v17703_v60, 5 }
 0x181   :  { %11964 = vmatmul.mubr.bf16.gmra.mrb[8].mxu0 %v10983_v35  ;;  %v10992_v0 = vld [vmem:[#allocation2 + $0x618] sm:$0xff]  ;;  %v10991_v1 = vld [vmem:[#allocation2 + $0x610] sm:$0xff]  ;;  %3765 = vst [vmem:[#allocation2 + $0x658] sm:$0xf] %v3604_v59  ;;  %3764 = vst [vmem:[#allocation2 + $0x650] sm:$0xf] %v3603_v61 }
 0x182   :  { %6612 = vmatmul.mubr.bf16.gmra.mrb[8].mxu1 %v4458_v34  ;;  %12033 = vmatpush1.bf16.msra.mxu0 %v21736_v26  ;;  %v4244_v3 = vrot.slane %v17702_v62, 5  ;;  %v21758_v5 = vld [vmem:[%s28314_s1 + $0x1670] ss:$8 sps:$4 sm:$0xff]   ;;  %4405 = vst [vmem:[#allocation2 + $0x658] sm:$0xf0] %v4245_v2  ;;  %v59_v8 = vld [vmem:[%s28315_s0 + $0x140] sm:$0xff] }
 0x183   :  { %6681 = vmatpush1.bf16.msra.mxu1 %v21733_v25  ;;  %12034 = vmatprep.subr.bf16.mxu0 %v21744_v9  ;;  %v21767_v6 = vld [vmem:[%s28314_s1 + $0x184] ss:$8 sps:$4 sm:$0xff]   ;;  %v17101_v10 = vcombine.high %v59_v8, %v59_v8  ;;  %v17100_v14 = vcombine.low %v59_v8, %v59_v8  ;;  %v21765_v16 = vld [vmem:[%s28314_s1 + $0x180] ss:$8 sps:$4 sm:$0xff]   ;;  %v21773_v28 = vld [vmem:[%s28314_s1 + $0x194] ss:$8 sps:$4 sm:$0xff]  }
 0x184   :  { %6682 = vmatprep.subr.bf16.mxu1 %v21741_v38  ;;  %6621 = vmatprep.mubr.bf16.mxu1 %v4467_v46  ;;  %4404 = vst [vmem:[#allocation2 + $0x650] sm:$0xf0] %v4244_v3  ;;  %v21770_v7 = vld [vmem:[%s28314_s1 + $0x1684] ss:$8 sps:$4 sm:$0xff]   ;;  %v21768_v23 = vld [vmem:[%s28314_s1 + $0x1680] ss:$8 sps:$4 sm:$0xff]  }
 0x185   :  { %11973 = vmatprep.mubr.bf16.mxu0 %v10992_v0  ;;  %v17160_v11 = vld [vmem:[%s28315_s0 + $0x3c0] sm:$0xff]  ;;  %v3210_v12 = vld [vmem:[%s28315_s0 + $0x188] sm:$0xee]  ;;  %v3214_v13 = vld [vmem:[%s28315_s0 + $0x1a8] sm:$0x11] }
 0x186   :  { %12035 = vmatpush1.bf16.msra.mxu0 %v21742_v40  ;;  %v4475_v15 = vld [vmem:[#allocation2 + $0x108] sm:$0xff]  ;;  %v17221_v17 = vcombine.high %v17160_v11, %v17160_v11  ;;  %v17551_v18 = vcombine.high %v3210_v12, %v3214_v13  ;;  %v17220_v20 = vcombine.low %v17160_v11, %v17160_v11  ;;  %v17550_v21 = vcombine.low %v3210_v12, %v3214_v13  ;;  %v21776_v9 = vld [vmem:[%s28314_s1 + $0x1694] ss:$8 sps:$4 sm:$0xff]   ;;  %v21771_v35 = vld [vmem:[%s28314_s1 + $0x190] ss:$8 sps:$4 sm:$0xff]  }
 0x187   :  { %6683 = vmatpush1.bf16.msra.mxu1 %v21739_v39  ;;  %12036 = vmatprep.subr.bf16.mxu0 %v21754_v41  ;;  %v17629_v19 = vld [vmem:[%s28315_s0 + $0x408] sm:$0xee]  ;;  %400 = vst [vmem:[#allocation2 + $0x148] sm:$0xf] %v17101_v10  ;;  %v17633_v22 = vld [vmem:[%s28315_s0 + $0x428] sm:$0x11] }
 0x188   :  { %6684 = vmatprep.subr.bf16.mxu1 %v21751_v47  ;;  %399 = vst [vmem:[#allocation2 + $0x140] sm:$0xf] %v17100_v14  ;;  %v4474_v53 = vld [vmem:[#allocation2 + $0x100] sm:$0xff]  ;;  %801 = vst [vmem:[#allocation2 + $0x148] sm:$0xf0] %v17221_v17  ;;  %v3612_v24 = vrot.slane %v17551_v18, 1  ;;  %v17711_v25 = vcombine.high %v17629_v19, %v17633_v22  ;;  %v17710_v27 = vcombine.low %v17629_v19, %v17633_v22 }
 0x189   :  { %11974 = vmatmul.mubr.bf16.gmra.mrb[12].mxu0 %v10991_v1  ;;  %800 = vst [vmem:[#allocation2 + $0x140] sm:$0xf0] %v17220_v20  ;;  %v3611_v26 = vrot.slane %v17550_v21, 1  ;;  %v11000_v29 = vld [vmem:[#allocation2 + $0x658] sm:$0xff]  ;;  %v21783_v37 = vld [vmem:[%s28314_s1 + $0x1a4] ss:$8 sps:$4 sm:$0xff]  }
 0x18a   :  { %6622 = vmatmul.mubr.bf16.gmra.mrb[12].mxu1 %v4466_v63  ;;  %12037 = vmatpush1.bf16.msra.mxu0 %v21752_v56  ;;  %3773 = vst [vmem:[#allocation2 + $0x698] sm:$0xf] %v3612_v24  ;;  %v4253_v33 = vrot.slane %v17711_v25, 5  ;;  %v4252_v34 = vrot.slane %v17710_v27, 5  ;;  %v21774_v36 = vld [vmem:[%s28314_s1 + $0x1690] ss:$8 sps:$4 sm:$0xff]  }
 0x18b   :  { %6685 = vmatpush1.bf16.msra.mxu1 %v21749_v54  ;;  %12038 = vmatprep.subr.bf16.mxu0 %v21760_v31  ;;  %v10999_v32 = vld [vmem:[#allocation2 + $0x650] sm:$0xff]  ;;  %3772 = vst [vmem:[#allocation2 + $0x690] sm:$0xf] %v3611_v26  ;;  %v21786_v38 = vld [vmem:[%s28314_s1 + $0x16a4] ss:$8 sps:$4 sm:$0xff]  }
 0x18c   :  { %6686 = vmatprep.subr.bf16.mxu1 %v21757_v57  ;;  %6631 = vmatprep.mubr.bf16.mxu1 %v4475_v15  ;;  %4413 = vst [vmem:[#allocation2 + $0x698] sm:$0xf0] %v4253_v33  ;;  %4412 = vst [vmem:[#allocation2 + $0x690] sm:$0xf0] %v4252_v34  ;;  %v63_v39 = vld [vmem:[%s28315_s0 + $0x180] sm:$0xff] }
 0x18d   :  { %11983 = vmatprep.mubr.bf16.mxu0 %v11000_v29  ;;  %v21781_v40 = vld [vmem:[%s28314_s1 + $0x1a0] ss:$8 sps:$4 sm:$0xff]   ;;  %v17109_v41 = vcombine.high %v63_v39, %v63_v39  ;;  %v17108_v30 = vcombine.low %v63_v39, %v63_v39  ;;  %v21789_v54 = vld [vmem:[%s28314_s1 + $0x1b4] ss:$8 sps:$4 sm:$0xff]   ;;  %v21787_v60 = vld [vmem:[%s28314_s1 + $0x1b0] ss:$8 sps:$4 sm:$0xff]  }
 0x18e   :  { %12039 = vmatpush1.bf16.msra.mxu0 %v21758_v5  ;;  %v17164_v42 = vld [vmem:[%s28315_s0 + $0x400] sm:$0xff]  ;;  %v3218_v58 = vld [vmem:[%s28315_s0 + $0x1c8] sm:$0xee]  ;;  %v3222_v43 = vld [vmem:[%s28315_s0 + $0x1e8] sm:$0x11] }
 0x18f   :  { %6687 = vmatpush1.bf16.msra.mxu1 %v21755_v4  ;;  %12040 = vmatprep.subr.bf16.mxu0 %v21770_v7  ;;  %v4483_v44 = vld [vmem:[#allocation2 + $0x148] sm:$0xff]  ;;  %v17229_v46 = vcombine.high %v17164_v42, %v17164_v42  ;;  %v17559_v47 = vcombine.high %v3218_v58, %v3222_v43  ;;  %v17228_v49 = vcombine.low %v17164_v42, %v17164_v42  ;;  %v21792_v63 = vld [vmem:[%s28314_s1 + $0x16b4] ss:$8 sps:$4 sm:$0xff]   ;;  %v21790_v31 = vld [vmem:[%s28314_s1 + $0x16b0] ss:$8 sps:$4 sm:$0xff]  }
 0x190   :  { %6688 = vmatprep.subr.bf16.mxu1 %v21767_v6  ;;  %v4482_v45 = vld [vmem:[#allocation2 + $0x140] sm:$0xff]  ;;  %v17637_v48 = vld [vmem:[%s28315_s0 + $0x448] sm:$0xee]  ;;  %v17558_v50 = vcombine.low %v3218_v58, %v3222_v43  ;;  %408 = vst [vmem:[#allocation2 + $0x188] sm:$0xf] %v17109_v41 }
 0x191   :  { %11984 = vmatmul.mubr.bf16.gmra.mrb[16].mxu0 %v10999_v32  ;;  %v17641_v51 = vld [vmem:[%s28315_s0 + $0x468] sm:$0x11]  ;;  %407 = vst [vmem:[#allocation2 + $0x180] sm:$0xf] %v17108_v30  ;;  %809 = vst [vmem:[#allocation2 + $0x188] sm:$0xf0] %v17229_v46 }
 0x192   :  { %6632 = vmatmul.mubr.bf16.gmra.mrb[16].mxu1 %v4474_v53  ;;  %12041 = vmatpush1.bf16.msra.mxu0 %v21768_v23  ;;  %v21784_v52 = vld [vmem:[%s28314_s1 + $0x16a0] ss:$8 sps:$4 sm:$0xff]   ;;  %v3620_v55 = vrot.slane %v17559_v47, 1  ;;  %v17719_v56 = vcombine.high %v17637_v48, %v17641_v51  ;;  %808 = vst [vmem:[#allocation2 + $0x180] sm:$0xf0] %v17228_v49  ;;  %v3619_v57 = vrot.slane %v17558_v50, 1  ;;  %v17718_v59 = vcombine.low %v17637_v48, %v17641_v51 }
 0x193   :  { %6689 = vmatpush1.bf16.msra.mxu1 %v21765_v16  ;;  %12042 = vmatprep.subr.bf16.mxu0 %v21776_v9  ;;  %v11008_v61 = vld [vmem:[#allocation2 + $0x698] sm:$0xff]  ;;  %v11007_v62 = vld [vmem:[#allocation2 + $0x690] sm:$0xff]  ;;  %v21799_v2 = vld [vmem:[%s28314_s1 + $0x1c4] ss:$8 sps:$4 sm:$0xff]  }
 0x194   :  { %6690 = vmatprep.subr.bf16.mxu1 %v21773_v28  ;;  %6641 = vmatprep.mubr.bf16.mxu1 %v4483_v44  ;;  %3781 = vst [vmem:[#allocation2 + $0x6d8] sm:$0xf] %v3620_v55  ;;  %v4261_v0 = vrot.slane %v17719_v56, 5  ;;  %3780 = vst [vmem:[#allocation2 + $0x6d0] sm:$0xf] %v3619_v57  ;;  %v4260_v1 = vrot.slane %v17718_v59, 5 }
 0x195   :  { %11993 = vmatprep.mubr.bf16.mxu0 %v11008_v61  ;;  %v21797_v3 = vld [vmem:[%s28314_s1 + $0x1c0] ss:$8 sps:$4 sm:$0xff]   ;;  %v21802_v4 = vld [vmem:[%s28314_s1 + $0x16c4] ss:$8 sps:$4 sm:$0xff]   ;;  %v21805_v6 = vld [vmem:[%s28314_s1 + $0x1d4] ss:$8 sps:$4 sm:$0xff]  }
 0x196   :  { %12043 = vmatpush1.bf16.msra.mxu0 %v21774_v36  ;;  %4421 = vst [vmem:[#allocation2 + $0x6d8] sm:$0xf0] %v4261_v0  ;;  %4420 = vst [vmem:[#allocation2 + $0x6d0] sm:$0xf0] %v4260_v1  ;;  %v67_v5 = vld [vmem:[%s28315_s0 + $0x1c0] sm:$0xff] }
 0x197   :  { %6691 = vmatpush1.bf16.msra.mxu1 %v21771_v35  ;;  %12044 = vmatprep.subr.bf16.mxu0 %v21786_v38  ;;  %v17117_v7 = vcombine.high %v67_v5, %v67_v5  ;;  %v17168_v8 = vld [vmem:[%s28315_s0 + $0x440] sm:$0xff]  ;;  %v3226_v10 = vld [vmem:[%s28315_s0 + $0x208] sm:$0xee]  ;;  %v3230_v11 = vld [vmem:[%s28315_s0 + $0x228] sm:$0x11]  ;;  %v17116_v12 = vcombine.low %v67_v5, %v67_v5 }
 0x198   :  { %6692 = vmatprep.subr.bf16.mxu1 %v21783_v37  ;;  %v4491_v13 = vld [vmem:[#allocation2 + $0x188] sm:$0xff]  ;;  %v17237_v15 = vcombine.high %v17168_v8, %v17168_v8  ;;  %v17567_v16 = vcombine.high %v3226_v10, %v3230_v11  ;;  %v17236_v18 = vcombine.low %v17168_v8, %v17168_v8  ;;  %v17566_v19 = vcombine.low %v3226_v10, %v3230_v11  ;;  %v21803_v25 = vld [vmem:[%s28314_s1 + $0x1d0] ss:$8 sps:$4 sm:$0xff]   ;;  %v21808_v28 = vld [vmem:[%s28314_s1 + $0x16d4] ss:$8 sps:$4 sm:$0xff]  }
 0x199   :  { %11994 = vmatmul.mubr.bf16.gmra.mrb[20].mxu0 %v11007_v62  ;;  %v4490_v14 = vld [vmem:[#allocation2 + $0x180] sm:$0xff]  ;;  %v17645_v17 = vld [vmem:[%s28315_s0 + $0x488] sm:$0xee]  ;;  %416 = vst [vmem:[#allocation2 + $0x1c8] sm:$0xf] %v17117_v7 }
 0x19a   :  { %6642 = vmatmul.mubr.bf16.gmra.mrb[20].mxu1 %v4482_v45  ;;  %12045 = vmatpush1.bf16.msra.mxu0 %v21784_v52  ;;  %v17649_v20 = vld [vmem:[%s28315_s0 + $0x4a8] sm:$0x11]  ;;  %415 = vst [vmem:[#allocation2 + $0x1c0] sm:$0xf] %v17116_v12  ;;  %817 = vst [vmem:[#allocation2 + $0x1c8] sm:$0xf0] %v17237_v15 }
 0x19b   :  { %6693 = vmatpush1.bf16.msra.mxu1 %v21781_v40  ;;  %12046 = vmatprep.subr.bf16.mxu0 %v21792_v63  ;;  %v21800_v21 = vld [vmem:[%s28314_s1 + $0x16c0] ss:$8 sps:$4 sm:$0xff]   ;;  %v3628_v22 = vrot.slane %v17567_v16, 1  ;;  %v17727_v53 = vcombine.high %v17645_v17, %v17649_v20  ;;  %816 = vst [vmem:[#allocation2 + $0x1c0] sm:$0xf0] %v17236_v18  ;;  %v3627_v23 = vrot.slane %v17566_v19, 1  ;;  %v17726_v24 = vcombine.low %v17645_v17, %v17649_v20 }
 0x19c   :  { %6694 = vmatprep.subr.bf16.mxu1 %v21789_v54  ;;  %6651 = vmatprep.mubr.bf16.mxu1 %v4491_v13  ;;  %v21806_v9 = vld [vmem:[%s28314_s1 + $0x16d0] ss:$8 sps:$4 sm:$0xff]   ;;  %v21815_v33 = vld [vmem:[%s28314_s1 + $0x1e4] ss:$8 sps:$4 sm:$0xff]   ;;  %v21813_v34 = vld [vmem:[%s28314_s1 + $0x1e0] ss:$8 sps:$4 sm:$0xff]  }
 0x19d   :  { %v11016_v26 = vld [vmem:[#allocation2 + $0x6d8] sm:$0xff]  ;;  %v11015_v27 = vld [vmem:[#allocation2 + $0x6d0] sm:$0xff]  ;;  %3789 = vst [vmem:[#allocation2 + $0x718] sm:$0xf] %v3628_v22  ;;  %v4269_v29 = vrot.slane %v17727_v53, 5  ;;  %v4268_v32 = vrot.slane %v17726_v24, 5 }
 0x19e   :  { %12047 = vmatpush1.bf16.msra.mxu0 %v21790_v31  ;;  %3788 = vst [vmem:[#allocation2 + $0x710] sm:$0xf] %v3627_v23  ;;  %12003 = vmatprep.mubr.bf16.mxu0 %v11016_v26  ;;  %v21818_v35 = vld [vmem:[%s28314_s1 + $0x16e4] ss:$8 sps:$4 sm:$0xff]   ;;  %v21821_v36 = vld [vmem:[%s28314_s1 + $0x1f4] ss:$8 sps:$4 sm:$0xff]  }
 0x19f   :  { %6695 = vmatpush1.bf16.msra.mxu1 %v21787_v60  ;;  %12048 = vmatprep.subr.bf16.mxu0 %v21802_v4  ;;  %4429 = vst [vmem:[#allocation2 + $0x718] sm:$0xf0] %v4269_v29  ;;  %4428 = vst [vmem:[#allocation2 + $0x710] sm:$0xf0] %v4268_v32  ;;  %v40_v37 = vld [vmem:[%s28315_s0 + $0x8] sm:$0xff] }
 0x1a0   :  { %6696 = vmatprep.subr.bf16.mxu1 %v21799_v2  ;;  %v17062_v38 = vcombine.low %v40_v37, %v40_v37  ;;  %v17063_v39 = vcombine.high %v40_v37, %v40_v37  ;;  %v17141_v40 = vld [vmem:[%s28315_s0 + $0x288] sm:$0xff]  ;;  %v3171_v41 = vld [vmem:[%s28315_s0 + $0x50] sm:$0xee]  ;;  %v3175_v42 = vld [vmem:[%s28315_s0 + $0x70] sm:$0x11] }
 0x1a1   :  { %12004 = vmatmul.mubr.bf16.gmra.mrb[24].mxu0 %v11015_v27  ;;  %v4499_v58 = vld [vmem:[#allocation2 + $0x1c8] sm:$0xff]  ;;  %v17182_v30 = vcombine.low %v17141_v40, %v17141_v40  ;;  %v17183_v44 = vcombine.high %v17141_v40, %v17141_v40  ;;  %v17512_v45 = vcombine.low %v3171_v41, %v3175_v42  ;;  %v17513_v46 = vcombine.high %v3171_v41, %v3175_v42  ;;  %v17590_v47 = vld [vmem:[%s28315_s0 + $0x2d0] sm:$0xee]  ;;  %v17594_v48 = vld [vmem:[%s28315_s0 + $0x2f0] sm:$0x11] }
 0x1a2   :  { %6652 = vmatmul.mubr.bf16.gmra.mrb[24].mxu1 %v4490_v14  ;;  %12049 = vmatpush1.bf16.msra.mxu0 %v21800_v21  ;;  %v4498_v43 = vld [vmem:[#allocation2 + $0x1c0] sm:$0xff]  ;;  %361 = vst [vmem:[#allocation2 + $0x10] sm:$0xf] %v17062_v38  ;;  %362 = vst [vmem:[#allocation2 + $0x18] sm:$0xf] %v17063_v39  ;;  %v17672_v54 = vcombine.low %v17590_v47, %v17594_v48  ;;  %v17673_v55 = vcombine.high %v17590_v47, %v17594_v48  ;;  %v44_v2 = vld [vmem:[%s28315_s0 + $0x48] sm:$0xff] }
 0x1a3   :  { %6697 = vmatpush1.bf16.msra.mxu1 %v21797_v3  ;;  %12050 = vmatprep.subr.bf16.mxu0 %v21808_v28  ;;  %v21816_v49 = vld [vmem:[%s28314_s1 + $0x16e0] ss:$8 sps:$4 sm:$0xff]   ;;  %v21819_v50 = vld [vmem:[%s28314_s1 + $0x1f0] ss:$8 sps:$4 sm:$0xff]   ;;  %762 = vst [vmem:[#allocation2 + $0x10] sm:$0xf0] %v17182_v30  ;;  %v17071_v3 = vcombine.high %v44_v2, %v44_v2  ;;  %v17070_v7 = vcombine.low %v44_v2, %v44_v2 }
 0x1a4   :  { %6698 = vmatprep.subr.bf16.mxu1 %v21805_v6  ;;  %6661 = vmatprep.mubr.bf16.mxu1 %v4499_v58  ;;  %763 = vst [vmem:[#allocation2 + $0x18] sm:$0xf0] %v17183_v44  ;;  %v3573_v51 = vrot.slane %v17512_v45, 1  ;;  %v3574_v52 = vrot.slane %v17513_v46, 1  ;;  %v21824_v56 = vld [vmem:[%s28314_s1 + $0x16f4] ss:$8 sps:$4 sm:$0xff]  }
 0x1a5   :  { %v4214_v60 = vrot.slane %v17672_v54, 5  ;;  %v4215_v61 = vrot.slane %v17673_v55, 5  ;;  %v21831_v62 = vld [vmem:[%s28314_s1 + $0x204] ss:$8 sps:$4 sm:$0xff]   ;;  %v21822_v63 = vld [vmem:[%s28314_s1 + $0x16f0] ss:$8 sps:$4 sm:$0xff]  }
 0x1a6   :  { %12051 = vmatpush1.bf16.msra.mxu0 %v21806_v9  ;;  %v11024_v57 = vld [vmem:[#allocation2 + $0x718] sm:$0xff]  ;;  %v11023_v59 = vld [vmem:[#allocation2 + $0x710] sm:$0xff]  ;;  %3735 = vst [vmem:[#allocation2 + $0x568] sm:$0xf] %v3574_v52  ;;  %3734 = vst [vmem:[#allocation2 + $0x560] sm:$0xf] %v3573_v51 }
 0x1a7   :  { %6699 = vmatpush1.bf16.msra.mxu1 %v21803_v25  ;;  %12052 = vmatprep.subr.bf16.mxu0 %v21818_v35  ;;  %4375 = vst [vmem:[#allocation2 + $0x568] sm:$0xf0] %v4215_v61  ;;  %4374 = vst [vmem:[#allocation2 + $0x560] sm:$0xf0] %v4214_v60  ;;  %v21829_v0 = vld [vmem:[%s28314_s1 + $0x200] ss:$8 sps:$4 sm:$0xff]  }
 0x1a8   :  { %6700 = vmatprep.subr.bf16.mxu1 %v21815_v33  ;;  %12013 = vmatprep.mubr.bf16.mxu0 %v11024_v57  ;;  %v21834_v1 = vld [vmem:[%s28314_s1 + $0x1704] ss:$8 sps:$4 sm:$0xff]   ;;  %v21837_v31 = vld [vmem:[%s28314_s1 + $0x214] ss:$8 sps:$4 sm:$0xff]   ;;  %370 = vst [vmem:[#allocation2 + $0x58] sm:$0xf] %v17071_v3 }
 0x1a9   :  { %12014 = vmatmul.mubr.bf16.gmra.mrb[28].mxu0 %v11023_v59  ;;  %v17145_v4 = vld [vmem:[%s28315_s0 + $0x2c8] sm:$0xff]  ;;  %v3179_v5 = vld [vmem:[%s28315_s0 + $0x90] sm:$0xee]  ;;  %v3183_v6 = vld [vmem:[%s28315_s0 + $0xb0] sm:$0x11] }
 0x1aa   :  { %6662 = vmatmul.mubr.bf16.gmra.mrb[28].mxu1 %v4498_v43  ;;  %12053 = vmatpush1.bf16.msra.mxu0 %v21816_v49  ;;  %v4444_v10 = vld [vmem:[#allocation2 + $0x10] sm:$0xff]  ;;  %v17191_v11 = vcombine.high %v17145_v4, %v17145_v4  ;;  %v17521_v12 = vcombine.high %v3179_v5, %v3183_v6  ;;  %v17190_v14 = vcombine.low %v17145_v4, %v17145_v4  ;;  %v21832_v17 = vld [vmem:[%s28314_s1 + $0x1700] ss:$8 sps:$4 sm:$0xff]   ;;  %v21847_v26 = vld [vmem:[%s28314_s1 + $0x224] ss:$8 sps:$4 sm:$0xff]  }
 0x1ab   :  { %6701 = vmatpush1.bf16.msra.mxu1 %v21813_v34  ;;  %12054 = vmatprep.subr.bf16.mxu0 %v21824_v56  ;;  %v4445_v8 = vld [vmem:[#allocation2 + $0x18] sm:$0xff]  ;;  %v17598_v13 = vld [vmem:[%s28315_s0 + $0x310] sm:$0xee]  ;;  %v17520_v15 = vcombine.low %v3179_v5, %v3183_v6  ;;  %v17602_v16 = vld [vmem:[%s28315_s0 + $0x330] sm:$0x11] }
 0x1ac   :  { %6702 = vmatprep.subr.bf16.mxu1 %v21821_v36  ;;  %6704 = vmatprep.mubr.bf16.mxu1 %v4445_v8  ;;  %369 = vst [vmem:[#allocation2 + $0x50] sm:$0xf] %v17070_v7  ;;  %v21835_v18 = vld [vmem:[%s28314_s1 + $0x210] ss:$8 sps:$4 sm:$0xff]   ;;  %771 = vst [vmem:[#allocation2 + $0x58] sm:$0xf0] %v17191_v11  ;;  %v17681_v20 = vcombine.high %v17598_v13, %v17602_v16  ;;  %v17680_v22 = vcombine.low %v17598_v13, %v17602_v16 }
 0x1ad   :  { %v3582_v19 = vrot.slane %v17521_v12, 1  ;;  %770 = vst [vmem:[#allocation2 + $0x50] sm:$0xf0] %v17190_v14  ;;  %v3581_v21 = vrot.slane %v17520_v15, 1  ;;  %v21840_v53 = vld [vmem:[%s28314_s1 + $0x1714] ss:$8 sps:$4 sm:$0xff]  }
 0x1ae   :  { %12055 = vmatpush1.bf16.msra.mxu0 %v21822_v63  ;;  %v10970_v23 = vld [vmem:[#allocation2 + $0x568] sm:$0xff]  ;;  %v10969_v24 = vld [vmem:[#allocation2 + $0x560] sm:$0xff]  ;;  %v4223_v25 = vrot.slane %v17681_v20, 5  ;;  %v4222_v27 = vrot.slane %v17680_v22, 5  ;;  %v21838_v28 = vld [vmem:[%s28314_s1 + $0x1710] ss:$8 sps:$4 sm:$0xff]  }
 0x1af   :  { %6703 = vmatpush1.bf16.msra.mxu1 %v21819_v50  ;;  %12137 = vmatprep.subr.bf16.mxu0 %v21834_v1  ;;  %3743 = vst [vmem:[#allocation2 + $0x5a8] sm:$0xf] %v3582_v19  ;;  %3742 = vst [vmem:[#allocation2 + $0x5a0] sm:$0xf] %v3581_v21  ;;  %v21845_v29 = vld [vmem:[%s28314_s1 + $0x220] ss:$8 sps:$4 sm:$0xff]  }
 0x1b0   :  { %6785 = vmatprep.subr.bf16.mxu1 %v21831_v62  ;;  %12056 = vmatprep.mubr.bf16.mxu0 %v10970_v23  ;;  %4383 = vst [vmem:[#allocation2 + $0x5a8] sm:$0xf0] %v4223_v25  ;;  %4382 = vst [vmem:[#allocation2 + $0x5a0] sm:$0xf0] %v4222_v27  ;;  %v21850_v32 = vld [vmem:[%s28314_s1 + $0x1724] ss:$8 sps:$4 sm:$0xff]  }
 0x1b1   :  { %12057 = vmatmul.mubr.bf16.vlgmr.msra.gmra.mrb[0].mxu0 %v10969_v24  ;;  %v21853_v9 = vld [vmem:[%s28314_s1 + $0x234] ss:$8 sps:$4 sm:$0xff]   ;;  %v48_v33 = vld [vmem:[%s28315_s0 + $0x88] sm:$0xff]  ;;  %v21851_v46 = vld [vmem:[%s28314_s1 + $0x230] ss:$8 sps:$4 sm:$0xff]  }
 0x1b2   :  { %6705 = vmatmul.mubr.bf16.vlgmr.msra.gmra.mrb[0].mxu1 %v4444_v10  ;;  %12138 = vmatpush1.bf16.msra.mxu0 %v21832_v17  ;;  %v17079_v34 = vcombine.high %v48_v33, %v48_v33  ;;  %v17149_v35 = vld [vmem:[%s28315_s0 + $0x308] sm:$0xff]  ;;  %v3187_v36 = vld [vmem:[%s28315_s0 + $0xd0] sm:$0xee]  ;;  %v3191_v37 = vld [vmem:[%s28315_s0 + $0xf0] sm:$0x11]  ;;  %v17078_v38 = vcombine.low %v48_v33, %v48_v33 }
 0x1b3   :  { %6786 = vmatpush1.bf16.msra.mxu1 %v21829_v0  ;;  %12139 = vmatprep.subr.bf16.mxu0 %v21840_v53  ;;  %v4453_v39 = vld [vmem:[#allocation2 + $0x58] sm:$0xff]  ;;  %v17199_v41 = vcombine.high %v17149_v35, %v17149_v35  ;;  %v17529_v42 = vcombine.high %v3187_v36, %v3191_v37  ;;  %v17606_v58 = vld [vmem:[%s28315_s0 + $0x350] sm:$0xee]  ;;  %v17198_v43 = vcombine.low %v17149_v35, %v17149_v35  ;;  %v17610_v44 = vld [vmem:[%s28315_s0 + $0x370] sm:$0x11] }
 0x1b4   :  { %6787 = vmatprep.subr.bf16.mxu1 %v21837_v31  ;;  %v4452_v40 = vld [vmem:[#allocation2 + $0x50] sm:$0xff]  ;;  %v17528_v30 = vcombine.low %v3187_v36, %v3191_v37  ;;  %6714 = vmatprep.mubr.bf16.mxu1 %v4453_v39  ;;  %378 = vst [vmem:[#allocation2 + $0x98] sm:$0xf] %v17079_v34  ;;  %377 = vst [vmem:[#allocation2 + $0x90] sm:$0xf] %v17078_v38  ;;  %v17689_v48 = vcombine.high %v17606_v58, %v17610_v44  ;;  %v52_v63 = vld [vmem:[%s28315_s0 + $0xc8] sm:$0xff] }
 0x1b5   :  { %v21848_v45 = vld [vmem:[%s28314_s1 + $0x1720] ss:$8 sps:$4 sm:$0xff]   ;;  %779 = vst [vmem:[#allocation2 + $0x98] sm:$0xf0] %v17199_v41  ;;  %v3590_v47 = vrot.slane %v17529_v42, 1  ;;  %v17688_v50 = vcombine.low %v17606_v58, %v17610_v44  ;;  %v17087_v0 = vcombine.high %v52_v63, %v52_v63  ;;  %v17086_v3 = vcombine.low %v52_v63, %v52_v63 }
 0x1b6   :  { %12140 = vmatpush1.bf16.msra.mxu0 %v21838_v28  ;;  %778 = vst [vmem:[#allocation2 + $0x90] sm:$0xf0] %v17198_v43  ;;  %v3589_v49 = vrot.slane %v17528_v30, 1  ;;  %v21856_v51 = vld [vmem:[%s28314_s1 + $0x1734] ss:$8 sps:$4 sm:$0xff]   ;;  %v4231_v55 = vrot.slane %v17689_v48, 5 }
 0x1b7   :  { %6788 = vmatpush1.bf16.msra.mxu1 %v21835_v18  ;;  %12141 = vmatprep.subr.bf16.mxu0 %v21850_v32  ;;  %v10978_v52 = vld [vmem:[#allocation2 + $0x5a8] sm:$0xff]  ;;  %v10977_v54 = vld [vmem:[#allocation2 + $0x5a0] sm:$0xff]  ;;  %3751 = vst [vmem:[#allocation2 + $0x5e8] sm:$0xf] %v3590_v47  ;;  %v4230_v57 = vrot.slane %v17688_v50, 5 }
 0x1b8   :  { %6789 = vmatprep.subr.bf16.mxu1 %v21847_v26  ;;  %v21863_v56 = vld [vmem:[%s28314_s1 + $0x244] ss:$8 sps:$4 sm:$0xff]   ;;  %3750 = vst [vmem:[#allocation2 + $0x5e0] sm:$0xf] %v3589_v49  ;;  %12066 = vmatprep.mubr.bf16.mxu0 %v10978_v52  ;;  %v21854_v59 = vld [vmem:[%s28314_s1 + $0x1730] ss:$8 sps:$4 sm:$0xff]  }
 0x1b9   :  { %12067 = vmatmul.mubr.bf16.gmra.mrb[4].mxu0 %v10977_v54  ;;  %4391 = vst [vmem:[#allocation2 + $0x5e8] sm:$0xf0] %v4231_v55  ;;  %v21861_v60 = vld [vmem:[%s28314_s1 + $0x240] ss:$8 sps:$4 sm:$0xff]   ;;  %4390 = vst [vmem:[#allocation2 + $0x5e0] sm:$0xf0] %v4230_v57 }
 0x1ba   :  { %6715 = vmatmul.mubr.bf16.gmra.mrb[4].mxu1 %v4452_v40  ;;  %12142 = vmatpush1.bf16.msra.mxu0 %v21848_v45  ;;  %v21866_v61 = vld [vmem:[%s28314_s1 + $0x1744] ss:$8 sps:$4 sm:$0xff]   ;;  %v21869_v62 = vld [vmem:[%s28314_s1 + $0x254] ss:$8 sps:$4 sm:$0xff]   ;;  %386 = vst [vmem:[#allocation2 + $0xd8] sm:$0xf] %v17087_v0 }
 0x1bb   :  { %6790 = vmatpush1.bf16.msra.mxu1 %v21845_v29  ;;  %12143 = vmatprep.subr.bf16.mxu0 %v21856_v51  ;;  %v17153_v1 = vld [vmem:[%s28315_s0 + $0x348] sm:$0xff]  ;;  %v3195_v31 = vld [vmem:[%s28315_s0 + $0x110] sm:$0xee]  ;;  %v3199_v2 = vld [vmem:[%s28315_s0 + $0x130] sm:$0x11] }
 0x1bc   :  { %6791 = vmatprep.subr.bf16.mxu1 %v21853_v9  ;;  %v4461_v4 = vld [vmem:[#allocation2 + $0x98] sm:$0xff]  ;;  %v17207_v6 = vcombine.high %v17153_v1, %v17153_v1  ;;  %v17537_v7 = vcombine.high %v3195_v31, %v3199_v2  ;;  %v17614_v8 = vld [vmem:[%s28315_s0 + $0x390] sm:$0xee]  ;;  %v17206_v10 = vcombine.low %v17153_v1, %v17153_v1  ;;  %v17536_v11 = vcombine.low %v3195_v31, %v3199_v2  ;;  %v17618_v12 = vld [vmem:[%s28315_s0 + $0x3b0] sm:$0x11] }
 0x1bd   :  { %v4460_v5 = vld [vmem:[#allocation2 + $0x90] sm:$0xff]  ;;  %6724 = vmatprep.mubr.bf16.mxu1 %v4461_v4  ;;  %385 = vst [vmem:[#allocation2 + $0xd0] sm:$0xf] %v17086_v3  ;;  %v21864_v13 = vld [vmem:[%s28314_s1 + $0x1740] ss:$8 sps:$4 sm:$0xff]   ;;  %v17697_v16 = vcombine.high %v17614_v8, %v17618_v12  ;;  %v17696_v18 = vcombine.low %v17614_v8, %v17618_v12 }
 0x1be   :  { %12144 = vmatpush1.bf16.msra.mxu0 %v21854_v59  ;;  %v21867_v14 = vld [vmem:[%s28314_s1 + $0x250] ss:$8 sps:$4 sm:$0xff]   ;;  %787 = vst [vmem:[#allocation2 + $0xd8] sm:$0xf0] %v17207_v6  ;;  %v3598_v15 = vrot.slane %v17537_v7, 1  ;;  %v3597_v17 = vrot.slane %v17536_v11, 1 }
 0x1bf   :  { %6792 = vmatpush1.bf16.msra.mxu1 %v21851_v46  ;;  %786 = vst [vmem:[#allocation2 + $0xd0] sm:$0xf0] %v17206_v10  ;;  %12145 = vmatprep.subr.bf16.mxu0 %v21866_v61  ;;  %v21872_v19 = vld [vmem:[%s28314_s1 + $0x1754] ss:$8 sps:$4 sm:$0xff]   ;;  %v4239_v22 = vrot.slane %v17697_v16, 5  ;;  %v4238_v23 = vrot.slane %v17696_v18, 5 }
 0x1c0   :  { %6793 = vmatprep.subr.bf16.mxu1 %v21863_v56  ;;  %v10986_v20 = vld [vmem:[#allocation2 + $0x5e8] sm:$0xff]  ;;  %v10985_v21 = vld [vmem:[#allocation2 + $0x5e0] sm:$0xff]  ;;  %3759 = vst [vmem:[#allocation2 + $0x628] sm:$0xf] %v3598_v15  ;;  %3758 = vst [vmem:[#allocation2 + $0x620] sm:$0xf] %v3597_v17 }
 0x1c1   :  { %v21879_v53 = vld [vmem:[%s28314_s1 + $0x264] ss:$8 sps:$4 sm:$0xff]   ;;  %12076 = vmatprep.mubr.bf16.mxu0 %v10986_v20  ;;  %v21870_v24 = vld [vmem:[%s28314_s1 + $0x1750] ss:$8 sps:$4 sm:$0xff]   ;;  %4399 = vst [vmem:[#allocation2 + $0x628] sm:$0xf0] %v4239_v22 }
 0x1c2   :  { %6725 = vmatmul.mubr.bf16.gmra.mrb[8].mxu1 %v4460_v5  ;;  %12077 = vmatmul.mubr.bf16.gmra.mrb[8].mxu0 %v10985_v21  ;;  %v21877_v25 = vld [vmem:[%s28314_s1 + $0x260] ss:$8 sps:$4 sm:$0xff]   ;;  %4398 = vst [vmem:[#allocation2 + $0x620] sm:$0xf0] %v4238_v23  ;;  %v21882_v26 = vld [vmem:[%s28314_s1 + $0x1764] ss:$8 sps:$4 sm:$0xff]  }
 0x1c3   :  { %6794 = vmatpush1.bf16.msra.mxu1 %v21861_v60  ;;  %12146 = vmatpush1.bf16.msra.mxu0 %v21864_v13  ;;  %v21885_v27 = vld [vmem:[%s28314_s1 + $0x274] ss:$8 sps:$4 sm:$0xff]   ;;  %v56_v28 = vld [vmem:[%s28315_s0 + $0x108] sm:$0xff]  ;;  %v21883_v43 = vld [vmem:[%s28314_s1 + $0x270] ss:$8 sps:$4 sm:$0xff]  }
 0x1c4   :  { %6795 = vmatprep.subr.bf16.mxu1 %v21869_v62  ;;  %12147 = vmatprep.subr.bf16.mxu0 %v21872_v19  ;;  %v17095_v29 = vcombine.high %v56_v28, %v56_v28  ;;  %v17157_v32 = vld [vmem:[%s28315_s0 + $0x388] sm:$0xff]  ;;  %v3203_v9 = vld [vmem:[%s28315_s0 + $0x150] sm:$0xee]  ;;  %v3207_v33 = vld [vmem:[%s28315_s0 + $0x170] sm:$0x11]  ;;  %v17094_v34 = vcombine.low %v56_v28, %v56_v28 }
 0x1c5   :  { %v4469_v35 = vld [vmem:[#allocation2 + $0xd8] sm:$0xff]  ;;  %v17215_v37 = vcombine.high %v17157_v32, %v17157_v32  ;;  %v17545_v38 = vcombine.high %v3203_v9, %v3207_v33  ;;  %v17622_v39 = vld [vmem:[%s28315_s0 + $0x3d0] sm:$0xee]  ;;  %v17214_v40 = vcombine.low %v17157_v32, %v17157_v32  ;;  %v17544_v41 = vcombine.low %v3203_v9, %v3207_v33  ;;  %v17626_v42 = vld [vmem:[%s28315_s0 + $0x3f0] sm:$0x11] }
 0x1c6   :  { %v4468_v36 = vld [vmem:[#allocation2 + $0xd0] sm:$0xff]  ;;  %6734 = vmatprep.mubr.bf16.mxu1 %v4469_v35  ;;  %394 = vst [vmem:[#allocation2 + $0x118] sm:$0xf] %v17095_v29  ;;  %393 = vst [vmem:[#allocation2 + $0x110] sm:$0xf] %v17094_v34  ;;  %v17705_v44 = vcombine.high %v17622_v39, %v17626_v42  ;;  %v17704_v46 = vcombine.low %v17622_v39, %v17626_v42  ;;  %v60_v59 = vld [vmem:[%s28315_s0 + $0x148] sm:$0xff] }
 0x1c7   :  { %6796 = vmatpush1.bf16.msra.mxu1 %v21867_v14  ;;  %12148 = vmatpush1.bf16.msra.mxu0 %v21870_v24  ;;  %v21880_v58 = vld [vmem:[%s28314_s1 + $0x1760] ss:$8 sps:$4 sm:$0xff]   ;;  %795 = vst [vmem:[#allocation2 + $0x118] sm:$0xf0] %v17215_v37  ;;  %v3606_v30 = vrot.slane %v17545_v38, 1  ;;  %v3605_v45 = vrot.slane %v17544_v41, 1  ;;  %v17103_v60 = vcombine.high %v60_v59, %v60_v59  ;;  %v17102_v0 = vcombine.low %v60_v59, %v60_v59 }
 0x1c8   :  { %6797 = vmatprep.subr.bf16.mxu1 %v21879_v53  ;;  %794 = vst [vmem:[#allocation2 + $0x110] sm:$0xf0] %v17214_v40  ;;  %12149 = vmatprep.subr.bf16.mxu0 %v21882_v26  ;;  %v21888_v47 = vld [vmem:[%s28314_s1 + $0x1774] ss:$8 sps:$4 sm:$0xff]   ;;  %v10994_v48 = vld [vmem:[#allocation2 + $0x628] sm:$0xff]  ;;  %v4247_v50 = vrot.slane %v17705_v44, 5 }
 0x1c9   :  { %v10993_v49 = vld [vmem:[#allocation2 + $0x620] sm:$0xff]  ;;  %3767 = vst [vmem:[#allocation2 + $0x668] sm:$0xf] %v3606_v30  ;;  %3766 = vst [vmem:[#allocation2 + $0x660] sm:$0xf] %v3605_v45  ;;  %v4246_v52 = vrot.slane %v17704_v46, 5  ;;  %12086 = vmatprep.mubr.bf16.mxu0 %v10994_v48 }
 0x1ca   :  { %6735 = vmatmul.mubr.bf16.gmra.mrb[12].mxu1 %v4468_v36  ;;  %v21895_v51 = vld [vmem:[%s28314_s1 + $0x284] ss:$8 sps:$4 sm:$0xff]   ;;  %v21886_v54 = vld [vmem:[%s28314_s1 + $0x1770] ss:$8 sps:$4 sm:$0xff]   ;;  %12087 = vmatmul.mubr.bf16.gmra.mrb[12].mxu0 %v10993_v49  ;;  %4407 = vst [vmem:[#allocation2 + $0x668] sm:$0xf0] %v4247_v50 }
 0x1cb   :  { %6798 = vmatpush1.bf16.msra.mxu1 %v21877_v25  ;;  %v21893_v55 = vld [vmem:[%s28314_s1 + $0x280] ss:$8 sps:$4 sm:$0xff]   ;;  %4406 = vst [vmem:[#allocation2 + $0x660] sm:$0xf0] %v4246_v52  ;;  %12150 = vmatpush1.bf16.msra.mxu0 %v21880_v58  ;;  %v21898_v56 = vld [vmem:[%s28314_s1 + $0x1784] ss:$8 sps:$4 sm:$0xff]  }
 0x1cc   :  { %6799 = vmatprep.subr.bf16.mxu1 %v21885_v27  ;;  %v21901_v57 = vld [vmem:[%s28314_s1 + $0x294] ss:$8 sps:$4 sm:$0xff]   ;;  %12151 = vmatprep.subr.bf16.mxu0 %v21888_v47  ;;  %v17161_v61 = vld [vmem:[%s28315_s0 + $0x3c8] sm:$0xff]  ;;  %402 = vst [vmem:[#allocation2 + $0x158] sm:$0xf] %v17103_v60 }
 0x1cd   :  { %v3211_v62 = vld [vmem:[%s28315_s0 + $0x190] sm:$0xee]  ;;  %v3215_v63 = vld [vmem:[%s28315_s0 + $0x1b0] sm:$0x11]  ;;  %v17223_v2 = vcombine.high %v17161_v61, %v17161_v61  ;;  %v17222_v5 = vcombine.low %v17161_v61, %v17161_v61  ;;  %401 = vst [vmem:[#allocation2 + $0x150] sm:$0xf] %v17102_v0 }
 0x1ce   :  { %v4477_v1 = vld [vmem:[#allocation2 + $0x118] sm:$0xff]  ;;  %v17553_v3 = vcombine.high %v3211_v62, %v3215_v63  ;;  %v17630_v4 = vld [vmem:[%s28315_s0 + $0x410] sm:$0xee]  ;;  %v17552_v6 = vcombine.low %v3211_v62, %v3215_v63  ;;  %v17634_v7 = vld [vmem:[%s28315_s0 + $0x430] sm:$0x11] }
 0x1cf   :  { %6800 = vmatpush1.bf16.msra.mxu1 %v21883_v43  ;;  %v4476_v31 = vld [vmem:[#allocation2 + $0x110] sm:$0xff]  ;;  %6744 = vmatprep.mubr.bf16.mxu1 %v4477_v1  ;;  %v21896_v8 = vld [vmem:[%s28314_s1 + $0x1780] ss:$8 sps:$4 sm:$0xff]   ;;  %803 = vst [vmem:[#allocation2 + $0x158] sm:$0xf0] %v17223_v2  ;;  %v17713_v12 = vcombine.high %v17630_v4, %v17634_v7  ;;  %v17712_v14 = vcombine.low %v17630_v4, %v17634_v7 }
 0x1d0   :  { %6801 = vmatprep.subr.bf16.mxu1 %v21895_v51  ;;  %12152 = vmatpush1.bf16.msra.mxu0 %v21886_v54  ;;  %v21899_v10 = vld [vmem:[%s28314_s1 + $0x290] ss:$8 sps:$4 sm:$0xff]   ;;  %v3614_v11 = vrot.slane %v17553_v3, 1  ;;  %802 = vst [vmem:[#allocation2 + $0x150] sm:$0xf0] %v17222_v5  ;;  %v3613_v13 = vrot.slane %v17552_v6, 1 }
 0x1d1   :  { %12153 = vmatprep.subr.bf16.mxu0 %v21898_v56  ;;  %v21904_v15 = vld [vmem:[%s28314_s1 + $0x1794] ss:$8 sps:$4 sm:$0xff]   ;;  %v11002_v16 = vld [vmem:[#allocation2 + $0x668] sm:$0xff]  ;;  %v4255_v18 = vrot.slane %v17713_v12, 5  ;;  %v4254_v20 = vrot.slane %v17712_v14, 5 }
 0x1d2   :  { %6745 = vmatmul.mubr.bf16.gmra.mrb[16].mxu1 %v4476_v31  ;;  %v11001_v17 = vld [vmem:[#allocation2 + $0x660] sm:$0xff]  ;;  %3775 = vst [vmem:[#allocation2 + $0x6a8] sm:$0xf] %v3614_v11  ;;  %3774 = vst [vmem:[#allocation2 + $0x6a0] sm:$0xf] %v3613_v13  ;;  %12096 = vmatprep.mubr.bf16.mxu0 %v11002_v16  ;;  %v64_v24 = vld [vmem:[%s28315_s0 + $0x188] sm:$0xff] }
 0x1d3   :  { %6802 = vmatpush1.bf16.msra.mxu1 %v21893_v55  ;;  %v21911_v19 = vld [vmem:[%s28314_s1 + $0x2a4] ss:$8 sps:$4 sm:$0xff]   ;;  %v21902_v21 = vld [vmem:[%s28314_s1 + $0x1790] ss:$8 sps:$4 sm:$0xff]   ;;  %12097 = vmatmul.mubr.bf16.gmra.mrb[16].mxu0 %v11001_v17  ;;  %4415 = vst [vmem:[#allocation2 + $0x6a8] sm:$0xf0] %v4255_v18  ;;  %v17111_v25 = vcombine.high %v64_v24, %v64_v24  ;;  %v17110_v29 = vcombine.low %v64_v24, %v64_v24 }
 0x1d4   :  { %6803 = vmatprep.subr.bf16.mxu1 %v21901_v57  ;;  %v21909_v22 = vld [vmem:[%s28314_s1 + $0x2a0] ss:$8 sps:$4 sm:$0xff]   ;;  %4414 = vst [vmem:[#allocation2 + $0x6a0] sm:$0xf0] %v4254_v20  ;;  %12154 = vmatpush1.bf16.msra.mxu0 %v21896_v8  ;;  %v21914_v53 = vld [vmem:[%s28314_s1 + $0x17a4] ss:$8 sps:$4 sm:$0xff]  }
 0x1d5   :  { %v21917_v23 = vld [vmem:[%s28314_s1 + $0x2b4] ss:$8 sps:$4 sm:$0xff]   ;;  %12155 = vmatprep.subr.bf16.mxu0 %v21904_v15  ;;  %v17165_v26 = vld [vmem:[%s28315_s0 + $0x408] sm:$0xff]  ;;  %410 = vst [vmem:[#allocation2 + $0x198] sm:$0xf] %v17111_v25 }
 0x1d6   :  { %v3219_v27 = vld [vmem:[%s28315_s0 + $0x1d0] sm:$0xee]  ;;  %v3223_v28 = vld [vmem:[%s28315_s0 + $0x1f0] sm:$0x11]  ;;  %v4485_v32 = vld [vmem:[#allocation2 + $0x158] sm:$0xff]  ;;  %v17231_v33 = vcombine.high %v17165_v26, %v17165_v26  ;;  %v17230_v36 = vcombine.low %v17165_v26, %v17165_v26 }
 0x1d7   :  { %6804 = vmatpush1.bf16.msra.mxu1 %v21899_v10  ;;  %v4484_v9 = vld [vmem:[#allocation2 + $0x150] sm:$0xff]  ;;  %v17561_v34 = vcombine.high %v3219_v27, %v3223_v28  ;;  %v17560_v37 = vcombine.low %v3219_v27, %v3223_v28  ;;  %6754 = vmatprep.mubr.bf16.mxu1 %v4485_v32  ;;  %409 = vst [vmem:[#allocation2 + $0x190] sm:$0xf] %v17110_v29  ;;  %v21912_v39 = vld [vmem:[%s28314_s1 + $0x17a0] ss:$8 sps:$4 sm:$0xff]  }
 0x1d8   :  { %6805 = vmatprep.subr.bf16.mxu1 %v21911_v19  ;;  %v17638_v35 = vld [vmem:[%s28315_s0 + $0x450] sm:$0xee]  ;;  %v17642_v38 = vld [vmem:[%s28315_s0 + $0x470] sm:$0x11]  ;;  %12156 = vmatpush1.bf16.msra.mxu0 %v21902_v21  ;;  %811 = vst [vmem:[#allocation2 + $0x198] sm:$0xf0] %v17231_v33 }
 0x1d9   :  { %v21915_v40 = vld [vmem:[%s28314_s1 + $0x2b0] ss:$8 sps:$4 sm:$0xff]   ;;  %v3622_v41 = vrot.slane %v17561_v34, 1  ;;  %v17721_v42 = vcombine.high %v17638_v35, %v17642_v38  ;;  %810 = vst [vmem:[#allocation2 + $0x190] sm:$0xf0] %v17230_v36  ;;  %v3621_v58 = vrot.slane %v17560_v37, 1  ;;  %v17720_v43 = vcombine.low %v17638_v35, %v17642_v38  ;;  %12157 = vmatprep.subr.bf16.mxu0 %v21914_v53 }
 0x1da   :  { %6755 = vmatmul.mubr.bf16.gmra.mrb[20].mxu1 %v4484_v9  ;;  %v21920_v30 = vld [vmem:[%s28314_s1 + $0x17b4] ss:$8 sps:$4 sm:$0xff]   ;;  %v11010_v44 = vld [vmem:[#allocation2 + $0x6a8] sm:$0xff]  ;;  %v21918_v49 = vld [vmem:[%s28314_s1 + $0x17b0] ss:$8 sps:$4 sm:$0xff]  }
 0x1db   :  { %6806 = vmatpush1.bf16.msra.mxu1 %v21909_v22  ;;  %v11009_v45 = vld [vmem:[#allocation2 + $0x6a0] sm:$0xff]  ;;  %3783 = vst [vmem:[#allocation2 + $0x6e8] sm:$0xf] %v3622_v41  ;;  %v4263_v46 = vrot.slane %v17721_v42, 5  ;;  %3782 = vst [vmem:[#allocation2 + $0x6e0] sm:$0xf] %v3621_v58  ;;  %12106 = vmatprep.mubr.bf16.mxu0 %v11010_v44 }
 0x1dc   :  { %6807 = vmatprep.subr.bf16.mxu1 %v21917_v23  ;;  %v21927_v47 = vld [vmem:[%s28314_s1 + $0x2c4] ss:$8 sps:$4 sm:$0xff]   ;;  %v4262_v48 = vrot.slane %v17720_v43, 5  ;;  %12107 = vmatmul.mubr.bf16.gmra.mrb[20].mxu0 %v11009_v45  ;;  %v21925_v50 = vld [vmem:[%s28314_s1 + $0x2c0] ss:$8 sps:$4 sm:$0xff]   ;;  %v41_v21 = vld [vmem:[%s28315_s0 + $0x10] sm:$0xff] }
 0x1dd   :  { %4423 = vst [vmem:[#allocation2 + $0x6e8] sm:$0xf0] %v4263_v46  ;;  %12158 = vmatpush1.bf16.msra.mxu0 %v21912_v39  ;;  %v21930_v51 = vld [vmem:[%s28314_s1 + $0x17c4] ss:$8 sps:$4 sm:$0xff]   ;;  %v21933_v52 = vld [vmem:[%s28314_s1 + $0x2d4] ss:$8 sps:$4 sm:$0xff]   ;;  %v17064_v22 = vcombine.low %v41_v21, %v41_v21  ;;  %v17065_v53 = vcombine.high %v41_v21, %v41_v21 }
 0x1de   :  { %4422 = vst [vmem:[#allocation2 + $0x6e0] sm:$0xf0] %v4262_v48  ;;  %v68_v54 = vld [vmem:[%s28315_s0 + $0x1c8] sm:$0xff]  ;;  %12159 = vmatprep.subr.bf16.mxu0 %v21920_v30  ;;  %v3227_v57 = vld [vmem:[%s28315_s0 + $0x210] sm:$0xee] }
 0x1df   :  { %6808 = vmatpush1.bf16.msra.mxu1 %v21915_v40  ;;  %v17119_v55 = vcombine.high %v68_v54, %v68_v54  ;;  %v17169_v56 = vld [vmem:[%s28315_s0 + $0x448] sm:$0xff]  ;;  %v3231_v59 = vld [vmem:[%s28315_s0 + $0x230] sm:$0x11]  ;;  %v17118_v60 = vcombine.low %v68_v54, %v68_v54  ;;  %v4493_v61 = vld [vmem:[#allocation2 + $0x198] sm:$0xff]  ;;  %363 = vst [vmem:[#allocation2 + $0x20] sm:$0xf] %v17064_v22 }
 0x1e0   :  { %6809 = vmatprep.subr.bf16.mxu1 %v21927_v47  ;;  %v4492_v62 = vld [vmem:[#allocation2 + $0x190] sm:$0xff]  ;;  %v17239_v63 = vcombine.high %v17169_v56, %v17169_v56  ;;  %v17569_v0 = vcombine.high %v3227_v57, %v3231_v59  ;;  %v17238_v31 = vcombine.low %v17169_v56, %v17169_v56  ;;  %v17568_v2 = vcombine.low %v3227_v57, %v3231_v59  ;;  %v21928_v4 = vld [vmem:[%s28314_s1 + $0x17c0] ss:$8 sps:$4 sm:$0xff]   ;;  %v21943_v15 = vld [vmem:[%s28314_s1 + $0x2e4] ss:$8 sps:$4 sm:$0xff]  }
 0x1e1   :  { %v17646_v1 = vld [vmem:[%s28315_s0 + $0x490] sm:$0xee]  ;;  %6764 = vmatprep.mubr.bf16.mxu1 %v4493_v61  ;;  %418 = vst [vmem:[#allocation2 + $0x1d8] sm:$0xf] %v17119_v55  ;;  %v17650_v3 = vld [vmem:[%s28315_s0 + $0x4b0] sm:$0x11]  ;;  %12160 = vmatpush1.bf16.msra.mxu0 %v21918_v49 }
 0x1e2   :  { %417 = vst [vmem:[#allocation2 + $0x1d0] sm:$0xf] %v17118_v60  ;;  %6765 = vmatmul.mubr.bf16.gmra.mrb[24].mxu1 %v4492_v62  ;;  %v21931_v5 = vld [vmem:[%s28314_s1 + $0x2d0] ss:$8 sps:$4 sm:$0xff]   ;;  %819 = vst [vmem:[#allocation2 + $0x1d8] sm:$0xf0] %v17239_v63  ;;  %v17729_v7 = vcombine.high %v17646_v1, %v17650_v3  ;;  %v17728_v10 = vcombine.low %v17646_v1, %v17650_v3  ;;  %12161 = vmatprep.subr.bf16.mxu0 %v21930_v51 }
 0x1e3   :  { %v3630_v6 = vrot.slane %v17569_v0, 1  ;;  %818 = vst [vmem:[#allocation2 + $0x1d0] sm:$0xf0] %v17238_v31  ;;  %v3629_v8 = vrot.slane %v17568_v2, 1  ;;  %6810 = vmatpush1.bf16.msra.mxu1 %v21925_v50  ;;  %v21936_v11 = vld [vmem:[%s28314_s1 + $0x17d4] ss:$8 sps:$4 sm:$0xff]  }
 0x1e4   :  { %v11018_v12 = vld [vmem:[#allocation2 + $0x6e8] sm:$0xff]  ;;  %6811 = vmatprep.subr.bf16.mxu1 %v21933_v52  ;;  %v4271_v14 = vrot.slane %v17729_v7, 5  ;;  %v4270_v16 = vrot.slane %v17728_v10, 5  ;;  %v21934_v17 = vld [vmem:[%s28314_s1 + $0x17d0] ss:$8 sps:$4 sm:$0xff]  }
 0x1e5   :  { %v11017_v13 = vld [vmem:[#allocation2 + $0x6e0] sm:$0xff]  ;;  %3791 = vst [vmem:[#allocation2 + $0x728] sm:$0xf] %v3630_v6  ;;  %3790 = vst [vmem:[#allocation2 + $0x720] sm:$0xf] %v3629_v8  ;;  %12116 = vmatprep.mubr.bf16.mxu0 %v11018_v12  ;;  %12162 = vmatpush1.bf16.msra.mxu0 %v21928_v4  ;;  %v17142_v23 = vld [vmem:[%s28315_s0 + $0x290] sm:$0xff] }
 0x1e6   :  { %12117 = vmatmul.mubr.bf16.gmra.mrb[24].mxu0 %v11017_v13  ;;  %4431 = vst [vmem:[#allocation2 + $0x728] sm:$0xf0] %v4271_v14  ;;  %v21941_v18 = vld [vmem:[%s28314_s1 + $0x2e0] ss:$8 sps:$4 sm:$0xff]   ;;  %4430 = vst [vmem:[#allocation2 + $0x720] sm:$0xf0] %v4270_v16  ;;  %12163 = vmatprep.subr.bf16.mxu0 %v21936_v11  ;;  %v17184_v28 = vcombine.low %v17142_v23, %v17142_v23  ;;  %v17185_v29 = vcombine.high %v17142_v23, %v17142_v23 }
 0x1e7   :  { %6812 = vmatpush1.bf16.msra.mxu1 %v21931_v5  ;;  %v21946_v19 = vld [vmem:[%s28314_s1 + $0x17e4] ss:$8 sps:$4 sm:$0xff]   ;;  %v21949_v20 = vld [vmem:[%s28314_s1 + $0x2f4] ss:$8 sps:$4 sm:$0xff]   ;;  %364 = vst [vmem:[#allocation2 + $0x28] sm:$0xf] %v17065_v53 }
 0x1e8   :  { %6813 = vmatprep.subr.bf16.mxu1 %v21943_v15  ;;  %v3172_v24 = vld [vmem:[%s28315_s0 + $0x58] sm:$0xee]  ;;  %v3176_v25 = vld [vmem:[%s28315_s0 + $0x78] sm:$0x11]  ;;  %v21944_v35 = vld [vmem:[%s28314_s1 + $0x17e0] ss:$8 sps:$4 sm:$0xff]  }
 0x1e9   :  { %v4501_v26 = vld [vmem:[#allocation2 + $0x1d8] sm:$0xff]  ;;  %v17514_v32 = vcombine.low %v3172_v24, %v3176_v25  ;;  %v17515_v9 = vcombine.high %v3172_v24, %v3176_v25  ;;  %12164 = vmatpush1.bf16.msra.mxu0 %v21934_v17  ;;  %764 = vst [vmem:[#allocation2 + $0x20] sm:$0xf0] %v17184_v28  ;;  %765 = vst [vmem:[#allocation2 + $0x28] sm:$0xf0] %v17185_v29  ;;  %v45_v49 = vld [vmem:[%s28315_s0 + $0x50] sm:$0xff] }
 0x1ea   :  { %v4500_v27 = vld [vmem:[#allocation2 + $0x1d0] sm:$0xff]  ;;  %v17591_v33 = vld [vmem:[%s28315_s0 + $0x2d8] sm:$0xee]  ;;  %6774 = vmatprep.mubr.bf16.mxu1 %v4501_v26  ;;  %v17595_v34 = vld [vmem:[%s28315_s0 + $0x2f8] sm:$0x11]  ;;  %12165 = vmatprep.subr.bf16.mxu0 %v21946_v19  ;;  %v17073_v50 = vcombine.high %v45_v49, %v45_v49  ;;  %v17072_v55 = vcombine.low %v45_v49, %v45_v49 }
 0x1eb   :  { %6775 = vmatmul.mubr.bf16.gmra.mrb[28].mxu1 %v4500_v27  ;;  %v21947_v36 = vld [vmem:[%s28314_s1 + $0x2f0] ss:$8 sps:$4 sm:$0xff]   ;;  %v3575_v37 = vrot.slane %v17514_v32, 1  ;;  %v3576_v38 = vrot.slane %v17515_v9, 1  ;;  %v17674_v39 = vcombine.low %v17591_v33, %v17595_v34  ;;  %v17675_v40 = vcombine.high %v17591_v33, %v17595_v34  ;;  %v21952_v41 = vld [vmem:[%s28314_s1 + $0x17f4] ss:$8 sps:$4 sm:$0xff]  }
 0x1ec   :  { %6814 = vmatpush1.bf16.msra.mxu1 %v21941_v18  ;;  %v21959_v44 = vld [vmem:[%s28314_s1 + $0x304] ss:$8 sps:$4 sm:$0xff]   ;;  %v21950_v45 = vld [vmem:[%s28314_s1 + $0x17f0] ss:$8 sps:$4 sm:$0xff]   ;;  %v21957_v46 = vld [vmem:[%s28314_s1 + $0x300] ss:$8 sps:$4 sm:$0xff]  }
 0x1ed   :  { %v11026_v42 = vld [vmem:[#allocation2 + $0x728] sm:$0xff]  ;;  %v11025_v58 = vld [vmem:[#allocation2 + $0x720] sm:$0xff]  ;;  %6815 = vmatprep.subr.bf16.mxu1 %v21949_v20  ;;  %3737 = vst [vmem:[#allocation2 + $0x578] sm:$0xf] %v3576_v38  ;;  %v4216_v43 = vrot.slane %v17674_v39, 5  ;;  %v4217_v30 = vrot.slane %v17675_v40, 5  ;;  %12166 = vmatpush1.bf16.msra.mxu0 %v21944_v35 }
 0x1ee   :  { %3736 = vst [vmem:[#allocation2 + $0x570] sm:$0xf] %v3575_v37  ;;  %12126 = vmatprep.mubr.bf16.mxu0 %v11026_v42  ;;  %v21962_v47 = vld [vmem:[%s28314_s1 + $0x1804] ss:$8 sps:$4 sm:$0xff]   ;;  %v21965_v48 = vld [vmem:[%s28314_s1 + $0x314] ss:$8 sps:$4 sm:$0xff]   ;;  %12167 = vmatprep.subr.bf16.mxu0 %v21952_v41 }
 0x1ef   :  { %12127 = vmatmul.mubr.bf16.gmra.mrb[28].mxu0 %v11025_v58  ;;  %4377 = vst [vmem:[#allocation2 + $0x578] sm:$0xf0] %v4217_v30  ;;  %4376 = vst [vmem:[#allocation2 + $0x570] sm:$0xf0] %v4216_v43  ;;  %v17146_v51 = vld [vmem:[%s28315_s0 + $0x2d0] sm:$0xff] }
 0x1f0   :  { %6816 = vmatpush1.bf16.msra.mxu1 %v21947_v36  ;;  %v3180_v52 = vld [vmem:[%s28315_s0 + $0x98] sm:$0xee]  ;;  %v3184_v54 = vld [vmem:[%s28315_s0 + $0xb8] sm:$0x11]  ;;  %v4447_v56 = vld [vmem:[#allocation2 + $0x28] sm:$0xff]  ;;  %v17193_v59 = vcombine.high %v17146_v51, %v17146_v51  ;;  %v17192_v62 = vcombine.low %v17146_v51, %v17146_v51 }
 0x1f1   :  { %6898 = vmatprep.subr.bf16.mxu1 %v21959_v44  ;;  %v4446_v57 = vld [vmem:[#allocation2 + $0x20] sm:$0xff]  ;;  %v17523_v60 = vcombine.high %v3180_v52, %v3184_v54  ;;  %v17599_v61 = vld [vmem:[%s28315_s0 + $0x318] sm:$0xee]  ;;  %v17522_v63 = vcombine.low %v3180_v52, %v3184_v54  ;;  %6817 = vmatprep.mubr.bf16.mxu1 %v4447_v56  ;;  %372 = vst [vmem:[#allocation2 + $0x68] sm:$0xf] %v17073_v50  ;;  %v49_v17 = vld [vmem:[%s28315_s0 + $0x90] sm:$0xff] }
 0x1f2   :  { %v17603_v0 = vld [vmem:[%s28315_s0 + $0x338] sm:$0x11]  ;;  %371 = vst [vmem:[#allocation2 + $0x60] sm:$0xf] %v17072_v55  ;;  %12168 = vmatpush1.bf16.msra.mxu0 %v21950_v45  ;;  %v21960_v1 = vld [vmem:[%s28314_s1 + $0x1800] ss:$8 sps:$4 sm:$0xff]   ;;  %v17081_v18 = vcombine.high %v49_v17, %v49_v17  ;;  %v17080_v22 = vcombine.low %v49_v17, %v49_v17 }
 0x1f3   :  { %6818 = vmatmul.mubr.bf16.vlgmr.msra.gmra.mrb[0].mxu1 %v4446_v57  ;;  %v21963_v31 = vld [vmem:[%s28314_s1 + $0x310] ss:$8 sps:$4 sm:$0xff]   ;;  %773 = vst [vmem:[#allocation2 + $0x68] sm:$0xf0] %v17193_v59  ;;  %v3584_v2 = vrot.slane %v17523_v60, 1  ;;  %v17683_v3 = vcombine.high %v17599_v61, %v17603_v0  ;;  %v3583_v4 = vrot.slane %v17522_v63, 1  ;;  %v17682_v5 = vcombine.low %v17599_v61, %v17603_v0  ;;  %13116 = vmatprep.subr.bf16.mxu0 %v21962_v47 }
 0x1f4   :  { %772 = vst [vmem:[#allocation2 + $0x60] sm:$0xf0] %v17192_v62  ;;  %6899 = vmatpush1.bf16.msra.mxu1 %v21957_v46  ;;  %v21968_v6 = vld [vmem:[%s28314_s1 + $0x1814] ss:$8 sps:$4 sm:$0xff]   ;;  %v21975_v11 = vld [vmem:[%s28314_s1 + $0x324] ss:$8 sps:$4 sm:$0xff]  }
 0x1f5   :  { %6900 = vmatprep.subr.bf16.mxu1 %v21965_v48  ;;  %3745 = vst [vmem:[#allocation2 + $0x5b8] sm:$0xf] %v3584_v2  ;;  %v4225_v10 = vrot.slane %v17683_v3, 5  ;;  %3744 = vst [vmem:[#allocation2 + $0x5b0] sm:$0xf] %v3583_v4  ;;  %v4224_v12 = vrot.slane %v17682_v5, 5 }
 0x1f6   :  { %v10972_v7 = vld [vmem:[#allocation2 + $0x578] sm:$0xff]  ;;  %v10971_v8 = vld [vmem:[#allocation2 + $0x570] sm:$0xff]  ;;  %v21973_v14 = vld [vmem:[%s28314_s1 + $0x320] ss:$8 sps:$4 sm:$0xff]   ;;  %380 = vst [vmem:[#allocation2 + $0xa8] sm:$0xf] %v17081_v18 }
 0x1f7   :  { %12169 = vmatprep.mubr.bf16.mxu0 %v10972_v7  ;;  %v21966_v13 = vld [vmem:[%s28314_s1 + $0x1810] ss:$8 sps:$4 sm:$0xff]   ;;  %4385 = vst [vmem:[#allocation2 + $0x5b8] sm:$0xf0] %v4225_v10  ;;  %4384 = vst [vmem:[#allocation2 + $0x5b0] sm:$0xf0] %v4224_v12 }
 0x1f8   :  { %12170 = vmatmul.mubr.bf16.vlgmr.msra.gmra.mrb[0].mxu0 %v10971_v8  ;;  %6901 = vmatpush1.bf16.msra.mxu1 %v21963_v31  ;;  %v21978_v15 = vld [vmem:[%s28314_s1 + $0x1824] ss:$8 sps:$4 sm:$0xff]   ;;  %v21981_v16 = vld [vmem:[%s28314_s1 + $0x334] ss:$8 sps:$4 sm:$0xff]   ;;  %379 = vst [vmem:[#allocation2 + $0xa0] sm:$0xf] %v17080_v22 }
 0x1f9   :  { %13117 = vmatpush1.bf16.msra.mxu0 %v21960_v1  ;;  %6902 = vmatprep.subr.bf16.mxu1 %v21975_v11  ;;  %v17150_v19 = vld [vmem:[%s28315_s0 + $0x310] sm:$0xff]  ;;  %v3188_v20 = vld [vmem:[%s28315_s0 + $0xd8] sm:$0xee]  ;;  %v3192_v21 = vld [vmem:[%s28315_s0 + $0xf8] sm:$0x11] }
 0x1fa   :  { %13118 = vmatprep.subr.bf16.mxu0 %v21968_v6  ;;  %v4455_v53 = vld [vmem:[#allocation2 + $0x68] sm:$0xff]  ;;  %v17201_v24 = vcombine.high %v17150_v19, %v17150_v19  ;;  %v17531_v25 = vcombine.high %v3188_v20, %v3192_v21  ;;  %v17607_v26 = vld [vmem:[%s28315_s0 + $0x358] sm:$0xee]  ;;  %v17200_v27 = vcombine.low %v17150_v19, %v17150_v19  ;;  %v17530_v28 = vcombine.low %v3188_v20, %v3192_v21  ;;  %v17611_v29 = vld [vmem:[%s28315_s0 + $0x378] sm:$0x11] }
 0x1fb   :  { %v4454_v23 = vld [vmem:[#allocation2 + $0x60] sm:$0xff]  ;;  %6827 = vmatprep.mubr.bf16.mxu1 %v4455_v53  ;;  %v21979_v9 = vld [vmem:[%s28314_s1 + $0x330] ss:$8 sps:$4 sm:$0xff]   ;;  %v17691_v34 = vcombine.high %v17607_v26, %v17611_v29  ;;  %v17690_v36 = vcombine.low %v17607_v26, %v17611_v29  ;;  %v21984_v37 = vld [vmem:[%s28314_s1 + $0x1834] ss:$8 sps:$4 sm:$0xff]  }
 0x1fc   :  { %6828 = vmatmul.mubr.bf16.gmra.mrb[4].mxu1 %v4454_v23  ;;  %v21976_v32 = vld [vmem:[%s28314_s1 + $0x1820] ss:$8 sps:$4 sm:$0xff]   ;;  %781 = vst [vmem:[#allocation2 + $0xa8] sm:$0xf0] %v17201_v24  ;;  %v3592_v33 = vrot.slane %v17531_v25, 1  ;;  %v3591_v35 = vrot.slane %v17530_v28, 1 }
 0x1fd   :  { %13119 = vmatpush1.bf16.msra.mxu0 %v21966_v13  ;;  %780 = vst [vmem:[#allocation2 + $0xa0] sm:$0xf0] %v17200_v27  ;;  %6903 = vmatpush1.bf16.msra.mxu1 %v21973_v14  ;;  %v4233_v40 = vrot.slane %v17691_v34, 5  ;;  %v21991_v41 = vld [vmem:[%s28314_s1 + $0x344] ss:$8 sps:$4 sm:$0xff]   ;;  %v4232_v42 = vrot.slane %v17690_v36, 5 }
 0x1fe   :  { %13120 = vmatprep.subr.bf16.mxu0 %v21978_v15  ;;  %v10980_v38 = vld [vmem:[#allocation2 + $0x5b8] sm:$0xff]  ;;  %v10979_v39 = vld [vmem:[#allocation2 + $0x5b0] sm:$0xff]  ;;  %6904 = vmatprep.subr.bf16.mxu1 %v21981_v16  ;;  %3753 = vst [vmem:[#allocation2 + $0x5f8] sm:$0xf] %v3592_v33  ;;  %3752 = vst [vmem:[#allocation2 + $0x5f0] sm:$0xf] %v3591_v35 }
 0x1ff   :  { %12179 = vmatprep.mubr.bf16.mxu0 %v10980_v38  ;;  %v21982_v58 = vld [vmem:[%s28314_s1 + $0x1830] ss:$8 sps:$4 sm:$0xff]   ;;  %4393 = vst [vmem:[#allocation2 + $0x5f8] sm:$0xf0] %v4233_v40  ;;  %v21989_v43 = vld [vmem:[%s28314_s1 + $0x340] ss:$8 sps:$4 sm:$0xff]  }
 0x200   :  { %12180 = vmatmul.mubr.bf16.gmra.mrb[4].mxu0 %v10979_v39  ;;  %4392 = vst [vmem:[#allocation2 + $0x5f0] sm:$0xf0] %v4232_v42  ;;  %v21994_v30 = vld [vmem:[%s28314_s1 + $0x1844] ss:$8 sps:$4 sm:$0xff]   ;;  %v21997_v44 = vld [vmem:[%s28314_s1 + $0x354] ss:$8 sps:$4 sm:$0xff]  }
 0x201   :  { %13121 = vmatpush1.bf16.msra.mxu0 %v21976_v32  ;;  %6905 = vmatpush1.bf16.msra.mxu1 %v21979_v9  ;;  %v53_v45 = vld [vmem:[%s28315_s0 + $0xd0] sm:$0xff]  ;;  %v3196_v48 = vld [vmem:[%s28315_s0 + $0x118] sm:$0xee]  ;;  %v3200_v49 = vld [vmem:[%s28315_s0 + $0x138] sm:$0x11] }
 0x202   :  { %13122 = vmatprep.subr.bf16.mxu0 %v21984_v37  ;;  %6906 = vmatprep.subr.bf16.mxu1 %v21991_v41  ;;  %v17089_v46 = vcombine.high %v53_v45, %v53_v45  ;;  %v17154_v47 = vld [vmem:[%s28315_s0 + $0x350] sm:$0xff]  ;;  %v17088_v50 = vcombine.low %v53_v45, %v53_v45  ;;  %v17539_v55 = vcombine.high %v3196_v48, %v3200_v49  ;;  %v17615_v56 = vld [vmem:[%s28315_s0 + $0x398] sm:$0xee]  ;;  %v17619_v60 = vld [vmem:[%s28315_s0 + $0x3b8] sm:$0x11] }
 0x203   :  { %v4463_v51 = vld [vmem:[#allocation2 + $0xa8] sm:$0xff]  ;;  %v17209_v54 = vcombine.high %v17154_v47, %v17154_v47  ;;  %v17208_v57 = vcombine.low %v17154_v47, %v17154_v47  ;;  %v17538_v59 = vcombine.low %v3196_v48, %v3200_v49  ;;  %v21995_v62 = vld [vmem:[%s28314_s1 + $0x350] ss:$8 sps:$4 sm:$0xff]   ;;  %v17699_v0 = vcombine.high %v17615_v56, %v17619_v60  ;;  %v22000_v2 = vld [vmem:[%s28314_s1 + $0x1854] ss:$8 sps:$4 sm:$0xff]  }
 0x204   :  { %v4462_v52 = vld [vmem:[#allocation2 + $0xa0] sm:$0xff]  ;;  %6837 = vmatprep.mubr.bf16.mxu1 %v4463_v51  ;;  %388 = vst [vmem:[#allocation2 + $0xe8] sm:$0xf] %v17089_v46  ;;  %387 = vst [vmem:[#allocation2 + $0xe0] sm:$0xf] %v17088_v50  ;;  %v3600_v63 = vrot.slane %v17539_v55, 1  ;;  %v17698_v31 = vcombine.low %v17615_v56, %v17619_v60 }
 0x205   :  { %13123 = vmatpush1.bf16.msra.mxu0 %v21982_v58  ;;  %6838 = vmatmul.mubr.bf16.gmra.mrb[8].mxu1 %v4462_v52  ;;  %v21992_v61 = vld [vmem:[%s28314_s1 + $0x1840] ss:$8 sps:$4 sm:$0xff]   ;;  %789 = vst [vmem:[#allocation2 + $0xe8] sm:$0xf0] %v17209_v54  ;;  %788 = vst [vmem:[#allocation2 + $0xe0] sm:$0xf0] %v17208_v57 }
 0x206   :  { %v3599_v1 = vrot.slane %v17538_v59, 1  ;;  %13124 = vmatprep.subr.bf16.mxu0 %v21994_v30  ;;  %6907 = vmatpush1.bf16.msra.mxu1 %v21989_v43  ;;  %v10988_v3 = vld [vmem:[#allocation2 + $0x5f8] sm:$0xff]  ;;  %3761 = vst [vmem:[#allocation2 + $0x638] sm:$0xf] %v3600_v63  ;;  %v4241_v5 = vrot.slane %v17699_v0, 5  ;;  %v4240_v7 = vrot.slane %v17698_v31, 5 }
 0x207   :  { %v10987_v4 = vld [vmem:[#allocation2 + $0x5f0] sm:$0xff]  ;;  %6908 = vmatprep.subr.bf16.mxu1 %v21997_v44  ;;  %v22007_v6 = vld [vmem:[%s28314_s1 + $0x364] ss:$8 sps:$4 sm:$0xff]   ;;  %12189 = vmatprep.mubr.bf16.mxu0 %v10988_v3  ;;  %v22005_v10 = vld [vmem:[%s28314_s1 + $0x360] ss:$8 sps:$4 sm:$0xff]  }
 0x208   :  { %3760 = vst [vmem:[#allocation2 + $0x630] sm:$0xf] %v3599_v1  ;;  %v21998_v8 = vld [vmem:[%s28314_s1 + $0x1850] ss:$8 sps:$4 sm:$0xff]   ;;  %12190 = vmatmul.mubr.bf16.gmra.mrb[8].mxu0 %v10987_v4  ;;  %4401 = vst [vmem:[#allocation2 + $0x638] sm:$0xf0] %v4241_v5 }
 0x209   :  { %4400 = vst [vmem:[#allocation2 + $0x630] sm:$0xf0] %v4240_v7  ;;  %13125 = vmatpush1.bf16.msra.mxu0 %v21992_v61  ;;  %v22010_v11 = vld [vmem:[%s28314_s1 + $0x1864] ss:$8 sps:$4 sm:$0xff]   ;;  %v22013_v12 = vld [vmem:[%s28314_s1 + $0x374] ss:$8 sps:$4 sm:$0xff]  }
 0x20a   :  { %6909 = vmatpush1.bf16.msra.mxu1 %v21995_v62  ;;  %v57_v13 = vld [vmem:[%s28315_s0 + $0x110] sm:$0xff]  ;;  %13126 = vmatprep.subr.bf16.mxu0 %v22000_v2  ;;  %v3204_v16 = vld [vmem:[%s28315_s0 + $0x158] sm:$0xee]  ;;  %v3208_v17 = vld [vmem:[%s28315_s0 + $0x178] sm:$0x11] }
 0x20b   :  { %6910 = vmatprep.subr.bf16.mxu1 %v22007_v6  ;;  %v17097_v14 = vcombine.high %v57_v13, %v57_v13  ;;  %v17158_v15 = vld [vmem:[%s28315_s0 + $0x390] sm:$0xff]  ;;  %v17096_v18 = vcombine.low %v57_v13, %v57_v13  ;;  %v17547_v22 = vcombine.high %v3204_v16, %v3208_v17  ;;  %v17623_v53 = vld [vmem:[%s28315_s0 + $0x3d8] sm:$0xee]  ;;  %v17546_v24 = vcombine.low %v3204_v16, %v3208_v17  ;;  %v17627_v25 = vld [vmem:[%s28315_s0 + $0x3f8] sm:$0x11] }
 0x20c   :  { %v4471_v19 = vld [vmem:[#allocation2 + $0xe8] sm:$0xff]  ;;  %v4470_v20 = vld [vmem:[#allocation2 + $0xe0] sm:$0xff]  ;;  %v17217_v21 = vcombine.high %v17158_v15, %v17158_v15  ;;  %v17216_v23 = vcombine.low %v17158_v15, %v17158_v15  ;;  %v22011_v27 = vld [vmem:[%s28314_s1 + $0x370] ss:$8 sps:$4 sm:$0xff]   ;;  %v17707_v29 = vcombine.high %v17623_v53, %v17627_v25  ;;  %v17706_v9 = vcombine.low %v17623_v53, %v17627_v25 }
 0x20d   :  { %6847 = vmatprep.mubr.bf16.mxu1 %v4471_v19  ;;  %396 = vst [vmem:[#allocation2 + $0x128] sm:$0xf] %v17097_v14  ;;  %395 = vst [vmem:[#allocation2 + $0x120] sm:$0xf] %v17096_v18  ;;  %13127 = vmatpush1.bf16.msra.mxu0 %v21998_v8  ;;  %v22008_v26 = vld [vmem:[%s28314_s1 + $0x1860] ss:$8 sps:$4 sm:$0xff]  }
 0x20e   :  { %6848 = vmatmul.mubr.bf16.gmra.mrb[12].mxu1 %v4470_v20  ;;  %797 = vst [vmem:[#allocation2 + $0x128] sm:$0xf0] %v17217_v21  ;;  %v3608_v28 = vrot.slane %v17547_v22, 1  ;;  %796 = vst [vmem:[#allocation2 + $0x120] sm:$0xf0] %v17216_v23  ;;  %v3607_v32 = vrot.slane %v17546_v24, 1  ;;  %13128 = vmatprep.subr.bf16.mxu0 %v22010_v11 }
 0x20f   :  { %6911 = vmatpush1.bf16.msra.mxu1 %v22005_v10  ;;  %v22016_v33 = vld [vmem:[%s28314_s1 + $0x1874] ss:$8 sps:$4 sm:$0xff]   ;;  %v4249_v36 = vrot.slane %v17707_v29, 5  ;;  %v22023_v37 = vld [vmem:[%s28314_s1 + $0x384] ss:$8 sps:$4 sm:$0xff]   ;;  %v4248_v38 = vrot.slane %v17706_v9, 5 }
 0x210   :  { %v10996_v34 = vld [vmem:[#allocation2 + $0x638] sm:$0xff]  ;;  %v10995_v35 = vld [vmem:[#allocation2 + $0x630] sm:$0xff]  ;;  %6912 = vmatprep.subr.bf16.mxu1 %v22013_v12  ;;  %3769 = vst [vmem:[#allocation2 + $0x678] sm:$0xf] %v3608_v28  ;;  %3768 = vst [vmem:[#allocation2 + $0x670] sm:$0xf] %v3607_v32 }
 0x211   :  { %12199 = vmatprep.mubr.bf16.mxu0 %v10996_v34  ;;  %v22014_v39 = vld [vmem:[%s28314_s1 + $0x1870] ss:$8 sps:$4 sm:$0xff]   ;;  %4409 = vst [vmem:[#allocation2 + $0x678] sm:$0xf0] %v4249_v36  ;;  %v22021_v40 = vld [vmem:[%s28314_s1 + $0x380] ss:$8 sps:$4 sm:$0xff]   ;;  %13129 = vmatpush1.bf16.msra.mxu0 %v22008_v26 }
 0x212   :  { %12200 = vmatmul.mubr.bf16.gmra.mrb[12].mxu0 %v10995_v35  ;;  %4408 = vst [vmem:[#allocation2 + $0x670] sm:$0xf0] %v4248_v38  ;;  %v22026_v41 = vld [vmem:[%s28314_s1 + $0x1884] ss:$8 sps:$4 sm:$0xff]   ;;  %v22029_v42 = vld [vmem:[%s28314_s1 + $0x394] ss:$8 sps:$4 sm:$0xff]   ;;  %13130 = vmatprep.subr.bf16.mxu0 %v22016_v33 }
 0x213   :  { %6913 = vmatpush1.bf16.msra.mxu1 %v22011_v27  ;;  %v61_v58 = vld [vmem:[%s28315_s0 + $0x150] sm:$0xff]  ;;  %v3212_v44 = vld [vmem:[%s28315_s0 + $0x198] sm:$0xee]  ;;  %v3216_v45 = vld [vmem:[%s28315_s0 + $0x1b8] sm:$0x11] }
 0x214   :  { %6914 = vmatprep.subr.bf16.mxu1 %v22023_v37  ;;  %v17105_v43 = vcombine.high %v61_v58, %v61_v58  ;;  %v17162_v30 = vld [vmem:[%s28315_s0 + $0x3d0] sm:$0xff]  ;;  %v17104_v46 = vcombine.low %v61_v58, %v61_v58  ;;  %v17555_v50 = vcombine.high %v3212_v44, %v3216_v45  ;;  %v17631_v51 = vld [vmem:[%s28315_s0 + $0x418] sm:$0xee]  ;;  %v17554_v54 = vcombine.low %v3212_v44, %v3216_v45  ;;  %v17635_v55 = vld [vmem:[%s28315_s0 + $0x438] sm:$0x11] }
 0x215   :  { %v4479_v47 = vld [vmem:[#allocation2 + $0x128] sm:$0xff]  ;;  %v4478_v48 = vld [vmem:[#allocation2 + $0x120] sm:$0xff]  ;;  %v17225_v49 = vcombine.high %v17162_v30, %v17162_v30  ;;  %v17224_v52 = vcombine.low %v17162_v30, %v17162_v30  ;;  %13131 = vmatpush1.bf16.msra.mxu0 %v22014_v39  ;;  %v22027_v57 = vld [vmem:[%s28314_s1 + $0x390] ss:$8 sps:$4 sm:$0xff]   ;;  %v17715_v60 = vcombine.high %v17631_v51, %v17635_v55  ;;  %v17714_v62 = vcombine.low %v17631_v51, %v17635_v55 }
 0x216   :  { %6857 = vmatprep.mubr.bf16.mxu1 %v4479_v47  ;;  %404 = vst [vmem:[#allocation2 + $0x168] sm:$0xf] %v17105_v43  ;;  %403 = vst [vmem:[#allocation2 + $0x160] sm:$0xf] %v17104_v46  ;;  %v22024_v56 = vld [vmem:[%s28314_s1 + $0x1880] ss:$8 sps:$4 sm:$0xff]   ;;  %13132 = vmatprep.subr.bf16.mxu0 %v22026_v41 }
 0x217   :  { %6858 = vmatmul.mubr.bf16.gmra.mrb[16].mxu1 %v4478_v48  ;;  %805 = vst [vmem:[#allocation2 + $0x168] sm:$0xf0] %v17225_v49  ;;  %v3616_v59 = vrot.slane %v17555_v50, 1  ;;  %804 = vst [vmem:[#allocation2 + $0x160] sm:$0xf0] %v17224_v52  ;;  %v3615_v61 = vrot.slane %v17554_v54, 1 }
 0x218   :  { %6915 = vmatpush1.bf16.msra.mxu1 %v22021_v40  ;;  %v22032_v63 = vld [vmem:[%s28314_s1 + $0x1894] ss:$8 sps:$4 sm:$0xff]   ;;  %v4257_v31 = vrot.slane %v17715_v60, 5  ;;  %v22039_v2 = vld [vmem:[%s28314_s1 + $0x3a4] ss:$8 sps:$4 sm:$0xff]   ;;  %v4256_v3 = vrot.slane %v17714_v62, 5 }
 0x219   :  { %v11004_v0 = vld [vmem:[#allocation2 + $0x678] sm:$0xff]  ;;  %v11003_v1 = vld [vmem:[#allocation2 + $0x670] sm:$0xff]  ;;  %6916 = vmatprep.subr.bf16.mxu1 %v22029_v42  ;;  %3777 = vst [vmem:[#allocation2 + $0x6b8] sm:$0xf] %v3616_v59  ;;  %3776 = vst [vmem:[#allocation2 + $0x6b0] sm:$0xf] %v3615_v61  ;;  %13133 = vmatpush1.bf16.msra.mxu0 %v22024_v56 }
 0x21a   :  { %12209 = vmatprep.mubr.bf16.mxu0 %v11004_v0  ;;  %v22030_v4 = vld [vmem:[%s28314_s1 + $0x1890] ss:$8 sps:$4 sm:$0xff]   ;;  %4417 = vst [vmem:[#allocation2 + $0x6b8] sm:$0xf0] %v4257_v31  ;;  %v22037_v5 = vld [vmem:[%s28314_s1 + $0x3a0] ss:$8 sps:$4 sm:$0xff]   ;;  %13134 = vmatprep.subr.bf16.mxu0 %v22032_v63 }
 0x21b   :  { %12210 = vmatmul.mubr.bf16.gmra.mrb[16].mxu0 %v11003_v1  ;;  %4416 = vst [vmem:[#allocation2 + $0x6b0] sm:$0xf0] %v4256_v3  ;;  %v22042_v6 = vld [vmem:[%s28314_s1 + $0x18a4] ss:$8 sps:$4 sm:$0xff]   ;;  %v22045_v7 = vld [vmem:[%s28314_s1 + $0x3b4] ss:$8 sps:$4 sm:$0xff]  }
 0x21c   :  { %6917 = vmatpush1.bf16.msra.mxu1 %v22027_v57  ;;  %v65_v8 = vld [vmem:[%s28315_s0 + $0x190] sm:$0xff]  ;;  %v3220_v12 = vld [vmem:[%s28315_s0 + $0x1d8] sm:$0xee]  ;;  %v3224_v13 = vld [vmem:[%s28315_s0 + $0x1f8] sm:$0x11] }
 0x21d   :  { %6918 = vmatprep.subr.bf16.mxu1 %v22039_v2  ;;  %v17113_v10 = vcombine.high %v65_v8, %v65_v8  ;;  %v17166_v11 = vld [vmem:[%s28315_s0 + $0x410] sm:$0xff]  ;;  %v17112_v14 = vcombine.low %v65_v8, %v65_v8  ;;  %v17563_v18 = vcombine.high %v3220_v12, %v3224_v13  ;;  %v17639_v19 = vld [vmem:[%s28315_s0 + $0x458] sm:$0xee]  ;;  %v17562_v21 = vcombine.low %v3220_v12, %v3224_v13  ;;  %v17643_v22 = vld [vmem:[%s28315_s0 + $0x478] sm:$0x11] }
 0x21e   :  { %v4487_v15 = vld [vmem:[#allocation2 + $0x168] sm:$0xff]  ;;  %v4486_v16 = vld [vmem:[#allocation2 + $0x160] sm:$0xff]  ;;  %v17233_v17 = vcombine.high %v17166_v11, %v17166_v11  ;;  %v17232_v20 = vcombine.low %v17166_v11, %v17166_v11  ;;  %13135 = vmatpush1.bf16.msra.mxu0 %v22030_v4  ;;  %v22043_v23 = vld [vmem:[%s28314_s1 + $0x3b0] ss:$8 sps:$4 sm:$0xff]   ;;  %v17723_v25 = vcombine.high %v17639_v19, %v17643_v22  ;;  %v17722_v27 = vcombine.low %v17639_v19, %v17643_v22 }
 0x21f   :  { %6867 = vmatprep.mubr.bf16.mxu1 %v4487_v15  ;;  %412 = vst [vmem:[#allocation2 + $0x1a8] sm:$0xf] %v17113_v10  ;;  %411 = vst [vmem:[#allocation2 + $0x1a0] sm:$0xf] %v17112_v14  ;;  %v22040_v53 = vld [vmem:[%s28314_s1 + $0x18a0] ss:$8 sps:$4 sm:$0xff]   ;;  %13136 = vmatprep.subr.bf16.mxu0 %v22042_v6 }
 0x220   :  { %6868 = vmatmul.mubr.bf16.gmra.mrb[20].mxu1 %v4486_v16  ;;  %813 = vst [vmem:[#allocation2 + $0x1a8] sm:$0xf0] %v17233_v17  ;;  %v3624_v24 = vrot.slane %v17563_v18, 1  ;;  %812 = vst [vmem:[#allocation2 + $0x1a0] sm:$0xf0] %v17232_v20  ;;  %v3623_v26 = vrot.slane %v17562_v21, 1 }
 0x221   :  { %6919 = vmatpush1.bf16.msra.mxu1 %v22037_v5  ;;  %v22048_v28 = vld [vmem:[%s28314_s1 + $0x18b4] ss:$8 sps:$4 sm:$0xff]   ;;  %v4265_v9 = vrot.slane %v17723_v25, 5  ;;  %v22055_v33 = vld [vmem:[%s28314_s1 + $0x3c4] ss:$8 sps:$4 sm:$0xff]   ;;  %v4264_v34 = vrot.slane %v17722_v27, 5 }
 0x222   :  { %v11012_v29 = vld [vmem:[#allocation2 + $0x6b8] sm:$0xff]  ;;  %v11011_v32 = vld [vmem:[#allocation2 + $0x6b0] sm:$0xff]  ;;  %6920 = vmatprep.subr.bf16.mxu1 %v22045_v7  ;;  %3785 = vst [vmem:[#allocation2 + $0x6f8] sm:$0xf] %v3624_v24  ;;  %3784 = vst [vmem:[#allocation2 + $0x6f0] sm:$0xf] %v3623_v26  ;;  %13137 = vmatpush1.bf16.msra.mxu0 %v22040_v53 }
 0x223   :  { %12219 = vmatprep.mubr.bf16.mxu0 %v11012_v29  ;;  %v22046_v35 = vld [vmem:[%s28314_s1 + $0x18b0] ss:$8 sps:$4 sm:$0xff]   ;;  %4425 = vst [vmem:[#allocation2 + $0x6f8] sm:$0xf0] %v4265_v9  ;;  %v22053_v36 = vld [vmem:[%s28314_s1 + $0x3c0] ss:$8 sps:$4 sm:$0xff]   ;;  %13138 = vmatprep.subr.bf16.mxu0 %v22048_v28 }
 0x224   :  { %12220 = vmatmul.mubr.bf16.gmra.mrb[20].mxu0 %v11011_v32  ;;  %4424 = vst [vmem:[#allocation2 + $0x6f0] sm:$0xf0] %v4264_v34  ;;  %v22058_v37 = vld [vmem:[%s28314_s1 + $0x18c4] ss:$8 sps:$4 sm:$0xff]   ;;  %v22061_v38 = vld [vmem:[%s28314_s1 + $0x3d4] ss:$8 sps:$4 sm:$0xff]  }
 0x225   :  { %6921 = vmatpush1.bf16.msra.mxu1 %v22043_v23  ;;  %v69_v39 = vld [vmem:[%s28315_s0 + $0x1d0] sm:$0xff]  ;;  %v3228_v42 = vld [vmem:[%s28315_s0 + $0x218] sm:$0xee]  ;;  %v3232_v58 = vld [vmem:[%s28315_s0 + $0x238] sm:$0x11] }
 0x226   :  { %6922 = vmatprep.subr.bf16.mxu1 %v22055_v33  ;;  %v17121_v40 = vcombine.high %v69_v39, %v69_v39  ;;  %v17170_v41 = vld [vmem:[%s28315_s0 + $0x450] sm:$0xff]  ;;  %v17120_v43 = vcombine.low %v69_v39, %v69_v39  ;;  %v17571_v46 = vcombine.high %v3228_v42, %v3232_v58  ;;  %v17647_v47 = vld [vmem:[%s28315_s0 + $0x498] sm:$0xee]  ;;  %v17570_v49 = vcombine.low %v3228_v42, %v3232_v58  ;;  %v17651_v50 = vld [vmem:[%s28315_s0 + $0x4b8] sm:$0x11] }
 0x227   :  { %v4495_v30 = vld [vmem:[#allocation2 + $0x1a8] sm:$0xff]  ;;  %v4494_v44 = vld [vmem:[#allocation2 + $0x1a0] sm:$0xff]  ;;  %v17241_v45 = vcombine.high %v17170_v41, %v17170_v41  ;;  %v17240_v48 = vcombine.low %v17170_v41, %v17170_v41  ;;  %13139 = vmatpush1.bf16.msra.mxu0 %v22046_v35  ;;  %v22059_v52 = vld [vmem:[%s28314_s1 + $0x3d0] ss:$8 sps:$4 sm:$0xff]   ;;  %v17731_v55 = vcombine.high %v17647_v47, %v17651_v50  ;;  %v17730_v57 = vcombine.low %v17647_v47, %v17651_v50 }
 0x228   :  { %6877 = vmatprep.mubr.bf16.mxu1 %v4495_v30  ;;  %420 = vst [vmem:[#allocation2 + $0x1e8] sm:$0xf] %v17121_v40  ;;  %419 = vst [vmem:[#allocation2 + $0x1e0] sm:$0xf] %v17120_v43  ;;  %v22056_v51 = vld [vmem:[%s28314_s1 + $0x18c0] ss:$8 sps:$4 sm:$0xff]   ;;  %13140 = vmatprep.subr.bf16.mxu0 %v22058_v37 }
 0x229   :  { %6878 = vmatmul.mubr.bf16.gmra.mrb[24].mxu1 %v4494_v44  ;;  %821 = vst [vmem:[#allocation2 + $0x1e8] sm:$0xf0] %v17241_v45  ;;  %v3632_v54 = vrot.slane %v17571_v46, 1  ;;  %820 = vst [vmem:[#allocation2 + $0x1e0] sm:$0xf0] %v17240_v48  ;;  %v3631_v56 = vrot.slane %v17570_v49, 1 }
 0x22a   :  { %6923 = vmatpush1.bf16.msra.mxu1 %v22053_v36  ;;  %v22064_v59 = vld [vmem:[%s28314_s1 + $0x18d4] ss:$8 sps:$4 sm:$0xff]   ;;  %v4273_v62 = vrot.slane %v17731_v55, 5  ;;  %v22071_v63 = vld [vmem:[%s28314_s1 + $0x3e4] ss:$8 sps:$4 sm:$0xff]   ;;  %v4272_v0 = vrot.slane %v17730_v57, 5 }
 0x22b   :  { %v11020_v60 = vld [vmem:[#allocation2 + $0x6f8] sm:$0xff]  ;;  %v11019_v61 = vld [vmem:[#allocation2 + $0x6f0] sm:$0xff]  ;;  %6924 = vmatprep.subr.bf16.mxu1 %v22061_v38  ;;  %3793 = vst [vmem:[#allocation2 + $0x738] sm:$0xf] %v3632_v54  ;;  %3792 = vst [vmem:[#allocation2 + $0x730] sm:$0xf] %v3631_v56  ;;  %13141 = vmatpush1.bf16.msra.mxu0 %v22056_v51 }
 0x22c   :  { %12229 = vmatprep.mubr.bf16.mxu0 %v11020_v60  ;;  %v22062_v1 = vld [vmem:[%s28314_s1 + $0x18d0] ss:$8 sps:$4 sm:$0xff]   ;;  %4433 = vst [vmem:[#allocation2 + $0x738] sm:$0xf0] %v4273_v62  ;;  %4432 = vst [vmem:[#allocation2 + $0x730] sm:$0xf0] %v4272_v0  ;;  %13142 = vmatprep.subr.bf16.mxu0 %v22064_v59 }
 0x22d   :  { %12230 = vmatmul.mubr.bf16.gmra.mrb[24].mxu0 %v11019_v61  ;;  %v22069_v31 = vld [vmem:[%s28314_s1 + $0x3e0] ss:$8 sps:$4 sm:$0xff]   ;;  %v22074_v2 = vld [vmem:[%s28314_s1 + $0x18e4] ss:$8 sps:$4 sm:$0xff]   ;;  %v42_v3 = vld [vmem:[%s28315_s0 + $0x18] sm:$0xff] }
 0x22e   :  { %6925 = vmatpush1.bf16.msra.mxu1 %v22059_v52  ;;  %v22077_v4 = vld [vmem:[%s28314_s1 + $0x3f4] ss:$8 sps:$4 sm:$0xff]   ;;  %v17066_v5 = vcombine.low %v42_v3, %v42_v3  ;;  %v17067_v6 = vcombine.high %v42_v3, %v42_v3  ;;  %v22072_v13 = vld [vmem:[%s28314_s1 + $0x18e0] ss:$8 sps:$4 sm:$0xff]   ;;  %v22075_v14 = vld [vmem:[%s28314_s1 + $0x3f0] ss:$8 sps:$4 sm:$0xff]  }
 0x22f   :  { %6926 = vmatprep.subr.bf16.mxu1 %v22071_v63  ;;  %v17143_v7 = vld [vmem:[%s28315_s0 + $0x298] sm:$0xff]  ;;  %13143 = vmatpush1.bf16.msra.mxu0 %v22062_v1  ;;  %v12284_v18 = vld [vmem:[#allocation2 + $0x88] sm:$0xff]  ;;  %v12283_v32 = vld [vmem:[#allocation2 + $0x80] sm:$0xff] }
 0x230   :  { %v4503_v8 = vld [vmem:[#allocation2 + $0x1e8] sm:$0xff]  ;;  %v4502_v10 = vld [vmem:[#allocation2 + $0x1e0] sm:$0xff]  ;;  %v17186_v11 = vcombine.low %v17143_v7, %v17143_v7  ;;  %v17187_v12 = vcombine.high %v17143_v7, %v17143_v7  ;;  %365 = vst [vmem:[#allocation2 + $0x30] sm:$0xf] %v17066_v5  ;;  %366 = vst [vmem:[#allocation2 + $0x38] sm:$0xf] %v17067_v6  ;;  %13144 = vmatprep.subr.bf16.mxu0 %v22074_v2 }
 0x231   :  { %6887 = vmatprep.mubr.bf16.mxu1 %v4503_v8  ;;  %v22080_v15 = vld [vmem:[%s28314_s1 + $0x18f4] ss:$8 sps:$4 sm:$0xff]   ;;  %v22087_v19 = vld [vmem:[%s28314_s1 + $0x804] ss:$8 sps:$4 sm:$0xff]   ;;  %v22078_v21 = vld [vmem:[%s28314_s1 + $0x18f0] ss:$8 sps:$4 sm:$0xff]  }
 0x232   :  { %6888 = vmatmul.mubr.bf16.gmra.mrb[28].mxu1 %v4502_v10  ;;  %766 = vst [vmem:[#allocation2 + $0x30] sm:$0xf0] %v17186_v11  ;;  %767 = vst [vmem:[#allocation2 + $0x38] sm:$0xf0] %v17187_v12  ;;  %v46_v20 = vld [vmem:[%s28315_s0 + $0x58] sm:$0xff]  ;;  %v12292_v36 = vld [vmem:[#allocation2 + $0xc8] sm:$0xff] }
 0x233   :  { %6927 = vmatpush1.bf16.msra.mxu1 %v22069_v31  ;;  %v11028_v16 = vld [vmem:[#allocation2 + $0x738] sm:$0xff]  ;;  %v11027_v17 = vld [vmem:[#allocation2 + $0x730] sm:$0xff]  ;;  %13145 = vmatpush1.bf16.msra.mxu0 %v22072_v13  ;;  %v17075_v22 = vcombine.high %v46_v20, %v46_v20  ;;  %v17074_v23 = vcombine.low %v46_v20, %v46_v20  ;;  %v22085_v24 = vld [vmem:[%s28314_s1 + $0x800] ss:$8 sps:$4 sm:$0xff]  }
 0x234   :  { %6928 = vmatprep.subr.bf16.mxu1 %v22077_v4  ;;  %12239 = vmatprep.mubr.bf16.mxu0 %v11028_v16  ;;  %v17147_v53 = vld [vmem:[%s28315_s0 + $0x2d8] sm:$0xff]  ;;  %v22090_v25 = vld [vmem:[%s28314_s1 + $0x1904] ss:$8 sps:$4 sm:$0xff]   ;;  %v22088_v33 = vld [vmem:[%s28314_s1 + $0x1900] ss:$8 sps:$4 sm:$0xff]  }
 0x235   :  { %12240 = vmatmul.mubr.bf16.gmra.mrb[28].mxu0 %v11027_v17  ;;  %13146 = vmatprep.subr.bf16.mxu0 %v22080_v15  ;;  %v17195_v26 = vcombine.high %v17147_v53, %v17147_v53  ;;  %v17194_v27 = vcombine.low %v17147_v53, %v17147_v53  ;;  %v22093_v9 = vld [vmem:[%s28314_s1 + $0x814] ss:$8 sps:$4 sm:$0xff]   ;;  %374 = vst [vmem:[#allocation2 + $0x78] sm:$0xf] %v17075_v22  ;;  %373 = vst [vmem:[#allocation2 + $0x70] sm:$0xf] %v17074_v23 }
 0x236   :  { %13148 = vmatprep.mubr.bf16.mxu0 %v12284_v18  ;;  %v22091_v34 = vld [vmem:[%s28314_s1 + $0x810] ss:$8 sps:$4 sm:$0xff]   ;;  %v22096_v35 = vld [vmem:[%s28314_s1 + $0x1914] ss:$8 sps:$4 sm:$0xff]   ;;  %v22103_v37 = vld [vmem:[%s28314_s1 + $0x824] ss:$8 sps:$4 sm:$0xff]  }
 0x237   :  { %6929 = vmatpush1.bf16.msra.mxu1 %v22075_v14  ;;  %775 = vst [vmem:[#allocation2 + $0x78] sm:$0xf0] %v17195_v26  ;;  %774 = vst [vmem:[#allocation2 + $0x70] sm:$0xf0] %v17194_v27  ;;  %13147 = vmatpush1.bf16.msra.mxu0 %v22078_v21  ;;  %v22094_v38 = vld [vmem:[%s28314_s1 + $0x1910] ss:$8 sps:$4 sm:$0xff]  }
 0x238   :  { %7844 = vmatprep.subr.bf16.mxu1 %v22087_v19  ;;  %13229 = vmatprep.subr.bf16.mxu0 %v22090_v25  ;;  %v50_v39 = vld [vmem:[%s28315_s0 + $0x98] sm:$0xff]  ;;  %v22101_v41 = vld [vmem:[%s28314_s1 + $0x820] ss:$8 sps:$4 sm:$0xff]   ;;  %v22106_v30 = vld [vmem:[%s28314_s1 + $0x1924] ss:$8 sps:$4 sm:$0xff]  }
 0x239   :  { %v4449_v28 = vld [vmem:[#allocation2 + $0x38] sm:$0xff]  ;;  %v4448_v29 = vld [vmem:[#allocation2 + $0x30] sm:$0xff]  ;;  %v17083_v42 = vcombine.high %v50_v39, %v50_v39  ;;  %v17082_v43 = vcombine.low %v50_v39, %v50_v39  ;;  %v12291_v48 = vld [vmem:[#allocation2 + $0xc0] sm:$0xff] }
 0x23a   :  { %6930 = vmatprep.mubr.bf16.mxu1 %v4449_v28  ;;  %v17151_v40 = vld [vmem:[%s28315_s0 + $0x318] sm:$0xff]  ;;  %v22104_v49 = vld [vmem:[%s28314_s1 + $0x1920] ss:$8 sps:$4 sm:$0xff]   ;;  %v22119_v54 = vld [vmem:[%s28314_s1 + $0x844] ss:$8 sps:$4 sm:$0xff]  }
 0x23b   :  { %6931 = vmatmul.mubr.bf16.vlgmr.msra.gmra.mrb[0].mxu1 %v4448_v29  ;;  %v17203_v58 = vcombine.high %v17151_v40, %v17151_v40  ;;  %v22109_v44 = vld [vmem:[%s28314_s1 + $0x834] ss:$8 sps:$4 sm:$0xff]   ;;  %v17202_v45 = vcombine.low %v17151_v40, %v17151_v40  ;;  %382 = vst [vmem:[#allocation2 + $0xb8] sm:$0xf] %v17083_v42  ;;  %381 = vst [vmem:[#allocation2 + $0xb0] sm:$0xf] %v17082_v43 }
 0x23c   :  { %7845 = vmatpush1.bf16.msra.mxu1 %v22085_v24  ;;  %v22107_v50 = vld [vmem:[%s28314_s1 + $0x830] ss:$8 sps:$4 sm:$0xff]   ;;  %v22112_v51 = vld [vmem:[%s28314_s1 + $0x1934] ss:$8 sps:$4 sm:$0xff]   ;;  %v12300_v52 = vld [vmem:[#allocation2 + $0x108] sm:$0xff] }
 0x23d   :  { %7846 = vmatprep.subr.bf16.mxu1 %v22093_v9  ;;  %13149 = vmatmul.mubr.bf16.vlgmr.msra.gmra.mrb[0].mxu0 %v12283_v32  ;;  %783 = vst [vmem:[#allocation2 + $0xb8] sm:$0xf0] %v17203_v58  ;;  %782 = vst [vmem:[#allocation2 + $0xb0] sm:$0xf0] %v17202_v45  ;;  %v54_v55 = vld [vmem:[%s28315_s0 + $0xd8] sm:$0xff]  ;;  %v12299_v2 = vld [vmem:[#allocation2 + $0x100] sm:$0xff] }
 0x23e   :  { %13230 = vmatpush1.bf16.msra.mxu0 %v22088_v33  ;;  %13158 = vmatprep.mubr.bf16.mxu0 %v12292_v36  ;;  %v4457_v46 = vld [vmem:[#allocation2 + $0x78] sm:$0xff]  ;;  %v4456_v47 = vld [vmem:[#allocation2 + $0x70] sm:$0xff]  ;;  %v17091_v57 = vcombine.high %v54_v55, %v54_v55  ;;  %v17090_v60 = vcombine.low %v54_v55, %v54_v55  ;;  %v22117_v63 = vld [vmem:[%s28314_s1 + $0x840] ss:$8 sps:$4 sm:$0xff]  }
 0x23f   :  { %13231 = vmatprep.subr.bf16.mxu0 %v22096_v35  ;;  %6940 = vmatprep.mubr.bf16.mxu1 %v4457_v46  ;;  %v17155_v56 = vld [vmem:[%s28315_s0 + $0x358] sm:$0xff]  ;;  %v22122_v0 = vld [vmem:[%s28314_s1 + $0x1944] ss:$8 sps:$4 sm:$0xff]   ;;  %v22120_v4 = vld [vmem:[%s28314_s1 + $0x1940] ss:$8 sps:$4 sm:$0xff]  }
 0x240   :  { %7847 = vmatpush1.bf16.msra.mxu1 %v22091_v34  ;;  %v17211_v59 = vcombine.high %v17155_v56, %v17155_v56  ;;  %v17210_v61 = vcombine.low %v17155_v56, %v17155_v56  ;;  %v22110_v62 = vld [vmem:[%s28314_s1 + $0x1930] ss:$8 sps:$4 sm:$0xff]   ;;  %390 = vst [vmem:[#allocation2 + $0xf8] sm:$0xf] %v17091_v57  ;;  %389 = vst [vmem:[#allocation2 + $0xf0] sm:$0xf] %v17090_v60 }
 0x241   :  { %7848 = vmatprep.subr.bf16.mxu1 %v22103_v37  ;;  %v22125_v3 = vld [vmem:[%s28314_s1 + $0x854] ss:$8 sps:$4 sm:$0xff]   ;;  %v22123_v5 = vld [vmem:[%s28314_s1 + $0x850] ss:$8 sps:$4 sm:$0xff]   ;;  %v12308_v7 = vld [vmem:[#allocation2 + $0x148] sm:$0xff] }
 0x242   :  { %13232 = vmatpush1.bf16.msra.mxu0 %v22094_v38  ;;  %791 = vst [vmem:[#allocation2 + $0xf8] sm:$0xf0] %v17211_v59  ;;  %790 = vst [vmem:[#allocation2 + $0xf0] sm:$0xf0] %v17210_v61  ;;  %v22128_v6 = vld [vmem:[%s28314_s1 + $0x1954] ss:$8 sps:$4 sm:$0xff]  }
 0x243   :  { %6941 = vmatmul.mubr.bf16.gmra.mrb[4].mxu1 %v4456_v47  ;;  %13233 = vmatprep.subr.bf16.mxu0 %v22106_v30  ;;  %v58_v8 = vld [vmem:[%s28315_s0 + $0x118] sm:$0xff]  ;;  %v22135_v10 = vld [vmem:[%s28314_s1 + $0x864] ss:$8 sps:$4 sm:$0xff]   ;;  %v22133_v18 = vld [vmem:[%s28314_s1 + $0x860] ss:$8 sps:$4 sm:$0xff]  }
 0x244   :  { %7849 = vmatpush1.bf16.msra.mxu1 %v22101_v41  ;;  %v4465_v1 = vld [vmem:[#allocation2 + $0xb8] sm:$0xff]  ;;  %v4464_v31 = vld [vmem:[#allocation2 + $0xb0] sm:$0xff]  ;;  %v17099_v11 = vcombine.high %v58_v8, %v58_v8  ;;  %v17098_v13 = vcombine.low %v58_v8, %v58_v8  ;;  %v22138_v19 = vld [vmem:[%s28314_s1 + $0x1964] ss:$8 sps:$4 sm:$0xff]  }
 0x245   :  { %7850 = vmatprep.subr.bf16.mxu1 %v22109_v44  ;;  %13159 = vmatmul.mubr.bf16.gmra.mrb[4].mxu0 %v12291_v48  ;;  %v17159_v12 = vld [vmem:[%s28315_s0 + $0x398] sm:$0xff]  ;;  %v12307_v22 = vld [vmem:[#allocation2 + $0x140] sm:$0xff]  ;;  %v12316_v25 = vld [vmem:[#allocation2 + $0x188] sm:$0xff] }
 0x246   :  { %13234 = vmatpush1.bf16.msra.mxu0 %v22104_v49  ;;  %13168 = vmatprep.mubr.bf16.mxu0 %v12300_v52  ;;  %v22126_v14 = vld [vmem:[%s28314_s1 + $0x1950] ss:$8 sps:$4 sm:$0xff]   ;;  %v17219_v15 = vcombine.high %v17159_v12, %v17159_v12  ;;  %v17218_v16 = vcombine.low %v17159_v12, %v17159_v12  ;;  %398 = vst [vmem:[#allocation2 + $0x138] sm:$0xf] %v17099_v11  ;;  %397 = vst [vmem:[#allocation2 + $0x130] sm:$0xf] %v17098_v13 }
 0x247   :  { %13235 = vmatprep.subr.bf16.mxu0 %v22112_v51  ;;  %6950 = vmatprep.mubr.bf16.mxu1 %v4465_v1  ;;  %v22141_v21 = vld [vmem:[%s28314_s1 + $0x874] ss:$8 sps:$4 sm:$0xff]   ;;  %v22136_v53 = vld [vmem:[%s28314_s1 + $0x1960] ss:$8 sps:$4 sm:$0xff]   ;;  %v22139_v23 = vld [vmem:[%s28314_s1 + $0x870] ss:$8 sps:$4 sm:$0xff]  }
 0x248   :  { %7851 = vmatpush1.bf16.msra.mxu1 %v22107_v50  ;;  %799 = vst [vmem:[#allocation2 + $0x138] sm:$0xf0] %v17219_v15  ;;  %798 = vst [vmem:[#allocation2 + $0x130] sm:$0xf0] %v17218_v16  ;;  %v22144_v24 = vld [vmem:[%s28314_s1 + $0x1974] ss:$8 sps:$4 sm:$0xff]  }
 0x249   :  { %7852 = vmatprep.subr.bf16.mxu1 %v22119_v54  ;;  %v4473_v17 = vld [vmem:[#allocation2 + $0xf8] sm:$0xff]  ;;  %v4472_v20 = vld [vmem:[#allocation2 + $0xf0] sm:$0xff]  ;;  %v22151_v28 = vld [vmem:[%s28314_s1 + $0x884] ss:$8 sps:$4 sm:$0xff]  }
 0x24a   :  { %13236 = vmatpush1.bf16.msra.mxu0 %v22110_v62  ;;  %v62_v26 = vld [vmem:[%s28315_s0 + $0x158] sm:$0xff]  ;;  %v22149_v36 = vld [vmem:[%s28314_s1 + $0x880] ss:$8 sps:$4 sm:$0xff]   ;;  %v22154_v38 = vld [vmem:[%s28314_s1 + $0x1984] ss:$8 sps:$4 sm:$0xff]  }
 0x24b   :  { %6951 = vmatmul.mubr.bf16.gmra.mrb[8].mxu1 %v4464_v31  ;;  %13237 = vmatprep.subr.bf16.mxu0 %v22122_v0  ;;  %v17163_v27 = vld [vmem:[%s28315_s0 + $0x3d8] sm:$0xff]  ;;  %v17107_v29 = vcombine.high %v62_v26, %v62_v26  ;;  %v17106_v9 = vcombine.low %v62_v26, %v62_v26  ;;  %v12315_v39 = vld [vmem:[#allocation2 + $0x180] sm:$0xff]  ;;  %v12324_v57 = vld [vmem:[#allocation2 + $0x1c8] sm:$0xff] }
 0x24c   :  { %7853 = vmatpush1.bf16.msra.mxu1 %v22117_v63  ;;  %6960 = vmatprep.mubr.bf16.mxu1 %v4473_v17  ;;  %v17227_v32 = vcombine.high %v17163_v27, %v17163_v27  ;;  %v17226_v33 = vcombine.low %v17163_v27, %v17163_v27  ;;  %v22142_v34 = vld [vmem:[%s28314_s1 + $0x1970] ss:$8 sps:$4 sm:$0xff]   ;;  %v22152_v40 = vld [vmem:[%s28314_s1 + $0x1980] ss:$8 sps:$4 sm:$0xff]   ;;  %v22157_v41 = vld [vmem:[%s28314_s1 + $0x894] ss:$8 sps:$4 sm:$0xff]  }
 0x24d   :  { %7854 = vmatprep.subr.bf16.mxu1 %v22125_v3  ;;  %13169 = vmatmul.mubr.bf16.gmra.mrb[8].mxu0 %v12299_v2  ;;  %406 = vst [vmem:[#allocation2 + $0x178] sm:$0xf] %v17107_v29  ;;  %405 = vst [vmem:[#allocation2 + $0x170] sm:$0xf] %v17106_v9  ;;  %v22155_v42 = vld [vmem:[%s28314_s1 + $0x890] ss:$8 sps:$4 sm:$0xff]  }
 0x24e   :  { %13238 = vmatpush1.bf16.msra.mxu0 %v22120_v4  ;;  %13178 = vmatprep.mubr.bf16.mxu0 %v12308_v7  ;;  %807 = vst [vmem:[#allocation2 + $0x178] sm:$0xf0] %v17227_v32  ;;  %806 = vst [vmem:[#allocation2 + $0x170] sm:$0xf0] %v17226_v33  ;;  %v22160_v58 = vld [vmem:[%s28314_s1 + $0x1994] ss:$8 sps:$4 sm:$0xff]  }
 0x24f   :  { %13239 = vmatprep.subr.bf16.mxu0 %v22128_v6  ;;  %v4481_v35 = vld [vmem:[#allocation2 + $0x138] sm:$0xff]  ;;  %v4480_v37 = vld [vmem:[#allocation2 + $0x130] sm:$0xff]  ;;  %v71_v46 = vld [vmem:[%s28315_s0 + $0x200] sm:$0xff] }
 0x250   :  { %7855 = vmatpush1.bf16.msra.mxu1 %v22123_v5  ;;  %v66_v43 = vld [vmem:[%s28315_s0 + $0x198] sm:$0xff]  ;;  %v17172_v47 = vld [vmem:[%s28315_s0 + $0x480] sm:$0xff]  ;;  %v17125_v51 = vcombine.high %v71_v46, %v71_v46  ;;  %v17124_v55 = vcombine.low %v71_v46, %v71_v46 }
 0x251   :  { %7856 = vmatprep.subr.bf16.mxu1 %v22135_v10  ;;  %v17167_v30 = vld [vmem:[%s28315_s0 + $0x418] sm:$0xff]  ;;  %v17115_v44 = vcombine.high %v66_v43, %v66_v43  ;;  %v17114_v48 = vcombine.low %v66_v43, %v66_v43  ;;  %v22167_v50 = vld [vmem:[%s28314_s1 + $0x8a4] ss:$8 sps:$4 sm:$0xff]   ;;  %v17245_v52 = vcombine.high %v17172_v47, %v17172_v47  ;;  %v17244_v59 = vcombine.low %v17172_v47, %v17172_v47  ;;  %v22165_v60 = vld [vmem:[%s28314_s1 + $0x8a0] ss:$8 sps:$4 sm:$0xff]  }
 0x252   :  { %13240 = vmatpush1.bf16.msra.mxu0 %v22126_v14  ;;  %v17235_v45 = vcombine.high %v17167_v30, %v17167_v30  ;;  %v22158_v49 = vld [vmem:[%s28314_s1 + $0x1990] ss:$8 sps:$4 sm:$0xff]   ;;  %v17234_v54 = vcombine.low %v17167_v30, %v17167_v30  ;;  %v22170_v61 = vld [vmem:[%s28314_s1 + $0x19a4] ss:$8 sps:$4 sm:$0xff]   ;;  %424 = vst [vmem:[#allocation2 + $0x208] sm:$0xf] %v17125_v51 }
 0x253   :  { %6961 = vmatmul.mubr.bf16.gmra.mrb[12].mxu1 %v4472_v20  ;;  %13241 = vmatprep.subr.bf16.mxu0 %v22138_v19  ;;  %414 = vst [vmem:[#allocation2 + $0x1b8] sm:$0xf] %v17115_v44  ;;  %413 = vst [vmem:[#allocation2 + $0x1b0] sm:$0xf] %v17114_v48  ;;  %v12323_v63 = vld [vmem:[#allocation2 + $0x1c0] sm:$0xff]  ;;  %v70_v2 = vld [vmem:[%s28315_s0 + $0x1d8] sm:$0xff] }
 0x254   :  { %7857 = vmatpush1.bf16.msra.mxu1 %v22133_v18  ;;  %6970 = vmatprep.mubr.bf16.mxu1 %v4481_v35  ;;  %815 = vst [vmem:[#allocation2 + $0x1b8] sm:$0xf0] %v17235_v45  ;;  %825 = vst [vmem:[#allocation2 + $0x208] sm:$0xf0] %v17245_v52  ;;  %v22173_v0 = vld [vmem:[%s28314_s1 + $0x8b4] ss:$8 sps:$4 sm:$0xff]   ;;  %v17123_v3 = vcombine.high %v70_v2, %v70_v2  ;;  %v17122_v7 = vcombine.low %v70_v2, %v70_v2 }
 0x255   :  { %7858 = vmatprep.subr.bf16.mxu1 %v22141_v21  ;;  %13179 = vmatmul.mubr.bf16.gmra.mrb[12].mxu0 %v12307_v22  ;;  %v4489_v56 = vld [vmem:[#allocation2 + $0x178] sm:$0xff]  ;;  %814 = vst [vmem:[#allocation2 + $0x1b0] sm:$0xf0] %v17234_v54  ;;  %423 = vst [vmem:[#allocation2 + $0x200] sm:$0xf] %v17124_v55  ;;  %v4488_v62 = vld [vmem:[#allocation2 + $0x170] sm:$0xff] }
 0x256   :  { %13242 = vmatpush1.bf16.msra.mxu0 %v22136_v53  ;;  %13188 = vmatprep.mubr.bf16.mxu0 %v12316_v25  ;;  %824 = vst [vmem:[#allocation2 + $0x200] sm:$0xf0] %v17244_v59  ;;  %v22168_v1 = vld [vmem:[%s28314_s1 + $0x19a0] ss:$8 sps:$4 sm:$0xff]   ;;  %v22171_v31 = vld [vmem:[%s28314_s1 + $0x8b0] ss:$8 sps:$4 sm:$0xff]  }
 0x257   :  { %13243 = vmatprep.subr.bf16.mxu0 %v22144_v24  ;;  %v17171_v4 = vld [vmem:[%s28315_s0 + $0x458] sm:$0xff]  ;;  %v75_v5 = vld [vmem:[%s28315_s0 + $0x240] sm:$0xff]  ;;  %422 = vst [vmem:[#allocation2 + $0x1f8] sm:$0xf] %v17123_v3  ;;  %421 = vst [vmem:[#allocation2 + $0x1f0] sm:$0xf] %v17122_v7 }
 0x258   :  { %7859 = vmatpush1.bf16.msra.mxu1 %v22139_v23  ;;  %v17176_v6 = vld [vmem:[%s28315_s0 + $0x4c0] sm:$0xff]  ;;  %v22176_v8 = vld [vmem:[%s28314_s1 + $0x19b4] ss:$8 sps:$4 sm:$0xff]   ;;  %v17243_v10 = vcombine.high %v17171_v4, %v17171_v4  ;;  %v17133_v11 = vcombine.high %v75_v5, %v75_v5  ;;  %v17242_v15 = vcombine.low %v17171_v4, %v17171_v4  ;;  %v17132_v16 = vcombine.low %v75_v5, %v75_v5  ;;  %v22174_v19 = vld [vmem:[%s28314_s1 + $0x19b0] ss:$8 sps:$4 sm:$0xff]  }
 0x259   :  { %7860 = vmatprep.subr.bf16.mxu1 %v22151_v28  ;;  %v17253_v12 = vcombine.high %v17176_v6, %v17176_v6  ;;  %v22185_v14 = vld [vmem:[%s28314_s1 + $0x8c4] ss:$8 sps:$4 sm:$0xff]   ;;  %v17252_v17 = vcombine.low %v17176_v6, %v17176_v6  ;;  %v22183_v20 = vld [vmem:[%s28314_s1 + $0x8c0] ss:$8 sps:$4 sm:$0xff]   ;;  %v22193_v23 = vld [vmem:[%s28314_s1 + $0x8d4] ss:$8 sps:$4 sm:$0xff]  }
 0x25a   :  { %13244 = vmatpush1.bf16.msra.mxu0 %v22142_v34  ;;  %823 = vst [vmem:[#allocation2 + $0x1f8] sm:$0xf0] %v17243_v10  ;;  %432 = vst [vmem:[#allocation2 + $0x248] sm:$0xf] %v17133_v11  ;;  %v22190_v21 = vld [vmem:[%s28314_s1 + $0x19c4] ss:$8 sps:$4 sm:$0xff]  }
 0x25b   :  { %6971 = vmatmul.mubr.bf16.gmra.mrb[16].mxu1 %v4480_v37  ;;  %13245 = vmatprep.subr.bf16.mxu0 %v22154_v38  ;;  %v4497_v13 = vld [vmem:[#allocation2 + $0x1b8] sm:$0xff]  ;;  %v12332_v18 = vld [vmem:[#allocation2 + $0x208] sm:$0xff]  ;;  %833 = vst [vmem:[#allocation2 + $0x248] sm:$0xf0] %v17253_v12  ;;  %822 = vst [vmem:[#allocation2 + $0x1f0] sm:$0xf0] %v17242_v15 }
 0x25c   :  { %7861 = vmatpush1.bf16.msra.mxu1 %v22149_v36  ;;  %6980 = vmatprep.mubr.bf16.mxu1 %v4489_v56  ;;  %431 = vst [vmem:[#allocation2 + $0x240] sm:$0xf] %v17132_v16  ;;  %832 = vst [vmem:[#allocation2 + $0x240] sm:$0xf0] %v17252_v17  ;;  %v4496_v22 = vld [vmem:[#allocation2 + $0x1b0] sm:$0xff]  ;;  %v7019_v3 = vld [vmem:[#allocation2 + $0x540] sm:$0xff] }
 0x25d   :  { %7862 = vmatprep.subr.bf16.mxu1 %v22157_v41  ;;  %13189 = vmatmul.mubr.bf16.gmra.mrb[16].mxu0 %v12315_v39  ;;  %v22188_v53 = vld [vmem:[%s28314_s1 + $0x19c0] ss:$8 sps:$4 sm:$0xff]   ;;  %v22191_v25 = vld [vmem:[%s28314_s1 + $0x8d0] ss:$8 sps:$4 sm:$0xff]   ;;  %v22196_v32 = vld [vmem:[%s28314_s1 + $0x19d4] ss:$8 sps:$4 sm:$0xff]  }
 0x25e   :  { %13246 = vmatpush1.bf16.msra.mxu0 %v22152_v40  ;;  %13198 = vmatprep.mubr.bf16.mxu0 %v12324_v57  ;;  %v12331_v24 = vld [vmem:[#allocation2 + $0x200] sm:$0xff]  ;;  %v22194_v39 = vld [vmem:[%s28314_s1 + $0x19d0] ss:$8 sps:$4 sm:$0xff]   ;;  %v22213_v45 = vld [vmem:[%s28314_s1 + $0x8f4] ss:$8 sps:$4 sm:$0xff]  }
 0x25f   :  { %13247 = vmatprep.subr.bf16.mxu0 %v22160_v58  ;;  %v3161_v26 = vld [vmem:[%s28315_s0] sm:$0xee]  ;;  %v3165_v27 = vld [vmem:[%s28315_s0 + $0x20] sm:$0x11]  ;;  %v22211_v48 = vld [vmem:[%s28314_s1 + $0x8f0] ss:$8 sps:$4 sm:$0xff]  }
 0x260   :  { %7863 = vmatpush1.bf16.msra.mxu1 %v22155_v42  ;;  %v17580_v28 = vld [vmem:[%s28315_s0 + $0x280] sm:$0xee]  ;;  %v17584_v29 = vld [vmem:[%s28315_s0 + $0x2a0] sm:$0x11]  ;;  %v17500_v9 = vcombine.low %v3161_v26, %v3165_v27  ;;  %v17501_v33 = vcombine.high %v3161_v26, %v3165_v27  ;;  %v22214_v52 = vld [vmem:[%s28314_s1 + $0x19f0] ss:$8 sps:$4 sm:$0xff]  }
 0x261   :  { %7864 = vmatprep.subr.bf16.mxu1 %v22167_v50  ;;  %v17660_v34 = vcombine.low %v17580_v28, %v17584_v29  ;;  %v4505_v35 = vld [vmem:[#allocation2 + $0x1f8] sm:$0xff]  ;;  %v22205_v37 = vld [vmem:[%s28314_s1 + $0x8e4] ss:$8 sps:$4 sm:$0xff]   ;;  %v17661_v38 = vcombine.high %v17580_v28, %v17584_v29  ;;  %v22203_v58 = vld [vmem:[%s28314_s1 + $0x8e0] ss:$8 sps:$4 sm:$0xff]  }
 0x262   :  { %13248 = vmatpush1.bf16.msra.mxu0 %v22158_v49  ;;  %v12340_v36 = vld [vmem:[#allocation2 + $0x248] sm:$0xff]  ;;  %v3561_v40 = vrot.slane %v17500_v9, 1  ;;  %v3562_v41 = vrot.slane %v17501_v33, 1  ;;  %v4504_v30 = vld [vmem:[#allocation2 + $0x1f0] sm:$0xff]  ;;  %v12286_v50 = vld [vmem:[#allocation2 + $0x98] sm:$0xff] }
 0x263   :  { %6981 = vmatmul.mubr.bf16.gmra.mrb[20].mxu1 %v4488_v62  ;;  %13249 = vmatprep.subr.bf16.mxu0 %v22170_v61  ;;  %v4202_v42 = vrot.slane %v17660_v34, 5  ;;  %v4203_v43 = vrot.slane %v17661_v38, 5  ;;  %v22210_v44 = vld [vmem:[%s28314_s1 + $0x19e4] ss:$8 sps:$4 sm:$0xff]   ;;  %v22208_v46 = vld [vmem:[%s28314_s1 + $0x19e0] ss:$8 sps:$4 sm:$0xff]  }
 0x264   :  { %7865 = vmatpush1.bf16.msra.mxu1 %v22165_v60  ;;  %6990 = vmatprep.mubr.bf16.mxu1 %v4497_v13  ;;  %3723 = vst [vmem:[#allocation2 + $0x508] sm:$0xf] %v3562_v41  ;;  %3722 = vst [vmem:[#allocation2 + $0x500] sm:$0xf] %v3561_v40  ;;  %v12339_v47 = vld [vmem:[#allocation2 + $0x240] sm:$0xff]  ;;  %v12285_v60 = vld [vmem:[#allocation2 + $0x90] sm:$0xff] }
 0x265   :  { %7866 = vmatprep.subr.bf16.mxu1 %v22173_v0  ;;  %13199 = vmatmul.mubr.bf16.gmra.mrb[20].mxu0 %v12323_v63  ;;  %4362 = vst [vmem:[#allocation2 + $0x500] sm:$0xf0] %v4202_v42  ;;  %4363 = vst [vmem:[#allocation2 + $0x508] sm:$0xf0] %v4203_v43  ;;  %v22216_v49 = vld [vmem:[%s28314_s1 + $0x19f4] ss:$8 sps:$4 sm:$0xff]  }
 0x266   :  { %13250 = vmatpush1.bf16.msra.mxu0 %v22168_v1  ;;  %13208 = vmatprep.mubr.bf16.mxu0 %v12332_v18  ;;  %v22219_v51 = vld [vmem:[%s28314_s1 + $0x904] ss:$8 sps:$4 sm:$0xff]   ;;  %v22217_v54 = vld [vmem:[%s28314_s1 + $0x900] ss:$8 sps:$4 sm:$0xff]   ;;  %v22225_v59 = vld [vmem:[%s28314_s1 + $0x914] ss:$8 sps:$4 sm:$0xff]  }
 0x267   :  { %13251 = vmatprep.subr.bf16.mxu0 %v22176_v8  ;;  %v22222_v55 = vld [vmem:[%s28314_s1 + $0x1a04] ss:$8 sps:$4 sm:$0xff]   ;;  %v22220_v62 = vld [vmem:[%s28314_s1 + $0x1a00] ss:$8 sps:$4 sm:$0xff]   ;;  %v22223_v63 = vld [vmem:[%s28314_s1 + $0x910] ss:$8 sps:$4 sm:$0xff]  }
 0x268   :  { %7867 = vmatpush1.bf16.msra.mxu1 %v22171_v31  ;;  %v7020_v61 = vld [vmem:[#allocation2 + $0x548] sm:$0xff]  ;;  %v22228_v0 = vld [vmem:[%s28314_s1 + $0x1a14] ss:$8 sps:$4 sm:$0xff]   ;;  %v22226_v2 = vld [vmem:[%s28314_s1 + $0x1a10] ss:$8 sps:$4 sm:$0xff]  }
 0x269   :  { %7868 = vmatprep.subr.bf16.mxu1 %v22185_v14  ;;  %v12294_v1 = vld [vmem:[#allocation2 + $0xd8] sm:$0xff]  ;;  %v22231_v31 = vld [vmem:[%s28314_s1 + $0x924] ss:$8 sps:$4 sm:$0xff]   ;;  %v22229_v4 = vld [vmem:[%s28314_s1 + $0x920] ss:$8 sps:$4 sm:$0xff]  }
 0x26a   :  { %13252 = vmatpush1.bf16.msra.mxu0 %v22174_v19  ;;  %v22234_v5 = vld [vmem:[%s28314_s1 + $0x1a24] ss:$8 sps:$4 sm:$0xff]   ;;  %v12293_v6 = vld [vmem:[#allocation2 + $0xd0] sm:$0xff]  ;;  %v22232_v10 = vld [vmem:[%s28314_s1 + $0x1a20] ss:$8 sps:$4 sm:$0xff]  }
 0x26b   :  { %6991 = vmatmul.mubr.bf16.gmra.mrb[24].mxu1 %v4496_v22  ;;  %13253 = vmatprep.subr.bf16.mxu0 %v22190_v21  ;;  %v22237_v7 = vld [vmem:[%s28314_s1 + $0x934] ss:$8 sps:$4 sm:$0xff]   ;;  %v7028_v8 = vld [vmem:[#allocation2 + $0x588] sm:$0xff]  ;;  %v22235_v11 = vld [vmem:[%s28314_s1 + $0x930] ss:$8 sps:$4 sm:$0xff]  }
 0x26c   :  { %7869 = vmatpush1.bf16.msra.mxu1 %v22183_v20  ;;  %7000 = vmatprep.mubr.bf16.mxu1 %v4505_v35  ;;  %v7012_v56 = vld [vmem:[#allocation2 + $0x508] sm:$0xff]  ;;  %v7011_v57 = vld [vmem:[#allocation2 + $0x500] sm:$0xff]  ;;  %v22240_v12 = vld [vmem:[%s28314_s1 + $0x1a34] ss:$8 sps:$4 sm:$0xff]  }
 0x26d   :  { %7870 = vmatprep.subr.bf16.mxu1 %v22193_v23  ;;  %13209 = vmatmul.mubr.bf16.gmra.mrb[24].mxu0 %v12331_v24  ;;  %v12302_v13 = vld [vmem:[#allocation2 + $0x118] sm:$0xff]  ;;  %v22243_v14 = vld [vmem:[%s28314_s1 + $0x944] ss:$8 sps:$4 sm:$0xff]   ;;  %v22241_v17 = vld [vmem:[%s28314_s1 + $0x940] ss:$8 sps:$4 sm:$0xff]  }
 0x26e   :  { %13254 = vmatpush1.bf16.msra.mxu0 %v22188_v53  ;;  %13218 = vmatprep.mubr.bf16.mxu0 %v12340_v36  ;;  %v22238_v15 = vld [vmem:[%s28314_s1 + $0x1a30] ss:$8 sps:$4 sm:$0xff]   ;;  %v7027_v16 = vld [vmem:[#allocation2 + $0x580] sm:$0xff]  ;;  %v22249_v20 = vld [vmem:[%s28314_s1 + $0x954] ss:$8 sps:$4 sm:$0xff]  }
 0x26f   :  { %13255 = vmatprep.subr.bf16.mxu0 %v22196_v32  ;;  %v22246_v18 = vld [vmem:[%s28314_s1 + $0x1a44] ss:$8 sps:$4 sm:$0xff]   ;;  %v12301_v19 = vld [vmem:[#allocation2 + $0x110] sm:$0xff]  ;;  %v22244_v21 = vld [vmem:[%s28314_s1 + $0x1a40] ss:$8 sps:$4 sm:$0xff]  }
 0x270   :  { %7871 = vmatpush1.bf16.msra.mxu1 %v22191_v25  ;;  %v7036_v22 = vld [vmem:[#allocation2 + $0x5c8] sm:$0xff]  ;;  %v22247_v53 = vld [vmem:[%s28314_s1 + $0x950] ss:$8 sps:$4 sm:$0xff]   ;;  %v22252_v23 = vld [vmem:[%s28314_s1 + $0x1a54] ss:$8 sps:$4 sm:$0xff]  }
 0x271   :  { %7872 = vmatprep.subr.bf16.mxu1 %v22205_v37  ;;  %v12310_v24 = vld [vmem:[#allocation2 + $0x158] sm:$0xff]  ;;  %v22255_v25 = vld [vmem:[%s28314_s1 + $0x964] ss:$8 sps:$4 sm:$0xff]   ;;  %v22253_v28 = vld [vmem:[%s28314_s1 + $0x960] ss:$8 sps:$4 sm:$0xff]  }
 0x272   :  { %13256 = vmatpush1.bf16.msra.mxu0 %v22194_v39  ;;  %v22250_v26 = vld [vmem:[%s28314_s1 + $0x1a50] ss:$8 sps:$4 sm:$0xff]   ;;  %v7035_v27 = vld [vmem:[#allocation2 + $0x5c0] sm:$0xff]  ;;  %v22261_v9 = vld [vmem:[%s28314_s1 + $0x974] ss:$8 sps:$4 sm:$0xff]  }
 0x273   :  { %7001 = vmatmul.mubr.bf16.gmra.mrb[28].mxu1 %v4504_v30  ;;  %13257 = vmatprep.subr.bf16.mxu0 %v22210_v44  ;;  %v22258_v29 = vld [vmem:[%s28314_s1 + $0x1a64] ss:$8 sps:$4 sm:$0xff]   ;;  %v12309_v32 = vld [vmem:[#allocation2 + $0x150] sm:$0xff]  ;;  %v22256_v33 = vld [vmem:[%s28314_s1 + $0x1a60] ss:$8 sps:$4 sm:$0xff]  }
 0x274   :  { %7873 = vmatpush1.bf16.msra.mxu1 %v22203_v58  ;;  %7876 = vmatprep.mubr.bf16.mxu1 %v7012_v56  ;;  %v7044_v34 = vld [vmem:[#allocation2 + $0x608] sm:$0xff]  ;;  %v22259_v35 = vld [vmem:[%s28314_s1 + $0x970] ss:$8 sps:$4 sm:$0xff]   ;;  %v22264_v36 = vld [vmem:[%s28314_s1 + $0x1a74] ss:$8 sps:$4 sm:$0xff]  }
 0x275   :  { %7874 = vmatprep.subr.bf16.mxu1 %v22213_v45  ;;  %13219 = vmatmul.mubr.bf16.gmra.mrb[28].mxu0 %v12339_v47  ;;  %v12318_v37 = vld [vmem:[#allocation2 + $0x198] sm:$0xff]  ;;  %v22267_v38 = vld [vmem:[%s28314_s1 + $0x984] ss:$8 sps:$4 sm:$0xff]   ;;  %v22265_v30 = vld [vmem:[%s28314_s1 + $0x980] ss:$8 sps:$4 sm:$0xff]  }
 0x276   :  { %13258 = vmatpush1.bf16.msra.mxu0 %v22208_v46  ;;  %13261 = vmatprep.mubr.bf16.mxu0 %v12286_v50  ;;  %v72_v39 = vld [vmem:[%s28315_s0 + $0x208] sm:$0xff]  ;;  %v22262_v40 = vld [vmem:[%s28314_s1 + $0x1a70] ss:$8 sps:$4 sm:$0xff]   ;;  %v7043_v43 = vld [vmem:[#allocation2 + $0x600] sm:$0xff] }
 0x277   :  { %13259 = vmatprep.subr.bf16.mxu0 %v22216_v49  ;;  %v17127_v41 = vcombine.high %v72_v39, %v72_v39  ;;  %v17173_v42 = vld [vmem:[%s28315_s0 + $0x488] sm:$0xff]  ;;  %v17126_v58 = vcombine.low %v72_v39, %v72_v39  ;;  %v12317_v47 = vld [vmem:[#allocation2 + $0x190] sm:$0xff] }
 0x278   :  { %7875 = vmatpush1.bf16.msra.mxu1 %v22211_v48  ;;  %v17247_v44 = vcombine.high %v17173_v42, %v17173_v42  ;;  %v17246_v45 = vcombine.low %v17173_v42, %v17173_v42  ;;  %v22270_v46 = vld [vmem:[%s28314_s1 + $0x1a84] ss:$8 sps:$4 sm:$0xff]   ;;  %v22273_v48 = vld [vmem:[%s28314_s1 + $0x994] ss:$8 sps:$4 sm:$0xff]   ;;  %v22268_v49 = vld [vmem:[%s28314_s1 + $0x1a80] ss:$8 sps:$4 sm:$0xff]  }
 0x279   :  { %7957 = vmatprep.subr.bf16.mxu1 %v22219_v51  ;;  %426 = vst [vmem:[#allocation2 + $0x218] sm:$0xf] %v17127_v41  ;;  %425 = vst [vmem:[#allocation2 + $0x210] sm:$0xf] %v17126_v58  ;;  %v7052_v50 = vld [vmem:[#allocation2 + $0x648] sm:$0xff] }
 0x27a   :  { %13260 = vmatpush1.bf16.msra.mxu0 %v22214_v52  ;;  %827 = vst [vmem:[#allocation2 + $0x218] sm:$0xf0] %v17247_v44  ;;  %826 = vst [vmem:[#allocation2 + $0x210] sm:$0xf0] %v17246_v45  ;;  %v22271_v51 = vld [vmem:[%s28314_s1 + $0x990] ss:$8 sps:$4 sm:$0xff]  }
 0x27b   :  { %7877 = vmatmul.mubr.bf16.vlgmr.msra.gmra.mrb[0].mxu1 %v7011_v57  ;;  %13342 = vmatprep.subr.bf16.mxu0 %v22222_v55  ;;  %v22276_v52 = vld [vmem:[%s28314_s1 + $0x1a94] ss:$8 sps:$4 sm:$0xff]   ;;  %v76_v55 = vld [vmem:[%s28315_s0 + $0x248] sm:$0xff]  ;;  %v22315_v58 = vld [vmem:[%s28314_s1 + $0x9f0] ss:$8 sps:$4 sm:$0xff]  }
 0x27c   :  { %7958 = vmatpush1.bf16.msra.mxu1 %v22217_v54  ;;  %7886 = vmatprep.mubr.bf16.mxu1 %v7020_v61  ;;  %v12326_v54 = vld [vmem:[#allocation2 + $0x1d8] sm:$0xff]  ;;  %v17177_v56 = vld [vmem:[%s28315_s0 + $0x4c8] sm:$0xff]  ;;  %v17134_v61 = vcombine.low %v76_v55, %v76_v55 }
 0x27d   :  { %7959 = vmatprep.subr.bf16.mxu1 %v22225_v59  ;;  %13262 = vmatmul.mubr.bf16.vlgmr.msra.gmra.mrb[0].mxu0 %v12285_v60  ;;  %v22279_v57 = vld [vmem:[%s28314_s1 + $0x9a4] ss:$8 sps:$4 sm:$0xff]   ;;  %v17135_v59 = vcombine.high %v76_v55, %v76_v55  ;;  %v17255_v60 = vcombine.high %v17177_v56, %v17177_v56  ;;  %v22317_v39 = vld [vmem:[%s28314_s1 + $0x9f4] ss:$8 sps:$4 sm:$0xff]   ;;  %v22318_v45 = vld [vmem:[%s28314_s1 + $0x1af0] ss:$8 sps:$4 sm:$0xff]  }
 0x27e   :  { %13343 = vmatpush1.bf16.msra.mxu0 %v22220_v62  ;;  %13271 = vmatprep.mubr.bf16.mxu0 %v12294_v1  ;;  %v17254_v62 = vcombine.low %v17177_v56, %v17177_v56  ;;  %433 = vst [vmem:[#allocation2 + $0x250] sm:$0xf] %v17134_v61  ;;  %v22277_v1 = vld [vmem:[%s28314_s1 + $0x9a0] ss:$8 sps:$4 sm:$0xff]   ;;  %v22323_v44 = vld [vmem:[%s28314_s1 + $0xa04] ss:$8 sps:$4 sm:$0xff]  }
 0x27f   :  { %13344 = vmatprep.subr.bf16.mxu0 %v22228_v0  ;;  %v7051_v0 = vld [vmem:[#allocation2 + $0x640] sm:$0xff]  ;;  %434 = vst [vmem:[#allocation2 + $0x258] sm:$0xf] %v17135_v59  ;;  %835 = vst [vmem:[#allocation2 + $0x258] sm:$0xf0] %v17255_v60  ;;  %v12296_v56 = vld [vmem:[#allocation2 + $0xe8] sm:$0xff] }
 0x280   :  { %7960 = vmatpush1.bf16.msra.mxu1 %v22223_v63  ;;  %v22274_v63 = vld [vmem:[%s28314_s1 + $0x1a90] ss:$8 sps:$4 sm:$0xff]   ;;  %834 = vst [vmem:[#allocation2 + $0x250] sm:$0xf0] %v17254_v62  ;;  %v22332_v55 = vld [vmem:[%s28314_s1 + $0x1b14] ss:$8 sps:$4 sm:$0xff]  }
 0x281   :  { %7961 = vmatprep.subr.bf16.mxu1 %v22231_v31  ;;  %v22282_v31 = vld [vmem:[%s28314_s1 + $0x1aa4] ss:$8 sps:$4 sm:$0xff]   ;;  %v22330_v59 = vld [vmem:[%s28314_s1 + $0x1b10] ss:$8 sps:$4 sm:$0xff]   ;;  %v22333_v61 = vld [vmem:[%s28314_s1 + $0xa20] ss:$8 sps:$4 sm:$0xff]  }
 0x282   :  { %13345 = vmatpush1.bf16.msra.mxu0 %v22226_v2  ;;  %v12325_v2 = vld [vmem:[#allocation2 + $0x1d0] sm:$0xff]  ;;  %v22338_v62 = vld [vmem:[%s28314_s1 + $0x1b24] ss:$8 sps:$4 sm:$0xff]  }
 0x283   :  { %7887 = vmatmul.mubr.bf16.gmra.mrb[4].mxu1 %v7019_v3  ;;  %13346 = vmatprep.subr.bf16.mxu0 %v22234_v5  ;;  %v22280_v3 = vld [vmem:[%s28314_s1 + $0x1aa0] ss:$8 sps:$4 sm:$0xff]   ;;  %v22283_v5 = vld [vmem:[%s28314_s1 + $0x9b0] ss:$8 sps:$4 sm:$0xff]  }
 0x284   :  { %7962 = vmatpush1.bf16.msra.mxu1 %v22229_v4  ;;  %7896 = vmatprep.mubr.bf16.mxu1 %v7028_v8  ;;  %v22285_v4 = vld [vmem:[%s28314_s1 + $0x9b4] ss:$8 sps:$4 sm:$0xff]   ;;  %v3162_v8 = vld [vmem:[%s28315_s0 + $0x8] sm:$0xee] }
 0x285   :  { %7963 = vmatprep.subr.bf16.mxu1 %v22237_v7  ;;  %13272 = vmatmul.mubr.bf16.gmra.mrb[4].mxu0 %v12293_v6  ;;  %v7060_v6 = vld [vmem:[#allocation2 + $0x688] sm:$0xff]  ;;  %v22288_v7 = vld [vmem:[%s28314_s1 + $0x1ab4] ss:$8 sps:$4 sm:$0xff]  }
 0x286   :  { %13347 = vmatpush1.bf16.msra.mxu0 %v22232_v10  ;;  %13281 = vmatprep.mubr.bf16.mxu0 %v12302_v13  ;;  %v3166_v10 = vld [vmem:[%s28315_s0 + $0x28] sm:$0x11]  ;;  %v7021_v60 = vld [vmem:[#allocation2 + $0x550] sm:$0xff] }
 0x287   :  { %13348 = vmatprep.subr.bf16.mxu0 %v22240_v12  ;;  %v17502_v12 = vcombine.low %v3162_v8, %v3166_v10  ;;  %v17503_v13 = vcombine.high %v3162_v8, %v3166_v10  ;;  %v12341_v42 = vld [vmem:[#allocation2 + $0x250] sm:$0xff]  ;;  %v22345_v8 = vld [vmem:[%s28314_s1 + $0xa40] ss:$8 sps:$4 sm:$0xff]   ;;  %v22350_v10 = vld [vmem:[%s28314_s1 + $0x1b44] ss:$8 sps:$4 sm:$0xff]  }
 0x288   :  { %7964 = vmatpush1.bf16.msra.mxu1 %v22235_v11  ;;  %v12334_v11 = vld [vmem:[#allocation2 + $0x218] sm:$0xff] }
 0x289   :  { %7965 = vmatprep.subr.bf16.mxu1 %v22243_v14  ;;  %v17581_v14 = vld [vmem:[%s28315_s0 + $0x288] sm:$0xee] }
 0x28a   :  { %13349 = vmatpush1.bf16.msra.mxu0 %v22238_v15  ;;  %v17585_v15 = vld [vmem:[%s28315_s0 + $0x2a8] sm:$0x11] }
 0x28b   :  { %7897 = vmatmul.mubr.bf16.gmra.mrb[8].mxu1 %v7027_v16  ;;  %13350 = vmatprep.subr.bf16.mxu0 %v22246_v18  ;;  %v22293_v16 = vld [vmem:[%s28314_s1 + $0x9c4] ss:$8 sps:$4 sm:$0xff]   ;;  %v17663_v18 = vcombine.high %v17581_v14, %v17585_v15 }
 0x28c   :  { %7966 = vmatpush1.bf16.msra.mxu1 %v22241_v17  ;;  %7906 = vmatprep.mubr.bf16.mxu1 %v7036_v22  ;;  %v17662_v17 = vcombine.low %v17581_v14, %v17585_v15  ;;  %v7059_v22 = vld [vmem:[#allocation2 + $0x680] sm:$0xff]  ;;  %v7038_v14 = vld [vmem:[#allocation2 + $0x5d8] sm:$0xff] }
 0x28d   :  { %7967 = vmatprep.subr.bf16.mxu1 %v22249_v20  ;;  %13282 = vmatmul.mubr.bf16.gmra.mrb[8].mxu0 %v12301_v19  ;;  %v22286_v19 = vld [vmem:[%s28314_s1 + $0x1ab0] ss:$8 sps:$4 sm:$0xff]   ;;  %v3563_v20 = vrot.slane %v17502_v12, 1  ;;  %v22353_v12 = vld [vmem:[%s28314_s1 + $0xa54] ss:$8 sps:$4 sm:$0xff]  }
 0x28e   :  { %13351 = vmatpush1.bf16.msra.mxu0 %v22244_v21  ;;  %13291 = vmatprep.mubr.bf16.mxu0 %v12310_v24  ;;  %v3564_v21 = vrot.slane %v17503_v13, 1  ;;  %v22291_v24 = vld [vmem:[%s28314_s1 + $0x9c0] ss:$8 sps:$4 sm:$0xff]   ;;  %v22351_v15 = vld [vmem:[%s28314_s1 + $0xa50] ss:$8 sps:$4 sm:$0xff]  }
 0x28f   :  { %13352 = vmatprep.subr.bf16.mxu0 %v22252_v23  ;;  %v4205_v23 = vrot.slane %v17663_v18, 5  ;;  %3724 = vst [vmem:[#allocation2 + $0x510] sm:$0xf] %v3563_v20  ;;  %v22348_v13 = vld [vmem:[%s28314_s1 + $0x1b40] ss:$8 sps:$4 sm:$0xff]  }
 0x290   :  { %7968 = vmatpush1.bf16.msra.mxu1 %v22247_v53  ;;  %v4204_v53 = vrot.slane %v17662_v17, 5  ;;  %3725 = vst [vmem:[#allocation2 + $0x518] sm:$0xf] %v3564_v21  ;;  %v12312_v17 = vld [vmem:[#allocation2 + $0x168] sm:$0xff]  ;;  %v22354_v20 = vld [vmem:[%s28314_s1 + $0x1b50] ss:$8 sps:$4 sm:$0xff]  }
 0x291   :  { %7969 = vmatprep.subr.bf16.mxu1 %v22255_v25  ;;  %v22298_v25 = vld [vmem:[%s28314_s1 + $0x1ac4] ss:$8 sps:$4 sm:$0xff]   ;;  %4365 = vst [vmem:[#allocation2 + $0x518] sm:$0xf0] %v4205_v23  ;;  %v7037_v23 = vld [vmem:[#allocation2 + $0x5d0] sm:$0xff] }
 0x292   :  { %13353 = vmatpush1.bf16.msra.mxu0 %v22250_v26  ;;  %v22296_v26 = vld [vmem:[%s28314_s1 + $0x1ac0] ss:$8 sps:$4 sm:$0xff]   ;;  %4364 = vst [vmem:[#allocation2 + $0x510] sm:$0xf0] %v4204_v53  ;;  %v22359_v18 = vld [vmem:[%s28314_s1 + $0xa64] ss:$8 sps:$4 sm:$0xff]  }
 0x293   :  { %7907 = vmatmul.mubr.bf16.gmra.mrb[12].mxu1 %v7035_v27  ;;  %13354 = vmatprep.subr.bf16.mxu0 %v22258_v29  ;;  %v22301_v27 = vld [vmem:[%s28314_s1 + $0x9d4] ss:$8 sps:$4 sm:$0xff]  }
 0x294   :  { %7970 = vmatpush1.bf16.msra.mxu1 %v22253_v28  ;;  %7916 = vmatprep.mubr.bf16.mxu1 %v7044_v34  ;;  %v7068_v28 = vld [vmem:[#allocation2 + $0x6c8] sm:$0xff]  ;;  %v12333_v29 = vld [vmem:[#allocation2 + $0x210] sm:$0xff] }
 0x295   :  { %7971 = vmatprep.subr.bf16.mxu1 %v22261_v9  ;;  %13292 = vmatmul.mubr.bf16.gmra.mrb[12].mxu0 %v12309_v32  ;;  %v22299_v32 = vld [vmem:[%s28314_s1 + $0x9d0] ss:$8 sps:$4 sm:$0xff]   ;;  %v22304_v9 = vld [vmem:[%s28314_s1 + $0x1ad4] ss:$8 sps:$4 sm:$0xff]   ;;  %v22309_v34 = vld [vmem:[%s28314_s1 + $0x9e4] ss:$8 sps:$4 sm:$0xff]  }
 0x296   :  { %13355 = vmatpush1.bf16.msra.mxu0 %v22256_v33  ;;  %13301 = vmatprep.mubr.bf16.mxu0 %v12318_v37  ;;  %v12342_v33 = vld [vmem:[#allocation2 + $0x258] sm:$0xff]  ;;  %v22307_v37 = vld [vmem:[%s28314_s1 + $0x9e0] ss:$8 sps:$4 sm:$0xff]  }
 0x297   :  { %13356 = vmatprep.subr.bf16.mxu0 %v22264_v36  ;;  %v7067_v36 = vld [vmem:[#allocation2 + $0x6c0] sm:$0xff] }
 0x298   :  { %7972 = vmatpush1.bf16.msra.mxu1 %v22259_v35  ;;  %v22302_v35 = vld [vmem:[%s28314_s1 + $0x1ad0] ss:$8 sps:$4 sm:$0xff]  }
 0x299   :  { %7973 = vmatprep.subr.bf16.mxu1 %v22267_v38  ;;  %v22314_v38 = vld [vmem:[%s28314_s1 + $0x1ae4] ss:$8 sps:$4 sm:$0xff]   ;;  %v7014_v41 = vld [vmem:[#allocation2 + $0x518] sm:$0xff] }
 0x29a   :  { %13357 = vmatpush1.bf16.msra.mxu0 %v22262_v40  ;;  %v22312_v40 = vld [vmem:[%s28314_s1 + $0x1ae0] ss:$8 sps:$4 sm:$0xff]  }
 0x29b   :  { %7917 = vmatmul.mubr.bf16.gmra.mrb[16].mxu1 %v7043_v43  ;;  %13358 = vmatprep.subr.bf16.mxu0 %v22270_v46  ;;  %v22320_v43 = vld [vmem:[%s28314_s1 + $0x1af4] ss:$8 sps:$4 sm:$0xff]   ;;  %v22321_v46 = vld [vmem:[%s28314_s1 + $0xa00] ss:$8 sps:$4 sm:$0xff]  }
 0x29c   :  { %7974 = vmatpush1.bf16.msra.mxu1 %v22265_v30  ;;  %7926 = vmatprep.mubr.bf16.mxu1 %v7052_v50  ;;  %v12288_v30 = vld [vmem:[#allocation2 + $0xa8] sm:$0xff]  ;;  %v22329_v50 = vld [vmem:[%s28314_s1 + $0xa14] ss:$8 sps:$4 sm:$0xff]  }
 0x29d   :  { %7975 = vmatprep.subr.bf16.mxu1 %v22273_v48  ;;  %13302 = vmatmul.mubr.bf16.gmra.mrb[16].mxu0 %v12317_v47  ;;  %v22326_v47 = vld [vmem:[%s28314_s1 + $0x1b04] ss:$8 sps:$4 sm:$0xff]   ;;  %v7013_v48 = vld [vmem:[#allocation2 + $0x510] sm:$0xff] }
 0x29e   :  { %13359 = vmatpush1.bf16.msra.mxu0 %v22268_v49  ;;  %13311 = vmatprep.mubr.bf16.mxu0 %v12326_v54  ;;  %v12287_v49 = vld [vmem:[#allocation2 + $0xa0] sm:$0xff]  ;;  %v22327_v54 = vld [vmem:[%s28314_s1 + $0xa10] ss:$8 sps:$4 sm:$0xff]  }
 0x29f   :  { %13360 = vmatprep.subr.bf16.mxu0 %v22276_v52  ;;  %v22324_v52 = vld [vmem:[%s28314_s1 + $0x1b00] ss:$8 sps:$4 sm:$0xff]  }
 0x2a0   :  { %7976 = vmatpush1.bf16.msra.mxu1 %v22271_v51  ;;  %v7022_v51 = vld [vmem:[#allocation2 + $0x558] sm:$0xff] }
 0x2a1   :  { %7977 = vmatprep.subr.bf16.mxu1 %v22279_v57  ;;  %v22335_v57 = vld [vmem:[%s28314_s1 + $0xa24] ss:$8 sps:$4 sm:$0xff]  }
 0x2a2   :  { %13361 = vmatpush1.bf16.msra.mxu0 %v22274_v63  ;;  %v12295_v63 = vld [vmem:[#allocation2 + $0xe0] sm:$0xff] }
 0x2a3   :  { %7927 = vmatmul.mubr.bf16.gmra.mrb[20].mxu1 %v7051_v0  ;;  %13362 = vmatprep.subr.bf16.mxu0 %v22282_v31  ;;  %v22341_v0 = vld [vmem:[%s28314_s1 + $0xa34] ss:$8 sps:$4 sm:$0xff]  }
 0x2a4   :  { %7978 = vmatpush1.bf16.msra.mxu1 %v22277_v1  ;;  %7936 = vmatprep.mubr.bf16.mxu1 %v7060_v6  ;;  %v22336_v1 = vld [vmem:[%s28314_s1 + $0x1b20] ss:$8 sps:$4 sm:$0xff]   ;;  %v7030_v31 = vld [vmem:[#allocation2 + $0x598] sm:$0xff] }
 0x2a5   :  { %7979 = vmatprep.subr.bf16.mxu1 %v22285_v4  ;;  %13312 = vmatmul.mubr.bf16.gmra.mrb[20].mxu0 %v12325_v2  ;;  %v22339_v2 = vld [vmem:[%s28314_s1 + $0xa30] ss:$8 sps:$4 sm:$0xff]   ;;  %v12304_v4 = vld [vmem:[#allocation2 + $0x128] sm:$0xff] }
 0x2a6   :  { %13363 = vmatpush1.bf16.msra.mxu0 %v22280_v3  ;;  %13321 = vmatprep.mubr.bf16.mxu0 %v12334_v11  ;;  %v22344_v3 = vld [vmem:[%s28314_s1 + $0x1b34] ss:$8 sps:$4 sm:$0xff]   ;;  %v22342_v6 = vld [vmem:[%s28314_s1 + $0x1b30] ss:$8 sps:$4 sm:$0xff]   ;;  %v12303_v11 = vld [vmem:[#allocation2 + $0x120] sm:$0xff] }
 0x2a7   :  { %13364 = vmatprep.subr.bf16.mxu0 %v22288_v7  ;;  %v7029_v7 = vld [vmem:[#allocation2 + $0x590] sm:$0xff] }
 0x2a8   :  { %7980 = vmatpush1.bf16.msra.mxu1 %v22283_v5  ;;  %v22347_v5 = vld [vmem:[%s28314_s1 + $0xa44] ss:$8 sps:$4 sm:$0xff]  }
 0x2a9   :  { %7981 = vmatprep.subr.bf16.mxu1 %v22293_v16  ;;  %v22356_v16 = vld [vmem:[%s28314_s1 + $0x1b54] ss:$8 sps:$4 sm:$0xff]  }
 0x2aa   :  { %13365 = vmatpush1.bf16.msra.mxu0 %v22286_v19  ;;  %v73_v19 = vld [vmem:[%s28315_s0 + $0x210] sm:$0xff] }
 0x2ab   :  { %7937 = vmatmul.mubr.bf16.gmra.mrb[24].mxu1 %v7059_v22  ;;  %13366 = vmatprep.subr.bf16.mxu0 %v22298_v25  ;;  %v17129_v21 = vcombine.high %v73_v19, %v73_v19  ;;  %v17174_v22 = vld [vmem:[%s28315_s0 + $0x490] sm:$0xff]  ;;  %v17128_v53 = vcombine.low %v73_v19, %v73_v19 }
 0x2ac   :  { %7982 = vmatpush1.bf16.msra.mxu1 %v22291_v24  ;;  %7946 = vmatprep.mubr.bf16.mxu1 %v7068_v28  ;;  %v22357_v24 = vld [vmem:[%s28314_s1 + $0xa60] ss:$8 sps:$4 sm:$0xff]   ;;  %v17249_v25 = vcombine.high %v17174_v22, %v17174_v22  ;;  %v22405_v19 = vld [vmem:[%s28314_s1 + $0xad4] ss:$8 sps:$4 sm:$0xff]  }
 0x2ad   :  { %7983 = vmatprep.subr.bf16.mxu1 %v22301_v27  ;;  %13322 = vmatmul.mubr.bf16.gmra.mrb[24].mxu0 %v12333_v29  ;;  %v22362_v27 = vld [vmem:[%s28314_s1 + $0x1b64] ss:$8 sps:$4 sm:$0xff]   ;;  %428 = vst [vmem:[#allocation2 + $0x228] sm:$0xf] %v17129_v21  ;;  %427 = vst [vmem:[#allocation2 + $0x220] sm:$0xf] %v17128_v53 }
 0x2ae   :  { %13367 = vmatpush1.bf16.msra.mxu0 %v22296_v26  ;;  %13331 = vmatprep.mubr.bf16.mxu0 %v12342_v33  ;;  %v17248_v26 = vcombine.low %v17174_v22, %v17174_v22  ;;  %v12311_v28 = vld [vmem:[#allocation2 + $0x160] sm:$0xff]  ;;  %v22365_v29 = vld [vmem:[%s28314_s1 + $0xa74] ss:$8 sps:$4 sm:$0xff]   ;;  %829 = vst [vmem:[#allocation2 + $0x228] sm:$0xf0] %v17249_v25 }
 0x2af   :  { %13368 = vmatprep.subr.bf16.mxu0 %v22304_v9  ;;  %v7046_v9 = vld [vmem:[#allocation2 + $0x618] sm:$0xff]  ;;  %v22413_v25 = vld [vmem:[%s28314_s1 + $0xae4] ss:$8 sps:$4 sm:$0xff]  }
 0x2b0   :  { %7984 = vmatpush1.bf16.msra.mxu1 %v22299_v32  ;;  %828 = vst [vmem:[#allocation2 + $0x220] sm:$0xf0] %v17248_v26  ;;  %v22360_v32 = vld [vmem:[%s28314_s1 + $0x1b60] ss:$8 sps:$4 sm:$0xff]   ;;  %v22363_v33 = vld [vmem:[%s28314_s1 + $0xa70] ss:$8 sps:$4 sm:$0xff]  }
 0x2b1   :  { %7985 = vmatprep.subr.bf16.mxu1 %v22309_v34  ;;  %v22368_v34 = vld [vmem:[%s28314_s1 + $0x1b74] ss:$8 sps:$4 sm:$0xff]   ;;  %v22403_v53 = vld [vmem:[%s28314_s1 + $0xad0] ss:$8 sps:$4 sm:$0xff]  }
 0x2b2   :  { %13369 = vmatpush1.bf16.msra.mxu0 %v22302_v35  ;;  %v12320_v35 = vld [vmem:[#allocation2 + $0x1a8] sm:$0xff]  ;;  %v7070_v21 = vld [vmem:[#allocation2 + $0x6d8] sm:$0xff] }
 0x2b3   :  { %7947 = vmatmul.mubr.bf16.gmra.mrb[28].mxu1 %v7067_v36  ;;  %13370 = vmatprep.subr.bf16.mxu0 %v22314_v38  ;;  %v77_v36 = vld [vmem:[%s28315_s0 + $0x250] sm:$0xff]  ;;  %v22371_v38 = vld [vmem:[%s28314_s1 + $0xa84] ss:$8 sps:$4 sm:$0xff]  }
 0x2b4   :  { %7986 = vmatpush1.bf16.msra.mxu1 %v22307_v37  ;;  %7989 = vmatprep.mubr.bf16.mxu1 %v7014_v41  ;;  %v17178_v37 = vld [vmem:[%s28315_s0 + $0x4d0] sm:$0xff]  ;;  %v17136_v41 = vcombine.low %v77_v36, %v77_v36 }
 0x2b5   :  { %7987 = vmatprep.subr.bf16.mxu1 %v22317_v39  ;;  %13332 = vmatmul.mubr.bf16.gmra.mrb[28].mxu0 %v12341_v42  ;;  %v17137_v39 = vcombine.high %v77_v36, %v77_v36  ;;  %v17256_v42 = vcombine.low %v17178_v37, %v17178_v37  ;;  %v22406_v26 = vld [vmem:[%s28314_s1 + $0x1bd0] ss:$8 sps:$4 sm:$0xff]   ;;  %v22424_v36 = vld [vmem:[%s28314_s1 + $0x1bf4] ss:$8 sps:$4 sm:$0xff]  }
 0x2b6   :  { %13371 = vmatpush1.bf16.msra.mxu0 %v22312_v40  ;;  %13374 = vmatprep.mubr.bf16.mxu0 %v12288_v30  ;;  %v17257_v40 = vcombine.high %v17178_v37, %v17178_v37  ;;  %435 = vst [vmem:[#allocation2 + $0x260] sm:$0xf] %v17136_v41  ;;  %v22369_v30 = vld [vmem:[%s28314_s1 + $0xa80] ss:$8 sps:$4 sm:$0xff]   ;;  %v12290_v37 = vld [vmem:[#allocation2 + $0xb8] sm:$0xff] }
 0x2b7   :  { %13372 = vmatprep.subr.bf16.mxu0 %v22320_v43  ;;  %v7045_v43 = vld [vmem:[#allocation2 + $0x610] sm:$0xff]  ;;  %436 = vst [vmem:[#allocation2 + $0x268] sm:$0xf] %v17137_v39  ;;  %836 = vst [vmem:[#allocation2 + $0x260] sm:$0xf0] %v17256_v42  ;;  %v12335_v22 = vld [vmem:[#allocation2 + $0x220] sm:$0xff] }
 0x2b8   :  { %7988 = vmatpush1.bf16.msra.mxu1 %v22315_v58  ;;  %v22366_v58 = vld [vmem:[%s28314_s1 + $0x1b70] ss:$8 sps:$4 sm:$0xff]   ;;  %837 = vst [vmem:[#allocation2 + $0x268] sm:$0xf0] %v17257_v40  ;;  %v22425_v41 = vld [vmem:[%s28314_s1 + $0xb00] ss:$8 sps:$4 sm:$0xff]  }
 0x2b9   :  { %8070 = vmatprep.subr.bf16.mxu1 %v22323_v44  ;;  %v22374_v44 = vld [vmem:[%s28314_s1 + $0x1b84] ss:$8 sps:$4 sm:$0xff]   ;;  %v22422_v39 = vld [vmem:[%s28314_s1 + $0x1bf0] ss:$8 sps:$4 sm:$0xff]  }
 0x2ba   :  { %13373 = vmatpush1.bf16.msra.mxu0 %v22318_v45  ;;  %v12319_v45 = vld [vmem:[#allocation2 + $0x1a0] sm:$0xff] }
 0x2bb   :  { %7990 = vmatmul.mubr.bf16.vlgmr.msra.gmra.mrb[0].mxu1 %v7013_v48  ;;  %13455 = vmatprep.subr.bf16.mxu0 %v22326_v47  ;;  %v22377_v47 = vld [vmem:[%s28314_s1 + $0xa94] ss:$8 sps:$4 sm:$0xff]   ;;  %v22375_v48 = vld [vmem:[%s28314_s1 + $0xa90] ss:$8 sps:$4 sm:$0xff]   ;;  %v22430_v42 = vld [vmem:[%s28314_s1 + $0x1c04] ss:$8 sps:$4 sm:$0xff]  }
 0x2bc   :  { %8071 = vmatpush1.bf16.msra.mxu1 %v22321_v46  ;;  %7999 = vmatprep.mubr.bf16.mxu1 %v7022_v51  ;;  %v22372_v46 = vld [vmem:[%s28314_s1 + $0x1b80] ss:$8 sps:$4 sm:$0xff]   ;;  %v3163_v51 = vld [vmem:[%s28315_s0 + $0x10] sm:$0xee] }
 0x2bd   :  { %8072 = vmatprep.subr.bf16.mxu1 %v22329_v50  ;;  %13375 = vmatmul.mubr.bf16.vlgmr.msra.gmra.mrb[0].mxu0 %v12287_v49  ;;  %v7054_v49 = vld [vmem:[#allocation2 + $0x658] sm:$0xff] }
 0x2be   :  { %13456 = vmatpush1.bf16.msra.mxu0 %v22324_v52  ;;  %13384 = vmatprep.mubr.bf16.mxu0 %v12296_v56  ;;  %v22380_v50 = vld [vmem:[%s28314_s1 + $0x1b94] ss:$8 sps:$4 sm:$0xff]  }
 0x2bf   :  { %13457 = vmatprep.subr.bf16.mxu0 %v22332_v55  ;;  %v3167_v52 = vld [vmem:[%s28315_s0 + $0x30] sm:$0x11] }
 0x2c0   :  { %8073 = vmatpush1.bf16.msra.mxu1 %v22327_v54  ;;  %v12328_v54 = vld [vmem:[#allocation2 + $0x1e8] sm:$0xff]  ;;  %v17504_v55 = vcombine.low %v3163_v51, %v3167_v52  ;;  %v17505_v56 = vcombine.high %v3163_v51, %v3167_v52 }
 0x2c1   :  { %8074 = vmatprep.subr.bf16.mxu1 %v22335_v57  ;;  %v17582_v57 = vld [vmem:[%s28315_s0 + $0x290] sm:$0xee]  ;;  %v22437_v51 = vld [vmem:[%s28314_s1 + $0xb20] ss:$8 sps:$4 sm:$0xff]   ;;  %v22442_v52 = vld [vmem:[%s28314_s1 + $0x1c24] ss:$8 sps:$4 sm:$0xff]  }
 0x2c2   :  { %13458 = vmatpush1.bf16.msra.mxu0 %v22330_v59  ;;  %v17586_v59 = vld [vmem:[%s28315_s0 + $0x2b0] sm:$0x11] }
 0x2c3   :  { %8000 = vmatmul.mubr.bf16.gmra.mrb[4].mxu1 %v7021_v60  ;;  %13459 = vmatprep.subr.bf16.mxu0 %v22338_v62  ;;  %v22383_v60 = vld [vmem:[%s28314_s1 + $0xaa4] ss:$8 sps:$4 sm:$0xff]   ;;  %v17665_v62 = vcombine.high %v17582_v57, %v17586_v59 }
 0x2c4   :  { %8075 = vmatpush1.bf16.msra.mxu1 %v22333_v61  ;;  %8009 = vmatprep.mubr.bf16.mxu1 %v7030_v31  ;;  %v17664_v61 = vcombine.low %v17582_v57, %v17586_v59  ;;  %v7053_v31 = vld [vmem:[#allocation2 + $0x650] sm:$0xff]  ;;  %v7032_v57 = vld [vmem:[#allocation2 + $0x5a8] sm:$0xff] }
 0x2c5   :  { %8076 = vmatprep.subr.bf16.mxu1 %v22341_v0  ;;  %13385 = vmatmul.mubr.bf16.gmra.mrb[4].mxu0 %v12295_v63  ;;  %v22378_v63 = vld [vmem:[%s28314_s1 + $0x1b90] ss:$8 sps:$4 sm:$0xff]   ;;  %v3565_v0 = vrot.slane %v17504_v55, 1  ;;  %v22445_v55 = vld [vmem:[%s28314_s1 + $0xb34] ss:$8 sps:$4 sm:$0xff]  }
 0x2c6   :  { %13460 = vmatpush1.bf16.msra.mxu0 %v22336_v1  ;;  %13394 = vmatprep.mubr.bf16.mxu0 %v12304_v4  ;;  %v3566_v1 = vrot.slane %v17505_v56, 1  ;;  %v22381_v4 = vld [vmem:[%s28314_s1 + $0xaa0] ss:$8 sps:$4 sm:$0xff]   ;;  %v22443_v59 = vld [vmem:[%s28314_s1 + $0xb30] ss:$8 sps:$4 sm:$0xff]  }
 0x2c7   :  { %13461 = vmatprep.subr.bf16.mxu0 %v22344_v3  ;;  %v4207_v3 = vrot.slane %v17665_v62, 5  ;;  %3726 = vst [vmem:[#allocation2 + $0x520] sm:$0xf] %v3565_v0  ;;  %v22440_v56 = vld [vmem:[%s28314_s1 + $0x1c20] ss:$8 sps:$4 sm:$0xff]  }
 0x2c8   :  { %8077 = vmatpush1.bf16.msra.mxu1 %v22339_v2  ;;  %v4206_v2 = vrot.slane %v17664_v61, 5  ;;  %3727 = vst [vmem:[#allocation2 + $0x528] sm:$0xf] %v3566_v1  ;;  %v12306_v61 = vld [vmem:[#allocation2 + $0x138] sm:$0xff]  ;;  %v22451_v62 = vld [vmem:[%s28314_s1 + $0xb44] ss:$8 sps:$4 sm:$0xff]  }
 0x2c9   :  { %8078 = vmatprep.subr.bf16.mxu1 %v22347_v5  ;;  %v22386_v5 = vld [vmem:[%s28314_s1 + $0x1ba4] ss:$8 sps:$4 sm:$0xff]   ;;  %4367 = vst [vmem:[#allocation2 + $0x528] sm:$0xf0] %v4207_v3  ;;  %v22446_v0 = vld [vmem:[%s28314_s1 + $0x1c30] ss:$8 sps:$4 sm:$0xff]  }
 0x2ca   :  { %13462 = vmatpush1.bf16.msra.mxu0 %v22342_v6  ;;  %v12327_v6 = vld [vmem:[#allocation2 + $0x1e0] sm:$0xff]  ;;  %4366 = vst [vmem:[#allocation2 + $0x520] sm:$0xf0] %v4206_v2 }
 0x2cb   :  { %8010 = vmatmul.mubr.bf16.gmra.mrb[8].mxu1 %v7029_v7  ;;  %13463 = vmatprep.subr.bf16.mxu0 %v22350_v10  ;;  %v22389_v7 = vld [vmem:[%s28314_s1 + $0xab4] ss:$8 sps:$4 sm:$0xff]   ;;  %v22384_v10 = vld [vmem:[%s28314_s1 + $0x1ba0] ss:$8 sps:$4 sm:$0xff]  }
 0x2cc   :  { %8079 = vmatpush1.bf16.msra.mxu1 %v22345_v8  ;;  %8019 = vmatprep.mubr.bf16.mxu1 %v7038_v14  ;;  %v7062_v8 = vld [vmem:[#allocation2 + $0x698] sm:$0xff]  ;;  %v22397_v14 = vld [vmem:[%s28314_s1 + $0xac4] ss:$8 sps:$4 sm:$0xff]  }
 0x2cd   :  { %8080 = vmatprep.subr.bf16.mxu1 %v22353_v12  ;;  %13395 = vmatmul.mubr.bf16.gmra.mrb[8].mxu0 %v12303_v11  ;;  %v22387_v11 = vld [vmem:[%s28314_s1 + $0xab0] ss:$8 sps:$4 sm:$0xff]   ;;  %v22392_v12 = vld [vmem:[%s28314_s1 + $0x1bb4] ss:$8 sps:$4 sm:$0xff]   ;;  %v7031_v3 = vld [vmem:[#allocation2 + $0x5a0] sm:$0xff] }
 0x2ce   :  { %13464 = vmatpush1.bf16.msra.mxu0 %v22348_v13  ;;  %13404 = vmatprep.mubr.bf16.mxu0 %v12312_v17  ;;  %v12336_v13 = vld [vmem:[#allocation2 + $0x228] sm:$0xff] }
 0x2cf   :  { %13465 = vmatprep.subr.bf16.mxu0 %v22356_v16  ;;  %v7061_v16 = vld [vmem:[#allocation2 + $0x690] sm:$0xff]  ;;  %v22395_v17 = vld [vmem:[%s28314_s1 + $0xac0] ss:$8 sps:$4 sm:$0xff]  }
 0x2d0   :  { %8081 = vmatpush1.bf16.msra.mxu1 %v22351_v15  ;;  %v22390_v15 = vld [vmem:[%s28314_s1 + $0x1bb0] ss:$8 sps:$4 sm:$0xff]  }
 0x2d1   :  { %8082 = vmatprep.subr.bf16.mxu1 %v22359_v18  ;;  %v22402_v18 = vld [vmem:[%s28314_s1 + $0x1bc4] ss:$8 sps:$4 sm:$0xff]  }
 0x2d2   :  { %13466 = vmatpush1.bf16.msra.mxu0 %v22354_v20  ;;  %v22400_v20 = vld [vmem:[%s28314_s1 + $0x1bc0] ss:$8 sps:$4 sm:$0xff]  }
 0x2d3   :  { %8020 = vmatmul.mubr.bf16.gmra.mrb[12].mxu1 %v7037_v23  ;;  %13467 = vmatprep.subr.bf16.mxu0 %v22362_v27  ;;  %v22408_v23 = vld [vmem:[%s28314_s1 + $0x1bd4] ss:$8 sps:$4 sm:$0xff]   ;;  %v7015_v40 = vld [vmem:[#allocation2 + $0x520] sm:$0xff] }
 0x2d4   :  { %8083 = vmatpush1.bf16.msra.mxu1 %v22357_v24  ;;  %8029 = vmatprep.mubr.bf16.mxu1 %v7046_v9  ;;  %v12344_v24 = vld [vmem:[#allocation2 + $0x268] sm:$0xff]  ;;  %v7069_v27 = vld [vmem:[#allocation2 + $0x6d0] sm:$0xff] }
 0x2d5   :  { %8084 = vmatprep.subr.bf16.mxu1 %v22365_v29  ;;  %13405 = vmatmul.mubr.bf16.gmra.mrb[12].mxu0 %v12311_v28  ;;  %v22411_v28 = vld [vmem:[%s28314_s1 + $0xae0] ss:$8 sps:$4 sm:$0xff]   ;;  %v22418_v29 = vld [vmem:[%s28314_s1 + $0x1be4] ss:$8 sps:$4 sm:$0xff]   ;;  %v22421_v9 = vld [vmem:[%s28314_s1 + $0xaf4] ss:$8 sps:$4 sm:$0xff]  }
 0x2d6   :  { %13468 = vmatpush1.bf16.msra.mxu0 %v22360_v32  ;;  %13414 = vmatprep.mubr.bf16.mxu0 %v12320_v35  ;;  %v22416_v32 = vld [vmem:[%s28314_s1 + $0x1be0] ss:$8 sps:$4 sm:$0xff]   ;;  %v22419_v35 = vld [vmem:[%s28314_s1 + $0xaf0] ss:$8 sps:$4 sm:$0xff]  }
 0x2d7   :  { %13469 = vmatprep.subr.bf16.mxu0 %v22368_v34  ;;  %v12343_v34 = vld [vmem:[#allocation2 + $0x260] sm:$0xff] }
 0x2d8   :  { %8085 = vmatpush1.bf16.msra.mxu1 %v22363_v33  ;;  %v7016_v33 = vld [vmem:[#allocation2 + $0x528] sm:$0xff] }
 0x2d9   :  { %8086 = vmatprep.subr.bf16.mxu1 %v22371_v38  ;;  %v22427_v38 = vld [vmem:[%s28314_s1 + $0xb04] ss:$8 sps:$4 sm:$0xff]  }
 0x2da   :  { %13470 = vmatpush1.bf16.msra.mxu0 %v22366_v58  ;;  %v12289_v58 = vld [vmem:[#allocation2 + $0xb0] sm:$0xff] }
 0x2db   :  { %8030 = vmatmul.mubr.bf16.gmra.mrb[16].mxu1 %v7045_v43  ;;  %13471 = vmatprep.subr.bf16.mxu0 %v22374_v44  ;;  %v22433_v43 = vld [vmem:[%s28314_s1 + $0xb14] ss:$8 sps:$4 sm:$0xff]   ;;  %v7024_v44 = vld [vmem:[#allocation2 + $0x568] sm:$0xff] }
 0x2dc   :  { %8087 = vmatpush1.bf16.msra.mxu1 %v22369_v30  ;;  %8039 = vmatprep.mubr.bf16.mxu1 %v7054_v49  ;;  %v22428_v30 = vld [vmem:[%s28314_s1 + $0x1c00] ss:$8 sps:$4 sm:$0xff]   ;;  %v22434_v49 = vld [vmem:[%s28314_s1 + $0x1c10] ss:$8 sps:$4 sm:$0xff]  }
 0x2dd   :  { %8088 = vmatprep.subr.bf16.mxu1 %v22377_v47  ;;  %13415 = vmatmul.mubr.bf16.gmra.mrb[16].mxu0 %v12319_v45  ;;  %v22431_v45 = vld [vmem:[%s28314_s1 + $0xb10] ss:$8 sps:$4 sm:$0xff]  }
 0x2de   :  { %13472 = vmatpush1.bf16.msra.mxu0 %v22372_v46  ;;  %13424 = vmatprep.mubr.bf16.mxu0 %v12328_v54  ;;  %v22436_v46 = vld [vmem:[%s28314_s1 + $0x1c14] ss:$8 sps:$4 sm:$0xff]  }
 0x2df   :  { %13473 = vmatprep.subr.bf16.mxu0 %v22380_v50  ;;  %v12298_v47 = vld [vmem:[#allocation2 + $0xf8] sm:$0xff]  ;;  %v7023_v50 = vld [vmem:[#allocation2 + $0x560] sm:$0xff]  ;;  %v12297_v54 = vld [vmem:[#allocation2 + $0xf0] sm:$0xff] }
 0x2e0   :  { %8089 = vmatpush1.bf16.msra.mxu1 %v22375_v48  ;;  %v22439_v48 = vld [vmem:[%s28314_s1 + $0xb24] ss:$8 sps:$4 sm:$0xff]  }
 0x2e1   :  { %8090 = vmatprep.subr.bf16.mxu1 %v22383_v60  ;;  %v22448_v60 = vld [vmem:[%s28314_s1 + $0x1c34] ss:$8 sps:$4 sm:$0xff]  }
 0x2e2   :  { %13474 = vmatpush1.bf16.msra.mxu0 %v22378_v63  ;;  %v74_v63 = vld [vmem:[%s28315_s0 + $0x218] sm:$0xff] }
 0x2e3   :  { %8040 = vmatmul.mubr.bf16.gmra.mrb[20].mxu1 %v7053_v31  ;;  %13475 = vmatprep.subr.bf16.mxu0 %v22386_v5  ;;  %v17131_v1 = vcombine.high %v74_v63, %v74_v63  ;;  %v17175_v31 = vld [vmem:[%s28315_s0 + $0x498] sm:$0xff]  ;;  %v17130_v2 = vcombine.low %v74_v63, %v74_v63 }
 0x2e4   :  { %8091 = vmatpush1.bf16.msra.mxu1 %v22381_v4  ;;  %8049 = vmatprep.mubr.bf16.mxu1 %v7062_v8  ;;  %v22449_v4 = vld [vmem:[%s28314_s1 + $0xb40] ss:$8 sps:$4 sm:$0xff]   ;;  %v17251_v5 = vcombine.high %v17175_v31, %v17175_v31  ;;  %v12305_v8 = vld [vmem:[#allocation2 + $0x130] sm:$0xff] }
 0x2e5   :  { %8092 = vmatprep.subr.bf16.mxu1 %v22389_v7  ;;  %13425 = vmatmul.mubr.bf16.gmra.mrb[20].mxu0 %v12327_v6  ;;  %v17250_v6 = vcombine.low %v17175_v31, %v17175_v31  ;;  %v22454_v7 = vld [vmem:[%s28314_s1 + $0x1c44] ss:$8 sps:$4 sm:$0xff]   ;;  %430 = vst [vmem:[#allocation2 + $0x238] sm:$0xf] %v17131_v1  ;;  %429 = vst [vmem:[#allocation2 + $0x230] sm:$0xf] %v17130_v2 }
 0x2e6   :  { %13476 = vmatpush1.bf16.msra.mxu0 %v22384_v10  ;;  %13434 = vmatprep.mubr.bf16.mxu0 %v12336_v13  ;;  %v22457_v10 = vld [vmem:[%s28314_s1 + $0xb54] ss:$8 sps:$4 sm:$0xff]   ;;  %831 = vst [vmem:[#allocation2 + $0x238] sm:$0xf0] %v17251_v5  ;;  %v22455_v13 = vld [vmem:[%s28314_s1 + $0xb50] ss:$8 sps:$4 sm:$0xff]  }
 0x2e7   :  { %13477 = vmatprep.subr.bf16.mxu0 %v22392_v12  ;;  %830 = vst [vmem:[#allocation2 + $0x230] sm:$0xf0] %v17250_v6  ;;  %v7040_v12 = vld [vmem:[#allocation2 + $0x5e8] sm:$0xff]  ;;  %v22493_v63 = vld [vmem:[%s28314_s1 + $0xbb4] ss:$8 sps:$4 sm:$0xff]  }
 0x2e8   :  { %8093 = vmatpush1.bf16.msra.mxu1 %v22387_v11  ;;  %v22452_v11 = vld [vmem:[%s28314_s1 + $0x1c40] ss:$8 sps:$4 sm:$0xff]   ;;  %v22491_v2 = vld [vmem:[%s28314_s1 + $0xbb0] ss:$8 sps:$4 sm:$0xff]   ;;  %v22501_v5 = vld [vmem:[%s28314_s1 + $0xbc4] ss:$8 sps:$4 sm:$0xff]  }
 0x2e9   :  { %8094 = vmatprep.subr.bf16.mxu1 %v22397_v14  ;;  %v22460_v14 = vld [vmem:[%s28314_s1 + $0x1c54] ss:$8 sps:$4 sm:$0xff]   ;;  %v7064_v1 = vld [vmem:[#allocation2 + $0x6a8] sm:$0xff]  ;;  %v22494_v6 = vld [vmem:[%s28314_s1 + $0x1cb0] ss:$8 sps:$4 sm:$0xff]  }
 0x2ea   :  { %13478 = vmatpush1.bf16.msra.mxu0 %v22390_v15  ;;  %v12314_v15 = vld [vmem:[#allocation2 + $0x178] sm:$0xff]  ;;  %v22488_v31 = vld [vmem:[%s28314_s1 + $0x1ca0] ss:$8 sps:$4 sm:$0xff]  }
 0x2eb   :  { %8050 = vmatmul.mubr.bf16.gmra.mrb[24].mxu1 %v7061_v16  ;;  %13479 = vmatprep.subr.bf16.mxu0 %v22402_v18  ;;  %v78_v16 = vld [vmem:[%s28315_s0 + $0x258] sm:$0xff]  ;;  %v22463_v18 = vld [vmem:[%s28314_s1 + $0xb64] ss:$8 sps:$4 sm:$0xff]  }
 0x2ec   :  { %8095 = vmatpush1.bf16.msra.mxu1 %v22395_v17  ;;  %8059 = vmatprep.mubr.bf16.mxu1 %v7070_v21  ;;  %v17179_v17 = vld [vmem:[%s28315_s0 + $0x4d8] sm:$0xff]  ;;  %v17138_v21 = vcombine.low %v78_v16, %v78_v16 }
 0x2ed   :  { %8096 = vmatprep.subr.bf16.mxu1 %v22405_v19  ;;  %13435 = vmatmul.mubr.bf16.gmra.mrb[24].mxu0 %v12335_v22  ;;  %v17139_v19 = vcombine.high %v78_v16, %v78_v16  ;;  %v17258_v22 = vcombine.low %v17179_v17, %v17179_v17  ;;  %v22512_v16 = vld [vmem:[%s28314_s1 + $0x1cd4] ss:$8 sps:$4 sm:$0xff]  }
 0x2ee   :  { %13480 = vmatpush1.bf16.msra.mxu0 %v22400_v20  ;;  %13444 = vmatprep.mubr.bf16.mxu0 %v12344_v24  ;;  %v17259_v20 = vcombine.high %v17179_v17, %v17179_v17  ;;  %437 = vst [vmem:[#allocation2 + $0x270] sm:$0xf] %v17138_v21  ;;  %v22461_v24 = vld [vmem:[%s28314_s1 + $0xb60] ss:$8 sps:$4 sm:$0xff]  }
 0x2ef   :  { %13481 = vmatprep.subr.bf16.mxu0 %v22408_v23  ;;  %v7039_v23 = vld [vmem:[#allocation2 + $0x5e0] sm:$0xff]  ;;  %438 = vst [vmem:[#allocation2 + $0x278] sm:$0xf] %v17139_v19  ;;  %838 = vst [vmem:[#allocation2 + $0x270] sm:$0xf0] %v17258_v22 }
 0x2f0   :  { %8097 = vmatpush1.bf16.msra.mxu1 %v22403_v53  ;;  %v22458_v53 = vld [vmem:[%s28314_s1 + $0x1c50] ss:$8 sps:$4 sm:$0xff]   ;;  %839 = vst [vmem:[#allocation2 + $0x278] sm:$0xf0] %v17259_v20  ;;  %v7071_v20 = vld [vmem:[#allocation2 + $0x6e0] sm:$0xff] }
 0x2f1   :  { %8098 = vmatprep.subr.bf16.mxu1 %v22413_v25  ;;  %v22466_v25 = vld [vmem:[%s28314_s1 + $0x1c64] ss:$8 sps:$4 sm:$0xff]   ;;  %v22510_v19 = vld [vmem:[%s28314_s1 + $0x1cd0] ss:$8 sps:$4 sm:$0xff]   ;;  %v22515_v21 = vld [vmem:[%s28314_s1 + $0xbe0] ss:$8 sps:$4 sm:$0xff]  }
 0x2f2   :  { %13482 = vmatpush1.bf16.msra.mxu0 %v22406_v26  ;;  %v12313_v26 = vld [vmem:[#allocation2 + $0x170] sm:$0xff]  ;;  %v22522_v22 = vld [vmem:[%s28314_s1 + $0x1ce4] ss:$8 sps:$4 sm:$0xff]  }
 0x2f3   :  { %8060 = vmatmul.mubr.bf16.gmra.mrb[28].mxu1 %v7069_v27  ;;  %13483 = vmatprep.subr.bf16.mxu0 %v22418_v29  ;;  %v22464_v27 = vld [vmem:[%s28314_s1 + $0x1c60] ss:$8 sps:$4 sm:$0xff]   ;;  %v22467_v29 = vld [vmem:[%s28314_s1 + $0xb70] ss:$8 sps:$4 sm:$0xff]  }
 0x2f4   :  { %8099 = vmatpush1.bf16.msra.mxu1 %v22411_v28  ;;  %8102 = vmatprep.mubr.bf16.mxu1 %v7016_v33  ;;  %v22469_v28 = vld [vmem:[%s28314_s1 + $0xb74] ss:$8 sps:$4 sm:$0xff]  }
 0x2f5   :  { %8100 = vmatprep.subr.bf16.mxu1 %v22421_v9  ;;  %13445 = vmatmul.mubr.bf16.gmra.mrb[28].mxu0 %v12343_v34  ;;  %v22472_v9 = vld [vmem:[%s28314_s1 + $0x1c74] ss:$8 sps:$4 sm:$0xff]  }
 0x2f6   :  { %13484 = vmatpush1.bf16.msra.mxu0 %v22416_v32  ;;  %13487 = vmatprep.mubr.bf16.mxu0 %v12290_v37  ;;  %v7048_v32 = vld [vmem:[#allocation2 + $0x628] sm:$0xff]  ;;  %v3164_v33 = vld [vmem:[%s28315_s0 + $0x18] sm:$0xee]  ;;  %v3168_v34 = vld [vmem:[%s28315_s0 + $0x38] sm:$0x11] }
 0x2f7   :  { %13485 = vmatprep.subr.bf16.mxu0 %v22424_v36  ;;  %v17506_v36 = vcombine.low %v3164_v33, %v3168_v34  ;;  %v17507_v37 = vcombine.high %v3164_v33, %v3168_v34  ;;  %v12346_v17 = vld [vmem:[#allocation2 + $0x278] sm:$0xff]  ;;  %v22534_v34 = vld [vmem:[%s28314_s1 + $0x1d04] ss:$8 sps:$4 sm:$0xff]  }
 0x2f8   :  { %8101 = vmatpush1.bf16.msra.mxu1 %v22419_v35  ;;  %v12322_v35 = vld [vmem:[#allocation2 + $0x1b8] sm:$0xff] }
 0x2f9   :  { %8183 = vmatprep.subr.bf16.mxu1 %v22427_v38  ;;  %v17583_v38 = vld [vmem:[%s28315_s0 + $0x298] sm:$0xee] }
 0x2fa   :  { %13486 = vmatpush1.bf16.msra.mxu0 %v22422_v39  ;;  %v17587_v39 = vld [vmem:[%s28315_s0 + $0x2b8] sm:$0x11] }
 0x2fb   :  { %8103 = vmatmul.mubr.bf16.vlgmr.msra.gmra.mrb[0].mxu1 %v7015_v40  ;;  %14434 = vmatprep.subr.bf16.mxu0 %v22430_v42  ;;  %v22475_v40 = vld [vmem:[%s28314_s1 + $0xb84] ss:$8 sps:$4 sm:$0xff]   ;;  %v17667_v42 = vcombine.high %v17583_v38, %v17587_v39 }
 0x2fc   :  { %8184 = vmatpush1.bf16.msra.mxu1 %v22425_v41  ;;  %8112 = vmatprep.mubr.bf16.mxu1 %v7024_v44  ;;  %v17666_v41 = vcombine.low %v17583_v38, %v17587_v39  ;;  %v7047_v44 = vld [vmem:[#allocation2 + $0x620] sm:$0xff]  ;;  %v7026_v38 = vld [vmem:[#allocation2 + $0x578] sm:$0xff] }
 0x2fd   :  { %8185 = vmatprep.subr.bf16.mxu1 %v22433_v43  ;;  %13488 = vmatmul.mubr.bf16.vlgmr.msra.gmra.mrb[0].mxu0 %v12289_v58  ;;  %v22470_v58 = vld [vmem:[%s28314_s1 + $0x1c70] ss:$8 sps:$4 sm:$0xff]   ;;  %v3567_v43 = vrot.slane %v17506_v36, 1  ;;  %v22537_v36 = vld [vmem:[%s28314_s1 + $0xc14] ss:$8 sps:$4 sm:$0xff]  }
 0x2fe   :  { %14435 = vmatpush1.bf16.msra.mxu0 %v22428_v30  ;;  %13497 = vmatprep.mubr.bf16.mxu0 %v12298_v47  ;;  %v3568_v30 = vrot.slane %v17507_v37, 1  ;;  %v22473_v47 = vld [vmem:[%s28314_s1 + $0xb80] ss:$8 sps:$4 sm:$0xff]   ;;  %v22535_v39 = vld [vmem:[%s28314_s1 + $0xc10] ss:$8 sps:$4 sm:$0xff]  }
 0x2ff   :  { %14436 = vmatprep.subr.bf16.mxu0 %v22436_v46  ;;  %v4209_v46 = vrot.slane %v17667_v42, 5  ;;  %3728 = vst [vmem:[#allocation2 + $0x530] sm:$0xf] %v3567_v43  ;;  %v22532_v37 = vld [vmem:[%s28314_s1 + $0x1d00] ss:$8 sps:$4 sm:$0xff]  }
 0x300   :  { %8186 = vmatpush1.bf16.msra.mxu1 %v22431_v45  ;;  %v4208_v45 = vrot.slane %v17666_v41, 5  ;;  %3729 = vst [vmem:[#allocation2 + $0x538] sm:$0xf] %v3568_v30  ;;  %v13610_v41 = vld [vmem:[#allocation2 + $0x348] sm:$0xff]  ;;  %v22538_v42 = vld [vmem:[%s28314_s1 + $0x1d10] ss:$8 sps:$4 sm:$0xff]  }
 0x301   :  { %8187 = vmatprep.subr.bf16.mxu1 %v22439_v48  ;;  %v22478_v48 = vld [vmem:[%s28314_s1 + $0x1c84] ss:$8 sps:$4 sm:$0xff]   ;;  %4369 = vst [vmem:[#allocation2 + $0x538] sm:$0xf0] %v4209_v46  ;;  %v7025_v30 = vld [vmem:[#allocation2 + $0x570] sm:$0xff] }
 0x302   :  { %14437 = vmatpush1.bf16.msra.mxu0 %v22434_v49  ;;  %v12321_v49 = vld [vmem:[#allocation2 + $0x1b0] sm:$0xff]  ;;  %4368 = vst [vmem:[#allocation2 + $0x530] sm:$0xf0] %v4208_v45  ;;  %v904_v43 = vld [vmem:[%s28315_s0 + $0x200] sm:$0xff] }
 0x303   :  { %8113 = vmatmul.mubr.bf16.gmra.mrb[4].mxu1 %v7023_v50  ;;  %14438 = vmatprep.subr.bf16.mxu0 %v22442_v52  ;;  %v22481_v50 = vld [vmem:[%s28314_s1 + $0xb94] ss:$8 sps:$4 sm:$0xff]   ;;  %v22476_v52 = vld [vmem:[%s28314_s1 + $0x1c80] ss:$8 sps:$4 sm:$0xff]  }
 0x304   :  { %8188 = vmatpush1.bf16.msra.mxu1 %v22437_v51  ;;  %8122 = vmatprep.mubr.bf16.mxu1 %v7032_v57  ;;  %v7056_v51 = vld [vmem:[#allocation2 + $0x668] sm:$0xff]  ;;  %v17404_v45 = vld [vmem:[%s28315_s0 + $0x480] sm:$0xff] }
 0x305   :  { %8189 = vmatprep.subr.bf16.mxu1 %v22445_v55  ;;  %13498 = vmatmul.mubr.bf16.gmra.mrb[4].mxu0 %v12297_v54  ;;  %v22479_v54 = vld [vmem:[%s28314_s1 + $0xb90] ss:$8 sps:$4 sm:$0xff]   ;;  %v22484_v55 = vld [vmem:[%s28314_s1 + $0x1c94] ss:$8 sps:$4 sm:$0xff]   ;;  %v22487_v57 = vld [vmem:[%s28314_s1 + $0xba4] ss:$8 sps:$4 sm:$0xff]  }
 0x306   :  { %14439 = vmatpush1.bf16.msra.mxu0 %v22440_v56  ;;  %13507 = vmatprep.mubr.bf16.mxu0 %v12306_v61  ;;  %v12330_v56 = vld [vmem:[#allocation2 + $0x1f8] sm:$0xff]  ;;  %v22485_v61 = vld [vmem:[%s28314_s1 + $0xba0] ss:$8 sps:$4 sm:$0xff]  }
 0x307   :  { %14440 = vmatprep.subr.bf16.mxu0 %v22448_v60  ;;  %v7055_v60 = vld [vmem:[#allocation2 + $0x660] sm:$0xff] }
 0x308   :  { %8190 = vmatpush1.bf16.msra.mxu1 %v22443_v59  ;;  %v22482_v59 = vld [vmem:[%s28314_s1 + $0x1c90] ss:$8 sps:$4 sm:$0xff]   ;;  %v17408_v46 = vld [vmem:[%s28315_s0 + $0x4a0] sm:$0x11] }
 0x309   :  { %8191 = vmatprep.subr.bf16.mxu1 %v22451_v62  ;;  %v22490_v62 = vld [vmem:[%s28314_s1 + $0x1ca4] ss:$8 sps:$4 sm:$0xff]   ;;  %v7017_v33 = vld [vmem:[#allocation2 + $0x530] sm:$0xff] }
 0x30a   :  { %14441 = vmatpush1.bf16.msra.mxu0 %v22446_v0  ;;  %v12329_v0 = vld [vmem:[#allocation2 + $0x1f0] sm:$0xff] }
 0x30b   :  { %8123 = vmatmul.mubr.bf16.gmra.mrb[8].mxu1 %v7031_v3  ;;  %14442 = vmatprep.subr.bf16.mxu0 %v22454_v7  ;;  %v22496_v3 = vld [vmem:[%s28314_s1 + $0x1cb4] ss:$8 sps:$4 sm:$0xff]   ;;  %v7063_v7 = vld [vmem:[#allocation2 + $0x6a0] sm:$0xff] }
 0x30c   :  { %8192 = vmatpush1.bf16.msra.mxu1 %v22449_v4  ;;  %8132 = vmatprep.mubr.bf16.mxu1 %v7040_v12  ;;  %v12338_v4 = vld [vmem:[#allocation2 + $0x238] sm:$0xff] }
 0x30d   :  { %8193 = vmatprep.subr.bf16.mxu1 %v22457_v10  ;;  %13508 = vmatmul.mubr.bf16.gmra.mrb[8].mxu0 %v12305_v8  ;;  %v22499_v8 = vld [vmem:[%s28314_s1 + $0xbc0] ss:$8 sps:$4 sm:$0xff]   ;;  %v22506_v10 = vld [vmem:[%s28314_s1 + $0x1cc4] ss:$8 sps:$4 sm:$0xff]   ;;  %v22509_v12 = vld [vmem:[%s28314_s1 + $0xbd4] ss:$8 sps:$4 sm:$0xff]  }
 0x30e   :  { %14443 = vmatpush1.bf16.msra.mxu0 %v22452_v11  ;;  %13517 = vmatprep.mubr.bf16.mxu0 %v12314_v15  ;;  %v22504_v11 = vld [vmem:[%s28314_s1 + $0x1cc0] ss:$8 sps:$4 sm:$0xff]   ;;  %v22507_v15 = vld [vmem:[%s28314_s1 + $0xbd0] ss:$8 sps:$4 sm:$0xff]  }
 0x30f   :  { %14444 = vmatprep.subr.bf16.mxu0 %v22460_v14  ;;  %v12337_v14 = vld [vmem:[#allocation2 + $0x230] sm:$0xff] }
 0x310   :  { %8194 = vmatpush1.bf16.msra.mxu1 %v22455_v13  ;;  %v7072_v13 = vld [vmem:[#allocation2 + $0x6e8] sm:$0xff] }
 0x311   :  { %8195 = vmatprep.subr.bf16.mxu1 %v22463_v18  ;;  %v22517_v18 = vld [vmem:[%s28314_s1 + $0xbe4] ss:$8 sps:$4 sm:$0xff]  }
 0x312   :  { %14445 = vmatpush1.bf16.msra.mxu0 %v22458_v53  ;;  %v22520_v53 = vld [vmem:[%s28314_s1 + $0x1ce0] ss:$8 sps:$4 sm:$0xff]  }
 0x313   :  { %8133 = vmatmul.mubr.bf16.gmra.mrb[12].mxu1 %v7039_v23  ;;  %14446 = vmatprep.subr.bf16.mxu0 %v22466_v25  ;;  %v22525_v23 = vld [vmem:[%s28314_s1 + $0xbf4] ss:$8 sps:$4 sm:$0xff]  }
 0x314   :  { %8196 = vmatpush1.bf16.msra.mxu1 %v22461_v24  ;;  %8142 = vmatprep.mubr.bf16.mxu1 %v7048_v32  ;;  %v22523_v24 = vld [vmem:[%s28314_s1 + $0xbf0] ss:$8 sps:$4 sm:$0xff]  }
 0x315   :  { %8197 = vmatprep.subr.bf16.mxu1 %v22469_v28  ;;  %13518 = vmatmul.mubr.bf16.gmra.mrb[12].mxu0 %v12313_v26  ;;  %v7018_v25 = vld [vmem:[#allocation2 + $0x538] sm:$0xff]  ;;  %v12345_v26 = vld [vmem:[#allocation2 + $0x270] sm:$0xff]  ;;  %v13602_v28 = vld [vmem:[#allocation2 + $0x308] sm:$0xff] }
 0x316   :  { %14447 = vmatpush1.bf16.msra.mxu0 %v22464_v27  ;;  %13527 = vmatprep.mubr.bf16.mxu0 %v12322_v35  ;;  %v22528_v27 = vld [vmem:[%s28314_s1 + $0x1cf4] ss:$8 sps:$4 sm:$0xff]   ;;  %v22526_v32 = vld [vmem:[%s28314_s1 + $0x1cf0] ss:$8 sps:$4 sm:$0xff]   ;;  %v13601_v35 = vld [vmem:[#allocation2 + $0x300] sm:$0xff] }
 0x317   :  { %14448 = vmatprep.subr.bf16.mxu0 %v22472_v9  ;;  %v22529_v9 = vld [vmem:[%s28314_s1 + $0xc00] ss:$8 sps:$4 sm:$0xff]  }
 0x318   :  { %8198 = vmatpush1.bf16.msra.mxu1 %v22467_v29  ;;  %v22531_v29 = vld [vmem:[%s28314_s1 + $0xc04] ss:$8 sps:$4 sm:$0xff]  }
 0x319   :  { %8199 = vmatprep.subr.bf16.mxu1 %v22475_v40  ;;  %v22540_v40 = vld [vmem:[%s28314_s1 + $0x1d14] ss:$8 sps:$4 sm:$0xff]  }
 0x31a   :  { %14449 = vmatpush1.bf16.msra.mxu0 %v22470_v58  ;;  %v22543_v58 = vld [vmem:[%s28314_s1 + $0xc24] ss:$8 sps:$4 sm:$0xff]  }
 0x31b   :  { %8143 = vmatmul.mubr.bf16.gmra.mrb[16].mxu1 %v7047_v44  ;;  %14450 = vmatprep.subr.bf16.mxu0 %v22478_v48  ;;  %v908_v44 = vld [vmem:[%s28315_s0 + $0x220] sm:$0x11] }
 0x31c   :  { %8200 = vmatpush1.bf16.msra.mxu1 %v22473_v47  ;;  %8152 = vmatprep.mubr.bf16.mxu1 %v7056_v51  ;;  %v22541_v47 = vld [vmem:[%s28314_s1 + $0xc20] ss:$8 sps:$4 sm:$0xff]   ;;  %v17325_v48 = vcombine.high %v904_v43, %v908_v44  ;;  %v22546_v51 = vld [vmem:[%s28314_s1 + $0x1d24] ss:$8 sps:$4 sm:$0xff]  }
 0x31d   :  { %8201 = vmatprep.subr.bf16.mxu1 %v22481_v50  ;;  %13528 = vmatmul.mubr.bf16.gmra.mrb[16].mxu0 %v12321_v49  ;;  %v17485_v49 = vcombine.high %v17404_v45, %v17408_v46  ;;  %v17324_v50 = vcombine.low %v904_v43, %v908_v44 }
 0x31e   :  { %14451 = vmatpush1.bf16.msra.mxu0 %v22476_v52  ;;  %13537 = vmatprep.mubr.bf16.mxu0 %v12330_v56  ;;  %v22549_v52 = vld [vmem:[%s28314_s1 + $0xc34] ss:$8 sps:$4 sm:$0xff]   ;;  %v1696_v56 = vshrl.u32 %v17325_v48, 16 }
 0x31f   :  { %14452 = vmatprep.subr.bf16.mxu0 %v22484_v55  ;;  %v22544_v55 = vld [vmem:[%s28314_s1 + $0x1d20] ss:$8 sps:$4 sm:$0xff]  }
 0x320   :  { %8202 = vmatpush1.bf16.msra.mxu1 %v22479_v54  ;;  %v17484_v54 = vcombine.low %v17404_v45, %v17408_v46  ;;  %v22567_v45 = vld [vmem:[%s28314_s1 + $0xc64] ss:$8 sps:$4 sm:$0xff]  }
 0x321   :  { %8203 = vmatprep.subr.bf16.mxu1 %v22487_v57  ;;  %v1698_v57 = vshll.u32 %v17325_v48, 16 }
 0x322   :  { %14453 = vmatpush1.bf16.msra.mxu0 %v22482_v59  ;;  %v2882_v59 = vshrl.u32 %v17485_v49, 16 }
 0x323   :  { %8153 = vmatmul.mubr.bf16.gmra.mrb[20].mxu1 %v7055_v60  ;;  %14454 = vmatprep.subr.bf16.mxu0 %v22490_v62  ;;  %v2885_v60 = vshll.u32 %v17485_v49, 16  ;;  %v22547_v62 = vld [vmem:[%s28314_s1 + $0xc30] ss:$8 sps:$4 sm:$0xff]  }
 0x324   :  { %8204 = vmatpush1.bf16.msra.mxu1 %v22485_v61  ;;  %8162 = vmatprep.mubr.bf16.mxu1 %v7064_v1  ;;  %v13609_v61 = vld [vmem:[#allocation2 + $0x340] sm:$0xff]  ;;  %v1691_v1 = vshll.u32 %v17324_v50, 16 }
 0x325   :  { %8205 = vmatprep.subr.bf16.mxu1 %v22493_v63  ;;  %13538 = vmatmul.mubr.bf16.gmra.mrb[20].mxu0 %v12329_v0  ;;  %v7034_v63 = vld [vmem:[#allocation2 + $0x5b8] sm:$0xff]  ;;  %v1689_v0 = vshrl.u32 %v17324_v50, 16 }
 0x326   :  { %14455 = vmatpush1.bf16.msra.mxu0 %v22488_v31  ;;  %13547 = vmatprep.mubr.bf16.mxu0 %v12338_v4  ;;  %v2874_v31 = vshrl.u32 %v17484_v54, 16  ;;  %v1700_v4 = vrot.slane %v1698_v57, 1  ;;  %v22570_v57 = vld [vmem:[%s28314_s1 + $0x1d64] ss:$8 sps:$4 sm:$0xff]  }
 0x327   :  { %14456 = vmatprep.subr.bf16.mxu0 %v22496_v3  ;;  %v22552_v3 = vld [vmem:[%s28314_s1 + $0x1d34] ss:$8 sps:$4 sm:$0xff]  }
 0x328   :  { %8206 = vmatpush1.bf16.msra.mxu1 %v22491_v2  ;;  %v2877_v2 = vshll.u32 %v17484_v54, 16 }
 0x329   :  { %8207 = vmatprep.subr.bf16.mxu1 %v22501_v5  ;;  %v2884_v5 = vrot.slane %v2882_v59, 4  ;;  %v13625_v59 = vld [vmem:[#allocation2 + $0x3c0] sm:$0xff] }
 0x32a   :  { %14457 = vmatpush1.bf16.msra.mxu0 %v22494_v6  ;;  %v2887_v6 = vrot.slane %v2885_v60, 5  ;;  %v22573_v60 = vld [vmem:[%s28314_s1 + $0xc74] ss:$8 sps:$4 sm:$0xff]  }
 0x32b   :  { %8163 = vmatmul.mubr.bf16.gmra.mrb[24].mxu1 %v7063_v7  ;;  %14458 = vmatprep.subr.bf16.mxu0 %v22506_v10  ;;  %v13618_v7 = vld [vmem:[#allocation2 + $0x388] sm:$0xff]  ;;  %v2876_v10 = vrot.slane %v2874_v31, 4 }
 0x32c   :  { %8208 = vmatpush1.bf16.msra.mxu1 %v22499_v8  ;;  %8172 = vmatprep.mubr.bf16.mxu1 %v7072_v13  ;;  %v1693_v8 = vrot.slane %v1691_v1, 1  ;;  %v22555_v13 = vld [vmem:[%s28314_s1 + $0xc44] ss:$8 sps:$4 sm:$0xff]  }
 0x32d   :  { %8209 = vmatprep.subr.bf16.mxu1 %v22509_v12  ;;  %13548 = vmatmul.mubr.bf16.gmra.mrb[24].mxu0 %v12337_v14  ;;  %v22550_v12 = vld [vmem:[%s28314_s1 + $0x1d30] ss:$8 sps:$4 sm:$0xff]   ;;  %v1701_v14 = vor.u32 %v1700_v4, %v1696_v56  ;;  %v22565_v56 = vld [vmem:[%s28314_s1 + $0xc60] ss:$8 sps:$4 sm:$0xff]   ;;  %v22579_v31 = vld [vmem:[%s28314_s1 + $0xc84] ss:$8 sps:$4 sm:$0xff]  }
 0x32e   :  { %14459 = vmatpush1.bf16.msra.mxu0 %v22504_v11  ;;  %13557 = vmatprep.mubr.bf16.mxu0 %v12346_v17  ;;  %v2879_v11 = vrot.slane %v2877_v2, 5  ;;  %v22553_v17 = vld [vmem:[%s28314_s1 + $0xc40] ss:$8 sps:$4 sm:$0xff]   ;;  %v22574_v2 = vld [vmem:[%s28314_s1 + $0x1d70] ss:$8 sps:$4 sm:$0xff]  }
 0x32f   :  { %14460 = vmatprep.subr.bf16.mxu0 %v22512_v16  ;;  %v7033_v16 = vld [vmem:[#allocation2 + $0x5b0] sm:$0xff]  ;;  %1946 = vst [vmem:[#allocation2 + $0x488] sm:$0xf] %v1701_v14  ;;  %v13634_v1 = vld [vmem:[#allocation2 + $0x408] sm:$0xff] }
 0x330   :  { %8210 = vmatpush1.bf16.msra.mxu1 %v22507_v15  ;;  %v2888_v15 = vor.u32 %v2887_v6, %v2884_v5  ;;  %v22577_v4 = vld [vmem:[%s28314_s1 + $0xc80] ss:$8 sps:$4 sm:$0xff]   ;;  %v22582_v5 = vld [vmem:[%s28314_s1 + $0x1d84] ss:$8 sps:$4 sm:$0xff]  }
 0x331   :  { %8211 = vmatprep.subr.bf16.mxu1 %v22517_v18  ;;  %v1694_v18 = vor.u32 %v1693_v8, %v1689_v0  ;;  %v22576_v0 = vld [vmem:[%s28314_s1 + $0x1d74] ss:$8 sps:$4 sm:$0xff]   ;;  %v13633_v6 = vld [vmem:[#allocation2 + $0x400] sm:$0xff] }
 0x332   :  { %14461 = vmatpush1.bf16.msra.mxu0 %v22510_v19  ;;  %v2880_v19 = vor.u32 %v2879_v11, %v2876_v10  ;;  %3146 = vst [vmem:[#allocation2 + $0x488] sm:$0xf0] %v2888_v15  ;;  %v22585_v8 = vld [vmem:[%s28314_s1 + $0xc94] ss:$8 sps:$4 sm:$0xff]   ;;  %v22583_v11 = vld [vmem:[%s28314_s1 + $0xc90] ss:$8 sps:$4 sm:$0xff]  }
 0x333   :  { %8173 = vmatmul.mubr.bf16.gmra.mrb[28].mxu1 %v7071_v20  ;;  %14462 = vmatprep.subr.bf16.mxu0 %v22522_v22  ;;  %v912_v20 = vld [vmem:[%s28315_s0 + $0x240] sm:$0xff]  ;;  %1945 = vst [vmem:[#allocation2 + $0x480] sm:$0xf] %v1694_v18  ;;  %v7058_v10 = vld [vmem:[#allocation2 + $0x678] sm:$0xff] }
 0x334   :  { %8212 = vmatpush1.bf16.msra.mxu1 %v22515_v21  ;;  %8215 = vmatprep.mubr.bf16.mxu1 %v7018_v25  ;;  %v916_v21 = vld [vmem:[%s28315_s0 + $0x260] sm:$0x11]  ;;  %3145 = vst [vmem:[#allocation2 + $0x480] sm:$0xf0] %v2880_v19  ;;  %v22586_v15 = vld [vmem:[%s28314_s1 + $0x1d90] ss:$8 sps:$4 sm:$0xff]  }
 0x335   :  { %8213 = vmatprep.subr.bf16.mxu1 %v22525_v23  ;;  %13558 = vmatmul.mubr.bf16.gmra.mrb[28].mxu0 %v12345_v26  ;;  %v17412_v22 = vld [vmem:[%s28315_s0 + $0x4c0] sm:$0xff]  ;;  %v17332_v26 = vcombine.low %v912_v20, %v916_v21 }
 0x336   :  { %14463 = vmatpush1.bf16.msra.mxu0 %v22520_v53  ;;  %14466 = vmatprep.mubr.bf16.mxu0 %v13602_v28  ;;  %v17416_v53 = vld [vmem:[%s28315_s0 + $0x4e0] sm:$0x11] }
 0x337   :  { %14464 = vmatprep.subr.bf16.mxu0 %v22528_v27  ;;  %v22558_v23 = vld [vmem:[%s28314_s1 + $0x1d44] ss:$8 sps:$4 sm:$0xff]   ;;  %v17493_v25 = vcombine.high %v17412_v22, %v17416_v53  ;;  %v22556_v28 = vld [vmem:[%s28314_s1 + $0x1d40] ss:$8 sps:$4 sm:$0xff]  }
 0x338   :  { %8214 = vmatpush1.bf16.msra.mxu1 %v22523_v24  ;;  %v17333_v24 = vcombine.high %v912_v20, %v916_v21  ;;  %v13617_v27 = vld [vmem:[#allocation2 + $0x380] sm:$0xff]  ;;  %v22597_v20 = vld [vmem:[%s28314_s1 + $0xcb4] ss:$8 sps:$4 sm:$0xff]  }
 0x339   :  { %9162 = vmatprep.subr.bf16.mxu1 %v22531_v29  ;;  %v22561_v29 = vld [vmem:[%s28314_s1 + $0xc54] ss:$8 sps:$4 sm:$0xff]   ;;  %v22591_v14 = vld [vmem:[%s28314_s1 + $0xca4] ss:$8 sps:$4 sm:$0xff]  }
 0x33a   :  { %14465 = vmatpush1.bf16.msra.mxu0 %v22526_v32  ;;  %v7042_v32 = vld [vmem:[#allocation2 + $0x5f8] sm:$0xff]  ;;  %v22594_v18 = vld [vmem:[%s28314_s1 + $0x1da4] ss:$8 sps:$4 sm:$0xff]  }
 0x33b   :  { %8216 = vmatmul.mubr.bf16.vlgmr.msra.gmra.mrb[0].mxu1 %v7017_v33  ;;  %14547 = vmatprep.subr.bf16.mxu0 %v22534_v34  ;;  %v22559_v33 = vld [vmem:[%s28314_s1 + $0xc50] ss:$8 sps:$4 sm:$0xff]   ;;  %v1752_v34 = vshrl.u32 %v17333_v24, 16  ;;  %v13641_v19 = vld [vmem:[#allocation2 + $0x440] sm:$0xff] }
 0x33c   :  { %9163 = vmatpush1.bf16.msra.mxu1 %v22529_v9  ;;  %8225 = vmatprep.mubr.bf16.mxu1 %v7026_v38  ;;  %v17492_v9 = vcombine.low %v17412_v22, %v17416_v53  ;;  %v22564_v38 = vld [vmem:[%s28314_s1 + $0x1d54] ss:$8 sps:$4 sm:$0xff]   ;;  %v22592_v22 = vld [vmem:[%s28314_s1 + $0x1da0] ss:$8 sps:$4 sm:$0xff]   ;;  %v22595_v53 = vld [vmem:[%s28314_s1 + $0xcb0] ss:$8 sps:$4 sm:$0xff]  }
 0x33d   :  { %9164 = vmatprep.subr.bf16.mxu1 %v22537_v36  ;;  %14467 = vmatmul.mubr.bf16.vlgmr.msra.gmra.mrb[0].mxu0 %v13601_v35  ;;  %v1754_v35 = vshll.u32 %v17333_v24, 16  ;;  %v2946_v36 = vshrl.u32 %v17493_v25, 16  ;;  %v7066_v21 = vld [vmem:[#allocation2 + $0x6b8] sm:$0xff]  ;;  %v13650_v24 = vld [vmem:[#allocation2 + $0x488] sm:$0xff] }
 0x33e   :  { %14548 = vmatpush1.bf16.msra.mxu0 %v22532_v37  ;;  %14476 = vmatprep.mubr.bf16.mxu0 %v13610_v41  ;;  %v2949_v37 = vshll.u32 %v17493_v25, 16  ;;  %v2938_v41 = vshrl.u32 %v17492_v9, 16  ;;  %v22603_v25 = vld [vmem:[%s28314_s1 + $0xcc4] ss:$8 sps:$4 sm:$0xff]  }
 0x33f   :  { %14549 = vmatprep.subr.bf16.mxu0 %v22540_v40  ;;  %v1747_v40 = vshll.u32 %v17332_v26, 16  ;;  %v1756_v43 = vrot.slane %v1754_v35, 1  ;;  %v22607_v35 = vld [vmem:[%s28314_s1 + $0xcd0] ss:$8 sps:$4 sm:$0xff]  }
 0x340   :  { %9165 = vmatpush1.bf16.msra.mxu1 %v22535_v39  ;;  %v1745_v39 = vshrl.u32 %v17332_v26, 16  ;;  %v2951_v44 = vrot.slane %v2949_v37, 5  ;;  %v22598_v26 = vld [vmem:[%s28314_s1 + $0x1db0] ss:$8 sps:$4 sm:$0xff]  }
 0x341   :  { %9166 = vmatprep.subr.bf16.mxu1 %v22543_v58  ;;  %v13626_v58 = vld [vmem:[#allocation2 + $0x3c8] sm:$0xff]  ;;  %v1749_v46 = vrot.slane %v1747_v40, 1  ;;  %v1757_v49 = vor.u32 %v1756_v43, %v1752_v34  ;;  %v13649_v34 = vld [vmem:[#allocation2 + $0x480] sm:$0xff]  ;;  %v7073_v40 = vld [vmem:[#allocation2 + $0x6f0] sm:$0xff] }
 0x342   :  { %14550 = vmatpush1.bf16.msra.mxu0 %v22538_v42  ;;  %v2941_v42 = vshll.u32 %v17492_v9, 16  ;;  %v22609_v9 = vld [vmem:[%s28314_s1 + $0xcd4] ss:$8 sps:$4 sm:$0xff]   ;;  %v22616_v43 = vld [vmem:[%s28314_s1 + $0x1de0] ss:$8 sps:$4 sm:$0xff]  }
 0x343   :  { %8226 = vmatmul.mubr.bf16.gmra.mrb[4].mxu1 %v7025_v30  ;;  %14551 = vmatprep.subr.bf16.mxu0 %v22546_v51  ;;  %v2948_v30 = vrot.slane %v2946_v36, 4  ;;  %v22562_v51 = vld [vmem:[%s28314_s1 + $0x1d50] ss:$8 sps:$4 sm:$0xff]   ;;  %1954 = vst [vmem:[#allocation2 + $0x4c8] sm:$0xf] %v1757_v49 }
 0x344   :  { %9167 = vmatpush1.bf16.msra.mxu1 %v22541_v47  ;;  %8235 = vmatprep.mubr.bf16.mxu1 %v7034_v63  ;;  %v2940_v47 = vrot.slane %v2938_v41, 4  ;;  %v2943_v48 = vrot.slane %v2941_v42, 5  ;;  %v22571_v63 = vld [vmem:[%s28314_s1 + $0xc70] ss:$8 sps:$4 sm:$0xff]   ;;  %v22612_v36 = vld [vmem:[%s28314_s1 + $0x1dd4] ss:$8 sps:$4 sm:$0xff]  }
 0x345   :  { %9168 = vmatprep.subr.bf16.mxu1 %v22549_v52  ;;  %14477 = vmatmul.mubr.bf16.gmra.mrb[4].mxu0 %v13609_v61  ;;  %v2952_v50 = vor.u32 %v2951_v44, %v2948_v30  ;;  %v1750_v52 = vor.u32 %v1749_v46, %v1745_v39  ;;  %v22568_v61 = vld [vmem:[%s28314_s1 + $0x1d60] ss:$8 sps:$4 sm:$0xff]   ;;  %v22610_v39 = vld [vmem:[%s28314_s1 + $0x1dd0] ss:$8 sps:$4 sm:$0xff]   ;;  %v22618_v42 = vld [vmem:[%s28314_s1 + $0x1de4] ss:$8 sps:$4 sm:$0xff]  }
 0x346   :  { %14552 = vmatpush1.bf16.msra.mxu0 %v22544_v55  ;;  %14486 = vmatprep.mubr.bf16.mxu0 %v13618_v7  ;;  %v2944_v54 = vor.u32 %v2943_v48, %v2940_v47  ;;  %v7041_v55 = vld [vmem:[#allocation2 + $0x5f0] sm:$0xff]  ;;  %v22580_v7 = vld [vmem:[%s28314_s1 + $0x1d80] ss:$8 sps:$4 sm:$0xff]   ;;  %v13604_v47 = vld [vmem:[#allocation2 + $0x318] sm:$0xff] }
 0x347   :  { %14553 = vmatprep.subr.bf16.mxu0 %v22552_v3  ;;  %3154 = vst [vmem:[#allocation2 + $0x4c8] sm:$0xf0] %v2952_v50  ;;  %1953 = vst [vmem:[#allocation2 + $0x4c0] sm:$0xf] %v1750_v52  ;;  %v7049_v3 = vld [vmem:[#allocation2 + $0x630] sm:$0xff]  ;;  %v8330_v44 = vld [vmem:[#allocation2 + $0x48] sm:$0xff] }
 0x348   :  { %9169 = vmatpush1.bf16.msra.mxu1 %v22547_v62  ;;  %3153 = vst [vmem:[#allocation2 + $0x4c0] sm:$0xf0] %v2944_v54  ;;  %v7050_v62 = vld [vmem:[#allocation2 + $0x638] sm:$0xff]  ;;  %v22613_v41 = vld [vmem:[%s28314_s1 + $0xce0] ss:$8 sps:$4 sm:$0xff]   ;;  %v13603_v54 = vld [vmem:[#allocation2 + $0x310] sm:$0xff] }
 0x349   :  { %9170 = vmatprep.subr.bf16.mxu1 %v22555_v13  ;;  %v13642_v13 = vld [vmem:[#allocation2 + $0x448] sm:$0xff]  ;;  %v22619_v30 = vld [vmem:[%s28314_s1 + $0xcf0] ss:$8 sps:$4 sm:$0xff]   ;;  %v22624_v46 = vld [vmem:[%s28314_s1 + $0x1df4] ss:$8 sps:$4 sm:$0xff]  }
 0x34a   :  { %14554 = vmatpush1.bf16.msra.mxu0 %v22550_v12  ;;  %v22588_v12 = vld [vmem:[%s28314_s1 + $0x1d94] ss:$8 sps:$4 sm:$0xff]   ;;  %v22627_v48 = vld [vmem:[%s28314_s1 + $0xd04] ss:$8 sps:$4 sm:$0xff]   ;;  %v22622_v49 = vld [vmem:[%s28314_s1 + $0x1df0] ss:$8 sps:$4 sm:$0xff]  }
 0x34b   :  { %8236 = vmatmul.mubr.bf16.gmra.mrb[8].mxu1 %v7033_v16  ;;  %14555 = vmatprep.subr.bf16.mxu0 %v22558_v23  ;;  %v7057_v16 = vld [vmem:[#allocation2 + $0x670] sm:$0xff]  ;;  %v8329_v50 = vld [vmem:[#allocation2 + $0x40] sm:$0xff] }
 0x34c   :  { %9171 = vmatpush1.bf16.msra.mxu1 %v22553_v17  ;;  %8245 = vmatprep.mubr.bf16.mxu1 %v7042_v32  ;;  %v22589_v17 = vld [vmem:[%s28314_s1 + $0xca0] ss:$8 sps:$4 sm:$0xff]   ;;  %v22600_v23 = vld [vmem:[%s28314_s1 + $0x1db4] ss:$8 sps:$4 sm:$0xff]   ;;  %v22630_v52 = vld [vmem:[%s28314_s1 + $0x1e04] ss:$8 sps:$4 sm:$0xff]  }
 0x34d   :  { %9172 = vmatprep.subr.bf16.mxu1 %v22561_v29  ;;  %14487 = vmatmul.mubr.bf16.gmra.mrb[8].mxu0 %v13617_v27  ;;  %v7065_v27 = vld [vmem:[#allocation2 + $0x6b0] sm:$0xff]  ;;  %v22606_v29 = vld [vmem:[%s28314_s1 + $0x1dc4] ss:$8 sps:$4 sm:$0xff]   ;;  %v22604_v32 = vld [vmem:[%s28314_s1 + $0x1dc0] ss:$8 sps:$4 sm:$0xff]  }
 0x34e   :  { %14556 = vmatpush1.bf16.msra.mxu0 %v22556_v28  ;;  %14496 = vmatprep.mubr.bf16.mxu0 %v13626_v58  ;;  %v22601_v28 = vld [vmem:[%s28314_s1 + $0xcc0] ss:$8 sps:$4 sm:$0xff]   ;;  %v22621_v58 = vld [vmem:[%s28314_s1 + $0xcf4] ss:$8 sps:$4 sm:$0xff]  }
 0x34f   :  { %14557 = vmatprep.subr.bf16.mxu0 %v22564_v38  ;;  %v13658_v37 = vld [vmem:[#allocation2 + $0x4c8] sm:$0xff] }
 0x350   :  { %9173 = vmatpush1.bf16.msra.mxu1 %v22559_v33  ;;  %v7074_v33 = vld [vmem:[#allocation2 + $0x6f8] sm:$0xff]  ;;  %v22615_v38 = vld [vmem:[%s28314_s1 + $0xce4] ss:$8 sps:$4 sm:$0xff]  }
 0x351   :  { %9174 = vmatprep.subr.bf16.mxu1 %v22567_v45  ;;  %v13657_v45 = vld [vmem:[#allocation2 + $0x4c0] sm:$0xff] }
 0x352   :  { %14558 = vmatpush1.bf16.msra.mxu0 %v22562_v51  ;;  %v22625_v51 = vld [vmem:[%s28314_s1 + $0xd00] ss:$8 sps:$4 sm:$0xff]  }
 0x353   :  { %8246 = vmatmul.mubr.bf16.gmra.mrb[12].mxu1 %v7041_v55  ;;  %14559 = vmatprep.subr.bf16.mxu0 %v22570_v57  ;;  %v22633_v55 = vld [vmem:[%s28314_s1 + $0xd14] ss:$8 sps:$4 sm:$0xff]   ;;  %v8338_v57 = vld [vmem:[#allocation2 + $0x88] sm:$0xff] }
 0x354   :  { %9175 = vmatpush1.bf16.msra.mxu1 %v22565_v56  ;;  %8255 = vmatprep.mubr.bf16.mxu1 %v7050_v62  ;;  %v22628_v56 = vld [vmem:[%s28314_s1 + $0x1e00] ss:$8 sps:$4 sm:$0xff]   ;;  %v22634_v62 = vld [vmem:[%s28314_s1 + $0x1e10] ss:$8 sps:$4 sm:$0xff]  }
 0x355   :  { %9176 = vmatprep.subr.bf16.mxu1 %v22573_v60  ;;  %14497 = vmatmul.mubr.bf16.gmra.mrb[12].mxu0 %v13625_v59  ;;  %v22631_v59 = vld [vmem:[%s28314_s1 + $0xd10] ss:$8 sps:$4 sm:$0xff]   ;;  %v22636_v60 = vld [vmem:[%s28314_s1 + $0x1e14] ss:$8 sps:$4 sm:$0xff]  }
 0x356   :  { %14560 = vmatpush1.bf16.msra.mxu0 %v22568_v61  ;;  %14506 = vmatprep.mubr.bf16.mxu0 %v13634_v1  ;;  %v13612_v61 = vld [vmem:[#allocation2 + $0x358] sm:$0xff]  ;;  %v22637_v1 = vld [vmem:[%s28314_s1 + $0xd20] ss:$8 sps:$4 sm:$0xff]  }
 0x357   :  { %14561 = vmatprep.subr.bf16.mxu0 %v22576_v0  ;;  %v8337_v0 = vld [vmem:[#allocation2 + $0x80] sm:$0xff] }
 0x358   :  { %9177 = vmatpush1.bf16.msra.mxu1 %v22571_v63  ;;  %v22639_v63 = vld [vmem:[%s28314_s1 + $0xd24] ss:$8 sps:$4 sm:$0xff]  }
 0x359   :  { %9178 = vmatprep.subr.bf16.mxu1 %v22579_v31  ;;  %v22642_v31 = vld [vmem:[%s28314_s1 + $0x1e24] ss:$8 sps:$4 sm:$0xff]  }
 0x35a   :  { %14562 = vmatpush1.bf16.msra.mxu0 %v22574_v2  ;;  %v913_v2 = vld [vmem:[%s28315_s0 + $0x248] sm:$0xff] }
 0x35b   :  { %8256 = vmatmul.mubr.bf16.gmra.mrb[16].mxu1 %v7049_v3  ;;  %14563 = vmatprep.subr.bf16.mxu0 %v22582_v5  ;;  %v917_v3 = vld [vmem:[%s28315_s0 + $0x268] sm:$0x11] }
 0x35c   :  { %9179 = vmatpush1.bf16.msra.mxu1 %v22577_v4  ;;  %8265 = vmatprep.mubr.bf16.mxu1 %v7058_v10  ;;  %v17413_v4 = vld [vmem:[%s28315_s0 + $0x4c8] sm:$0xff]  ;;  %v17335_v10 = vcombine.high %v913_v2, %v917_v3 }
 0x35d   :  { %9180 = vmatprep.subr.bf16.mxu1 %v22585_v8  ;;  %14507 = vmatmul.mubr.bf16.gmra.mrb[16].mxu0 %v13633_v6  ;;  %v17417_v5 = vld [vmem:[%s28315_s0 + $0x4e8] sm:$0x11]  ;;  %v13611_v6 = vld [vmem:[#allocation2 + $0x350] sm:$0xff] }
 0x35e   :  { %14564 = vmatpush1.bf16.msra.mxu0 %v22580_v7  ;;  %14516 = vmatprep.mubr.bf16.mxu0 %v13642_v13  ;;  %v22640_v7 = vld [vmem:[%s28314_s1 + $0x1e20] ss:$8 sps:$4 sm:$0xff]   ;;  %v22645_v8 = vld [vmem:[%s28314_s1 + $0xd34] ss:$8 sps:$4 sm:$0xff]   ;;  %v17494_v13 = vcombine.low %v17413_v4, %v17417_v5 }
 0x35f   :  { %14565 = vmatprep.subr.bf16.mxu0 %v22588_v12  ;;  %v17334_v12 = vcombine.low %v913_v2, %v917_v3  ;;  %v8370_v2 = vld [vmem:[#allocation2 + $0x188] sm:$0xff] }
 0x360   :  { %9181 = vmatpush1.bf16.msra.mxu1 %v22583_v11  ;;  %v17495_v11 = vcombine.high %v17413_v4, %v17417_v5  ;;  %v22676_v3 = vld [vmem:[%s28314_s1 + $0x1e80] ss:$8 sps:$4 sm:$0xff]   ;;  %v22679_v4 = vld [vmem:[%s28314_s1 + $0xd90] ss:$8 sps:$4 sm:$0xff]   ;;  %v22684_v5 = vld [vmem:[%s28314_s1 + $0x1e94] ss:$8 sps:$4 sm:$0xff]  }
 0x361   :  { %9182 = vmatprep.subr.bf16.mxu1 %v22591_v14  ;;  %v22643_v14 = vld [vmem:[%s28314_s1 + $0xd30] ss:$8 sps:$4 sm:$0xff]  }
 0x362   :  { %14566 = vmatpush1.bf16.msra.mxu0 %v22586_v15  ;;  %v22648_v15 = vld [vmem:[%s28314_s1 + $0x1e34] ss:$8 sps:$4 sm:$0xff]  }
 0x363   :  { %8266 = vmatmul.mubr.bf16.gmra.mrb[20].mxu1 %v7057_v16  ;;  %14567 = vmatprep.subr.bf16.mxu0 %v22594_v18  ;;  %v8346_v16 = vld [vmem:[#allocation2 + $0xc8] sm:$0xff]  ;;  %v1768_v18 = vshll.u32 %v17335_v10, 16 }
 0x364   :  { %9183 = vmatpush1.bf16.msra.mxu1 %v22589_v17  ;;  %8275 = vmatprep.mubr.bf16.mxu1 %v7066_v21  ;;  %v1766_v17 = vshrl.u32 %v17335_v10, 16  ;;  %v13620_v21 = vld [vmem:[#allocation2 + $0x398] sm:$0xff]  ;;  %v8369_v10 = vld [vmem:[#allocation2 + $0x180] sm:$0xff] }
 0x365   :  { %9184 = vmatprep.subr.bf16.mxu1 %v22597_v20  ;;  %14517 = vmatmul.mubr.bf16.gmra.mrb[20].mxu0 %v13641_v19  ;;  %v2962_v19 = vshrl.u32 %v17495_v11, 16  ;;  %v2965_v20 = vshll.u32 %v17495_v11, 16  ;;  %v22685_v11 = vld [vmem:[%s28314_s1 + $0xda0] ss:$8 sps:$4 sm:$0xff]  }
 0x366   :  { %14568 = vmatpush1.bf16.msra.mxu0 %v22592_v22  ;;  %14526 = vmatprep.mubr.bf16.mxu0 %v13650_v24  ;;  %v1759_v22 = vshrl.u32 %v17334_v12, 16  ;;  %v2957_v24 = vshll.u32 %v17494_v13, 16 }
 0x367   :  { %14569 = vmatprep.subr.bf16.mxu0 %v22600_v23  ;;  %v2954_v23 = vshrl.u32 %v17494_v13, 16  ;;  %v22693_v13 = vld [vmem:[%s28314_s1 + $0xdb4] ss:$8 sps:$4 sm:$0xff]  }
 0x368   :  { %9185 = vmatpush1.bf16.msra.mxu1 %v22595_v53  ;;  %v1761_v53 = vshll.u32 %v17334_v12, 16  ;;  %v22690_v12 = vld [vmem:[%s28314_s1 + $0x1ea4] ss:$8 sps:$4 sm:$0xff]  }
 0x369   :  { %9186 = vmatprep.subr.bf16.mxu1 %v22603_v25  ;;  %v22651_v25 = vld [vmem:[%s28314_s1 + $0xd44] ss:$8 sps:$4 sm:$0xff]  }
 0x36a   :  { %14570 = vmatpush1.bf16.msra.mxu0 %v22598_v26  ;;  %v1770_v26 = vrot.slane %v1768_v18, 1  ;;  %v22696_v18 = vld [vmem:[%s28314_s1 + $0x1eb4] ss:$8 sps:$4 sm:$0xff]  }
 0x36b   :  { %8276 = vmatmul.mubr.bf16.gmra.mrb[24].mxu1 %v7065_v27  ;;  %14571 = vmatprep.subr.bf16.mxu0 %v22606_v29  ;;  %v2964_v27 = vrot.slane %v2962_v19, 4  ;;  %v1763_v29 = vrot.slane %v1761_v53, 1  ;;  %v13652_v19 = vld [vmem:[#allocation2 + $0x498] sm:$0xff]  ;;  %v22697_v53 = vld [vmem:[%s28314_s1 + $0xdc0] ss:$8 sps:$4 sm:$0xff]  }
 0x36c   :  { %9187 = vmatpush1.bf16.msra.mxu1 %v22601_v28  ;;  %8285 = vmatprep.mubr.bf16.mxu1 %v7074_v33  ;;  %v2967_v28 = vrot.slane %v2965_v20, 5  ;;  %v22646_v33 = vld [vmem:[%s28314_s1 + $0x1e30] ss:$8 sps:$4 sm:$0xff]   ;;  %v22699_v20 = vld [vmem:[%s28314_s1 + $0xdc4] ss:$8 sps:$4 sm:$0xff]  }
 0x36d   :  { %9188 = vmatprep.subr.bf16.mxu1 %v22609_v9  ;;  %14527 = vmatmul.mubr.bf16.gmra.mrb[24].mxu0 %v13649_v34  ;;  %v2959_v9 = vrot.slane %v2957_v24, 5  ;;  %v1771_v34 = vor.u32 %v1770_v26, %v1766_v17  ;;  %v22691_v17 = vld [vmem:[%s28314_s1 + $0xdb0] ss:$8 sps:$4 sm:$0xff]   ;;  %v22705_v24 = vld [vmem:[%s28314_s1 + $0xdd4] ss:$8 sps:$4 sm:$0xff]   ;;  %v8386_v26 = vld [vmem:[#allocation2 + $0x208] sm:$0xff] }
 0x36e   :  { %14572 = vmatpush1.bf16.msra.mxu0 %v22604_v32  ;;  %14536 = vmatprep.mubr.bf16.mxu0 %v13658_v37  ;;  %v2956_v32 = vrot.slane %v2954_v23, 4  ;;  %v22649_v37 = vld [vmem:[%s28314_s1 + $0xd40] ss:$8 sps:$4 sm:$0xff]   ;;  %v22702_v23 = vld [vmem:[%s28314_s1 + $0x1ec4] ss:$8 sps:$4 sm:$0xff]  }
 0x36f   :  { %14573 = vmatprep.subr.bf16.mxu0 %v22612_v36  ;;  %v8345_v36 = vld [vmem:[#allocation2 + $0xc0] sm:$0xff]  ;;  %1956 = vst [vmem:[#allocation2 + $0x4d8] sm:$0xf] %v1771_v34 }
 0x370   :  { %9189 = vmatpush1.bf16.msra.mxu1 %v22607_v35  ;;  %v2968_v35 = vor.u32 %v2967_v28, %v2964_v27  ;;  %v22700_v27 = vld [vmem:[%s28314_s1 + $0x1ec0] ss:$8 sps:$4 sm:$0xff]   ;;  %v22703_v28 = vld [vmem:[%s28314_s1 + $0xdd0] ss:$8 sps:$4 sm:$0xff]  }
 0x371   :  { %9190 = vmatprep.subr.bf16.mxu1 %v22615_v38  ;;  %v22654_v38 = vld [vmem:[%s28314_s1 + $0x1e44] ss:$8 sps:$4 sm:$0xff]  }
 0x372   :  { %14574 = vmatpush1.bf16.msra.mxu0 %v22610_v39  ;;  %v1764_v39 = vor.u32 %v1763_v29, %v1759_v22  ;;  %3156 = vst [vmem:[#allocation2 + $0x4d8] sm:$0xf0] %v2968_v35  ;;  %v8377_v22 = vld [vmem:[#allocation2 + $0x1c0] sm:$0xff]  ;;  %v22708_v29 = vld [vmem:[%s28314_s1 + $0x1ed4] ss:$8 sps:$4 sm:$0xff]  }
 0x373   :  { %8286 = vmatmul.mubr.bf16.gmra.mrb[28].mxu1 %v7073_v40  ;;  %14575 = vmatprep.subr.bf16.mxu0 %v22618_v42  ;;  %v2960_v40 = vor.u32 %v2959_v9, %v2956_v32  ;;  %v22657_v42 = vld [vmem:[%s28314_s1 + $0xd54] ss:$8 sps:$4 sm:$0xff]   ;;  %v22711_v9 = vld [vmem:[%s28314_s1 + $0xde4] ss:$8 sps:$4 sm:$0xff]   ;;  %v22709_v35 = vld [vmem:[%s28314_s1 + $0xde0] ss:$8 sps:$4 sm:$0xff]  }
 0x374   :  { %9191 = vmatpush1.bf16.msra.mxu1 %v22613_v41  ;;  %9194 = vmatprep.mubr.bf16.mxu1 %v8330_v44  ;;  %v13619_v41 = vld [vmem:[#allocation2 + $0x390] sm:$0xff]  ;;  %1955 = vst [vmem:[#allocation2 + $0x4d0] sm:$0xf] %v1764_v39  ;;  %v8385_v34 = vld [vmem:[#allocation2 + $0x200] sm:$0xff]  ;;  %v8332_v39 = vld [vmem:[#allocation2 + $0x58] sm:$0xff] }
 0x375   :  { %9192 = vmatprep.subr.bf16.mxu1 %v22621_v58  ;;  %14537 = vmatmul.mubr.bf16.gmra.mrb[28].mxu0 %v13657_v45  ;;  %v22652_v58 = vld [vmem:[%s28314_s1 + $0x1e40] ss:$8 sps:$4 sm:$0xff]   ;;  %3155 = vst [vmem:[#allocation2 + $0x4d0] sm:$0xf0] %v2960_v40  ;;  %v22660_v44 = vld [vmem:[%s28314_s1 + $0x1e54] ss:$8 sps:$4 sm:$0xff]  }
 0x376   :  { %14576 = vmatpush1.bf16.msra.mxu0 %v22616_v43  ;;  %14579 = vmatprep.mubr.bf16.mxu0 %v13604_v47  ;;  %v22655_v43 = vld [vmem:[%s28314_s1 + $0xd50] ss:$8 sps:$4 sm:$0xff]  }
 0x377   :  { %14577 = vmatprep.subr.bf16.mxu0 %v22624_v46  ;;  %v13628_v45 = vld [vmem:[#allocation2 + $0x3d8] sm:$0xff]  ;;  %v22663_v46 = vld [vmem:[%s28314_s1 + $0xd64] ss:$8 sps:$4 sm:$0xff]  }
 0x378   :  { %9193 = vmatpush1.bf16.msra.mxu1 %v22619_v30  ;;  %v8354_v30 = vld [vmem:[#allocation2 + $0x108] sm:$0xff]  ;;  %v22658_v47 = vld [vmem:[%s28314_s1 + $0x1e50] ss:$8 sps:$4 sm:$0xff]  }
 0x379   :  { %9275 = vmatprep.subr.bf16.mxu1 %v22627_v48  ;;  %v8353_v48 = vld [vmem:[#allocation2 + $0x100] sm:$0xff]  ;;  %v13660_v32 = vld [vmem:[#allocation2 + $0x4d8] sm:$0xff] }
 0x37a   :  { %14578 = vmatpush1.bf16.msra.mxu0 %v22622_v49  ;;  %v22661_v49 = vld [vmem:[%s28314_s1 + $0xd60] ss:$8 sps:$4 sm:$0xff]  }
 0x37b   :  { %9195 = vmatmul.mubr.bf16.vlgmr.msra.gmra.mrb[0].mxu1 %v8329_v50  ;;  %14660 = vmatprep.subr.bf16.mxu0 %v22630_v52  ;;  %v22666_v50 = vld [vmem:[%s28314_s1 + $0x1e64] ss:$8 sps:$4 sm:$0xff]   ;;  %v22669_v52 = vld [vmem:[%s28314_s1 + $0xd74] ss:$8 sps:$4 sm:$0xff]  }
 0x37c   :  { %9276 = vmatpush1.bf16.msra.mxu1 %v22625_v51  ;;  %9204 = vmatprep.mubr.bf16.mxu1 %v8338_v57  ;;  %v13627_v51 = vld [vmem:[#allocation2 + $0x3d0] sm:$0xff] }
 0x37d   :  { %9277 = vmatprep.subr.bf16.mxu1 %v22633_v55  ;;  %14580 = vmatmul.mubr.bf16.vlgmr.msra.gmra.mrb[0].mxu0 %v13603_v54  ;;  %v8362_v54 = vld [vmem:[#allocation2 + $0x148] sm:$0xff]  ;;  %v22672_v57 = vld [vmem:[%s28314_s1 + $0x1e74] ss:$8 sps:$4 sm:$0xff]  }
 0x37e   :  { %14661 = vmatpush1.bf16.msra.mxu0 %v22628_v56  ;;  %14589 = vmatprep.mubr.bf16.mxu0 %v13612_v61  ;;  %v22664_v55 = vld [vmem:[%s28314_s1 + $0x1e60] ss:$8 sps:$4 sm:$0xff]   ;;  %v22667_v56 = vld [vmem:[%s28314_s1 + $0xd70] ss:$8 sps:$4 sm:$0xff]  }
 0x37f   :  { %14662 = vmatprep.subr.bf16.mxu0 %v22636_v60  ;;  %v22675_v60 = vld [vmem:[%s28314_s1 + $0xd84] ss:$8 sps:$4 sm:$0xff]   ;;  %v22670_v61 = vld [vmem:[%s28314_s1 + $0x1e70] ss:$8 sps:$4 sm:$0xff]  }
 0x380   :  { %9278 = vmatpush1.bf16.msra.mxu1 %v22631_v59  ;;  %v13636_v59 = vld [vmem:[#allocation2 + $0x418] sm:$0xff]  ;;  %v13659_v40 = vld [vmem:[#allocation2 + $0x4d0] sm:$0xff] }
 0x381   :  { %9279 = vmatprep.subr.bf16.mxu1 %v22639_v63  ;;  %v22673_v63 = vld [vmem:[%s28314_s1 + $0xd80] ss:$8 sps:$4 sm:$0xff]  }
 0x382   :  { %14663 = vmatpush1.bf16.msra.mxu0 %v22634_v62  ;;  %v8361_v62 = vld [vmem:[#allocation2 + $0x140] sm:$0xff] }
 0x383   :  { %9205 = vmatmul.mubr.bf16.gmra.mrb[4].mxu1 %v8337_v0  ;;  %14664 = vmatprep.subr.bf16.mxu0 %v22642_v31  ;;  %v22678_v0 = vld [vmem:[%s28314_s1 + $0x1e84] ss:$8 sps:$4 sm:$0xff]   ;;  %v22681_v31 = vld [vmem:[%s28314_s1 + $0xd94] ss:$8 sps:$4 sm:$0xff]  }
 0x384   :  { %9280 = vmatpush1.bf16.msra.mxu1 %v22637_v1  ;;  %9214 = vmatprep.mubr.bf16.mxu1 %v8346_v16  ;;  %v13635_v1 = vld [vmem:[#allocation2 + $0x410] sm:$0xff]  ;;  %v22688_v16 = vld [vmem:[%s28314_s1 + $0x1ea0] ss:$8 sps:$4 sm:$0xff]  }
 0x385   :  { %9281 = vmatprep.subr.bf16.mxu1 %v22645_v8  ;;  %14590 = vmatmul.mubr.bf16.gmra.mrb[4].mxu0 %v13611_v6  ;;  %v13644_v6 = vld [vmem:[#allocation2 + $0x458] sm:$0xff] }
 0x386   :  { %14665 = vmatpush1.bf16.msra.mxu0 %v22640_v7  ;;  %14599 = vmatprep.mubr.bf16.mxu0 %v13620_v21  ;;  %v22687_v7 = vld [vmem:[%s28314_s1 + $0xda4] ss:$8 sps:$4 sm:$0xff]   ;;  %v22682_v8 = vld [vmem:[%s28314_s1 + $0x1e90] ss:$8 sps:$4 sm:$0xff]  }
 0x387   :  { %14666 = vmatprep.subr.bf16.mxu0 %v22648_v15  ;;  %v13643_v15 = vld [vmem:[#allocation2 + $0x450] sm:$0xff] }
 0x388   :  { %9282 = vmatpush1.bf16.msra.mxu1 %v22643_v14  ;;  %v8378_v14 = vld [vmem:[#allocation2 + $0x1c8] sm:$0xff]  ;;  %v22694_v21 = vld [vmem:[%s28314_s1 + $0x1eb0] ss:$8 sps:$4 sm:$0xff]  }
 0x389   :  { %9283 = vmatprep.subr.bf16.mxu1 %v22651_v25  ;;  %v13651_v25 = vld [vmem:[#allocation2 + $0x490] sm:$0xff] }
 0x38a   :  { %14667 = vmatpush1.bf16.msra.mxu0 %v22646_v33  ;;  %v22706_v33 = vld [vmem:[%s28314_s1 + $0x1ed0] ss:$8 sps:$4 sm:$0xff]  }
 0x38b   :  { %9215 = vmatmul.mubr.bf16.gmra.mrb[8].mxu1 %v8345_v36  ;;  %14668 = vmatprep.subr.bf16.mxu0 %v22654_v38  ;;  %v22714_v36 = vld [vmem:[%s28314_s1 + $0x1ee4] ss:$8 sps:$4 sm:$0xff]   ;;  %v22717_v38 = vld [vmem:[%s28314_s1 + $0xdf4] ss:$8 sps:$4 sm:$0xff]  }
 0x38c   :  { %9284 = vmatpush1.bf16.msra.mxu1 %v22649_v37  ;;  %9224 = vmatprep.mubr.bf16.mxu1 %v8354_v30  ;;  %v22712_v37 = vld [vmem:[%s28314_s1 + $0x1ee0] ss:$8 sps:$4 sm:$0xff]   ;;  %v22718_v30 = vld [vmem:[%s28314_s1 + $0x1ef0] ss:$8 sps:$4 sm:$0xff]  }
 0x38d   :  { %9285 = vmatprep.subr.bf16.mxu1 %v22657_v42  ;;  %14600 = vmatmul.mubr.bf16.gmra.mrb[8].mxu0 %v13619_v41  ;;  %v22715_v41 = vld [vmem:[%s28314_s1 + $0xdf0] ss:$8 sps:$4 sm:$0xff]   ;;  %v22720_v42 = vld [vmem:[%s28314_s1 + $0x1ef4] ss:$8 sps:$4 sm:$0xff]  }
 0x38e   :  { %14669 = vmatpush1.bf16.msra.mxu0 %v22652_v58  ;;  %14609 = vmatprep.mubr.bf16.mxu0 %v13628_v45  ;;  %v13606_v58 = vld [vmem:[#allocation2 + $0x328] sm:$0xff] }
 0x38f   :  { %14670 = vmatprep.subr.bf16.mxu0 %v22660_v44  ;;  %v8331_v44 = vld [vmem:[#allocation2 + $0x50] sm:$0xff]  ;;  %v22721_v45 = vld [vmem:[%s28314_s1 + $0xe00] ss:$8 sps:$4 sm:$0xff]  }
 0x390   :  { %9286 = vmatpush1.bf16.msra.mxu1 %v22655_v43  ;;  %v22723_v43 = vld [vmem:[%s28314_s1 + $0xe04] ss:$8 sps:$4 sm:$0xff]  }
 0x391   :  { %9287 = vmatprep.subr.bf16.mxu1 %v22663_v46  ;;  %v22726_v46 = vld [vmem:[%s28314_s1 + $0x1f04] ss:$8 sps:$4 sm:$0xff]  }
 0x392   :  { %14671 = vmatpush1.bf16.msra.mxu0 %v22658_v47  ;;  %v914_v47 = vld [vmem:[%s28315_s0 + $0x250] sm:$0xff] }
 0x393   :  { %9225 = vmatmul.mubr.bf16.gmra.mrb[12].mxu1 %v8353_v48  ;;  %14672 = vmatprep.subr.bf16.mxu0 %v22666_v50  ;;  %v918_v48 = vld [vmem:[%s28315_s0 + $0x270] sm:$0x11]  ;;  %v13605_v50 = vld [vmem:[#allocation2 + $0x320] sm:$0xff] }
 0x394   :  { %9288 = vmatpush1.bf16.msra.mxu1 %v22661_v49  ;;  %9234 = vmatprep.mubr.bf16.mxu1 %v8362_v54  ;;  %v17414_v49 = vld [vmem:[%s28315_s0 + $0x4d0] sm:$0xff]  ;;  %v17337_v54 = vcombine.high %v914_v47, %v918_v48 }
 0x395   :  { %9289 = vmatprep.subr.bf16.mxu1 %v22669_v52  ;;  %14610 = vmatmul.mubr.bf16.gmra.mrb[12].mxu0 %v13627_v51  ;;  %v22724_v51 = vld [vmem:[%s28314_s1 + $0x1f00] ss:$8 sps:$4 sm:$0xff]   ;;  %v22729_v52 = vld [vmem:[%s28314_s1 + $0xe14] ss:$8 sps:$4 sm:$0xff]  }
 0x396   :  { %14673 = vmatpush1.bf16.msra.mxu0 %v22664_v55  ;;  %14619 = vmatprep.mubr.bf16.mxu0 %v13636_v59  ;;  %v17418_v55 = vld [vmem:[%s28315_s0 + $0x4f0] sm:$0x11] }
 0x397   :  { %14674 = vmatprep.subr.bf16.mxu0 %v22672_v57  ;;  %v22727_v57 = vld [vmem:[%s28314_s1 + $0xe10] ss:$8 sps:$4 sm:$0xff]   ;;  %v22732_v59 = vld [vmem:[%s28314_s1 + $0x1f14] ss:$8 sps:$4 sm:$0xff]  }
 0x398   :  { %9290 = vmatpush1.bf16.msra.mxu1 %v22667_v56  ;;  %v17336_v56 = vcombine.low %v914_v47, %v918_v48  ;;  %v22760_v47 = vld [vmem:[%s28314_s1 + $0x1f60] ss:$8 sps:$4 sm:$0xff]   ;;  %v8364_v48 = vld [vmem:[#allocation2 + $0x158] sm:$0xff] }
 0x399   :  { %9291 = vmatprep.subr.bf16.mxu1 %v22675_v60  ;;  %v8340_v60 = vld [vmem:[#allocation2 + $0x98] sm:$0xff] }
 0x39a   :  { %14675 = vmatpush1.bf16.msra.mxu0 %v22670_v61  ;;  %v17497_v61 = vcombine.high %v17414_v49, %v17418_v55 }
 0x39b   :  { %9235 = vmatmul.mubr.bf16.gmra.mrb[16].mxu1 %v8361_v62  ;;  %14676 = vmatprep.subr.bf16.mxu0 %v22678_v0  ;;  %v17496_v62 = vcombine.low %v17414_v49, %v17418_v55  ;;  %v1782_v0 = vshll.u32 %v17337_v54, 16  ;;  %v22763_v49 = vld [vmem:[%s28314_s1 + $0xe70] ss:$8 sps:$4 sm:$0xff]  }
 0x39c   :  { %9292 = vmatpush1.bf16.msra.mxu1 %v22673_v63  ;;  %9244 = vmatprep.mubr.bf16.mxu1 %v8370_v2  ;;  %v1780_v63 = vshrl.u32 %v17337_v54, 16  ;;  %v13614_v2 = vld [vmem:[#allocation2 + $0x368] sm:$0xff]  ;;  %v22766_v54 = vld [vmem:[%s28314_s1 + $0x1f70] ss:$8 sps:$4 sm:$0xff]  }
 0x39d   :  { %9293 = vmatprep.subr.bf16.mxu1 %v22681_v31  ;;  %14620 = vmatmul.mubr.bf16.gmra.mrb[16].mxu0 %v13635_v1  ;;  %v1773_v1 = vshrl.u32 %v17336_v56, 16  ;;  %v1775_v31 = vshll.u32 %v17336_v56, 16  ;;  %v8363_v55 = vld [vmem:[#allocation2 + $0x150] sm:$0xff]  ;;  %v22769_v56 = vld [vmem:[%s28314_s1 + $0xe80] ss:$8 sps:$4 sm:$0xff]  }
 0x39e   :  { %14677 = vmatpush1.bf16.msra.mxu0 %v22676_v3  ;;  %14629 = vmatprep.mubr.bf16.mxu0 %v13644_v6  ;;  %v2978_v3 = vshrl.u32 %v17497_v61, 16  ;;  %v2973_v6 = vshll.u32 %v17496_v62, 16 }
 0x39f   :  { %14678 = vmatprep.subr.bf16.mxu0 %v22684_v5  ;;  %v2970_v5 = vshrl.u32 %v17496_v62, 16  ;;  %v22772_v62 = vld [vmem:[%s28314_s1 + $0x1f80] ss:$8 sps:$4 sm:$0xff]  }
 0x3a0   :  { %9294 = vmatpush1.bf16.msra.mxu1 %v22679_v4  ;;  %v2981_v4 = vshll.u32 %v17497_v61, 16  ;;  %v13637_v61 = vld [vmem:[#allocation2 + $0x420] sm:$0xff] }
 0x3a1   :  { %9295 = vmatprep.subr.bf16.mxu1 %v22687_v7  ;;  %v22735_v7 = vld [vmem:[%s28314_s1 + $0xe24] ss:$8 sps:$4 sm:$0xff]  }
 0x3a2   :  { %14679 = vmatpush1.bf16.msra.mxu0 %v22682_v8  ;;  %v1784_v8 = vrot.slane %v1782_v0, 1  ;;  %v22780_v0 = vld [vmem:[%s28314_s1 + $0x1f94] ss:$8 sps:$4 sm:$0xff]  }
 0x3a3   :  { %9245 = vmatmul.mubr.bf16.gmra.mrb[20].mxu1 %v8369_v10  ;;  %14680 = vmatprep.subr.bf16.mxu0 %v22690_v12  ;;  %v1777_v10 = vrot.slane %v1775_v31, 1  ;;  %v2983_v12 = vrot.slane %v2981_v4, 5  ;;  %v22783_v31 = vld [vmem:[%s28314_s1 + $0xea4] ss:$8 sps:$4 sm:$0xff]   ;;  %v22781_v4 = vld [vmem:[%s28314_s1 + $0xea0] ss:$8 sps:$4 sm:$0xff]  }
 0x3a4   :  { %9296 = vmatpush1.bf16.msra.mxu1 %v22685_v11  ;;  %9254 = vmatprep.mubr.bf16.mxu1 %v8378_v14  ;;  %v2980_v11 = vrot.slane %v2978_v3, 4  ;;  %v2975_v14 = vrot.slane %v2973_v6, 5  ;;  %v8371_v3 = vld [vmem:[#allocation2 + $0x190] sm:$0xff] }
 0x3a5   :  { %9297 = vmatprep.subr.bf16.mxu1 %v22693_v13  ;;  %14630 = vmatmul.mubr.bf16.gmra.mrb[20].mxu0 %v13643_v15  ;;  %v2972_v13 = vrot.slane %v2970_v5, 4  ;;  %v22730_v15 = vld [vmem:[%s28314_s1 + $0x1f10] ss:$8 sps:$4 sm:$0xff]   ;;  %v22786_v5 = vld [vmem:[%s28314_s1 + $0x1fa4] ss:$8 sps:$4 sm:$0xff]  }
 0x3a6   :  { %14681 = vmatpush1.bf16.msra.mxu0 %v22688_v16  ;;  %14639 = vmatprep.mubr.bf16.mxu0 %v13652_v19  ;;  %v1785_v16 = vor.u32 %v1784_v8, %v1780_v63  ;;  %v22733_v19 = vld [vmem:[%s28314_s1 + $0xe20] ss:$8 sps:$4 sm:$0xff]   ;;  %v22775_v63 = vld [vmem:[%s28314_s1 + $0xe90] ss:$8 sps:$4 sm:$0xff]   ;;  %v22789_v6 = vld [vmem:[%s28314_s1 + $0xeb4] ss:$8 sps:$4 sm:$0xff]  }
 0x3a7   :  { %14682 = vmatprep.subr.bf16.mxu0 %v22696_v18  ;;  %v8339_v18 = vld [vmem:[#allocation2 + $0x90] sm:$0xff]  ;;  %v8380_v8 = vld [vmem:[#allocation2 + $0x1d8] sm:$0xff] }
 0x3a8   :  { %9298 = vmatpush1.bf16.msra.mxu1 %v22691_v17  ;;  %v1778_v17 = vor.u32 %v1777_v10, %v1773_v1  ;;  %1958 = vst [vmem:[#allocation2 + $0x4e8] sm:$0xf] %v1785_v16  ;;  %v13646_v1 = vld [vmem:[#allocation2 + $0x468] sm:$0xff]  ;;  %v8379_v16 = vld [vmem:[#allocation2 + $0x1d0] sm:$0xff] }
 0x3a9   :  { %9299 = vmatprep.subr.bf16.mxu1 %v22699_v20  ;;  %v22738_v20 = vld [vmem:[%s28314_s1 + $0x1f24] ss:$8 sps:$4 sm:$0xff]   ;;  %v22784_v10 = vld [vmem:[%s28314_s1 + $0x1fa0] ss:$8 sps:$4 sm:$0xff]  }
 0x3aa   :  { %14683 = vmatpush1.bf16.msra.mxu0 %v22694_v21  ;;  %v2984_v21 = vor.u32 %v2983_v12, %v2980_v11  ;;  %1957 = vst [vmem:[#allocation2 + $0x4e0] sm:$0xf] %v1778_v17  ;;  %v22787_v11 = vld [vmem:[%s28314_s1 + $0xeb0] ss:$8 sps:$4 sm:$0xff]   ;;  %v22792_v12 = vld [vmem:[%s28314_s1 + $0x1fb4] ss:$8 sps:$4 sm:$0xff]  }
 0x3ab   :  { %9255 = vmatmul.mubr.bf16.gmra.mrb[24].mxu1 %v8377_v22  ;;  %14684 = vmatprep.subr.bf16.mxu0 %v22702_v23  ;;  %v2976_v22 = vor.u32 %v2975_v14, %v2972_v13  ;;  %v22741_v23 = vld [vmem:[%s28314_s1 + $0xe34] ss:$8 sps:$4 sm:$0xff]   ;;  %v13654_v13 = vld [vmem:[#allocation2 + $0x4a8] sm:$0xff] }
 0x3ac   :  { %9300 = vmatpush1.bf16.msra.mxu1 %v22697_v53  ;;  %9264 = vmatprep.mubr.bf16.mxu1 %v8386_v26  ;;  %v13613_v53 = vld [vmem:[#allocation2 + $0x360] sm:$0xff]  ;;  %3158 = vst [vmem:[#allocation2 + $0x4e8] sm:$0xf0] %v2984_v21  ;;  %v22739_v26 = vld [vmem:[%s28314_s1 + $0xe30] ss:$8 sps:$4 sm:$0xff]  }
 0x3ad   :  { %9301 = vmatprep.subr.bf16.mxu1 %v22705_v24  ;;  %14640 = vmatmul.mubr.bf16.gmra.mrb[24].mxu0 %v13651_v25  ;;  %v22736_v24 = vld [vmem:[%s28314_s1 + $0x1f20] ss:$8 sps:$4 sm:$0xff]   ;;  %v8348_v25 = vld [vmem:[#allocation2 + $0xd8] sm:$0xff]  ;;  %3157 = vst [vmem:[#allocation2 + $0x4e0] sm:$0xf0] %v2976_v22 }
 0x3ae   :  { %14685 = vmatpush1.bf16.msra.mxu0 %v22700_v27  ;;  %14649 = vmatprep.mubr.bf16.mxu0 %v13660_v32  ;;  %v22744_v27 = vld [vmem:[%s28314_s1 + $0x1f34] ss:$8 sps:$4 sm:$0xff]   ;;  %v22742_v32 = vld [vmem:[%s28314_s1 + $0x1f30] ss:$8 sps:$4 sm:$0xff]   ;;  %v22795_v14 = vld [vmem:[%s28314_s1 + $0xec4] ss:$8 sps:$4 sm:$0xff]  }
 0x3af   :  { %14686 = vmatprep.subr.bf16.mxu0 %v22708_v29  ;;  %v22747_v29 = vld [vmem:[%s28314_s1 + $0xe44] ss:$8 sps:$4 sm:$0xff]   ;;  %v22793_v17 = vld [vmem:[%s28314_s1 + $0xec0] ss:$8 sps:$4 sm:$0xff]   ;;  %v8388_v21 = vld [vmem:[#allocation2 + $0x218] sm:$0xff] }
 0x3b0   :  { %9302 = vmatpush1.bf16.msra.mxu1 %v22703_v28  ;;  %v13622_v28 = vld [vmem:[#allocation2 + $0x3a8] sm:$0xff] }
 0x3b1   :  { %9303 = vmatprep.subr.bf16.mxu1 %v22711_v9  ;;  %v8347_v9 = vld [vmem:[#allocation2 + $0xd0] sm:$0xff]  ;;  %v22796_v22 = vld [vmem:[%s28314_s1 + $0x1fc0] ss:$8 sps:$4 sm:$0xff]  }
 0x3b2   :  { %14687 = vmatpush1.bf16.msra.mxu0 %v22706_v33  ;;  %v22745_v33 = vld [vmem:[%s28314_s1 + $0xe40] ss:$8 sps:$4 sm:$0xff]  }
 0x3b3   :  { %9265 = vmatmul.mubr.bf16.gmra.mrb[28].mxu1 %v8385_v34  ;;  %14688 = vmatprep.subr.bf16.mxu0 %v22714_v36  ;;  %v22750_v34 = vld [vmem:[%s28314_s1 + $0x1f44] ss:$8 sps:$4 sm:$0xff]   ;;  %v22753_v36 = vld [vmem:[%s28314_s1 + $0xe54] ss:$8 sps:$4 sm:$0xff]  }
 0x3b4   :  { %9304 = vmatpush1.bf16.msra.mxu1 %v22709_v35  ;;  %9307 = vmatprep.mubr.bf16.mxu1 %v8332_v39  ;;  %v13621_v35 = vld [vmem:[#allocation2 + $0x3a0] sm:$0xff]  ;;  %v22751_v39 = vld [vmem:[%s28314_s1 + $0xe50] ss:$8 sps:$4 sm:$0xff]  }
 0x3b5   :  { %9305 = vmatprep.subr.bf16.mxu1 %v22717_v38  ;;  %14650 = vmatmul.mubr.bf16.gmra.mrb[28].mxu0 %v13659_v40  ;;  %v8356_v38 = vld [vmem:[#allocation2 + $0x118] sm:$0xff] }
 0x3b6   :  { %14689 = vmatpush1.bf16.msra.mxu0 %v22712_v37  ;;  %14692 = vmatprep.mubr.bf16.mxu0 %v13606_v58  ;;  %v22748_v37 = vld [vmem:[%s28314_s1 + $0x1f40] ss:$8 sps:$4 sm:$0xff]   ;;  %v22756_v40 = vld [vmem:[%s28314_s1 + $0x1f54] ss:$8 sps:$4 sm:$0xff]   ;;  %v22754_v58 = vld [vmem:[%s28314_s1 + $0x1f50] ss:$8 sps:$4 sm:$0xff]  }
 0x3b7   :  { %14690 = vmatprep.subr.bf16.mxu0 %v22720_v42  ;;  %v22759_v42 = vld [vmem:[%s28314_s1 + $0xe64] ss:$8 sps:$4 sm:$0xff]  }
 0x3b8   :  { %9306 = vmatpush1.bf16.msra.mxu1 %v22715_v41  ;;  %v13630_v41 = vld [vmem:[#allocation2 + $0x3e8] sm:$0xff] }
 0x3b9   :  { %9388 = vmatprep.subr.bf16.mxu1 %v22723_v43  ;;  %v8355_v43 = vld [vmem:[#allocation2 + $0x110] sm:$0xff] }
 0x3ba   :  { %14691 = vmatpush1.bf16.msra.mxu0 %v22718_v30  ;;  %v22757_v30 = vld [vmem:[%s28314_s1 + $0xe60] ss:$8 sps:$4 sm:$0xff]  }
 0x3bb   :  { %9308 = vmatmul.mubr.bf16.vlgmr.msra.gmra.mrb[0].mxu1 %v8331_v44  ;;  %14773 = vmatprep.subr.bf16.mxu0 %v22726_v46  ;;  %v22762_v44 = vld [vmem:[%s28314_s1 + $0x1f64] ss:$8 sps:$4 sm:$0xff]   ;;  %v22765_v46 = vld [vmem:[%s28314_s1 + $0xe74] ss:$8 sps:$4 sm:$0xff]  }
 0x3bc   :  { %9389 = vmatpush1.bf16.msra.mxu1 %v22721_v45  ;;  %9317 = vmatprep.mubr.bf16.mxu1 %v8340_v60  ;;  %v13629_v45 = vld [vmem:[#allocation2 + $0x3e0] sm:$0xff]  ;;  %v8372_v60 = vld [vmem:[#allocation2 + $0x198] sm:$0xff] }
 0x3bd   :  { %9390 = vmatprep.subr.bf16.mxu1 %v22729_v52  ;;  %14693 = vmatmul.mubr.bf16.vlgmr.msra.gmra.mrb[0].mxu0 %v13605_v50  ;;  %v22768_v50 = vld [vmem:[%s28314_s1 + $0x1f74] ss:$8 sps:$4 sm:$0xff]   ;;  %v22771_v52 = vld [vmem:[%s28314_s1 + $0xe84] ss:$8 sps:$4 sm:$0xff]  }
 0x3be   :  { %14774 = vmatpush1.bf16.msra.mxu0 %v22724_v51  ;;  %14702 = vmatprep.mubr.bf16.mxu0 %v13614_v2  ;;  %v13638_v51 = vld [vmem:[#allocation2 + $0x428] sm:$0xff]  ;;  %v22778_v2 = vld [vmem:[%s28314_s1 + $0x1f90] ss:$8 sps:$4 sm:$0xff]  }
 0x3bf   :  { %14775 = vmatprep.subr.bf16.mxu0 %v22732_v59  ;;  %v22777_v59 = vld [vmem:[%s28314_s1 + $0xe94] ss:$8 sps:$4 sm:$0xff]  }
 0x3c0   :  { %9391 = vmatpush1.bf16.msra.mxu1 %v22727_v57  ;;  %v22774_v57 = vld [vmem:[%s28314_s1 + $0x1f84] ss:$8 sps:$4 sm:$0xff]  }
 0x3c1   :  { %9392 = vmatprep.subr.bf16.mxu1 %v22735_v7  ;;  %v13645_v7 = vld [vmem:[#allocation2 + $0x460] sm:$0xff] }
 0x3c2   :  { %14776 = vmatpush1.bf16.msra.mxu0 %v22730_v15  ;;  %v22790_v15 = vld [vmem:[%s28314_s1 + $0x1fb0] ss:$8 sps:$4 sm:$0xff]  }
 0x3c3   :  { %9318 = vmatmul.mubr.bf16.gmra.mrb[4].mxu1 %v8339_v18  ;;  %14777 = vmatprep.subr.bf16.mxu0 %v22738_v20  ;;  %v22798_v18 = vld [vmem:[%s28314_s1 + $0x1fc4] ss:$8 sps:$4 sm:$0xff]   ;;  %v22801_v20 = vld [vmem:[%s28314_s1 + $0xed4] ss:$8 sps:$4 sm:$0xff]  }
 0x3c4   :  { %9393 = vmatpush1.bf16.msra.mxu1 %v22733_v19  ;;  %9327 = vmatprep.mubr.bf16.mxu1 %v8348_v25  ;;  %v13653_v19 = vld [vmem:[#allocation2 + $0x4a0] sm:$0xff] }
 0x3c5   :  { %9394 = vmatprep.subr.bf16.mxu1 %v22741_v23  ;;  %14703 = vmatmul.mubr.bf16.gmra.mrb[4].mxu0 %v13613_v53  ;;  %v22799_v53 = vld [vmem:[%s28314_s1 + $0xed0] ss:$8 sps:$4 sm:$0xff]   ;;  %v22804_v23 = vld [vmem:[%s28314_s1 + $0x1fd4] ss:$8 sps:$4 sm:$0xff]   ;;  %v22807_v25 = vld [vmem:[%s28314_s1 + $0xee4] ss:$8 sps:$4 sm:$0xff]  }
 0x3c6   :  { %14778 = vmatpush1.bf16.msra.mxu0 %v22736_v24  ;;  %14712 = vmatprep.mubr.bf16.mxu0 %v13622_v28  ;;  %v13662_v24 = vld [vmem:[#allocation2 + $0x4e8] sm:$0xff] }
 0x3c7   :  { %14779 = vmatprep.subr.bf16.mxu0 %v22744_v27  ;;  %v8387_v27 = vld [vmem:[#allocation2 + $0x210] sm:$0xff]  ;;  %v22805_v28 = vld [vmem:[%s28314_s1 + $0xee0] ss:$8 sps:$4 sm:$0xff]  }
 0x3c8   :  { %9395 = vmatpush1.bf16.msra.mxu1 %v22739_v26  ;;  %v22802_v26 = vld [vmem:[%s28314_s1 + $0x1fd0] ss:$8 sps:$4 sm:$0xff]  }
 0x3c9   :  { %9396 = vmatprep.subr.bf16.mxu1 %v22747_v29  ;;  %v22810_v29 = vld [vmem:[%s28314_s1 + $0x1fe4] ss:$8 sps:$4 sm:$0xff]  }
 0x3ca   :  { %14780 = vmatpush1.bf16.msra.mxu0 %v22742_v32  ;;  %v915_v32 = vld [vmem:[%s28315_s0 + $0x258] sm:$0xff] }
 0x3cb   :  { %9328 = vmatmul.mubr.bf16.gmra.mrb[8].mxu1 %v8347_v9  ;;  %14781 = vmatprep.subr.bf16.mxu0 %v22750_v34  ;;  %v919_v9 = vld [vmem:[%s28315_s0 + $0x278] sm:$0x11] }
 0x3cc   :  { %9397 = vmatpush1.bf16.msra.mxu1 %v22745_v33  ;;  %9337 = vmatprep.mubr.bf16.mxu1 %v8356_v38  ;;  %v22808_v33 = vld [vmem:[%s28314_s1 + $0x1fe0] ss:$8 sps:$4 sm:$0xff]   ;;  %v22813_v34 = vld [vmem:[%s28314_s1 + $0xef4] ss:$8 sps:$4 sm:$0xff]   ;;  %v17338_v38 = vcombine.low %v915_v32, %v919_v9 }
 0x3cd   :  { %9398 = vmatprep.subr.bf16.mxu1 %v22753_v36  ;;  %14713 = vmatmul.mubr.bf16.gmra.mrb[8].mxu0 %v13621_v35  ;;  %v17339_v35 = vcombine.high %v915_v32, %v919_v9  ;;  %v17415_v36 = vld [vmem:[%s28315_s0 + $0x4d8] sm:$0xff] }
 0x3ce   :  { %14782 = vmatpush1.bf16.msra.mxu0 %v22748_v37  ;;  %14722 = vmatprep.mubr.bf16.mxu0 %v13630_v41  ;;  %v17419_v37 = vld [vmem:[%s28315_s0 + $0x4f8] sm:$0x11]  ;;  %v8334_v41 = vld [vmem:[#allocation2 + $0x68] sm:$0xff] }
 0x3cf   :  { %14783 = vmatprep.subr.bf16.mxu0 %v22756_v40  ;;  %v22816_v40 = vld [vmem:[%s28314_s1 + $0x1ff4] ss:$8 sps:$4 sm:$0xff]   ;;  %v22847_v9 = vld [vmem:[%s28314_s1 + $0xf50] ss:$8 sps:$4 sm:$0xff]  }
 0x3d0   :  { %9399 = vmatpush1.bf16.msra.mxu1 %v22751_v39  ;;  %v22811_v39 = vld [vmem:[%s28314_s1 + $0xef0] ss:$8 sps:$4 sm:$0xff]   ;;  %v22849_v32 = vld [vmem:[%s28314_s1 + $0xf54] ss:$8 sps:$4 sm:$0xff]  }
 0x3d1   :  { %9400 = vmatprep.subr.bf16.mxu1 %v22759_v42  ;;  %v17499_v42 = vcombine.high %v17415_v36, %v17419_v37 }
 0x3d2   :  { %14784 = vmatpush1.bf16.msra.mxu0 %v22754_v58  ;;  %v17498_v58 = vcombine.low %v17415_v36, %v17419_v37  ;;  %v22855_v36 = vld [vmem:[%s28314_s1 + $0xf64] ss:$8 sps:$4 sm:$0xff]   ;;  %v22850_v37 = vld [vmem:[%s28314_s1 + $0x2050] ss:$8 sps:$4 sm:$0xff]  }
 0x3d3   :  { %9338 = vmatmul.mubr.bf16.gmra.mrb[12].mxu1 %v8355_v43  ;;  %14785 = vmatprep.subr.bf16.mxu0 %v22762_v44  ;;  %v13661_v43 = vld [vmem:[#allocation2 + $0x4e0] sm:$0xff]  ;;  %v1794_v44 = vshrl.u32 %v17339_v35, 16 }
 0x3d4   :  { %9401 = vmatpush1.bf16.msra.mxu1 %v22757_v30  ;;  %9347 = vmatprep.mubr.bf16.mxu1 %v8364_v48  ;;  %v13608_v30 = vld [vmem:[#allocation2 + $0x338] sm:$0xff]  ;;  %v2994_v48 = vshrl.u32 %v17499_v42, 16 }
 0x3d5   :  { %9402 = vmatprep.subr.bf16.mxu1 %v22765_v46  ;;  %14723 = vmatmul.mubr.bf16.gmra.mrb[12].mxu0 %v13629_v45  ;;  %v1796_v45 = vshll.u32 %v17339_v35, 16  ;;  %v1787_v46 = vshrl.u32 %v17338_v38, 16  ;;  %v13632_v35 = vld [vmem:[#allocation2 + $0x3f8] sm:$0xff] }
 0x3d6   :  { %14786 = vmatpush1.bf16.msra.mxu0 %v22760_v47  ;;  %14732 = vmatprep.mubr.bf16.mxu0 %v13638_v51  ;;  %v1789_v47 = vshll.u32 %v17338_v38, 16  ;;  %v2989_v51 = vshll.u32 %v17498_v58, 16  ;;  %v8357_v38 = vld [vmem:[#allocation2 + $0x120] sm:$0xff] }
 0x3d7   :  { %14787 = vmatprep.subr.bf16.mxu0 %v22768_v50  ;;  %v2986_v50 = vshrl.u32 %v17498_v58, 16  ;;  %v8366_v58 = vld [vmem:[#allocation2 + $0x168] sm:$0xff] }
 0x3d8   :  { %9403 = vmatpush1.bf16.msra.mxu1 %v22763_v49  ;;  %v2997_v49 = vshll.u32 %v17499_v42, 16  ;;  %v13631_v42 = vld [vmem:[#allocation2 + $0x3f0] sm:$0xff] }
 0x3d9   :  { %9404 = vmatprep.subr.bf16.mxu1 %v22771_v52  ;;  %v22819_v52 = vld [vmem:[%s28314_s1 + $0xf04] ss:$8 sps:$4 sm:$0xff]  }
 0x3da   :  { %14788 = vmatpush1.bf16.msra.mxu0 %v22766_v54  ;;  %v1798_v54 = vrot.slane %v1796_v45, 1  ;;  %v13640_v45 = vld [vmem:[#allocation2 + $0x438] sm:$0xff] }
 0x3db   :  { %9348 = vmatmul.mubr.bf16.gmra.mrb[16].mxu1 %v8363_v55  ;;  %14789 = vmatprep.subr.bf16.mxu0 %v22774_v57  ;;  %v1791_v55 = vrot.slane %v1789_v47, 1  ;;  %v2999_v57 = vrot.slane %v2997_v49, 5  ;;  %v22862_v47 = vld [vmem:[%s28314_s1 + $0x2070] ss:$8 sps:$4 sm:$0xff]   ;;  %v22865_v49 = vld [vmem:[%s28314_s1 + $0xf80] ss:$8 sps:$4 sm:$0xff]  }
 0x3dc   :  { %9405 = vmatpush1.bf16.msra.mxu1 %v22769_v56  ;;  %9357 = vmatprep.mubr.bf16.mxu1 %v8372_v60  ;;  %v2996_v56 = vrot.slane %v2994_v48, 4  ;;  %v2991_v60 = vrot.slane %v2989_v51, 5  ;;  %v8365_v48 = vld [vmem:[#allocation2 + $0x160] sm:$0xff]  ;;  %v22873_v51 = vld [vmem:[%s28314_s1 + $0xf94] ss:$8 sps:$4 sm:$0xff]  }
 0x3dd   :  { %9406 = vmatprep.subr.bf16.mxu1 %v22777_v59  ;;  %14733 = vmatmul.mubr.bf16.gmra.mrb[16].mxu0 %v13637_v61  ;;  %v2988_v59 = vrot.slane %v2986_v50, 4  ;;  %v22814_v61 = vld [vmem:[%s28314_s1 + $0x1ff0] ss:$8 sps:$4 sm:$0xff]   ;;  %v22870_v50 = vld [vmem:[%s28314_s1 + $0x2084] ss:$8 sps:$4 sm:$0xff]  }
 0x3de   :  { %14790 = vmatpush1.bf16.msra.mxu0 %v22772_v62  ;;  %14742 = vmatprep.mubr.bf16.mxu0 %v13646_v1  ;;  %v8333_v62 = vld [vmem:[#allocation2 + $0x60] sm:$0xff] }
 0x3df   :  { %14791 = vmatprep.subr.bf16.mxu0 %v22780_v0  ;;  %v1792_v0 = vor.u32 %v1791_v55, %v1787_v46  ;;  %v22817_v1 = vld [vmem:[%s28314_s1 + $0xf00] ss:$8 sps:$4 sm:$0xff]   ;;  %v22867_v46 = vld [vmem:[%s28314_s1 + $0xf84] ss:$8 sps:$4 sm:$0xff]  }
 0x3e0   :  { %9407 = vmatpush1.bf16.msra.mxu1 %v22775_v63  ;;  %v1799_v63 = vor.u32 %v1798_v54, %v1794_v44  ;;  %v22864_v44 = vld [vmem:[%s28314_s1 + $0x2074] ss:$8 sps:$4 sm:$0xff]   ;;  %v8374_v54 = vld [vmem:[#allocation2 + $0x1a8] sm:$0xff] }
 0x3e1   :  { %9408 = vmatprep.subr.bf16.mxu1 %v22783_v31  ;;  %v22822_v31 = vld [vmem:[%s28314_s1 + $0x2004] ss:$8 sps:$4 sm:$0xff]   ;;  %1959 = vst [vmem:[#allocation2 + $0x4f0] sm:$0xf] %v1792_v0  ;;  %v22868_v55 = vld [vmem:[%s28314_s1 + $0x2080] ss:$8 sps:$4 sm:$0xff]  }
 0x3e2   :  { %14792 = vmatpush1.bf16.msra.mxu0 %v22778_v2  ;;  %v3000_v2 = vor.u32 %v2999_v57, %v2996_v56  ;;  %1960 = vst [vmem:[#allocation2 + $0x4f8] sm:$0xf] %v1799_v63  ;;  %v22871_v56 = vld [vmem:[%s28314_s1 + $0xf90] ss:$8 sps:$4 sm:$0xff]   ;;  %v22876_v57 = vld [vmem:[%s28314_s1 + $0x2094] ss:$8 sps:$4 sm:$0xff]  }
 0x3e3   :  { %9358 = vmatmul.mubr.bf16.gmra.mrb[20].mxu1 %v8371_v3  ;;  %14793 = vmatprep.subr.bf16.mxu0 %v22786_v5  ;;  %v2992_v3 = vor.u32 %v2991_v60, %v2988_v59  ;;  %v22825_v5 = vld [vmem:[%s28314_s1 + $0xf14] ss:$8 sps:$4 sm:$0xff]   ;;  %v22879_v60 = vld [vmem:[%s28314_s1 + $0xfa4] ss:$8 sps:$4 sm:$0xff]   ;;  %v22877_v63 = vld [vmem:[%s28314_s1 + $0xfa0] ss:$8 sps:$4 sm:$0xff]  }
 0x3e4   :  { %9409 = vmatpush1.bf16.msra.mxu1 %v22781_v4  ;;  %9367 = vmatprep.mubr.bf16.mxu1 %v8380_v8  ;;  %v13607_v4 = vld [vmem:[#allocation2 + $0x330] sm:$0xff]  ;;  %3160 = vst [vmem:[#allocation2 + $0x4f8] sm:$0xf0] %v3000_v2  ;;  %v13648_v59 = vld [vmem:[#allocation2 + $0x478] sm:$0xff]  ;;  %v22882_v0 = vld [vmem:[%s28314_s1 + $0x20a4] ss:$8 sps:$4 sm:$0xff]  }
 0x3e5   :  { %9410 = vmatprep.subr.bf16.mxu1 %v22789_v6  ;;  %14743 = vmatmul.mubr.bf16.gmra.mrb[20].mxu0 %v13645_v7  ;;  %v8342_v6 = vld [vmem:[#allocation2 + $0xa8] sm:$0xff]  ;;  %3159 = vst [vmem:[#allocation2 + $0x4f0] sm:$0xf0] %v2992_v3  ;;  %v22823_v8 = vld [vmem:[%s28314_s1 + $0xf10] ss:$8 sps:$4 sm:$0xff]  }
 0x3e6   :  { %14794 = vmatpush1.bf16.msra.mxu0 %v22784_v10  ;;  %14752 = vmatprep.mubr.bf16.mxu0 %v13654_v13  ;;  %v22820_v7 = vld [vmem:[%s28314_s1 + $0x2000] ss:$8 sps:$4 sm:$0xff]   ;;  %v22828_v10 = vld [vmem:[%s28314_s1 + $0x2014] ss:$8 sps:$4 sm:$0xff]   ;;  %v22826_v13 = vld [vmem:[%s28314_s1 + $0x2010] ss:$8 sps:$4 sm:$0xff]  }
 0x3e7   :  { %14795 = vmatprep.subr.bf16.mxu0 %v22792_v12  ;;  %v22831_v12 = vld [vmem:[%s28314_s1 + $0xf24] ss:$8 sps:$4 sm:$0xff]   ;;  %v22880_v2 = vld [vmem:[%s28314_s1 + $0x20a0] ss:$8 sps:$4 sm:$0xff]  }
 0x3e8   :  { %9411 = vmatpush1.bf16.msra.mxu1 %v22787_v11  ;;  %v13616_v11 = vld [vmem:[#allocation2 + $0x378] sm:$0xff]  ;;  %v8382_v3 = vld [vmem:[#allocation2 + $0x1e8] sm:$0xff] }
 0x3e9   :  { %9412 = vmatprep.subr.bf16.mxu1 %v22795_v14  ;;  %v8341_v14 = vld [vmem:[#allocation2 + $0xa0] sm:$0xff] }
 0x3ea   :  { %14796 = vmatpush1.bf16.msra.mxu0 %v22790_v15  ;;  %v22829_v15 = vld [vmem:[%s28314_s1 + $0xf20] ss:$8 sps:$4 sm:$0xff]  }
 0x3eb   :  { %9368 = vmatmul.mubr.bf16.gmra.mrb[24].mxu1 %v8379_v16  ;;  %14797 = vmatprep.subr.bf16.mxu0 %v22798_v18  ;;  %v22834_v16 = vld [vmem:[%s28314_s1 + $0x2024] ss:$8 sps:$4 sm:$0xff]   ;;  %v22837_v18 = vld [vmem:[%s28314_s1 + $0xf34] ss:$8 sps:$4 sm:$0xff]  }
 0x3ec   :  { %9413 = vmatpush1.bf16.msra.mxu1 %v22793_v17  ;;  %9377 = vmatprep.mubr.bf16.mxu1 %v8388_v21  ;;  %v13615_v17 = vld [vmem:[#allocation2 + $0x370] sm:$0xff]  ;;  %v8350_v21 = vld [vmem:[#allocation2 + $0xe8] sm:$0xff] }
 0x3ed   :  { %9414 = vmatprep.subr.bf16.mxu1 %v22801_v20  ;;  %14753 = vmatmul.mubr.bf16.gmra.mrb[24].mxu0 %v13653_v19  ;;  %v22832_v19 = vld [vmem:[%s28314_s1 + $0x2020] ss:$8 sps:$4 sm:$0xff]   ;;  %v22835_v20 = vld [vmem:[%s28314_s1 + $0xf30] ss:$8 sps:$4 sm:$0xff]  }
 0x3ee   :  { %14798 = vmatpush1.bf16.msra.mxu0 %v22796_v22  ;;  %14762 = vmatprep.mubr.bf16.mxu0 %v13662_v24  ;;  %v22840_v22 = vld [vmem:[%s28314_s1 + $0x2034] ss:$8 sps:$4 sm:$0xff]   ;;  %v22838_v24 = vld [vmem:[%s28314_s1 + $0x2030] ss:$8 sps:$4 sm:$0xff]  }
 0x3ef   :  { %14799 = vmatprep.subr.bf16.mxu0 %v22804_v23  ;;  %v22843_v23 = vld [vmem:[%s28314_s1 + $0xf44] ss:$8 sps:$4 sm:$0xff]  }
 0x3f0   :  { %9415 = vmatpush1.bf16.msra.mxu1 %v22799_v53  ;;  %v13624_v53 = vld [vmem:[#allocation2 + $0x3b8] sm:$0xff] }
 0x3f1   :  { %9416 = vmatprep.subr.bf16.mxu1 %v22807_v25  ;;  %v8349_v25 = vld [vmem:[#allocation2 + $0xe0] sm:$0xff] }
 0x3f2   :  { %14800 = vmatpush1.bf16.msra.mxu0 %v22802_v26  ;;  %v22841_v26 = vld [vmem:[%s28314_s1 + $0xf40] ss:$8 sps:$4 sm:$0xff]  }
 0x3f3   :  { %9378 = vmatmul.mubr.bf16.gmra.mrb[28].mxu1 %v8387_v27  ;;  %14801 = vmatprep.subr.bf16.mxu0 %v22810_v29  ;;  %v22846_v27 = vld [vmem:[%s28314_s1 + $0x2044] ss:$8 sps:$4 sm:$0xff]   ;;  %v22844_v29 = vld [vmem:[%s28314_s1 + $0x2040] ss:$8 sps:$4 sm:$0xff]  }
 0x3f4   :  { %9417 = vmatpush1.bf16.msra.mxu1 %v22805_v28  ;;  %9420 = vmatprep.mubr.bf16.mxu1 %v8334_v41  ;;  %v13623_v28 = vld [vmem:[#allocation2 + $0x3b0] sm:$0xff] }
 0x3f5   :  { %9418 = vmatprep.subr.bf16.mxu1 %v22813_v34  ;;  %14763 = vmatmul.mubr.bf16.gmra.mrb[28].mxu0 %v13661_v43  ;;  %v22852_v34 = vld [vmem:[%s28314_s1 + $0x2054] ss:$8 sps:$4 sm:$0xff]   ;;  %v22856_v43 = vld [vmem:[%s28314_s1 + $0x2060] ss:$8 sps:$4 sm:$0xff]  }
 0x3f6   :  { %14802 = vmatpush1.bf16.msra.mxu0 %v22808_v33  ;;  %14805 = vmatprep.mubr.bf16.mxu0 %v13608_v30  ;;  %v8358_v33 = vld [vmem:[#allocation2 + $0x128] sm:$0xff]  ;;  %v22861_v41 = vld [vmem:[%s28314_s1 + $0xf74] ss:$8 sps:$4 sm:$0xff]   ;;  %v22859_v30 = vld [vmem:[%s28314_s1 + $0xf70] ss:$8 sps:$4 sm:$0xff]  }
 0x3f7   :  { %14803 = vmatprep.subr.bf16.mxu0 %v22816_v40  ;;  %v22858_v40 = vld [vmem:[%s28314_s1 + $0x2064] ss:$8 sps:$4 sm:$0xff]  }
 0x3f8   :  { %9419 = vmatpush1.bf16.msra.mxu1 %v22811_v39  ;;  %v22853_v39 = vld [vmem:[%s28314_s1 + $0xf60] ss:$8 sps:$4 sm:$0xff]  }
 0x3f9   :  { %9501 = vmatprep.subr.bf16.mxu1 %v22819_v52  ;;  %v13639_v52 = vld [vmem:[#allocation2 + $0x430] sm:$0xff] }
 0x3fa   :  { %14804 = vmatpush1.bf16.msra.mxu0 %v22814_v61  ;;  %v22874_v61 = vld [vmem:[%s28314_s1 + $0x2090] ss:$8 sps:$4 sm:$0xff]  }
 0x3fb   :  { %9421 = vmatmul.mubr.bf16.vlgmr.msra.gmra.mrb[0].mxu1 %v8333_v62  ;;  %15752 = vmatprep.subr.bf16.mxu0 %v22822_v31  ;;  %v8373_v62 = vld [vmem:[#allocation2 + $0x1a0] sm:$0xff]  ;;  %v22885_v31 = vld [vmem:[%s28314_s1 + $0xfb4] ss:$8 sps:$4 sm:$0xff]  }
 0x3fc   :  { %9502 = vmatpush1.bf16.msra.mxu1 %v22817_v1  ;;  %9430 = vmatprep.mubr.bf16.mxu1 %v8342_v6  ;;  %v13647_v1 = vld [vmem:[#allocation2 + $0x470] sm:$0xff]  ;;  %v13656_v6 = vld [vmem:[#allocation2 + $0x4b8] sm:$0xff] }
 0x3fd   :  { %9503 = vmatprep.subr.bf16.mxu1 %v22825_v5  ;;  %14806 = vmatmul.mubr.bf16.vlgmr.msra.gmra.mrb[0].mxu0 %v13607_v4  ;;  %v22883_v4 = vld [vmem:[%s28314_s1 + $0xfb0] ss:$8 sps:$4 sm:$0xff]   ;;  %v22888_v5 = vld [vmem:[%s28314_s1 + $0x20b4] ss:$8 sps:$4 sm:$0xff]  }
 0x3fe   :  { %15753 = vmatpush1.bf16.msra.mxu0 %v22820_v7  ;;  %14815 = vmatprep.mubr.bf16.mxu0 %v13616_v11  ;;  %v22891_v7 = vld [vmem:[%s28314_s1 + $0xfc4] ss:$8 sps:$4 sm:$0xff]   ;;  %v22889_v11 = vld [vmem:[%s28314_s1 + $0xfc0] ss:$8 sps:$4 sm:$0xff]  }
 0x3ff   :  { %15754 = vmatprep.subr.bf16.mxu0 %v22828_v10  ;;  %v8381_v10 = vld [vmem:[#allocation2 + $0x1e0] sm:$0xff] }
 0x400   :  { %9504 = vmatpush1.bf16.msra.mxu1 %v22823_v8  ;;  %v22886_v8 = vld [vmem:[%s28314_s1 + $0x20b0] ss:$8 sps:$4 sm:$0xff]  }
 0x401   :  { %9505 = vmatprep.subr.bf16.mxu1 %v22831_v12  ;;  %v22894_v12 = vld [vmem:[%s28314_s1 + $0x20c4] ss:$8 sps:$4 sm:$0xff]  }
 0x402   :  { %15755 = vmatpush1.bf16.msra.mxu0 %v22826_v13  ;;  %v22897_v13 = vld [vmem:[%s28314_s1 + $0xfd4] ss:$8 sps:$4 sm:$0xff]  }
 0x403   :  { %9431 = vmatmul.mubr.bf16.gmra.mrb[4].mxu1 %v8341_v14  ;;  %15756 = vmatprep.subr.bf16.mxu0 %v22834_v16  ;;  %v3233_v14 = vld [vmem:[%s28315_s0 + $0x240] sm:$0xee] }
 0x404   :  { %9506 = vmatpush1.bf16.msra.mxu1 %v22829_v15  ;;  %9440 = vmatprep.mubr.bf16.mxu1 %v8350_v21  ;;  %v13655_v15 = vld [vmem:[#allocation2 + $0x4b0] sm:$0xff]  ;;  %v22892_v16 = vld [vmem:[%s28314_s1 + $0x20c0] ss:$8 sps:$4 sm:$0xff]  }
 0x405   :  { %9507 = vmatprep.subr.bf16.mxu1 %v22837_v18  ;;  %14816 = vmatmul.mubr.bf16.gmra.mrb[4].mxu0 %v13615_v17  ;;  %v3237_v17 = vld [vmem:[%s28315_s0 + $0x260] sm:$0x11]  ;;  %v17652_v18 = vld [vmem:[%s28315_s0 + $0x4c0] sm:$0xee]  ;;  %v8390_v21 = vld [vmem:[#allocation2 + $0x228] sm:$0xff] }
 0x406   :  { %15757 = vmatpush1.bf16.msra.mxu0 %v22832_v19  ;;  %14825 = vmatprep.mubr.bf16.mxu0 %v13624_v53  ;;  %v17656_v19 = vld [vmem:[%s28315_s0 + $0x4e0] sm:$0x11] }
 0x407   :  { %15758 = vmatprep.subr.bf16.mxu0 %v22840_v22  ;;  %v17573_v22 = vcombine.high %v3233_v14, %v3237_v17  ;;  %v17733_v53 = vcombine.high %v17652_v18, %v17656_v19 }
 0x408   :  { %9508 = vmatpush1.bf16.msra.mxu1 %v22835_v20  ;;  %v22895_v20 = vld [vmem:[%s28314_s1 + $0xfd0] ss:$8 sps:$4 sm:$0xff]  }
 0x409   :  { %9509 = vmatprep.subr.bf16.mxu1 %v22843_v23  ;;  %v17572_v23 = vcombine.low %v3233_v14, %v3237_v17  ;;  %v22948_v14 = vld [vmem:[%s28314_s1 + $0x2154] ss:$8 sps:$4 sm:$0xff]   ;;  %v3234_v17 = vld [vmem:[%s28315_s0 + $0x248] sm:$0xee] }
 0x40a   :  { %15759 = vmatpush1.bf16.msra.mxu0 %v22838_v24  ;;  %v17732_v24 = vcombine.low %v17652_v18, %v17656_v19  ;;  %v3238_v18 = vld [vmem:[%s28315_s0 + $0x268] sm:$0x11]  ;;  %v17653_v19 = vld [vmem:[%s28315_s0 + $0x4c8] sm:$0xee] }
 0x40b   :  { %9441 = vmatmul.mubr.bf16.gmra.mrb[8].mxu1 %v8349_v25  ;;  %15760 = vmatprep.subr.bf16.mxu0 %v22846_v27  ;;  %v22900_v25 = vld [vmem:[%s28314_s1 + $0x20d4] ss:$8 sps:$4 sm:$0xff]   ;;  %v3634_v27 = vrot.slane %v17573_v22, 1  ;;  %v17657_v22 = vld [vmem:[%s28315_s0 + $0x4e8] sm:$0x11] }
 0x40c   :  { %9510 = vmatpush1.bf16.msra.mxu1 %v22841_v26  ;;  %9450 = vmatprep.mubr.bf16.mxu1 %v8358_v33  ;;  %v13664_v26 = vld [vmem:[#allocation2 + $0x4f8] sm:$0xff] }
 0x40d   :  { %9511 = vmatprep.subr.bf16.mxu1 %v22849_v32  ;;  %14826 = vmatmul.mubr.bf16.gmra.mrb[8].mxu0 %v13623_v28  ;;  %v4275_v28 = vrot.slane %v17733_v53, 5  ;;  %v4274_v32 = vrot.slane %v17732_v24, 5  ;;  %3795 = vst [vmem:[#allocation2 + $0x748] sm:$0xf] %v3634_v27  ;;  %v22898_v33 = vld [vmem:[%s28314_s1 + $0x20d0] ss:$8 sps:$4 sm:$0xff]   ;;  %v17574_v53 = vcombine.low %v3234_v17, %v3238_v18 }
 0x40e   :  { %15761 = vmatpush1.bf16.msra.mxu0 %v22844_v29  ;;  %14835 = vmatprep.mubr.bf16.mxu0 %v13632_v35  ;;  %v3633_v29 = vrot.slane %v17572_v23, 1  ;;  %v22901_v35 = vld [vmem:[%s28314_s1 + $0xfe0] ss:$8 sps:$4 sm:$0xff]   ;;  %v8359_v23 = vld [vmem:[#allocation2 + $0x130] sm:$0xff]  ;;  %v22954_v27 = vld [vmem:[%s28314_s1 + $0x2164] ss:$8 sps:$4 sm:$0xff]  }
 0x40f   :  { %15762 = vmatprep.subr.bf16.mxu0 %v22852_v34  ;;  %4435 = vst [vmem:[#allocation2 + $0x748] sm:$0xf0] %v4275_v28  ;;  %4434 = vst [vmem:[#allocation2 + $0x740] sm:$0xf0] %v4274_v32  ;;  %v8389_v34 = vld [vmem:[#allocation2 + $0x220] sm:$0xff] }
 0x410   :  { %9512 = vmatpush1.bf16.msra.mxu1 %v22847_v9  ;;  %v22903_v9 = vld [vmem:[%s28314_s1 + $0xfe4] ss:$8 sps:$4 sm:$0xff]   ;;  %3794 = vst [vmem:[#allocation2 + $0x740] sm:$0xf] %v3633_v29  ;;  %v22949_v24 = vld [vmem:[%s28314_s1 + $0x1060] ss:$8 sps:$4 sm:$0xff]  }
 0x411   :  { %9513 = vmatprep.subr.bf16.mxu1 %v22855_v36  ;;  %v22906_v36 = vld [vmem:[%s28314_s1 + $0x20e4] ss:$8 sps:$4 sm:$0xff]   ;;  %v3635_v29 = vrot.slane %v17574_v53, 1 }
 0x412   :  { %15763 = vmatpush1.bf16.msra.mxu0 %v22850_v37  ;;  %v22909_v37 = vld [vmem:[%s28314_s1 + $0xff4] ss:$8 sps:$4 sm:$0xff]   ;;  %v14943_v32 = vld [vmem:[#allocation2 + $0x640] sm:$0xff] }
 0x413   :  { %9451 = vmatmul.mubr.bf16.gmra.mrb[12].mxu1 %v8357_v38  ;;  %15764 = vmatprep.subr.bf16.mxu0 %v22858_v40  ;;  %v8336_v38 = vld [vmem:[#allocation2 + $0x78] sm:$0xff]  ;;  %v22904_v40 = vld [vmem:[%s28314_s1 + $0x20e0] ss:$8 sps:$4 sm:$0xff]   ;;  %3796 = vst [vmem:[#allocation2 + $0x750] sm:$0xf] %v3635_v29 }
 0x414   :  { %9514 = vmatpush1.bf16.msra.mxu1 %v22853_v39  ;;  %9460 = vmatprep.mubr.bf16.mxu1 %v8366_v58  ;;  %v13663_v39 = vld [vmem:[#allocation2 + $0x4f0] sm:$0xff]  ;;  %v14920_v58 = vld [vmem:[#allocation2 + $0x588] sm:$0xff] }
 0x415   :  { %9515 = vmatprep.subr.bf16.mxu1 %v22861_v41  ;;  %14836 = vmatmul.mubr.bf16.gmra.mrb[12].mxu0 %v13631_v42  ;;  %v22907_v41 = vld [vmem:[%s28314_s1 + $0xff0] ss:$8 sps:$4 sm:$0xff]   ;;  %v22912_v42 = vld [vmem:[%s28314_s1 + $0x20f4] ss:$8 sps:$4 sm:$0xff]   ;;  %v9648_v29 = vld [vmem:[#allocation2 + $0x2c8] sm:$0xff] }
 0x416   :  { %15765 = vmatpush1.bf16.msra.mxu0 %v22856_v43  ;;  %14845 = vmatprep.mubr.bf16.mxu0 %v13640_v45  ;;  %v22915_v43 = vld [vmem:[%s28314_s1 + $0x1004] ss:$8 sps:$4 sm:$0xff]   ;;  %v22913_v45 = vld [vmem:[%s28314_s1 + $0x1000] ss:$8 sps:$4 sm:$0xff]  }
 0x417   :  { %15766 = vmatprep.subr.bf16.mxu0 %v22864_v44  ;;  %v8335_v44 = vld [vmem:[#allocation2 + $0x70] sm:$0xff] }
 0x418   :  { %9516 = vmatpush1.bf16.msra.mxu1 %v22859_v30  ;;  %v22910_v30 = vld [vmem:[%s28314_s1 + $0x20f0] ss:$8 sps:$4 sm:$0xff]  }
 0x419   :  { %9517 = vmatprep.subr.bf16.mxu1 %v22867_v46  ;;  %v22918_v46 = vld [vmem:[%s28314_s1 + $0x2104] ss:$8 sps:$4 sm:$0xff]  }
 0x41a   :  { %15767 = vmatpush1.bf16.msra.mxu0 %v22862_v47  ;;  %v14919_v47 = vld [vmem:[#allocation2 + $0x580] sm:$0xff] }
 0x41b   :  { %9461 = vmatmul.mubr.bf16.gmra.mrb[16].mxu1 %v8365_v48  ;;  %15768 = vmatprep.subr.bf16.mxu0 %v22870_v50  ;;  %v22921_v48 = vld [vmem:[%s28314_s1 + $0x1014] ss:$8 sps:$4 sm:$0xff]   ;;  %v22916_v50 = vld [vmem:[%s28314_s1 + $0x2100] ss:$8 sps:$4 sm:$0xff]  }
 0x41c   :  { %9518 = vmatpush1.bf16.msra.mxu1 %v22865_v49  ;;  %9470 = vmatprep.mubr.bf16.mxu1 %v8374_v54  ;;  %v8344_v49 = vld [vmem:[#allocation2 + $0xb8] sm:$0xff]  ;;  %v14928_v54 = vld [vmem:[#allocation2 + $0x5c8] sm:$0xff] }
 0x41d   :  { %9519 = vmatprep.subr.bf16.mxu1 %v22873_v51  ;;  %14846 = vmatmul.mubr.bf16.gmra.mrb[16].mxu0 %v13639_v52  ;;  %v22919_v51 = vld [vmem:[%s28314_s1 + $0x1010] ss:$8 sps:$4 sm:$0xff]   ;;  %v22924_v52 = vld [vmem:[%s28314_s1 + $0x2114] ss:$8 sps:$4 sm:$0xff]  }
 0x41e   :  { %15769 = vmatpush1.bf16.msra.mxu0 %v22868_v55  ;;  %14855 = vmatprep.mubr.bf16.mxu0 %v13648_v59  ;;  %v22927_v55 = vld [vmem:[%s28314_s1 + $0x1024] ss:$8 sps:$4 sm:$0xff]   ;;  %v22925_v59 = vld [vmem:[%s28314_s1 + $0x1020] ss:$8 sps:$4 sm:$0xff]  }
 0x41f   :  { %15770 = vmatprep.subr.bf16.mxu0 %v22876_v57  ;;  %v8343_v57 = vld [vmem:[#allocation2 + $0xb0] sm:$0xff] }
 0x420   :  { %9520 = vmatpush1.bf16.msra.mxu1 %v22871_v56  ;;  %v22922_v56 = vld [vmem:[%s28314_s1 + $0x2110] ss:$8 sps:$4 sm:$0xff]  }
 0x421   :  { %9521 = vmatprep.subr.bf16.mxu1 %v22879_v60  ;;  %v22930_v60 = vld [vmem:[%s28314_s1 + $0x2124] ss:$8 sps:$4 sm:$0xff]  }
 0x422   :  { %15771 = vmatpush1.bf16.msra.mxu0 %v22874_v61  ;;  %v14927_v61 = vld [vmem:[#allocation2 + $0x5c0] sm:$0xff] }
 0x423   :  { %9471 = vmatmul.mubr.bf16.gmra.mrb[20].mxu1 %v8373_v62  ;;  %15772 = vmatprep.subr.bf16.mxu0 %v22882_v0  ;;  %v22933_v62 = vld [vmem:[%s28314_s1 + $0x1034] ss:$8 sps:$4 sm:$0xff]   ;;  %v22928_v0 = vld [vmem:[%s28314_s1 + $0x2120] ss:$8 sps:$4 sm:$0xff]  }
 0x424   :  { %9522 = vmatpush1.bf16.msra.mxu1 %v22877_v63  ;;  %9480 = vmatprep.mubr.bf16.mxu1 %v8382_v3  ;;  %v8352_v63 = vld [vmem:[#allocation2 + $0xf8] sm:$0xff]  ;;  %v22939_v3 = vld [vmem:[%s28314_s1 + $0x1044] ss:$8 sps:$4 sm:$0xff]  }
 0x425   :  { %9523 = vmatprep.subr.bf16.mxu1 %v22885_v31  ;;  %14856 = vmatmul.mubr.bf16.gmra.mrb[20].mxu0 %v13647_v1  ;;  %v22931_v1 = vld [vmem:[%s28314_s1 + $0x1030] ss:$8 sps:$4 sm:$0xff]   ;;  %v22936_v31 = vld [vmem:[%s28314_s1 + $0x2134] ss:$8 sps:$4 sm:$0xff]  }
 0x426   :  { %15773 = vmatpush1.bf16.msra.mxu0 %v22880_v2  ;;  %14865 = vmatprep.mubr.bf16.mxu0 %v13656_v6  ;;  %v14936_v2 = vld [vmem:[#allocation2 + $0x608] sm:$0xff] }
 0x427   :  { %15774 = vmatprep.subr.bf16.mxu0 %v22888_v5  ;;  %v8351_v5 = vld [vmem:[#allocation2 + $0xf0] sm:$0xff]  ;;  %v22937_v6 = vld [vmem:[%s28314_s1 + $0x1040] ss:$8 sps:$4 sm:$0xff]  }
 0x428   :  { %9524 = vmatpush1.bf16.msra.mxu1 %v22883_v4  ;;  %v22934_v4 = vld [vmem:[%s28314_s1 + $0x2130] ss:$8 sps:$4 sm:$0xff]  }
 0x429   :  { %9525 = vmatprep.subr.bf16.mxu1 %v22891_v7  ;;  %v22942_v7 = vld [vmem:[%s28314_s1 + $0x2144] ss:$8 sps:$4 sm:$0xff]  }
 0x42a   :  { %15775 = vmatpush1.bf16.msra.mxu0 %v22886_v8  ;;  %v14935_v8 = vld [vmem:[#allocation2 + $0x600] sm:$0xff] }
 0x42b   :  { %9481 = vmatmul.mubr.bf16.gmra.mrb[24].mxu1 %v8381_v10  ;;  %15776 = vmatprep.subr.bf16.mxu0 %v22894_v12  ;;  %v22940_v10 = vld [vmem:[%s28314_s1 + $0x2140] ss:$8 sps:$4 sm:$0xff]   ;;  %v8360_v12 = vld [vmem:[#allocation2 + $0x138] sm:$0xff] }
 0x42c   :  { %9526 = vmatpush1.bf16.msra.mxu1 %v22889_v11  ;;  %9490 = vmatprep.mubr.bf16.mxu1 %v8390_v21  ;;  %v22945_v11 = vld [vmem:[%s28314_s1 + $0x1054] ss:$8 sps:$4 sm:$0xff]   ;;  %v17575_v21 = vcombine.high %v3234_v17, %v3238_v18  ;;  %v22991_v17 = vld [vmem:[%s28314_s1 + $0x10d0] ss:$8 sps:$4 sm:$0xff]  }
 0x42d   :  { %9527 = vmatprep.subr.bf16.mxu1 %v22897_v13  ;;  %14866 = vmatmul.mubr.bf16.gmra.mrb[24].mxu0 %v13655_v15  ;;  %v22943_v13 = vld [vmem:[%s28314_s1 + $0x1050] ss:$8 sps:$4 sm:$0xff]   ;;  %v14944_v15 = vld [vmem:[#allocation2 + $0x648] sm:$0xff] }
 0x42e   :  { %15777 = vmatpush1.bf16.msra.mxu0 %v22892_v16  ;;  %14875 = vmatprep.mubr.bf16.mxu0 %v13664_v26  ;;  %v22951_v16 = vld [vmem:[%s28314_s1 + $0x1064] ss:$8 sps:$4 sm:$0xff]   ;;  %v17734_v26 = vcombine.low %v17653_v19, %v17657_v22  ;;  %v3636_v28 = vrot.slane %v17575_v21, 1 }
 0x42f   :  { %15778 = vmatprep.subr.bf16.mxu0 %v22900_v25  ;;  %v17735_v25 = vcombine.high %v17653_v19, %v17657_v22  ;;  %v22996_v19 = vld [vmem:[%s28314_s1 + $0x21d4] ss:$8 sps:$4 sm:$0xff]  }
 0x430   :  { %9528 = vmatpush1.bf16.msra.mxu1 %v22895_v20  ;;  %v22946_v20 = vld [vmem:[%s28314_s1 + $0x2150] ss:$8 sps:$4 sm:$0xff]   ;;  %3797 = vst [vmem:[#allocation2 + $0x758] sm:$0xf] %v3636_v28  ;;  %v23005_v28 = vld [vmem:[%s28314_s1 + $0x10f4] ss:$8 sps:$4 sm:$0xff]  }
 0x431   :  { %9529 = vmatprep.subr.bf16.mxu1 %v22903_v9  ;;  %v22957_v9 = vld [vmem:[%s28314_s1 + $0x1074] ss:$8 sps:$4 sm:$0xff]  }
 0x432   :  { %15779 = vmatpush1.bf16.msra.mxu0 %v22898_v33  ;;  %v4277_v33 = vrot.slane %v17735_v25, 5  ;;  %v8391_v25 = vld [vmem:[#allocation2 + $0x230] sm:$0xff] }
 0x433   :  { %9491 = vmatmul.mubr.bf16.gmra.mrb[28].mxu1 %v8389_v34  ;;  %15780 = vmatprep.subr.bf16.mxu0 %v22906_v36  ;;  %v4276_v34 = vrot.slane %v17734_v26, 5  ;;  %v22952_v36 = vld [vmem:[%s28314_s1 + $0x2160] ss:$8 sps:$4 sm:$0xff]  }
 0x434   :  { %9530 = vmatpush1.bf16.msra.mxu1 %v22901_v35  ;;  %9533 = vmatprep.mubr.bf16.mxu1 %v8336_v38  ;;  %v8368_v35 = vld [vmem:[#allocation2 + $0x178] sm:$0xff]  ;;  %4437 = vst [vmem:[#allocation2 + $0x758] sm:$0xf0] %v4277_v33  ;;  %v22997_v26 = vld [vmem:[%s28314_s1 + $0x10e0] ss:$8 sps:$4 sm:$0xff]  }
 0x435   :  { %9531 = vmatprep.subr.bf16.mxu1 %v22909_v37  ;;  %14876 = vmatmul.mubr.bf16.gmra.mrb[28].mxu0 %v13663_v39  ;;  %4436 = vst [vmem:[#allocation2 + $0x750] sm:$0xf0] %v4276_v34  ;;  %v22955_v37 = vld [vmem:[%s28314_s1 + $0x1070] ss:$8 sps:$4 sm:$0xff]   ;;  %v22960_v38 = vld [vmem:[%s28314_s1 + $0x2174] ss:$8 sps:$4 sm:$0xff]  }
 0x436   :  { %15781 = vmatpush1.bf16.msra.mxu0 %v22904_v40  ;;  %15784 = vmatprep.mubr.bf16.mxu0 %v14920_v58  ;;  %v14952_v39 = vld [vmem:[#allocation2 + $0x688] sm:$0xff]  ;;  %v23003_v33 = vld [vmem:[%s28314_s1 + $0x10f0] ss:$8 sps:$4 sm:$0xff]   ;;  %v23008_v34 = vld [vmem:[%s28314_s1 + $0x21f4] ss:$8 sps:$4 sm:$0xff]  }
 0x437   :  { %15782 = vmatprep.subr.bf16.mxu0 %v22912_v42  ;;  %v22963_v40 = vld [vmem:[%s28314_s1 + $0x1084] ss:$8 sps:$4 sm:$0xff]   ;;  %v8367_v42 = vld [vmem:[#allocation2 + $0x170] sm:$0xff]  ;;  %v22961_v58 = vld [vmem:[%s28314_s1 + $0x1080] ss:$8 sps:$4 sm:$0xff]  }
 0x438   :  { %9532 = vmatpush1.bf16.msra.mxu1 %v22907_v41  ;;  %v22958_v41 = vld [vmem:[%s28314_s1 + $0x2170] ss:$8 sps:$4 sm:$0xff]  }
 0x439   :  { %10480 = vmatprep.subr.bf16.mxu1 %v22915_v43  ;;  %v22966_v43 = vld [vmem:[%s28314_s1 + $0x2184] ss:$8 sps:$4 sm:$0xff]  }
 0x43a   :  { %15783 = vmatpush1.bf16.msra.mxu0 %v22910_v30  ;;  %v22969_v30 = vld [vmem:[%s28314_s1 + $0x1094] ss:$8 sps:$4 sm:$0xff]  }
 0x43b   :  { %9534 = vmatmul.mubr.bf16.vlgmr.msra.gmra.mrb[0].mxu1 %v8335_v44  ;;  %15865 = vmatprep.subr.bf16.mxu0 %v22918_v46  ;;  %v14951_v44 = vld [vmem:[#allocation2 + $0x680] sm:$0xff] }
 0x43c   :  { %10481 = vmatpush1.bf16.msra.mxu1 %v22913_v45  ;;  %9543 = vmatprep.mubr.bf16.mxu1 %v8344_v49  ;;  %v8376_v45 = vld [vmem:[#allocation2 + $0x1b8] sm:$0xff]  ;;  %v22964_v46 = vld [vmem:[%s28314_s1 + $0x2180] ss:$8 sps:$4 sm:$0xff]  }
 0x43d   :  { %10482 = vmatprep.subr.bf16.mxu1 %v22921_v48  ;;  %15785 = vmatmul.mubr.bf16.vlgmr.msra.gmra.mrb[0].mxu0 %v14919_v47  ;;  %v22967_v47 = vld [vmem:[%s28314_s1 + $0x1090] ss:$8 sps:$4 sm:$0xff]   ;;  %v22972_v48 = vld [vmem:[%s28314_s1 + $0x2194] ss:$8 sps:$4 sm:$0xff]   ;;  %v14960_v49 = vld [vmem:[#allocation2 + $0x6c8] sm:$0xff] }
 0x43e   :  { %15866 = vmatpush1.bf16.msra.mxu0 %v22916_v50  ;;  %15794 = vmatprep.mubr.bf16.mxu0 %v14928_v54  ;;  %v22975_v50 = vld [vmem:[%s28314_s1 + $0x10a4] ss:$8 sps:$4 sm:$0xff]   ;;  %v22973_v54 = vld [vmem:[%s28314_s1 + $0x10a0] ss:$8 sps:$4 sm:$0xff]  }
 0x43f   :  { %15867 = vmatprep.subr.bf16.mxu0 %v22924_v52  ;;  %v8375_v52 = vld [vmem:[#allocation2 + $0x1b0] sm:$0xff] }
 0x440   :  { %10483 = vmatpush1.bf16.msra.mxu1 %v22919_v51  ;;  %v22970_v51 = vld [vmem:[%s28314_s1 + $0x2190] ss:$8 sps:$4 sm:$0xff]  }
 0x441   :  { %10484 = vmatprep.subr.bf16.mxu1 %v22927_v55  ;;  %v22978_v55 = vld [vmem:[%s28314_s1 + $0x21a4] ss:$8 sps:$4 sm:$0xff]  }
 0x442   :  { %15868 = vmatpush1.bf16.msra.mxu0 %v22922_v56  ;;  %v14959_v56 = vld [vmem:[#allocation2 + $0x6c0] sm:$0xff] }
 0x443   :  { %9544 = vmatmul.mubr.bf16.gmra.mrb[4].mxu1 %v8343_v57  ;;  %15869 = vmatprep.subr.bf16.mxu0 %v22930_v60  ;;  %v22981_v57 = vld [vmem:[%s28314_s1 + $0x10b4] ss:$8 sps:$4 sm:$0xff]  }
 0x444   :  { %10485 = vmatpush1.bf16.msra.mxu1 %v22925_v59  ;;  %9553 = vmatprep.mubr.bf16.mxu1 %v8352_v63  ;;  %v22976_v59 = vld [vmem:[%s28314_s1 + $0x21a0] ss:$8 sps:$4 sm:$0xff]   ;;  %v8384_v60 = vld [vmem:[#allocation2 + $0x1f8] sm:$0xff] }
 0x445   :  { %10486 = vmatprep.subr.bf16.mxu1 %v22933_v62  ;;  %15795 = vmatmul.mubr.bf16.gmra.mrb[4].mxu0 %v14927_v61  ;;  %v22979_v61 = vld [vmem:[%s28314_s1 + $0x10b0] ss:$8 sps:$4 sm:$0xff]   ;;  %v22984_v62 = vld [vmem:[%s28314_s1 + $0x21b4] ss:$8 sps:$4 sm:$0xff]   ;;  %v14968_v63 = vld [vmem:[#allocation2 + $0x708] sm:$0xff] }
 0x446   :  { %15870 = vmatpush1.bf16.msra.mxu0 %v22928_v0  ;;  %15804 = vmatprep.mubr.bf16.mxu0 %v14936_v2  ;;  %v22982_v0 = vld [vmem:[%s28314_s1 + $0x21b0] ss:$8 sps:$4 sm:$0xff]   ;;  %v22985_v2 = vld [vmem:[%s28314_s1 + $0x10c0] ss:$8 sps:$4 sm:$0xff]  }
 0x447   :  { %15871 = vmatprep.subr.bf16.mxu0 %v22936_v31  ;;  %v8383_v31 = vld [vmem:[#allocation2 + $0x1f0] sm:$0xff] }
 0x448   :  { %10487 = vmatpush1.bf16.msra.mxu1 %v22931_v1  ;;  %v22987_v1 = vld [vmem:[%s28314_s1 + $0x10c4] ss:$8 sps:$4 sm:$0xff]  }
 0x449   :  { %10488 = vmatprep.subr.bf16.mxu1 %v22939_v3  ;;  %v22990_v3 = vld [vmem:[%s28314_s1 + $0x21c4] ss:$8 sps:$4 sm:$0xff]  }
 0x44a   :  { %15872 = vmatpush1.bf16.msra.mxu0 %v22934_v4  ;;  %v22993_v4 = vld [vmem:[%s28314_s1 + $0x10d4] ss:$8 sps:$4 sm:$0xff]  }
 0x44b   :  { %9554 = vmatmul.mubr.bf16.gmra.mrb[8].mxu1 %v8351_v5  ;;  %15873 = vmatprep.subr.bf16.mxu0 %v22942_v7  ;;  %v3235_v5 = vld [vmem:[%s28315_s0 + $0x250] sm:$0xee] }
 0x44c   :  { %10489 = vmatpush1.bf16.msra.mxu1 %v22937_v6  ;;  %9563 = vmatprep.mubr.bf16.mxu1 %v8360_v12  ;;  %v3239_v6 = vld [vmem:[%s28315_s0 + $0x270] sm:$0x11]  ;;  %v17654_v7 = vld [vmem:[%s28315_s0 + $0x4d0] sm:$0xee] }
 0x44d   :  { %10490 = vmatprep.subr.bf16.mxu1 %v22945_v11  ;;  %15805 = vmatmul.mubr.bf16.gmra.mrb[8].mxu0 %v14935_v8  ;;  %v17577_v8 = vcombine.high %v3235_v5, %v3239_v6  ;;  %v8392_v11 = vld [vmem:[#allocation2 + $0x238] sm:$0xff] }
 0x44e   :  { %15874 = vmatpush1.bf16.msra.mxu0 %v22940_v10  ;;  %15814 = vmatprep.mubr.bf16.mxu0 %v14944_v15  ;;  %v17658_v10 = vld [vmem:[%s28315_s0 + $0x4f0] sm:$0x11]  ;;  %v14967_v15 = vld [vmem:[#allocation2 + $0x700] sm:$0xff] }
 0x44f   :  { %15875 = vmatprep.subr.bf16.mxu0 %v22948_v14  ;;  %v17737_v12 = vcombine.high %v17654_v7, %v17658_v10  ;;  %v17736_v14 = vcombine.low %v17654_v7, %v17658_v10  ;;  %v3638_v18 = vrot.slane %v17577_v8, 1  ;;  %v14953_v7 = vld [vmem:[#allocation2 + $0x690] sm:$0xff]  ;;  %v23033_v8 = vld [vmem:[%s28314_s1 + $0x2280] ss:$8 sps:$4 sm:$0xff]  }
 0x450   :  { %10491 = vmatpush1.bf16.msra.mxu1 %v22943_v13  ;;  %v17576_v13 = vcombine.low %v3235_v5, %v3239_v6  ;;  %v23035_v5 = vld [vmem:[%s28314_s1 + $0x2284] ss:$8 sps:$4 sm:$0xff]   ;;  %v23038_v10 = vld [vmem:[%s28314_s1 + $0x2294] ss:$8 sps:$4 sm:$0xff]  }
 0x451   :  { %10492 = vmatprep.subr.bf16.mxu1 %v22951_v16  ;;  %v22988_v16 = vld [vmem:[%s28314_s1 + $0x21c0] ss:$8 sps:$4 sm:$0xff]   ;;  %v4279_v21 = vrot.slane %v17737_v12, 5  ;;  %v4278_v53 = vrot.slane %v17736_v14, 5  ;;  %3799 = vst [vmem:[#allocation2 + $0x768] sm:$0xf] %v3638_v18 }
 0x452   :  { %15876 = vmatpush1.bf16.msra.mxu0 %v22946_v20  ;;  %v14976_v20 = vld [vmem:[#allocation2 + $0x748] sm:$0xff]  ;;  %v3637_v22 = vrot.slane %v17576_v13, 1  ;;  %v23036_v12 = vld [vmem:[%s28314_s1 + $0x2290] ss:$8 sps:$4 sm:$0xff]   ;;  %v9687_v13 = vld [vmem:[#allocation2 + $0x400] sm:$0xff] }
 0x453   :  { %9564 = vmatmul.mubr.bf16.gmra.mrb[12].mxu1 %v8359_v23  ;;  %15877 = vmatprep.subr.bf16.mxu0 %v22954_v27  ;;  %v22999_v23 = vld [vmem:[%s28314_s1 + $0x10e4] ss:$8 sps:$4 sm:$0xff]   ;;  %4439 = vst [vmem:[#allocation2 + $0x768] sm:$0xf0] %v4279_v21  ;;  %4438 = vst [vmem:[#allocation2 + $0x760] sm:$0xf0] %v4278_v53 }
 0x454   :  { %10493 = vmatpush1.bf16.msra.mxu1 %v22949_v24  ;;  %9573 = vmatprep.mubr.bf16.mxu1 %v8368_v35  ;;  %3798 = vst [vmem:[#allocation2 + $0x760] sm:$0xf] %v3637_v22  ;;  %v22994_v24 = vld [vmem:[%s28314_s1 + $0x21d0] ss:$8 sps:$4 sm:$0xff]   ;;  %v23002_v27 = vld [vmem:[%s28314_s1 + $0x21e4] ss:$8 sps:$4 sm:$0xff]  }
 0x455   :  { %10494 = vmatprep.subr.bf16.mxu1 %v22957_v9  ;;  %15815 = vmatmul.mubr.bf16.gmra.mrb[12].mxu0 %v14943_v32  ;;  %v14975_v32 = vld [vmem:[#allocation2 + $0x740] sm:$0xff]  ;;  %v14922_v35 = vld [vmem:[#allocation2 + $0x598] sm:$0xff]  ;;  %v9688_v6 = vld [vmem:[#allocation2 + $0x408] sm:$0xff] }
 0x456   :  { %15878 = vmatpush1.bf16.msra.mxu0 %v22952_v36  ;;  %15824 = vmatprep.mubr.bf16.mxu0 %v14952_v39  ;;  %v23000_v9 = vld [vmem:[%s28314_s1 + $0x21e0] ss:$8 sps:$4 sm:$0xff]   ;;  %v23006_v36 = vld [vmem:[%s28314_s1 + $0x21f0] ss:$8 sps:$4 sm:$0xff]   ;;  %v23041_v14 = vld [vmem:[%s28314_s1 + $0x22a4] ss:$8 sps:$4 sm:$0xff]  }
 0x457   :  { %15879 = vmatprep.subr.bf16.mxu0 %v22960_v38  ;;  %v23011_v38 = vld [vmem:[%s28314_s1 + $0x2204] ss:$8 sps:$4 sm:$0xff]   ;;  %v23044_v18 = vld [vmem:[%s28314_s1 + $0x22b4] ss:$8 sps:$4 sm:$0xff]  }
 0x458   :  { %10495 = vmatpush1.bf16.msra.mxu1 %v22955_v37  ;;  %v9647_v37 = vld [vmem:[#allocation2 + $0x2c0] sm:$0xff]  ;;  %v9656_v39 = vld [vmem:[#allocation2 + $0x308] sm:$0xff]  ;;  %v3236_v53 = vld [vmem:[%s28315_s0 + $0x258] sm:$0xee] }
 0x459   :  { %10496 = vmatprep.subr.bf16.mxu1 %v22963_v40  ;;  %v14921_v40 = vld [vmem:[#allocation2 + $0x590] sm:$0xff]  ;;  %v9695_v21 = vld [vmem:[#allocation2 + $0x440] sm:$0xff] }
 0x45a   :  { %15880 = vmatpush1.bf16.msra.mxu0 %v22958_v41  ;;  %v23009_v41 = vld [vmem:[%s28314_s1 + $0x2200] ss:$8 sps:$4 sm:$0xff]   ;;  %v23047_v22 = vld [vmem:[%s28314_s1 + $0x22c4] ss:$8 sps:$4 sm:$0xff]  }
 0x45b   :  { %9574 = vmatmul.mubr.bf16.gmra.mrb[16].mxu1 %v8367_v42  ;;  %15881 = vmatprep.subr.bf16.mxu0 %v22966_v43  ;;  %v23014_v42 = vld [vmem:[%s28314_s1 + $0x2214] ss:$8 sps:$4 sm:$0xff]   ;;  %v23012_v43 = vld [vmem:[%s28314_s1 + $0x2210] ss:$8 sps:$4 sm:$0xff]  }
 0x45c   :  { %10497 = vmatpush1.bf16.msra.mxu1 %v22961_v58  ;;  %9583 = vmatprep.mubr.bf16.mxu1 %v8376_v45  ;;  %v14930_v58 = vld [vmem:[#allocation2 + $0x5d8] sm:$0xff]  ;;  %v9664_v45 = vld [vmem:[#allocation2 + $0x348] sm:$0xff] }
 0x45d   :  { %10498 = vmatprep.subr.bf16.mxu1 %v22969_v30  ;;  %15825 = vmatmul.mubr.bf16.gmra.mrb[16].mxu0 %v14951_v44  ;;  %v9655_v30 = vld [vmem:[#allocation2 + $0x300] sm:$0xff] }
 0x45e   :  { %15882 = vmatpush1.bf16.msra.mxu0 %v22964_v46  ;;  %15834 = vmatprep.mubr.bf16.mxu0 %v14960_v49  ;;  %v23017_v44 = vld [vmem:[%s28314_s1 + $0x2224] ss:$8 sps:$4 sm:$0xff]   ;;  %v14929_v46 = vld [vmem:[#allocation2 + $0x5d0] sm:$0xff]  ;;  %v14938_v49 = vld [vmem:[#allocation2 + $0x618] sm:$0xff] }
 0x45f   :  { %15883 = vmatprep.subr.bf16.mxu0 %v22972_v48  ;;  %v23020_v48 = vld [vmem:[%s28314_s1 + $0x2234] ss:$8 sps:$4 sm:$0xff]  }
 0x460   :  { %10499 = vmatpush1.bf16.msra.mxu1 %v22967_v47  ;;  %v23015_v47 = vld [vmem:[%s28314_s1 + $0x2220] ss:$8 sps:$4 sm:$0xff]  }
 0x461   :  { %10500 = vmatprep.subr.bf16.mxu1 %v22975_v50  ;;  %v23018_v50 = vld [vmem:[%s28314_s1 + $0x2230] ss:$8 sps:$4 sm:$0xff]  }
 0x462   :  { %15884 = vmatpush1.bf16.msra.mxu0 %v22970_v51  ;;  %v9663_v51 = vld [vmem:[#allocation2 + $0x340] sm:$0xff] }
 0x463   :  { %9584 = vmatmul.mubr.bf16.gmra.mrb[20].mxu1 %v8375_v52  ;;  %15885 = vmatprep.subr.bf16.mxu0 %v22978_v55  ;;  %v23023_v52 = vld [vmem:[%s28314_s1 + $0x2244] ss:$8 sps:$4 sm:$0xff]   ;;  %v14937_v55 = vld [vmem:[#allocation2 + $0x610] sm:$0xff] }
 0x464   :  { %10501 = vmatpush1.bf16.msra.mxu1 %v22973_v54  ;;  %9593 = vmatprep.mubr.bf16.mxu1 %v8384_v60  ;;  %v9672_v54 = vld [vmem:[#allocation2 + $0x388] sm:$0xff]  ;;  %v23024_v60 = vld [vmem:[%s28314_s1 + $0x2250] ss:$8 sps:$4 sm:$0xff]  }
 0x465   :  { %10502 = vmatprep.subr.bf16.mxu1 %v22981_v57  ;;  %15835 = vmatmul.mubr.bf16.gmra.mrb[20].mxu0 %v14959_v56  ;;  %v23021_v56 = vld [vmem:[%s28314_s1 + $0x2240] ss:$8 sps:$4 sm:$0xff]   ;;  %v23026_v57 = vld [vmem:[%s28314_s1 + $0x2254] ss:$8 sps:$4 sm:$0xff]  }
 0x466   :  { %15886 = vmatpush1.bf16.msra.mxu0 %v22976_v59  ;;  %15844 = vmatprep.mubr.bf16.mxu0 %v14968_v63  ;;  %v14946_v59 = vld [vmem:[#allocation2 + $0x658] sm:$0xff]  ;;  %v9680_v63 = vld [vmem:[#allocation2 + $0x3c8] sm:$0xff] }
 0x467   :  { %15887 = vmatprep.subr.bf16.mxu0 %v22984_v62  ;;  %v23029_v62 = vld [vmem:[%s28314_s1 + $0x2264] ss:$8 sps:$4 sm:$0xff]  }
 0x468   :  { %10503 = vmatpush1.bf16.msra.mxu1 %v22979_v61  ;;  %v9671_v61 = vld [vmem:[#allocation2 + $0x380] sm:$0xff] }
 0x469   :  { %10504 = vmatprep.subr.bf16.mxu1 %v22987_v1  ;;  %v23027_v1 = vld [vmem:[%s28314_s1 + $0x2260] ss:$8 sps:$4 sm:$0xff]  }
 0x46a   :  { %15888 = vmatpush1.bf16.msra.mxu0 %v22982_v0  ;;  %v14945_v0 = vld [vmem:[#allocation2 + $0x650] sm:$0xff] }
 0x46b   :  { %9594 = vmatmul.mubr.bf16.gmra.mrb[24].mxu1 %v8383_v31  ;;  %15889 = vmatprep.subr.bf16.mxu0 %v22990_v3  ;;  %v23032_v31 = vld [vmem:[%s28314_s1 + $0x2274] ss:$8 sps:$4 sm:$0xff]   ;;  %v23030_v3 = vld [vmem:[%s28314_s1 + $0x2270] ss:$8 sps:$4 sm:$0xff]  }
 0x46c   :  { %10505 = vmatpush1.bf16.msra.mxu1 %v22985_v2  ;;  %9603 = vmatprep.mubr.bf16.mxu1 %v8392_v11  ;;  %v14954_v2 = vld [vmem:[#allocation2 + $0x698] sm:$0xff] }
 0x46d   :  { %10506 = vmatprep.subr.bf16.mxu1 %v22993_v4  ;;  %15845 = vmatmul.mubr.bf16.gmra.mrb[24].mxu0 %v14967_v15  ;;  %v9679_v4 = vld [vmem:[#allocation2 + $0x3c0] sm:$0xff]  ;;  %v14962_v11 = vld [vmem:[#allocation2 + $0x6d8] sm:$0xff]  ;;  %v9696_v15 = vld [vmem:[#allocation2 + $0x448] sm:$0xff] }
 0x46e   :  { %15890 = vmatpush1.bf16.msra.mxu0 %v22988_v16  ;;  %15854 = vmatprep.mubr.bf16.mxu0 %v14976_v20  ;;  %v14961_v16 = vld [vmem:[#allocation2 + $0x6d0] sm:$0xff] }
 0x46f   :  { %15891 = vmatprep.subr.bf16.mxu0 %v22996_v19  ;;  %v14970_v19 = vld [vmem:[#allocation2 + $0x718] sm:$0xff] }
 0x470   :  { %10507 = vmatpush1.bf16.msra.mxu1 %v22991_v17  ;;  %v23039_v17 = vld [vmem:[%s28314_s1 + $0x22a0] ss:$8 sps:$4 sm:$0xff]   ;;  %v23042_v20 = vld [vmem:[%s28314_s1 + $0x22b0] ss:$8 sps:$4 sm:$0xff]  }
 0x471   :  { %10508 = vmatprep.subr.bf16.mxu1 %v22999_v23  ;;  %v3240_v23 = vld [vmem:[%s28315_s0 + $0x278] sm:$0x11] }
 0x472   :  { %15892 = vmatpush1.bf16.msra.mxu0 %v22994_v24  ;;  %v17655_v24 = vld [vmem:[%s28315_s0 + $0x4d8] sm:$0xee] }
 0x473   :  { %9604 = vmatmul.mubr.bf16.gmra.mrb[28].mxu1 %v8391_v25  ;;  %15893 = vmatprep.subr.bf16.mxu0 %v23002_v27  ;;  %v9704_v25 = vld [vmem:[#allocation2 + $0x488] sm:$0xff]  ;;  %v17659_v27 = vld [vmem:[%s28315_s0 + $0x4f8] sm:$0x11] }
 0x474   :  { %10509 = vmatpush1.bf16.msra.mxu1 %v22997_v26  ;;  %10512 = vmatprep.mubr.bf16.mxu1 %v9648_v29  ;;  %v17579_v26 = vcombine.high %v3236_v53, %v3240_v23  ;;  %v17578_v29 = vcombine.low %v3236_v53, %v3240_v23  ;;  %v23098_v53 = vld [vmem:[%s28314_s1 + $0x23d4] ss:$8 sps:$4 sm:$0xff]   ;;  %v14980_v23 = vld [vmem:[#allocation2 + $0x768] sm:$0xff] }
 0x475   :  { %10510 = vmatprep.subr.bf16.mxu1 %v23005_v28  ;;  %15855 = vmatmul.mubr.bf16.gmra.mrb[28].mxu0 %v14975_v32  ;;  %v17739_v28 = vcombine.high %v17655_v24, %v17659_v27  ;;  %v17738_v32 = vcombine.low %v17655_v24, %v17659_v27  ;;  %v23096_v24 = vld [vmem:[%s28314_s1 + $0x23d0] ss:$8 sps:$4 sm:$0xff]   ;;  %v23099_v27 = vld [vmem:[%s28314_s1 + $0x23e0] ss:$8 sps:$4 sm:$0xff]  }
 0x476   :  { %15894 = vmatpush1.bf16.msra.mxu0 %v23000_v9  ;;  %15897 = vmatprep.mubr.bf16.mxu0 %v14922_v35  ;;  %v14969_v9 = vld [vmem:[#allocation2 + $0x710] sm:$0xff] }
 0x477   :  { %15895 = vmatprep.subr.bf16.mxu0 %v23008_v34  ;;  %v3640_v34 = vrot.slane %v17579_v26, 1  ;;  %v23050_v35 = vld [vmem:[%s28314_s1 + $0x22d4] ss:$8 sps:$4 sm:$0xff]   ;;  %v14979_v26 = vld [vmem:[#allocation2 + $0x760] sm:$0xff] }
 0x478   :  { %10511 = vmatpush1.bf16.msra.mxu1 %v23003_v33  ;;  %v23045_v33 = vld [vmem:[%s28314_s1 + $0x22c0] ss:$8 sps:$4 sm:$0xff]  }
 0x479   :  { %3801 = vst [vmem:[#allocation2 + $0x778] sm:$0xf] %v3640_v34  ;;  %v14933_v34 = vld [vmem:[#allocation2 + $0x5f0] sm:$0xff] }
 0x47a   :  { %15896 = vmatpush1.bf16.msra.mxu0 %v23006_v36  ;;  %v14978_v36 = vld [vmem:[#allocation2 + $0x758] sm:$0xff] }
 0x47b   :  { %10513 = vmatmul.mubr.bf16.vlgmr.msra.gmra.mrb[0].mxu1 %v9647_v37  ;;  %15978 = vmatprep.subr.bf16.mxu0 %v23011_v38  ;;  %v4281_v37 = vrot.slane %v17739_v28, 5  ;;  %v3639_v38 = vrot.slane %v17578_v29, 1  ;;  %v23104_v28 = vld [vmem:[%s28314_s1 + $0x23f4] ss:$8 sps:$4 sm:$0xff]  }
 0x47c   :  { %10522 = vmatprep.mubr.bf16.mxu1 %v9656_v39  ;;  %v4280_v39 = vrot.slane %v17738_v32, 5  ;;  %v14926_v29 = vld [vmem:[#allocation2 + $0x5b8] sm:$0xff] }
 0x47d   :  { %15898 = vmatmul.mubr.bf16.vlgmr.msra.gmra.mrb[0].mxu0 %v14921_v40  ;;  %4441 = vst [vmem:[#allocation2 + $0x778] sm:$0xf0] %v4281_v37  ;;  %3800 = vst [vmem:[#allocation2 + $0x770] sm:$0xf] %v3639_v38  ;;  %v23048_v40 = vld [vmem:[%s28314_s1 + $0x22d0] ss:$8 sps:$4 sm:$0xff]  }
 0x47e   :  { %15979 = vmatpush1.bf16.msra.mxu0 %v23009_v41  ;;  %15907 = vmatprep.mubr.bf16.mxu0 %v14930_v58  ;;  %4440 = vst [vmem:[#allocation2 + $0x770] sm:$0xf0] %v4280_v39  ;;  %v9703_v41 = vld [vmem:[#allocation2 + $0x480] sm:$0xff]  ;;  %v14977_v58 = vld [vmem:[#allocation2 + $0x750] sm:$0xff]  ;;  %v14950_v37 = vld [vmem:[#allocation2 + $0x678] sm:$0xff] }
 0x47f   :  { %15980 = vmatprep.subr.bf16.mxu0 %v23014_v42  ;;  %v23053_v42 = vld [vmem:[%s28314_s1 + $0x22e4] ss:$8 sps:$4 sm:$0xff]   ;;  %v23102_v32 = vld [vmem:[%s28314_s1 + $0x23f0] ss:$8 sps:$4 sm:$0xff]  }
 0x480   :  { %v23105_v38 = vld [vmem:[%s28316_s3 + $0x40] sm:$0xff]  }
 0x481   :  { %v23106_v39 = vld [vmem:[%s28316_s3] sm:$0xff]   ;;  %19973 = vmatprep.subr.bf16.mxu1 %v23105_v38 }
 0x482   :  { %15981 = vmatpush1.bf16.msra.mxu0 %v23012_v43  ;;  %v23051_v43 = vld [vmem:[%s28314_s1 + $0x22e0] ss:$8 sps:$4 sm:$0xff]   ;;  %19974 = vmatpush3.bf16.msra.mxu1 %v23106_v39 }
 0x483   :  { %10523 = vmatmul.mubr.bf16.gmra.mrb[4].mxu1 %v9655_v30  ;;  %15982 = vmatprep.subr.bf16.mxu0 %v23017_v44  ;;  %v23056_v30 = vld [vmem:[%s28314_s1 + $0x22f4] ss:$8 sps:$4 sm:$0xff]   ;;  %v14924_v44 = vld [vmem:[#allocation2 + $0x5a8] sm:$0xff] }
 0x484   :  { %10532 = vmatprep.mubr.bf16.mxu1 %v9664_v45  ;;  %v23054_v45 = vld [vmem:[%s28314_s1 + $0x22f0] ss:$8 sps:$4 sm:$0xff]  }
 0x485   :  { %15908 = vmatmul.mubr.bf16.gmra.mrb[4].mxu0 %v14929_v46  ;;  %v23059_v46 = vld [vmem:[%s28314_s1 + $0x2304] ss:$8 sps:$4 sm:$0xff]  }
 0x486   :  { %15983 = vmatpush1.bf16.msra.mxu0 %v23015_v47  ;;  %15917 = vmatprep.mubr.bf16.mxu0 %v14938_v49  ;;  %v14923_v47 = vld [vmem:[#allocation2 + $0x5a0] sm:$0xff]  ;;  %v23062_v49 = vld [vmem:[%s28314_s1 + $0x2314] ss:$8 sps:$4 sm:$0xff]  }
 0x487   :  { %15984 = vmatprep.subr.bf16.mxu0 %v23020_v48  ;;  %v23057_v48 = vld [vmem:[%s28314_s1 + $0x2300] ss:$8 sps:$4 sm:$0xff]  }
 0x48a   :  { %15985 = vmatpush1.bf16.msra.mxu0 %v23018_v50  ;;  %v14932_v50 = vld [vmem:[#allocation2 + $0x5e8] sm:$0xff] }
 0x48b   :  { %10533 = vmatmul.mubr.bf16.gmra.mrb[8].mxu1 %v9663_v51  ;;  %15986 = vmatprep.subr.bf16.mxu0 %v23023_v52  ;;  %v23060_v51 = vld [vmem:[%s28314_s1 + $0x2310] ss:$8 sps:$4 sm:$0xff]   ;;  %v23065_v52 = vld [vmem:[%s28314_s1 + $0x2324] ss:$8 sps:$4 sm:$0xff]  }
 0x48c   :  { %10542 = vmatprep.mubr.bf16.mxu1 %v9672_v54  ;;  %v14931_v54 = vld [vmem:[#allocation2 + $0x5e0] sm:$0xff] }
 0x48d   :  { %15918 = vmatmul.mubr.bf16.gmra.mrb[8].mxu0 %v14937_v55  ;;  %v23063_v55 = vld [vmem:[%s28314_s1 + $0x2320] ss:$8 sps:$4 sm:$0xff]  }
 0x48e   :  { %15987 = vmatpush1.bf16.msra.mxu0 %v23021_v56  ;;  %15927 = vmatprep.mubr.bf16.mxu0 %v14946_v59  ;;  %v23068_v56 = vld [vmem:[%s28314_s1 + $0x2334] ss:$8 sps:$4 sm:$0xff]   ;;  %v23066_v59 = vld [vmem:[%s28314_s1 + $0x2330] ss:$8 sps:$4 sm:$0xff]  }
 0x48f   :  { %15988 = vmatprep.subr.bf16.mxu0 %v23026_v57  ;;  %v14940_v57 = vld [vmem:[#allocation2 + $0x628] sm:$0xff] }
 0x492   :  { %15989 = vmatpush1.bf16.msra.mxu0 %v23024_v60  ;;  %v23071_v60 = vld [vmem:[%s28314_s1 + $0x2344] ss:$8 sps:$4 sm:$0xff]  }
 0x493   :  { %10543 = vmatmul.mubr.bf16.gmra.mrb[12].mxu1 %v9671_v61  ;;  %15990 = vmatprep.subr.bf16.mxu0 %v23029_v62  ;;  %v14939_v61 = vld [vmem:[#allocation2 + $0x620] sm:$0xff] }
 0x494   :  { %10552 = vmatprep.mubr.bf16.mxu1 %v9680_v63  ;;  %v23069_v62 = vld [vmem:[%s28314_s1 + $0x2340] ss:$8 sps:$4 sm:$0xff]   ;;  %v23074_v63 = vld [vmem:[%s28314_s1 + $0x2354] ss:$8 sps:$4 sm:$0xff]  }
 0x495   :  { %15928 = vmatmul.mubr.bf16.gmra.mrb[12].mxu0 %v14945_v0  ;;  %v14948_v0 = vld [vmem:[#allocation2 + $0x668] sm:$0xff] }
 0x496   :  { %15991 = vmatpush1.bf16.msra.mxu0 %v23027_v1  ;;  %15937 = vmatprep.mubr.bf16.mxu0 %v14954_v2  ;;  %v23072_v1 = vld [vmem:[%s28314_s1 + $0x2350] ss:$8 sps:$4 sm:$0xff]   ;;  %v14947_v2 = vld [vmem:[#allocation2 + $0x660] sm:$0xff] }
 0x497   :  { %15992 = vmatprep.subr.bf16.mxu0 %v23032_v31  ;;  %v23077_v31 = vld [vmem:[%s28314_s1 + $0x2364] ss:$8 sps:$4 sm:$0xff]  }
 0x49a   :  { %15993 = vmatpush1.bf16.msra.mxu0 %v23030_v3  ;;  %v23075_v3 = vld [vmem:[%s28314_s1 + $0x2360] ss:$8 sps:$4 sm:$0xff]  }
 0x49b   :  { %10553 = vmatmul.mubr.bf16.gmra.mrb[16].mxu1 %v9679_v4  ;;  %15994 = vmatprep.subr.bf16.mxu0 %v23035_v5  ;;  %v23080_v4 = vld [vmem:[%s28314_s1 + $0x2374] ss:$8 sps:$4 sm:$0xff]   ;;  %v14956_v5 = vld [vmem:[#allocation2 + $0x6a8] sm:$0xff] }
 0x49c   :  { %10562 = vmatprep.mubr.bf16.mxu1 %v9688_v6  ;;  %v23078_v6 = vld [vmem:[%s28314_s1 + $0x2370] ss:$8 sps:$4 sm:$0xff]  }
 0x49d   :  { %15938 = vmatmul.mubr.bf16.gmra.mrb[16].mxu0 %v14953_v7  ;;  %v23083_v7 = vld [vmem:[%s28314_s1 + $0x2384] ss:$8 sps:$4 sm:$0xff]  }
 0x49e   :  { %15995 = vmatpush1.bf16.msra.mxu0 %v23033_v8  ;;  %15947 = vmatprep.mubr.bf16.mxu0 %v14962_v11  ;;  %v14955_v8 = vld [vmem:[#allocation2 + $0x6a0] sm:$0xff]  ;;  %v23086_v11 = vld [vmem:[%s28314_s1 + $0x2394] ss:$8 sps:$4 sm:$0xff]  }
 0x49f   :  { %15996 = vmatprep.subr.bf16.mxu0 %v23038_v10  ;;  %v23081_v10 = vld [vmem:[%s28314_s1 + $0x2380] ss:$8 sps:$4 sm:$0xff]  }
 0x4a2   :  { %15997 = vmatpush1.bf16.msra.mxu0 %v23036_v12  ;;  %v14964_v12 = vld [vmem:[#allocation2 + $0x6e8] sm:$0xff] }
 0x4a3   :  { %10563 = vmatmul.mubr.bf16.gmra.mrb[20].mxu1 %v9687_v13  ;;  %15998 = vmatprep.subr.bf16.mxu0 %v23041_v14  ;;  %v23084_v13 = vld [vmem:[%s28314_s1 + $0x2390] ss:$8 sps:$4 sm:$0xff]   ;;  %v23089_v14 = vld [vmem:[%s28314_s1 + $0x23a4] ss:$8 sps:$4 sm:$0xff]  }
 0x4a4   :  { %10572 = vmatprep.mubr.bf16.mxu1 %v9696_v15  ;;  %v14963_v15 = vld [vmem:[#allocation2 + $0x6e0] sm:$0xff] }
 0x4a5   :  { %15948 = vmatmul.mubr.bf16.gmra.mrb[20].mxu0 %v14961_v16  ;;  %v23087_v16 = vld [vmem:[%s28314_s1 + $0x23a0] ss:$8 sps:$4 sm:$0xff]  }
 0x4a6   :  { %15999 = vmatpush1.bf16.msra.mxu0 %v23039_v17  ;;  %15957 = vmatprep.mubr.bf16.mxu0 %v14970_v19  ;;  %v23092_v17 = vld [vmem:[%s28314_s1 + $0x23b4] ss:$8 sps:$4 sm:$0xff]   ;;  %v23090_v19 = vld [vmem:[%s28314_s1 + $0x23b0] ss:$8 sps:$4 sm:$0xff]  }
 0x4a7   :  { %16000 = vmatprep.subr.bf16.mxu0 %v23044_v18  ;;  %v14972_v18 = vld [vmem:[#allocation2 + $0x728] sm:$0xff] }
 0x4aa   :  { %16001 = vmatpush1.bf16.msra.mxu0 %v23042_v20  ;;  %v23095_v20 = vld [vmem:[%s28314_s1 + $0x23c4] ss:$8 sps:$4 sm:$0xff]  }
 0x4ab   :  { %10573 = vmatmul.mubr.bf16.gmra.mrb[24].mxu1 %v9695_v21  ;;  %16002 = vmatprep.subr.bf16.mxu0 %v23047_v22  ;;  %v14971_v21 = vld [vmem:[#allocation2 + $0x720] sm:$0xff] }
 0x4ac   :  { %10582 = vmatprep.mubr.bf16.mxu1 %v9704_v25  ;;  %v23093_v22 = vld [vmem:[%s28314_s1 + $0x23c0] ss:$8 sps:$4 sm:$0xff]   ;;  %v23101_v25 = vld [vmem:[%s28314_s1 + $0x23e4] ss:$8 sps:$4 sm:$0xff]  }
 0x4ad   :  { %15958 = vmatmul.mubr.bf16.gmra.mrb[24].mxu0 %v14969_v9  ;;  %v14925_v9 = vld [vmem:[#allocation2 + $0x5b0] sm:$0xff] }
 0x4ae   :  { %16003 = vmatpush1.bf16.msra.mxu0 %v23045_v33  ;;  %15967 = vmatprep.mubr.bf16.mxu0 %v14978_v36  ;;  %v14934_v33 = vld [vmem:[#allocation2 + $0x5f8] sm:$0xff]  ;;  %v14941_v36 = vld [vmem:[#allocation2 + $0x630] sm:$0xff] }
 0x4af   :  { %16004 = vmatprep.subr.bf16.mxu0 %v23050_v35  ;;  %v14942_v35 = vld [vmem:[#allocation2 + $0x638] sm:$0xff] }
 0x4b2   :  { %16005 = vmatpush1.bf16.msra.mxu0 %v23048_v40  ;;  %v23107_v40 = vld [vmem:[%s28316_s3 + $0x48] sm:$0xff]  }
 0x4b3   :  { %10583 = vmatmul.mubr.bf16.gmra.mrb[28].mxu1 %v9703_v41  ;;  %16006 = vmatprep.subr.bf16.mxu0 %v23053_v42  ;;  %v23108_v41 = vld [vmem:[%s28316_s3 + $0x8] sm:$0xff]   ;;  %v23109_v42 = vld [vmem:[%s28316_s3 + $0x50] sm:$0xff]  }
 0x4b4   :  { %19975 = vmatprep.subr.bf16.mxu1 %v23107_v40 }
 0x4b5   :  { %15968 = vmatmul.mubr.bf16.gmra.mrb[28].mxu0 %v14977_v58  ;;  %19976 = vmatpush3.bf16.msra.mxu1 %v23108_v41  ;;  %v23110_v58 = vld [vmem:[%s28316_s3 + $0x10] sm:$0xff]  }
 0x4b6   :  { %16007 = vmatpush1.bf16.msra.mxu0 %v23051_v43  ;;  %16010 = vmatprep.mubr.bf16.mxu0 %v14924_v44  ;;  %v23111_v43 = vld [vmem:[%s28316_s3 + $0x58] sm:$0xff]  }
 0x4b7   :  { %16008 = vmatprep.subr.bf16.mxu0 %v23056_v30  ;;  %19977 = vmatprep.subr.bf16.mxu1 %v23109_v42  ;;  %v14949_v30 = vld [vmem:[#allocation2 + $0x670] sm:$0xff]  ;;  %v14958_v44 = vld [vmem:[#allocation2 + $0x6b8] sm:$0xff] }
 0x4b9   :  { %19978 = vmatpush3.bf16.msra.mxu1 %v23110_v58 }
 0x4ba   :  { %16009 = vmatpush1.bf16.msra.mxu0 %v23054_v45  ;;  %v23112_v45 = vld [vmem:[%s28316_s3 + $0x18] sm:$0xff]   ;;  %19979 = vmatprep.subr.bf16.mxu1 %v23111_v43 }
 0x4bb   :  { %16091 = vmatprep.subr.bf16.mxu0 %v23059_v46  ;;  %v23113_v46 = vld [vmem:[%s28316_s3 + $0x60] sm:$0xff]  }
 0x4bd   :  { %16011 = vmatmul.mubr.bf16.vlgmr.msra.gmra.mrb[0].mxu0 %v14923_v47  ;;  %19980 = vmatpush3.bf16.msra.mxu1 %v23112_v45  ;;  %v23114_v47 = vld [vmem:[%s28316_s3 + $0x20] sm:$0xff]  }
 0x4be   :  { %16092 = vmatpush1.bf16.msra.mxu0 %v23057_v48  ;;  %16020 = vmatprep.mubr.bf16.mxu0 %v14932_v50  ;;  %v23115_v48 = vld [vmem:[%s28316_s3 + $0x68] sm:$0xff]   ;;  %v14966_v50 = vld [vmem:[#allocation2 + $0x6f8] sm:$0xff] }
 0x4bf   :  { %16093 = vmatprep.subr.bf16.mxu0 %v23062_v49  ;;  %19981 = vmatprep.subr.bf16.mxu1 %v23113_v46  ;;  %v14957_v49 = vld [vmem:[#allocation2 + $0x6b0] sm:$0xff] }
 0x4c1   :  { %19982 = vmatpush3.bf16.msra.mxu1 %v23114_v47 }
 0x4c2   :  { %16094 = vmatpush1.bf16.msra.mxu0 %v23060_v51  ;;  %v23116_v51 = vld [vmem:[%s28316_s3 + $0x28] sm:$0xff]   ;;  %19983 = vmatprep.subr.bf16.mxu1 %v23115_v48 }
 0x4c3   :  { %16095 = vmatprep.subr.bf16.mxu0 %v23065_v52  ;;  %v23117_v52 = vld [vmem:[%s28316_s3 + $0x70] sm:$0xff]  }
 0x4c5   :  { %16021 = vmatmul.mubr.bf16.gmra.mrb[4].mxu0 %v14931_v54  ;;  %19984 = vmatpush3.bf16.msra.mxu1 %v23116_v51  ;;  %v23118_v54 = vld [vmem:[%s28316_s3 + $0x30] sm:$0xff]  }
 0x4c6   :  { %16096 = vmatpush1.bf16.msra.mxu0 %v23063_v55  ;;  %16030 = vmatprep.mubr.bf16.mxu0 %v14940_v57  ;;  %v14965_v55 = vld [vmem:[#allocation2 + $0x6f0] sm:$0xff] }
 0x4c7   :  { %16097 = vmatprep.subr.bf16.mxu0 %v23068_v56  ;;  %19985 = vmatprep.subr.bf16.mxu1 %v23117_v52  ;;  %v14974_v56 = vld [vmem:[#allocation2 + $0x738] sm:$0xff]  ;;  %v14973_v57 = vld [vmem:[#allocation2 + $0x730] sm:$0xff] }
 0x4c9   :  { %19986 = vmatpush3.bf16.msra.mxu1 %v23118_v54 }
 0x4ca   :  { %16098 = vmatpush1.bf16.msra.mxu0 %v23066_v59  ;;  %v14982_v59 = vld [vmem:[#allocation2 + $0x778] sm:$0xff] }
 0x4cb   :  { %16099 = vmatprep.subr.bf16.mxu0 %v23071_v60  ;;  %v14981_v60 = vld [vmem:[#allocation2 + $0x770] sm:$0xff] }
 0x4cd   :  { %16031 = vmatmul.mubr.bf16.gmra.mrb[8].mxu0 %v14939_v61 }
 0x4ce   :  { %16100 = vmatpush1.bf16.msra.mxu0 %v23069_v62  ;;  %16040 = vmatprep.mubr.bf16.mxu0 %v14948_v0 }
 0x4cf   :  { %16101 = vmatprep.subr.bf16.mxu0 %v23074_v63 }
 0x4d2   :  { %16102 = vmatpush1.bf16.msra.mxu0 %v23072_v1 }
 0x4d3   :  { %16103 = vmatprep.subr.bf16.mxu0 %v23077_v31 }
 0x4d5   :  { %16041 = vmatmul.mubr.bf16.gmra.mrb[12].mxu0 %v14947_v2 }
 0x4d6   :  { %16104 = vmatpush1.bf16.msra.mxu0 %v23075_v3  ;;  %16050 = vmatprep.mubr.bf16.mxu0 %v14956_v5  ;;  %v23119_v3 = vld [vmem:[%s28316_s3 + $0x78] sm:$0xff]  }
 0x4d7   :  { %16105 = vmatprep.subr.bf16.mxu0 %v23080_v4  ;;  %v23120_v5 = vld [vmem:[%s28316_s3 + $0x38] sm:$0xff]   ;;  %19987 = vmatprep.subr.bf16.mxu1 %v23119_v3 }
 0x4d8   :  { %19988 = vmatpush3.bf16.msra.mxu1 %v23120_v5 }
 0x4da   :  { %16106 = vmatpush1.bf16.msra.mxu0 %v23078_v6 }
 0x4db   :  { %16107 = vmatprep.subr.bf16.mxu0 %v23083_v7 }
 0x4dd   :  { %16051 = vmatmul.mubr.bf16.gmra.mrb[16].mxu0 %v14955_v8 }
 0x4de   :  { %16108 = vmatpush1.bf16.msra.mxu0 %v23081_v10  ;;  %16060 = vmatprep.mubr.bf16.mxu0 %v14964_v12 }
 0x4df   :  { %16109 = vmatprep.subr.bf16.mxu0 %v23086_v11 }
 0x4e2   :  { %16110 = vmatpush1.bf16.msra.mxu0 %v23084_v13 }
 0x4e3   :  { %16111 = vmatprep.subr.bf16.mxu0 %v23089_v14 }
 0x4e5   :  { %16061 = vmatmul.mubr.bf16.gmra.mrb[20].mxu0 %v14963_v15 }
 0x4e6   :  { %16112 = vmatpush1.bf16.msra.mxu0 %v23087_v16  ;;  %16070 = vmatprep.mubr.bf16.mxu0 %v14972_v18 }
 0x4e7   :  { %16113 = vmatprep.subr.bf16.mxu0 %v23092_v17 }
 0x4ea   :  { %16114 = vmatpush1.bf16.msra.mxu0 %v23090_v19 }
 0x4eb   :  { %16115 = vmatprep.subr.bf16.mxu0 %v23095_v20 }
 0x4ed   :  { %16071 = vmatmul.mubr.bf16.gmra.mrb[24].mxu0 %v14971_v21 }
 0x4ee   :  { %16116 = vmatpush1.bf16.msra.mxu0 %v23093_v22  ;;  %16080 = vmatprep.mubr.bf16.mxu0 %v14980_v23 }
 0x4ef   :  { %16117 = vmatprep.subr.bf16.mxu0 %v23098_v53 }
 0x4f2   :  { %16118 = vmatpush1.bf16.msra.mxu0 %v23096_v24 }
 0x4f3   :  { %16119 = vmatprep.subr.bf16.mxu0 %v23101_v25 }
 0x4f5   :  { %16081 = vmatmul.mubr.bf16.gmra.mrb[28].mxu0 %v14979_v26 }
 0x4f6   :  { %16120 = vmatpush1.bf16.msra.mxu0 %v23099_v27  ;;  %16123 = vmatprep.mubr.bf16.mxu0 %v14926_v29 }
 0x4f7   :  { %16121 = vmatprep.subr.bf16.mxu0 %v23104_v28 }
 0x4fa   :  { %16122 = vmatpush1.bf16.msra.mxu0 %v23102_v32  ;;  %v23121_v32 = vld [vmem:[%s28317_s5] sm:$0xff]  }
 0x4fb   :  { %20057 = vmatprep.subr.bf16.mxu1 %v23121_v32 }
 0x4fd   :  { %16124 = vmatmul.mubr.bf16.vlgmr.msra.gmra.mrb[0].mxu0 %v14925_v9  ;;  %v16238_v9 = vlaneseq }
 0x4fe   :  { %16133 = vmatprep.mubr.bf16.mxu0 %v14934_v33 }
 0x4ff   :  { %v16239_v33 = vshrl.u32 %v16238_v9, 7 }
 0x505   :  { %16134 = vmatmul.mubr.bf16.gmra.mrb[4].mxu0 %v14933_v34  ;;  %v16240_v34 = vsub.s32 0, %v16239_v33 }
 0x506   :  { %16143 = vmatprep.mubr.bf16.mxu0 %v14942_v35  ;;  %v16236_v35 = vld [vmem:[%s28318_s2] sm:$0x3] }
 0x50d   :  { %16144 = vmatmul.mubr.bf16.gmra.mrb[8].mxu0 %v14941_v36  ;;  %v16244_v36 = vsub.s32 1, %v16239_v33 }
 0x50e   :  { %16153 = vmatprep.mubr.bf16.mxu0 %v14950_v37  ;;  %v28076_v37 = vrot.slane %v16236_v35, %v16240_v34 }
 0x50f   :  { %v28078_v39 = vrot.slane %v16236_v35, %v16244_v36 }
 0x515   :  { %16154 = vmatmul.mubr.bf16.gmra.mrb[12].mxu0 %v14949_v30 }
 0x516   :  { %16163 = vmatprep.mubr.bf16.mxu0 %v14958_v44 }
 0x51d   :  { %16164 = vmatmul.mubr.bf16.gmra.mrb[16].mxu0 %v14957_v49 }
 0x51e   :  { %16173 = vmatprep.mubr.bf16.mxu0 %v14966_v50 }
 0x525   :  { %16174 = vmatmul.mubr.bf16.gmra.mrb[20].mxu0 %v14965_v55 }
 0x526   :  { %16183 = vmatprep.mubr.bf16.mxu0 %v14974_v56 }
 0x52d   :  { %16184 = vmatmul.mubr.bf16.gmra.mrb[24].mxu0 %v14973_v57 }
 0x52e   :  { %16193 = vmatprep.mubr.bf16.mxu0 %v14982_v59 }
 0x535   :  { %16194 = vmatmul.mubr.bf16.gmra.mrb[28].mxu0 %v14981_v60 }
 0x54e   :  { %v10514_v61 = vpop.f32.mrb[0].mxu1 }
 0x54f   :  { %v10516_v62 = vpop.f32.mrb[1].mxu1 }
 0x550   :  { %v10518_v63 = vpop.f32.mrb[2].mxu1 }
 0x551   :  { %v10520_v0 = vpop.f32.mrb[3].mxu1 }
 0x556   :  { %v10524_v1 = vpop.f32.mrb[4].mxu1 }
 0x557   :  { %v10526_v31 = vpop.f32.mrb[5].mxu1 }
 0x558   :  { %v28012_v2 = vpop.f32.mrb[6].mxu1 }
 0x559   :  { %v28017_v4 = vpop.f32.mrb[7].mxu1 }
 0x55e   :  { %v28022_v6 = vpop.f32.mrb[8].mxu1 }
 0x55f   :  { %v28024_v7 = vpop.f32.mrb[9].mxu1 }
 0x560   :  { %v28026_v8 = vpop.f32.mrb[10].mxu1 }
 0x561   :  { %v28028_v10 = vpop.f32.mrb[11].mxu1 }
 0x566   :  { %v28030_v11 = vpop.f32.mrb[12].mxu1 }
 0x567   :  { %v28032_v12 = vpop.f32.mrb[13].mxu1 }
 0x568   :  { %v28034_v13 = vpop.f32.mrb[14].mxu1 }
 0x569   :  { %v28036_v14 = vpop.f32.mrb[15].mxu1 }
 0x56e   :  { %v28038_v15 = vpop.f32.mrb[16].mxu1 }
 0x56f   :  { %v28040_v16 = vpop.f32.mrb[17].mxu1 }
 0x570   :  { %v28042_v17 = vpop.f32.mrb[18].mxu1 }
 0x571   :  { %v28044_v18 = vpop.f32.mrb[19].mxu1 }
 0x576   :  { %v28046_v19 = vpop.f32.mrb[20].mxu1 }
 0x577   :  { %v28048_v20 = vpop.f32.mrb[21].mxu1 }
 0x578   :  { %v28050_v21 = vpop.f32.mrb[22].mxu1 }
 0x579   :  { %v28052_v22 = vpop.f32.mrb[23].mxu1 }
 0x57e   :  { %v28054_v53 = vpop.f32.mrb[24].mxu1 }
 0x57f   :  { %v28056_v23 = vpop.f32.mrb[25].mxu1 }
 0x580   :  { %v28058_v24 = vpop.f32.mrb[26].mxu1 }
 0x581   :  { %v28060_v25 = vpop.f32.mrb[27].mxu1 }
 0x586   :  { %v28062_v26 = vpop.f32.mrb[28].mxu1 }
 0x587   :  { %v28064_v27 = vpop.f32.mrb[29].mxu1 }
 0x588   :  { %v28066_v28 = vpop.f32.mrb[30].mxu1 }
 0x589   :  { %v28068_v29 = vpop.f32.mrb[31].mxu1 }
 0x5d0   :  { %v16125_v38 = vpop.f32.mrb[0].mxu0 }
 0x5d1   :  { %v20097_v40 = vadd.f32 %v16125_v38, %v10514_v61  ;;  %v16127_v41 = vpop.f32.mrb[1].mxu0 }
 0x5d2   :  { %v20098_v42 = vadd.f32 %v16127_v41, %v10516_v62  ;;  %v16129_v58 = vpop.f32.mrb[2].mxu0 }
 0x5d3   :  { %v16248_v43 = vadd.f32 %v20097_v40, %v28076_v37  ;;  %v20099_v30 = vadd.f32 %v16129_v58, %v10518_v63  ;;  %v16131_v44 = vpop.f32.mrb[3].mxu0 }
 0x5d4   :  { %v16249_v45 = vadd.f32 %v20098_v42, %v28078_v39  ;;  %v20100_v46 = vadd.f32 %v16131_v44, %v10520_v0 }
 0x5d5   :  { %v16250_v47 = vadd.f32 %v20099_v30, %v28076_v37  ;;  %v16280_v49 = vmax.f32 %v16248_v43, 0.0 }
 0x5d6   :  { %v16251_v48 = vadd.f32 %v20100_v46, %v28078_v39  ;;  %v16281_v51 = vmax.f32 %v16249_v45, 0.0 }
 0x5d7   :  { %v16282_v50 = vmax.f32 %v16250_v47, 0.0 }
 0x5d8   :  { %v16283_v52 = vmax.f32 %v16251_v48, 0.0  ;;  %v16135_v54 = vpop.f32.mrb[4].mxu0 }
 0x5d9   :  { %v16312_v55 = vpack.c.bf16 %v16282_v50, %v16280_v49  ;;  %v20101_v56 = vadd.f32 %v16135_v54, %v10524_v1  ;;  %v16137_v57 = vpop.f32.mrb[5].mxu0 }
 0x5da   :  { %v20102_v59 = vadd.f32 %v16137_v57, %v10526_v31  ;;  %v16139_v60 = vpop.f32.mrb[6].mxu0  ;;  %v16313_v61 = vpack.c.bf16 %v16283_v52, %v16281_v51 }
 0x5db   :  { %v16252_v62 = vadd.f32 %v20101_v56, %v28076_v37  ;;  %v20103_v63 = vadd.f32 %v16139_v60, %v28012_v2  ;;  %v16141_v0 = vpop.f32.mrb[7].mxu0 }
 0x5dc   :  { %v16253_v3 = vadd.f32 %v20102_v59, %v28078_v39  ;;  %v20104_v5 = vadd.f32 %v16141_v0, %v28017_v4  ;;  %16495 = vmatprep.mubr.bf16.mxu1 %v16313_v61 }
 0x5dd   :  { %v16254_v9 = vadd.f32 %v20103_v63, %v28076_v37  ;;  %16496 = vmatmul.mubr.bf16.vlgmr.msra.gmra.mrb[32].mxu1 %v16312_v55  ;;  %v16284_v1 = vmax.f32 %v16252_v62, 0.0 }
 0x5de   :  { %v16255_v33 = vadd.f32 %v20104_v5, %v28078_v39  ;;  %20058 = vmatpush3.bf16.msra.mxu1 %v23121_v32  ;;  %v16285_v34 = vmax.f32 %v16253_v3, 0.0 }
 0x5df   :  { %v16286_v31 = vmax.f32 %v16254_v9, 0.0 }
 0x5e0   :  { %v16287_v35 = vmax.f32 %v16255_v33, 0.0  ;;  %v16145_v36 = vpop.f32.mrb[8].mxu0 }
 0x5e1   :  { %v20105_v38 = vadd.f32 %v16145_v36, %v28022_v6  ;;  %v16147_v2 = vpop.f32.mrb[9].mxu0  ;;  %v16314_v40 = vpack.c.bf16 %v16286_v31, %v16284_v1 }
 0x5e2   :  { %v20106_v41 = vadd.f32 %v16147_v2, %v28024_v7  ;;  %v16149_v42 = vpop.f32.mrb[10].mxu0  ;;  %v16315_v4 = vpack.c.bf16 %v16287_v35, %v16285_v34 }
 0x5e3   :  { %v16256_v58 = vadd.f32 %v20105_v38, %v28076_v37  ;;  %v20107_v43 = vadd.f32 %v16149_v42, %v28026_v8  ;;  %v16151_v30 = vpop.f32.mrb[11].mxu0 }
 0x5e4   :  { %v16257_v32 = vadd.f32 %v20106_v41, %v28078_v39  ;;  %v20108_v44 = vadd.f32 %v16151_v30, %v28028_v10  ;;  %16503 = vmatprep.mubr.bf16.mxu1 %v16315_v4 }
 0x5e5   :  { %v16258_v45 = vadd.f32 %v20107_v43, %v28076_v37  ;;  %16504 = vmatmul.mubr.bf16.gmra.mrb[36].mxu1 %v16314_v40  ;;  %v16288_v46 = vmax.f32 %v16256_v58, 0.0 }
 0x5e6   :  { %v16259_v6 = vadd.f32 %v20108_v44, %v28078_v39  ;;  %v16289_v7 = vmax.f32 %v16257_v32, 0.0 }
 0x5e7   :  { %v16290_v47 = vmax.f32 %v16258_v45, 0.0 }
 0x5e8   :  { %v16291_v48 = vmax.f32 %v16259_v6, 0.0  ;;  %v16155_v49 = vpop.f32.mrb[12].mxu0 }
 0x5e9   :  { %v20109_v50 = vadd.f32 %v16155_v49, %v28030_v11  ;;  %v16157_v51 = vpop.f32.mrb[13].mxu0  ;;  %v16316_v8 = vpack.c.bf16 %v16290_v47, %v16288_v46 }
 0x5ea   :  { %v20110_v52 = vadd.f32 %v16157_v51, %v28032_v12  ;;  %v16159_v54 = vpop.f32.mrb[14].mxu0  ;;  %v16317_v55 = vpack.c.bf16 %v16291_v48, %v16289_v7 }
 0x5eb   :  { %v16260_v10 = vadd.f32 %v20109_v50, %v28076_v37  ;;  %v20111_v56 = vadd.f32 %v16159_v54, %v28034_v13  ;;  %v16161_v57 = vpop.f32.mrb[15].mxu0 }
 0x5ec   :  { %v16261_v59 = vadd.f32 %v20110_v52, %v28078_v39  ;;  %v20112_v60 = vadd.f32 %v16161_v57, %v28036_v14  ;;  %16511 = vmatprep.mubr.bf16.mxu1 %v16317_v55 }
 0x5ed   :  { %v16262_v61 = vadd.f32 %v20111_v56, %v28076_v37  ;;  %16512 = vmatmul.mubr.bf16.gmra.mrb[40].mxu1 %v16316_v8  ;;  %v16292_v62 = vmax.f32 %v16260_v10, 0.0 }
 0x5ee   :  { %v16263_v11 = vadd.f32 %v20112_v60, %v28078_v39  ;;  %v16293_v12 = vmax.f32 %v16261_v59, 0.0 }
 0x5ef   :  { %v16294_v63 = vmax.f32 %v16262_v61, 0.0 }
 0x5f0   :  { %v16295_v0 = vmax.f32 %v16263_v11, 0.0  ;;  %v16165_v3 = vpop.f32.mrb[16].mxu0 }
 0x5f1   :  { %v20113_v5 = vadd.f32 %v16165_v3, %v28038_v15  ;;  %v16167_v9 = vpop.f32.mrb[17].mxu0  ;;  %v16318_v13 = vpack.c.bf16 %v16294_v63, %v16292_v62 }
 0x5f2   :  { %v20114_v33 = vadd.f32 %v16167_v9, %v28040_v16  ;;  %v16169_v1 = vpop.f32.mrb[18].mxu0  ;;  %v16319_v31 = vpack.c.bf16 %v16295_v0, %v16293_v12 }
 0x5f3   :  { %v16264_v14 = vadd.f32 %v20113_v5, %v28076_v37  ;;  %v20115_v34 = vadd.f32 %v16169_v1, %v28042_v17  ;;  %v16171_v35 = vpop.f32.mrb[19].mxu0 }
 0x5f4   :  { %v16265_v36 = vadd.f32 %v20114_v33, %v28078_v39  ;;  %v20116_v38 = vadd.f32 %v16171_v35, %v28044_v18  ;;  %16519 = vmatprep.mubr.bf16.mxu1 %v16319_v31 }
 0x5f5   :  { %v16266_v2 = vadd.f32 %v20115_v34, %v28076_v37  ;;  %16520 = vmatmul.mubr.bf16.gmra.mrb[44].mxu1 %v16318_v13  ;;  %v16296_v40 = vmax.f32 %v16264_v14, 0.0 }
 0x5f6   :  { %v16267_v15 = vadd.f32 %v20116_v38, %v28078_v39  ;;  %v16297_v16 = vmax.f32 %v16265_v36, 0.0 }
 0x5f7   :  { %v16298_v41 = vmax.f32 %v16266_v2, 0.0 }
 0x5f8   :  { %v16299_v42 = vmax.f32 %v16267_v15, 0.0  ;;  %v16175_v4 = vpop.f32.mrb[20].mxu0 }
 0x5f9   :  { %v20117_v58 = vadd.f32 %v16175_v4, %v28046_v19  ;;  %v16177_v43 = vpop.f32.mrb[21].mxu0  ;;  %v16320_v17 = vpack.c.bf16 %v16298_v41, %v16296_v40 }
 0x5fa   :  { %v20118_v30 = vadd.f32 %v16177_v43, %v28048_v20  ;;  %v16179_v32 = vpop.f32.mrb[22].mxu0  ;;  %v16321_v44 = vpack.c.bf16 %v16299_v42, %v16297_v16 }
 0x5fb   :  { %v16268_v18 = vadd.f32 %v20117_v58, %v28076_v37  ;;  %v20119_v45 = vadd.f32 %v16179_v32, %v28050_v21  ;;  %v16181_v6 = vpop.f32.mrb[23].mxu0 }
 0x5fc   :  { %v16269_v46 = vadd.f32 %v20118_v30, %v28078_v39  ;;  %v20120_v47 = vadd.f32 %v16181_v6, %v28052_v22  ;;  %16527 = vmatprep.mubr.bf16.mxu1 %v16321_v44 }
 0x5fd   :  { %v16270_v7 = vadd.f32 %v20119_v45, %v28076_v37  ;;  %16528 = vmatmul.mubr.bf16.gmra.mrb[48].mxu1 %v16320_v17  ;;  %v16300_v48 = vmax.f32 %v16268_v18, 0.0 }
 0x5fe   :  { %v16271_v19 = vadd.f32 %v20120_v47, %v28078_v39  ;;  %v16301_v20 = vmax.f32 %v16269_v46, 0.0 }
 0x5ff   :  { %v16302_v49 = vmax.f32 %v16270_v7, 0.0 }
 0x600   :  { %v16303_v50 = vmax.f32 %v16271_v19, 0.0  ;;  %v16185_v51 = vpop.f32.mrb[24].mxu0 }
 0x601   :  { %v20121_v8 = vadd.f32 %v16185_v51, %v28054_v53  ;;  %v16187_v52 = vpop.f32.mrb[25].mxu0  ;;  %v16322_v21 = vpack.c.bf16 %v16302_v49, %v16300_v48 }
 0x602   :  { %v20122_v54 = vadd.f32 %v16187_v52, %v28056_v23  ;;  %v16189_v55 = vpop.f32.mrb[26].mxu0  ;;  %v16323_v10 = vpack.c.bf16 %v16303_v50, %v16301_v20 }
 0x603   :  { %v16272_v22 = vadd.f32 %v20121_v8, %v28076_v37  ;;  %v20123_v56 = vadd.f32 %v16189_v55, %v28058_v24  ;;  %v16191_v57 = vpop.f32.mrb[27].mxu0 }
 0x604   :  { %v16273_v59 = vadd.f32 %v20122_v54, %v28078_v39  ;;  %v20124_v60 = vadd.f32 %v16191_v57, %v28060_v25  ;;  %16535 = vmatprep.mubr.bf16.mxu1 %v16323_v10 }
 0x605   :  { %v16274_v61 = vadd.f32 %v20123_v56, %v28076_v37  ;;  %16536 = vmatmul.mubr.bf16.gmra.mrb[52].mxu1 %v16322_v21  ;;  %v16304_v11 = vmax.f32 %v16272_v22, 0.0 }
 0x606   :  { %v16275_v53 = vadd.f32 %v20124_v60, %v28078_v39  ;;  %v16305_v23 = vmax.f32 %v16273_v59, 0.0 }
 0x607   :  { %v16306_v62 = vmax.f32 %v16274_v61, 0.0 }
 0x608   :  { %v16307_v63 = vmax.f32 %v16275_v53, 0.0  ;;  %v16195_v12 = vpop.f32.mrb[28].mxu0 }
 0x609   :  { %v20125_v0 = vadd.f32 %v16195_v12, %v28062_v26  ;;  %v16197_v3 = vpop.f32.mrb[29].mxu0  ;;  %v16324_v24 = vpack.c.bf16 %v16306_v62, %v16304_v11 }
 0x60a   :  { %v20126_v5 = vadd.f32 %v16197_v3, %v28064_v27  ;;  %v16199_v9 = vpop.f32.mrb[30].mxu0  ;;  %v16325_v13 = vpack.c.bf16 %v16307_v63, %v16305_v23 }
 0x60b   :  { %v16276_v25 = vadd.f32 %v20125_v0, %v28076_v37  ;;  %v20127_v33 = vadd.f32 %v16199_v9, %v28066_v28  ;;  %v16201_v1 = vpop.f32.mrb[31].mxu0  ;;  %v23122_v28 = vld [vmem:[%s28317_s5 + $0x8] sm:$0xff]  }
 0x60c   :  { %v16277_v31 = vadd.f32 %v20126_v5, %v28078_v39  ;;  %v20128_v14 = vadd.f32 %v16201_v1, %v28068_v29  ;;  %16543 = vmatprep.mubr.bf16.mxu1 %v16325_v13  ;;  %20059 = vmatprep.subr.bf16.mxu1 %v23122_v28 }
 0x60d   :  { %v16278_v34 = vadd.f32 %v20127_v33, %v28076_v37  ;;  %16544 = vmatmul.mubr.bf16.gmra.mrb[56].mxu1 %v16324_v24  ;;  %v16308_v35 = vmax.f32 %v16276_v25, 0.0  ;;  %v28144_v37 = vld [vmem:[%s28319_s4] ss:$0 sm:$0xff] }
 0x60e   :  { %v16279_v26 = vadd.f32 %v20128_v14, %v28078_v39  ;;  %v16309_v27 = vmax.f32 %v16277_v31, 0.0  ;;  %20060 = vmatpush3.bf16.msra.mxu1 %v23122_v28 }
 0x60f   :  { %v16310_v36 = vmax.f32 %v16278_v34, 0.0 }
 0x610   :  { %v16311_v38 = vmax.f32 %v16279_v26, 0.0 }
 0x611   :  { %v16326_v2 = vpack.c.bf16 %v16310_v36, %v16308_v35 }
 0x612   :  { %v16327_v15 = vpack.c.bf16 %v16311_v38, %v16309_v27 }
 0x614   :  { %16551 = vmatprep.mubr.bf16.mxu1 %v16327_v15 }
 0x615   :  { %16552 = vmatmul.mubr.bf16.gmra.mrb[60].mxu1 %v16326_v2 }
 0x6b0   :  { %v19989_v29 = vpop.f32.mrb[32].mxu1 }
 0x6b1   :  { %v19990_v39 = vpop.f32.mrb[33].mxu1 }
 0x6b2   :  { %v19991_v40 = vadd.f32 %v19990_v39, %v19989_v29  ;;  %v19992_v41 = vpop.f32.mrb[34].mxu1 }
 0x6b3   :  { %v19993_v16 = vpop.f32.mrb[35].mxu1 }
 0x6b4   :  { %v16498_v42 = vadd.f32 %v19991_v40, %v28144_v37  ;;  %v19994_v4 = vadd.f32 %v19993_v16, %v19992_v41 }
 0x6b6   :  { %v16501_v58 = vadd.f32 %v19994_v4, %v28144_v37  ;;  %v16560_v43 = vmax.f32 %v16498_v42, 0.0 }
 0x6b8   :  { %v16561_v17 = vmax.f32 %v16501_v58, 0.0  ;;  %v19995_v30 = vpop.f32.mrb[36].mxu1 }
 0x6b9   :  { %v19996_v32 = vpop.f32.mrb[37].mxu1 }
 0x6ba   :  { %v16576_v44 = vpack.c.bf16 %v16561_v17, %v16560_v43  ;;  %v19997_v18 = vadd.f32 %v19996_v32, %v19995_v30  ;;  %v19998_v45 = vpop.f32.mrb[38].mxu1 }
 0x6bb   :  { %v19999_v6 = vpop.f32.mrb[39].mxu1 }
 0x6bc   :  { %v16506_v46 = vadd.f32 %v19997_v18, %v28144_v37  ;;  %v20000_v47 = vadd.f32 %v19999_v6, %v19998_v45  ;;  %20061 = vmatprep.mubr.msk.bf16.mxu1 %vm16607_vm0, %v16576_v44 }
 0x6be   :  { %v16509_v7 = vadd.f32 %v20000_v47, %v28144_v37  ;;  %v16562_v19 = vmax.f32 %v16506_v46, 0.0 }
 0x6c0   :  { %v16563_v48 = vmax.f32 %v16509_v7, 0.0  ;;  %v20001_v49 = vpop.f32.mrb[40].mxu1 }
 0x6c1   :  { %v20002_v20 = vpop.f32.mrb[41].mxu1 }
 0x6c2   :  { %v16577_v50 = vpack.c.bf16 %v16563_v48, %v16562_v19  ;;  %v20003_v51 = vadd.f32 %v20002_v20, %v20001_v49  ;;  %v20004_v8 = vpop.f32.mrb[42].mxu1 }
 0x6c3   :  { %v20005_v52 = vpop.f32.mrb[43].mxu1 }
 0x6c4   :  { %v16514_v21 = vadd.f32 %v20003_v51, %v28144_v37  ;;  %v20006_v54 = vadd.f32 %v20005_v52, %v20004_v8  ;;  %20062 = vmatmul.mubr.msk.bf16.vlgmr.msra.gmra.mrb[64].mxu1 %vm16607_vm0, %v16577_v50  ;;  %v23123_v8 = vld [vmem:[%s28320_s7] sm:$0xff]   ;;  %v23124_v52 = vld [vmem:[%s28320_s7 + $0x8] sm:$0xff]  }
 0x6c5   :  { %20077 = vmatprep.subr.bf16.mxu1 %v23123_v8 }
 0x6c6   :  { %v16517_v55 = vadd.f32 %v20006_v54, %v28144_v37  ;;  %v16564_v10 = vmax.f32 %v16514_v21, 0.0  ;;  %20078 = vmatpush3.bf16.msra.mxu1 %v23123_v8 }
 0x6c7   :  { %20079 = vmatprep.subr.bf16.mxu1 %v23124_v52 }
 0x6c8   :  { %v16565_v22 = vmax.f32 %v16517_v55, 0.0  ;;  %v20007_v56 = vpop.f32.mrb[44].mxu1 }
 0x6c9   :  { %v20008_v57 = vpop.f32.mrb[45].mxu1 }
 0x6ca   :  { %v16578_v59 = vpack.c.bf16 %v16565_v22, %v16564_v10  ;;  %v20009_v60 = vadd.f32 %v20008_v57, %v20007_v56  ;;  %v20010_v61 = vpop.f32.mrb[46].mxu1  ;;  %20080 = vmatpush3.bf16.msra.mxu1 %v23124_v52 }
 0x6cb   :  { %v20011_v53 = vpop.f32.mrb[47].mxu1 }
 0x6cc   :  { %v16522_v11 = vadd.f32 %v20009_v60, %v28144_v37  ;;  %v20012_v62 = vadd.f32 %v20011_v53, %v20010_v61  ;;  %20065 = vmatprep.mubr.msk.bf16.mxu1 %vm16607_vm0, %v16578_v59 }
 0x6ce   :  { %v16525_v23 = vadd.f32 %v20012_v62, %v28144_v37  ;;  %v16566_v63 = vmax.f32 %v16522_v11, 0.0 }
 0x6d0   :  { %v16567_v12 = vmax.f32 %v16525_v23, 0.0  ;;  %v20013_v0 = vpop.f32.mrb[48].mxu1 }
 0x6d1   :  { %v20014_v3 = vpop.f32.mrb[49].mxu1 }
 0x6d2   :  { %v16579_v24 = vpack.c.bf16 %v16567_v12, %v16566_v63  ;;  %v20015_v5 = vadd.f32 %v20014_v3, %v20013_v0  ;;  %v20016_v9 = vpop.f32.mrb[50].mxu1 }
 0x6d3   :  { %v20017_v13 = vpop.f32.mrb[51].mxu1 }
 0x6d4   :  { %v16530_v25 = vadd.f32 %v20015_v5, %v28144_v37  ;;  %v20018_v33 = vadd.f32 %v20017_v13, %v20016_v9  ;;  %20066 = vmatmul.mubr.msk.bf16.gmra.mrb[68].mxu1 %vm16607_vm0, %v16579_v24 }
 0x6d6   :  { %v16533_v1 = vadd.f32 %v20018_v33, %v28144_v37  ;;  %v16568_v31 = vmax.f32 %v16530_v25, 0.0 }
 0x6d8   :  { %v16569_v14 = vmax.f32 %v16533_v1, 0.0  ;;  %v20019_v34 = vpop.f32.mrb[52].mxu1 }
 0x6d9   :  { %v20020_v26 = vpop.f32.mrb[53].mxu1 }
 0x6da   :  { %v16580_v35 = vpack.c.bf16 %v16569_v14, %v16568_v31  ;;  %v20021_v36 = vadd.f32 %v20020_v26, %v20019_v34  ;;  %v20022_v27 = vpop.f32.mrb[54].mxu1 }
 0x6db   :  { %v20023_v38 = vpop.f32.mrb[55].mxu1 }
 0x6dc   :  { %v16538_v2 = vadd.f32 %v20021_v36, %v28144_v37  ;;  %v20024_v15 = vadd.f32 %v20023_v38, %v20022_v27  ;;  %20069 = vmatprep.mubr.msk.bf16.mxu1 %vm16607_vm0, %v16580_v35 }
 0x6de   :  { %v16541_v28 = vadd.f32 %v20024_v15, %v28144_v37  ;;  %v16570_v29 = vmax.f32 %v16538_v2, 0.0 }
 0x6e0   :  { %v16571_v39 = vmax.f32 %v16541_v28, 0.0  ;;  %v20025_v40 = vpop.f32.mrb[56].mxu1 }
 0x6e1   :  { %v20026_v41 = vpop.f32.mrb[57].mxu1 }
 0x6e2   :  { %v16581_v16 = vpack.c.bf16 %v16571_v39, %v16570_v29  ;;  %v20027_v42 = vadd.f32 %v20026_v41, %v20025_v40  ;;  %v20028_v4 = vpop.f32.mrb[58].mxu1 }
 0x6e3   :  { %v20029_v58 = vpop.f32.mrb[59].mxu1 }
 0x6e4   :  { %v16546_v43 = vadd.f32 %v20027_v42, %v28144_v37  ;;  %v20030_v17 = vadd.f32 %v20029_v58, %v20028_v4  ;;  %20070 = vmatmul.mubr.msk.bf16.gmra.mrb[72].mxu1 %vm16607_vm0, %v16581_v16 }
 0x6e6   :  { %v16549_v30 = vadd.f32 %v20030_v17, %v28144_v37  ;;  %v16572_v32 = vmax.f32 %v16546_v43, 0.0 }
 0x6e8   :  { %v16573_v44 = vmax.f32 %v16549_v30, 0.0  ;;  %v20031_v18 = vpop.f32.mrb[60].mxu1 }
 0x6e9   :  { %v20032_v45 = vpop.f32.mrb[61].mxu1 }
 0x6ea   :  { %v16582_v6 = vpack.c.bf16 %v16573_v44, %v16572_v32  ;;  %v20033_v46 = vadd.f32 %v20032_v45, %v20031_v18  ;;  %v20034_v47 = vpop.f32.mrb[62].mxu1 }
 0x6eb   :  { %v20035_v7 = vpop.f32.mrb[63].mxu1 }
 0x6ec   :  { %v16554_v19 = vadd.f32 %v20033_v46, %v28144_v37  ;;  %v20036_v48 = vadd.f32 %v20035_v7, %v20034_v47  ;;  %20073 = vmatprep.mubr.msk.bf16.mxu1 %vm16607_vm0, %v16582_v6 }
 0x6ee   :  { %v16557_v49 = vadd.f32 %v20036_v48, %v28144_v37  ;;  %v16574_v20 = vmax.f32 %v16554_v19, 0.0  ;;  %v19933_v37 = vld [vmem:[%s28321_s6] ss:$0 sm:$0xff] }
 0x6ef   :  { %v28190_v48 = vld [vmem:[%s28322_s8] ss:$0 sm:$0xff] }
 0x6f0   :  { %v16575_v50 = vmax.f32 %v16557_v49, 0.0 }
 0x6f2   :  { %v16583_v51 = vpack.c.bf16 %v16575_v50, %v16574_v20 }
 0x6f4   :  { %20074 = vmatmul.mubr.msk.bf16.gmra.mrb[76].mxu1 %vm16607_vm0, %v16583_v51 }
 0x797   :  { %v20063_v21 = vpop.f32.mrb[64].mxu1 }
 0x798   :  { %v16675_v54 = vadd.f32 %v20063_v21, %v19933_v37  ;;  %v16666_v55 = vpop.f32.mrb[65].mxu1 }
 0x799   :  { %v16667_v10 = vadd.f32 %v19933_v37, %v16666_v55  ;;  %v20064_v22 = vpop.f32.mrb[66].mxu1 }
 0x79a   :  { %v16678_v56 = vadd.f32 %v20064_v22, %v19933_v37  ;;  %v16669_v57 = vpop.f32.mrb[67].mxu1  ;;  %v16731_v60 = vmax.f32 %v16675_v54, 0.0 }
 0x79b   :  { %v16670_v59 = vadd.f32 %v19933_v37, %v16669_v57  ;;  %v16729_v53 = vmax.f32 %v16667_v10, 0.0 }
 0x79c   :  { %v16732_v61 = vmax.f32 %v16678_v56, 0.0 }
 0x79d   :  { %v16730_v11 = vmax.f32 %v16670_v59, 0.0 }
 0x79e   :  { %v16746_v62 = vpack.c.bf16 %v16732_v61, %v16731_v60 }
 0x79f   :  { %v16745_v23 = vpack.c.bf16 %v16730_v11, %v16729_v53 }
 0x7a1   :  { %20081 = vmatprep.mubr.msk.bf16.mxu1 %vm16607_vm0, %v16745_v23 }
 0x7a2   :  { %20082 = vmatmul.mubr.msk.bf16.vlgmr.msra.gmra.mrb[80].mxu1 %vm16607_vm0, %v16746_v62 }
 0x7a7   :  { %v20067_v63 = vpop.f32.mrb[68].mxu1 }
 0x7a8   :  { %v16691_v12 = vadd.f32 %v20067_v63, %v19933_v37  ;;  %v16682_v0 = vpop.f32.mrb[69].mxu1 }
 0x7a9   :  { %v16683_v3 = vadd.f32 %v19933_v37, %v16682_v0  ;;  %v20068_v24 = vpop.f32.mrb[70].mxu1 }
 0x7aa   :  { %v16694_v5 = vadd.f32 %v20068_v24, %v19933_v37  ;;  %v16685_v9 = vpop.f32.mrb[71].mxu1  ;;  %v16735_v25 = vmax.f32 %v16691_v12, 0.0 }
 0x7ab   :  { %v16686_v13 = vadd.f32 %v19933_v37, %v16685_v9  ;;  %v16733_v1 = vmax.f32 %v16683_v3, 0.0 }
 0x7ac   :  { %v16736_v33 = vmax.f32 %v16694_v5, 0.0 }
 0x7ad   :  { %v16734_v31 = vmax.f32 %v16686_v13, 0.0 }
 0x7ae   :  { %v16748_v14 = vpack.c.bf16 %v16736_v33, %v16735_v25 }
 0x7af   :  { %v16747_v34 = vpack.c.bf16 %v16734_v31, %v16733_v1  ;;  %v28203_v31 = vld [vmem:[%s28323_s9] ss:$0 sm:$0xff] }
 0x7b1   :  { %20085 = vmatprep.mubr.msk.bf16.mxu1 %vm16607_vm0, %v16747_v34  ;;  %v28208_v34 = vld [vmem:[%s28324_s10] ss:$0 sm:$0xff] }
 0x7b2   :  { %20086 = vmatmul.mubr.msk.bf16.gmra.mrb[84].mxu1 %vm16607_vm0, %v16748_v14 }
 0x7b7   :  { %v20071_v26 = vpop.f32.mrb[72].mxu1 }
 0x7b8   :  { %v16707_v35 = vadd.f32 %v20071_v26, %v19933_v37  ;;  %v16698_v36 = vpop.f32.mrb[73].mxu1 }
 0x7b9   :  { %v16699_v27 = vadd.f32 %v19933_v37, %v16698_v36  ;;  %v20072_v38 = vpop.f32.mrb[74].mxu1 }
 0x7ba   :  { %v16710_v2 = vadd.f32 %v20072_v38, %v19933_v37  ;;  %v16701_v15 = vpop.f32.mrb[75].mxu1  ;;  %v16739_v29 = vmax.f32 %v16707_v35, 0.0 }
 0x7bb   :  { %v16702_v28 = vadd.f32 %v19933_v37, %v16701_v15  ;;  %v16737_v40 = vmax.f32 %v16699_v27, 0.0 }
 0x7bc   :  { %v16740_v39 = vmax.f32 %v16710_v2, 0.0 }
 0x7bd   :  { %v16738_v41 = vmax.f32 %v16702_v28, 0.0 }
 0x7be   :  { %v16750_v16 = vpack.c.bf16 %v16740_v39, %v16739_v29 }
 0x7bf   :  { %v16749_v42 = vpack.c.bf16 %v16738_v41, %v16737_v40 }
 0x7c1   :  { %20089 = vmatprep.mubr.msk.bf16.mxu1 %vm16607_vm0, %v16749_v42 }
 0x7c2   :  { %20090 = vmatmul.mubr.msk.bf16.gmra.mrb[88].mxu1 %vm16607_vm0, %v16750_v16 }
 0x7c7   :  { %v20075_v4 = vpop.f32.mrb[76].mxu1 }
 0x7c8   :  { %v16723_v58 = vadd.f32 %v20075_v4, %v19933_v37  ;;  %v16714_v43 = vpop.f32.mrb[77].mxu1 }
 0x7c9   :  { %v16715_v17 = vadd.f32 %v19933_v37, %v16714_v43  ;;  %v20076_v30 = vpop.f32.mrb[78].mxu1 }
 0x7ca   :  { %v16726_v32 = vadd.f32 %v20076_v30, %v19933_v37  ;;  %v16717_v44 = vpop.f32.mrb[79].mxu1  ;;  %v16743_v45 = vmax.f32 %v16723_v58, 0.0 }
 0x7cb   :  { %v16718_v18 = vadd.f32 %v19933_v37, %v16717_v44  ;;  %v16741_v46 = vmax.f32 %v16715_v17, 0.0 }
 0x7cc   :  { %v16744_v6 = vmax.f32 %v16726_v32, 0.0 }
 0x7cd   :  { %v16742_v47 = vmax.f32 %v16718_v18, 0.0 }
 0x7ce   :  { %v16752_v7 = vpack.c.bf16 %v16744_v6, %v16743_v45 }
 0x7cf   :  { %v16751_v19 = vpack.c.bf16 %v16742_v47, %v16741_v46 }
 0x7d1   :  { %20093 = vmatprep.mubr.msk.bf16.mxu1 %vm16607_vm0, %v16751_v19 }
 0x7d2   :  { %20094 = vmatmul.mubr.msk.bf16.gmra.mrb[92].mxu1 %vm16607_vm0, %v16752_v7 }
 0x875   :  { %v20083_v49 = vpop.f32.mrb[80].mxu1 }
 0x876   :  { %v16843_v20 = vadd.f32 %v20083_v49, %v28190_v48  ;;  %v16834_v50 = vpop.f32.mrb[81].mxu1 }
 0x877   :  { %v16835_v51 = vadd.f32 %v28190_v48, %v16834_v50  ;;  %v20084_v8 = vpop.f32.mrb[82].mxu1 }
 0x878   :  { %v19957_v52 = vmul.f32 -1.442695, %v16843_v20  ;;  %v16846_v37 = vadd.f32 %v20084_v8, %v28190_v48  ;;  %v16837_v21 = vpop.f32.mrb[83].mxu1 }
 0x879   :  { %v19955_v54 = vmul.f32 -1.442695, %v16835_v51  ;;  %v16838_v55 = vadd.f32 %v28190_v48, %v16837_v21 }
 0x87a   :  { %23125 = vpow2.f32 %v19957_v52  ;;  %v19958_v10 = vmul.f32 -1.442695, %v16846_v37 }
 0x87b   :  { %23127 = vpow2.f32 %v19955_v54  ;;  %v19956_v22 = vmul.f32 -1.442695, %v16838_v55 }
 0x87c   :  { %23129 = vpow2.f32 %v19958_v10 }
 0x87d   :  { %23131 = vpow2.f32 %v19956_v22 }
 0x884   :  { %v23126_v56 = vpop.eup %23125 }
 0x885   :  { %v23128_v57 = vpop.eup %23127  ;;  %v16947_v59 = vadd.f32 1.0, %v23126_v56  ;;  %v20087_v60 = vpop.f32.mrb[84].mxu1 }
 0x886   :  { %v23130_v61 = vpop.eup %23129  ;;  %v16945_v53 = vadd.f32 1.0, %v23128_v57  ;;  %v16859_v11 = vadd.f32 %v20087_v60, %v28190_v48  ;;  %v16850_v62 = vpop.f32.mrb[85].mxu1 }
 0x887   :  { %v23132_v23 = vpop.eup %23131  ;;  %23133 = vrcp.f32 %v16947_v59  ;;  %v16948_v63 = vadd.f32 1.0, %v23130_v61  ;;  %v16851_v12 = vadd.f32 %v28190_v48, %v16850_v62  ;;  %v20088_v0 = vpop.f32.mrb[86].mxu1 }
 0x888   :  { %23135 = vrcp.f32 %v16945_v53  ;;  %v16946_v3 = vadd.f32 1.0, %v23132_v23  ;;  %v19961_v24 = vmul.f32 -1.442695, %v16859_v11  ;;  %v16862_v5 = vadd.f32 %v20088_v0, %v28190_v48  ;;  %v16853_v9 = vpop.f32.mrb[87].mxu1 }
 0x889   :  { %23137 = vrcp.f32 %v16948_v63  ;;  %v19959_v13 = vmul.f32 -1.442695, %v16851_v12  ;;  %v16854_v25 = vadd.f32 %v28190_v48, %v16853_v9 }
 0x88a   :  { %23139 = vrcp.f32 %v16946_v3  ;;  %v19962_v33 = vmul.f32 -1.442695, %v16862_v5 }
 0x88b   :  { %23141 = vpow2.f32 %v19961_v24  ;;  %v19960_v1 = vmul.f32 -1.442695, %v16854_v25 }
 0x88c   :  { %23143 = vpow2.f32 %v19959_v13 }
 0x88d   :  { %23145 = vpow2.f32 %v19962_v33 }
 0x88e   :  { %23147 = vpow2.f32 %v19960_v1 }
 0x891   :  { %v23134_v14 = vpop.eup %23133 }
 0x892   :  { %v23136_v26 = vpop.eup %23135  ;;  %v17002_v35 = vmul.f32 %v23134_v14, %v28203_v31 }
 0x893   :  { %v23138_v36 = vpop.eup %23137  ;;  %v17000_v27 = vmul.f32 %v23136_v26, %v28203_v31 }
 0x894   :  { %v23140_v38 = vpop.eup %23139  ;;  %v17025_v2 = vadd.f32 %v28208_v34, %v17002_v35  ;;  %v17003_v15 = vmul.f32 %v23138_v36, %v28203_v31 }
 0x895   :  { %v23142_v28 = vpop.eup %23141  ;;  %v17023_v29 = vadd.f32 %v28208_v34, %v17000_v27  ;;  %v17001_v39 = vmul.f32 %v23140_v38, %v28203_v31  ;;  %v20091_v40 = vpop.f32.mrb[88].mxu1 }
 0x896   :  { %v23144_v41 = vpop.eup %23143  ;;  %17042 = vst.msk [vmem:[%s28325_s11 + $0x10] sm:$0xff] %vm17039_vm1, %v17025_v2  ;;  %v17026_v16 = vadd.f32 %v28208_v34, %v17003_v15  ;;  %v16951_v42 = vadd.f32 1.0, %v23142_v28  ;;  %v16875_v4 = vadd.f32 %v20091_v40, %v28190_v48  ;;  %v16866_v58 = vpop.f32.mrb[89].mxu1 }
 0x897   :  { %v23146_v43 = vpop.eup %23145  ;;  %17040 = vst.msk [vmem:[%s28325_s11] sm:$0xff] %vm17039_vm1, %v17023_v29  ;;  %v17024_v17 = vadd.f32 %v28208_v34, %v17001_v39  ;;  %v16949_v30 = vadd.f32 1.0, %v23144_v41  ;;  %v16867_v32 = vadd.f32 %v28190_v48, %v16866_v58  ;;  %v20092_v44 = vpop.f32.mrb[90].mxu1 }
 0x898   :  { %v23148_v18 = vpop.eup %23147  ;;  %17043 = vst.msk [vmem:[%s28325_s11 + $0x18] sm:$0xff] %vm17039_vm1, %v17026_v16  ;;  %23149 = vrcp.f32 %v16951_v42  ;;  %v16952_v45 = vadd.f32 1.0, %v23146_v43  ;;  %v19965_v6 = vmul.f32 -1.442695, %v16875_v4  ;;  %v16878_v46 = vadd.f32 %v20092_v44, %v28190_v48  ;;  %v16869_v47 = vpop.f32.mrb[91].mxu1 }
 0x899   :  { %17041 = vst.msk [vmem:[%s28325_s11 + $0x8] sm:$0xff] %vm17039_vm1, %v17024_v17  ;;  %23151 = vrcp.f32 %v16949_v30  ;;  %v16950_v7 = vadd.f32 1.0, %v23148_v18  ;;  %v19963_v19 = vmul.f32 -1.442695, %v16867_v32  ;;  %v16870_v49 = vadd.f32 %v28190_v48, %v16869_v47 }
 0x89a   :  { %23153 = vrcp.f32 %v16952_v45  ;;  %v19966_v20 = vmul.f32 -1.442695, %v16878_v46 }
 0x89b   :  { %23155 = vrcp.f32 %v16950_v7  ;;  %v19964_v50 = vmul.f32 -1.442695, %v16870_v49 }
 0x89c   :  { %23157 = vpow2.f32 %v19965_v6 }
 0x89d   :  { %23159 = vpow2.f32 %v19963_v19 }
 0x89e   :  { %23161 = vpow2.f32 %v19966_v20 }
 0x89f   :  { %23163 = vpow2.f32 %v19964_v50 }
 0x8a2   :  { %v23150_v51 = vpop.eup %23149 }
 0x8a3   :  { %v23152_v8 = vpop.eup %23151  ;;  %v17006_v52 = vmul.f32 %v23150_v51, %v28203_v31 }
 0x8a4   :  { %v23154_v37 = vpop.eup %23153  ;;  %v17004_v21 = vmul.f32 %v23152_v8, %v28203_v31 }
 0x8a5   :  { %v23156_v54 = vpop.eup %23155  ;;  %v17029_v55 = vadd.f32 %v28208_v34, %v17006_v52  ;;  %v17007_v10 = vmul.f32 %v23154_v37, %v28203_v31  ;;  %v20095_v22 = vpop.f32.mrb[92].mxu1 }
 0x8a6   :  { %v23158_v56 = vpop.eup %23157  ;;  %v17027_v57 = vadd.f32 %v28208_v34, %v17004_v21  ;;  %v17005_v59 = vmul.f32 %v23156_v54, %v28203_v31  ;;  %v16891_v60 = vadd.f32 %v20095_v22, %v28190_v48  ;;  %v16882_v61 = vpop.f32.mrb[93].mxu1 }
 0x8a7   :  { %v23160_v53 = vpop.eup %23159  ;;  %17046 = vst.msk [vmem:[%s28325_s11 + $0x30] sm:$0xff] %vm17039_vm1, %v17029_v55  ;;  %v17030_v11 = vadd.f32 %v28208_v34, %v17007_v10  ;;  %v16955_v62 = vadd.f32 1.0, %v23158_v56  ;;  %v16883_v23 = vadd.f32 %v28190_v48, %v16882_v61  ;;  %v20096_v63 = vpop.f32.mrb[94].mxu1 }
 0x8a8   :  { %v23162_v12 = vpop.eup %23161  ;;  %17044 = vst.msk [vmem:[%s28325_s11 + $0x20] sm:$0xff] %vm17039_vm1, %v17027_v57  ;;  %v17028_v0 = vadd.f32 %v28208_v34, %v17005_v59  ;;  %v16953_v3 = vadd.f32 1.0, %v23160_v53  ;;  %v16894_v24 = vadd.f32 %v20096_v63, %v28190_v48  ;;  %v16885_v5 = vpop.f32.mrb[95].mxu1  ;;  %v19969_v25 = vmul.f32 -1.442695, %v16891_v60 }
 0x8a9   :  { %v23164_v9 = vpop.eup %23163  ;;  %17047 = vst.msk [vmem:[%s28325_s11 + $0x38] sm:$0xff] %vm17039_vm1, %v17030_v11  ;;  %23165 = vrcp.f32 %v16955_v62  ;;  %v16956_v13 = vadd.f32 1.0, %v23162_v12  ;;  %v16886_v33 = vadd.f32 %v28190_v48, %v16885_v5  ;;  %v19967_v14 = vmul.f32 -1.442695, %v16883_v23 }
 0x8aa   :  { %17045 = vst.msk [vmem:[%s28325_s11 + $0x28] sm:$0xff] %vm17039_vm1, %v17028_v0  ;;  %23167 = vrcp.f32 %v16953_v3  ;;  %v16954_v1 = vadd.f32 1.0, %v23164_v9  ;;  %v19970_v26 = vmul.f32 -1.442695, %v16894_v24 }
 0x8ab   :  { %23169 = vrcp.f32 %v16956_v13  ;;  %v19968_v35 = vmul.f32 -1.442695, %v16886_v33 }
 0x8ac   :  { %23171 = vrcp.f32 %v16954_v1 }
 0x8ad   :  { %23173 = vpow2.f32 %v19969_v25 }
 0x8ae   :  { %23175 = vpow2.f32 %v19967_v14 }
 0x8af   :  { %23177 = vpow2.f32 %v19970_v26 }
 0x8b0   :  { %23179 = vpow2.f32 %v19968_v35 }
 0x8b3   :  { %v23166_v36 = vpop.eup %23165 }
 0x8b4   :  { %v23168_v27 = vpop.eup %23167  ;;  %v17010_v48 = vmul.f32 %v23166_v36, %v28203_v31 }
 0x8b5   :  { %v23170_v38 = vpop.eup %23169  ;;  %v17008_v2 = vmul.f32 %v23168_v27, %v28203_v31 }
 0x8b6   :  { %v23172_v15 = vpop.eup %23171  ;;  %v17033_v28 = vadd.f32 %v28208_v34, %v17010_v48  ;;  %v17011_v29 = vmul.f32 %v23170_v38, %v28203_v31 }
 0x8b7   :  { %v23174_v39 = vpop.eup %23173  ;;  %v17031_v40 = vadd.f32 %v28208_v34, %v17008_v2  ;;  %v17009_v41 = vmul.f32 %v23172_v15, %v28203_v31 }
 0x8b8   :  { %v23176_v16 = vpop.eup %23175  ;;  %17050 = vst.msk [vmem:[%s28325_s11 + $0x50] sm:$0xff] %vm17039_vm1, %v17033_v28  ;;  %v17034_v42 = vadd.f32 %v28208_v34, %v17011_v29  ;;  %v16959_v4 = vadd.f32 1.0, %v23174_v39 }
 0x8b9   :  { %v23178_v58 = vpop.eup %23177  ;;  %17048 = vst.msk [vmem:[%s28325_s11 + $0x40] sm:$0xff] %vm17039_vm1, %v17031_v40  ;;  %v17032_v43 = vadd.f32 %v28208_v34, %v17009_v41  ;;  %v16957_v17 = vadd.f32 1.0, %v23176_v16 }
 0x8ba   :  { %v23180_v30 = vpop.eup %23179  ;;  %17051 = vst.msk [vmem:[%s28325_s11 + $0x58] sm:$0xff] %vm17039_vm1, %v17034_v42  ;;  %23181 = vrcp.f32 %v16959_v4  ;;  %v16960_v32 = vadd.f32 1.0, %v23178_v58 }
 0x8bb   :  { %17049 = vst.msk [vmem:[%s28325_s11 + $0x48] sm:$0xff] %vm17039_vm1, %v17032_v43  ;;  %23183 = vrcp.f32 %v16957_v17  ;;  %v16958_v44 = vadd.f32 1.0, %v23180_v30 }
 0x8bc   :  { %23185 = vrcp.f32 %v16960_v32 }
 0x8bd   :  { %23187 = vrcp.f32 %v16958_v44 }
 0x8c4   :  { %v23182_v18 = vpop.eup %23181 }
 0x8c5   :  { %v23184_v45 = vpop.eup %23183  ;;  %v17014_v6 = vmul.f32 %v23182_v18, %v28203_v31 }
 0x8c6   :  { %v23186_v46 = vpop.eup %23185  ;;  %v17012_v47 = vmul.f32 %v23184_v45, %v28203_v31 }
 0x8c7   :  { %v23188_v7 = vpop.eup %23187  ;;  %v17037_v19 = vadd.f32 %v28208_v34, %v17014_v6  ;;  %v17015_v49 = vmul.f32 %v23186_v46, %v28203_v31 }
 0x8c8   :  { %v17035_v20 = vadd.f32 %v28208_v34, %v17012_v47  ;;  %v17013_v50 = vmul.f32 %v23188_v7, %v28203_v31 }
 0x8c9   :  { %17054 = vst.msk [vmem:[%s28325_s11 + $0x70] sm:$0xff] %vm17039_vm1, %v17037_v19  ;;  %v17038_v51 = vadd.f32 %v28208_v34, %v17015_v49 }
 0x8ca   :  { %17052 = vst.msk [vmem:[%s28325_s11 + $0x60] sm:$0xff] %vm17039_vm1, %v17035_v20  ;;  %v17036_v8 = vadd.f32 %v28208_v34, %v17013_v50 }
 0x8cb   :  { %17055 = vst.msk [vmem:[%s28325_s11 + $0x78] sm:$0xff] %vm17039_vm1, %v17038_v51 }
 0x8cc   :  { %17053 = vst.msk [vmem:[%s28325_s11 + $0x68] sm:$0xff] %vm17039_vm1, %v17036_v8 }

</bundles_post_ra>
